<compile_context>
chip_gen: v7x
topology: tpu7x:2x2x1
jax: 0.10.0
libtpu: 0.0.40
codegen_flags: <defaults>
</compile_context>

<pallas_src>
import functools

import jax
import jax.numpy as jnp
from jax.experimental import pallas as pl
from jax.experimental.pallas import tpu as pltpu


# ----------------------------- in-kernel building blocks -----------------------------

def _layernorm(x, g, b, eps=1e-5):
    mu = jnp.mean(x, axis=-1, keepdims=True)
    var = jnp.mean((x - mu) ** 2, axis=-1, keepdims=True)
    return (x - mu) * jax.lax.rsqrt(var + eps) * g + b


def _linear(x, w, b, act=None):
    y = jnp.dot(x, w, preferred_element_type=jnp.float32) + b
    if act == "tanh":
        y = jnp.tanh(y)
    elif act == "gelu":
        # TODO(synk): PyTorch nn.GELU defaults to the exact erf form; the tanh
        # approximation is used here (erf has no guaranteed Mosaic lowering).
        y = jax.nn.gelu(y, approximate=True)
    return y


def _mha(x, qkv_w, qkv_b, proj_w, proj_b, num_heads):
    P, hidden = x.shape
    dh = hidden // num_heads
    scale = 1.0 / (dh ** 0.5)
    qkv = jnp.dot(x, qkv_w, preferred_element_type=jnp.float32) + qkv_b    # (P, 3*hidden)
    q = qkv[:, :hidden]
    k = qkv[:, hidden:2 * hidden]
    v = qkv[:, 2 * hidden:]
    heads = []
    for hd in range(num_heads):                       # static unroll (tiny shapes)
        sl = slice(hd * dh, (hd + 1) * dh)
        qh, kh, vh = q[:, sl], k[:, sl], v[:, sl]
        s = jnp.dot(qh, kh.T, preferred_element_type=jnp.float32) * scale  # (P, P)
        s = s - jnp.max(s, axis=-1, keepdims=True)
        e = jnp.exp(s)
        p = e / jnp.sum(e, axis=-1, keepdims=True)
        heads.append(jnp.dot(p, vh, preferred_element_type=jnp.float32))
    o = jnp.concatenate(heads, axis=-1)               # (P, hidden)
    return jnp.dot(o, proj_w, preferred_element_type=jnp.float32) + proj_b


def _vit_forward(tokens, vp, num_heads):
    """Pre-LN 3-D ViT on an already-patchified (P, patch_dim) token slab."""
    x = _linear(tokens, vp["pe_w"][...], vp["pe_b"][...]) + vp["pos"][...]
    num_layers = vp["qkv_w"].shape[0]
    for li in range(num_layers):                      # static unroll
        h = _layernorm(x, vp["ln1_g"][li], vp["ln1_b"][li])
        x = x + _mha(h, vp["qkv_w"][li], vp["qkv_b"][li],
                     vp["proj_w"][li], vp["proj_b"][li], num_heads)
        h = _layernorm(x, vp["ln2_g"][li], vp["ln2_b"][li])
        h = _linear(h, vp["fc1_w"][li], vp["fc1_b"][li], act="gelu")
        h = _linear(h, vp["fc2_w"][li], vp["fc2_b"][li])
        x = x + h
    return _layernorm(x, vp["lnf_g"][...], vp["lnf_b"][...])


# ----------------------------- the fused kernel -----------------------------

def _vqae_kernel(treedef, n_weights, num_heads, *refs):
    x_ref = refs[0]
    w_refs = refs[1:1 + n_weights]
    dec_ref, mse_ref, idx_ref = refs[1 + n_weights:]
    p = jax.tree_util.tree_unflatten(treedef, list(w_refs))

    tokens = x_ref[0]                                              # (P, patch_dim)

    # --- encoder ViT + input MLP ---
    enc_f = _vit_forward(tokens, p["vit_enc"], num_heads)          # (P, feature_dim)
    h = _linear(enc_f, p["input_mlp"]["w1"][...], p["input_mlp"]["b1"][...], act="tanh")
    enc_ds = _linear(h, p["input_mlp"]["w2"][...], p["input_mlp"]["b2"][...])   # (P, cd)

    # --- vector quantization (codebook axis n_code stays on lanes) ---
    cb = p["vq_embed"][...]                                        # (n_code, cd)
    n_code = cb.shape[0]
    nrm = jnp.sqrt(jnp.sum(enc_ds * enc_ds, axis=-1, keepdims=True))
    fn = enc_ds / jnp.maximum(nrm, 1e-12)                          # F.normalize(p=2, dim=-1)
    # NOTE: matches reference — the codebook is NOT re-normalized at lookup time.
    sim = jnp.dot(fn, cb.T, preferred_element_type=jnp.float32)    # (P, n_code)
    mx = jnp.max(sim, axis=-1, keepdims=True)
    lane = jax.lax.broadcasted_iota(jnp.int32, sim.shape, 1)
    idx_col = jnp.min(jnp.where(sim == mx, lane, n_code),
                      axis=-1, keepdims=True)                      # (P, 1) argmax
    onehot = (lane == idx_col).astype(jnp.float32)
    quant = jnp.dot(onehot, cb, preferred_element_type=jnp.float32)  # embedding gather

    # lane-dense (1, P) indice output: place idx on a diagonal, reduce over sublanes.
    P = sim.shape[0]
    r_io = jax.lax.broadcasted_iota(jnp.int32, (P, P), 0)
    c_io = jax.lax.broadcasted_iota(jnp.int32, (P, P), 1)
    diag = jnp.where(r_io == c_io, idx_col.astype(jnp.float32), 0.0)
    idx_ref[0] = jnp.sum(diag, axis=0, keepdims=True).astype(jnp.int32)   # (1, P)

    # fused MSE: per-batch sum of squared error (normalized outside the kernel).
    d = quant - enc_ds
    mse_ref[0] = jnp.sum(d * d)[None, None]

    # --- decoder ViT + output MLP ---
    # grad_bridge = enc + (quant - enc).detach(): forward value == quant, and with
    # patch_size=1 the decoder's patchify is exactly this (P, cd) token slab.
    dec_f = _vit_forward(quant, p["vit_dec"], num_heads)           # (P, feature_dim)
    h = _linear(dec_f, p["output_mlp"]["w1"][...], p["output_mlp"]["b1"][...], act="tanh")
    dec_ref[0] = _linear(h, p["output_mlp"]["w2"][...], p["output_mlp"]["b2"][...])


def _const_index_map(nd):
    return lambda b: (0,) * nd


# ----------------------------- parameters / glue -----------------------------

def l2norm(x):
    return x / jnp.maximum(jnp.sqrt(jnp.sum(x * x, axis=-1, keepdims=True)), 1e-12)


def _init_linear(key, fan_in, fan_out, std=0.02):
    w = jax.random.truncated_normal(key, -2.0, 2.0, (fan_in, fan_out), jnp.float32) * std
    b = jnp.zeros((1, fan_out), jnp.float32)
    return w, b


def _init_vit(key, in_ch, img_size, patch_size, num_layers, hidden, mlp_dim):
    npd = img_size // patch_size
    P = npd ** 3
    patch_dim = in_ch * patch_size ** 3
    keys = jax.random.split(key, 2 + num_layers)
    pe_w, pe_b = _init_linear(keys[0], patch_dim, hidden)
    pos = jax.random.normal(keys[1], (P, hidden), jnp.float32) * 0.02

    def one_layer(k):
        lk = jax.random.split(k, 4)
        qkv_w, qkv_b = _init_linear(lk[0], hidden, 3 * hidden)
        proj_w, proj_b = _init_linear(lk[1], hidden, hidden)
        fc1_w, fc1_b = _init_linear(lk[2], hidden, mlp_dim)
        fc2_w, fc2_b = _init_linear(lk[3], mlp_dim, hidden)
        ones = jnp.ones((1, hidden), jnp.float32)
        zeros = jnp.zeros((1, hidden), jnp.float32)
        return dict(qkv_w=qkv_w, qkv_b=qkv_b, proj_w=proj_w, proj_b=proj_b,
                    fc1_w=fc1_w, fc1_b=fc1_b, fc2_w=fc2_w, fc2_b=fc2_b,
                    ln1_g=ones, ln1_b=zeros, ln2_g=ones, ln2_b=zeros)

    layers = [one_layer(keys[2 + l]) for l in range(num_layers)]
    stacked = {k: jnp.stack([lyr[k] for lyr in layers]) for k in layers[0]}
    return dict(pe_w=pe_w, pe_b=pe_b, pos=pos,
                lnf_g=jnp.ones((1, hidden), jnp.float32),
                lnf_b=jnp.zeros((1, hidden), jnp.float32),
                **stacked)


def init_vqae(key, img_size=8, patch_size=4, feature_dim=64, mlp_ratio=4.0,
              num_heads=4, codebook_dim=32, n_code=256, output_dim=64):
    npd = img_size // patch_size
    mlp_dim = int(mlp_ratio * feature_dim)
    keys = jax.random.split(key, 7)
    in1_w, in1_b = _init_linear(keys[0], feature_dim, feature_dim)
    in2_w, in2_b = _init_linear(keys[1], feature_dim, codebook_dim)
    out1_w, out1_b = _init_linear(keys[2], feature_dim, feature_dim)
    out2_w, out2_b = _init_linear(keys[3], feature_dim, output_dim)
    # TODO(synk): the ViT class used by VQ_AE is not given in the reference; a standard
    # pre-LN 3-D ViT (patch embed + MHA + GELU MLP, no cls token, enc depth 2 / dec depth 3)
    # is used as a deterministic stand-in.
    params = {
        "input_mlp": dict(w1=in1_w, b1=in1_b, w2=in2_w, b2=in2_b),
        "output_mlp": dict(w1=out1_w, b1=out1_b, w2=out2_w, b2=out2_b),
        "vit_enc": _init_vit(keys[4], 1, img_size, patch_size, 2, feature_dim, mlp_dim),
        "vit_dec": _init_vit(keys[5], codebook_dim, npd, 1, 3, feature_dim, mlp_dim),
        "vq_embed": l2norm(jax.random.normal(keys[6], (n_code, codebook_dim), jnp.float32)),
    }
    cfg = dict(img_size=img_size, patch_size=patch_size, feature_dim=feature_dim,
               num_heads=num_heads, codebook_dim=codebook_dim, output_dim=output_dim,
               npd=npd, n_code=n_code)
    return params, cfg


def vqae_forward(params, cfg, img):
    B, C = img.shape[0], img.shape[1]
    ps, npd = cfg["patch_size"], cfg["npd"]
    P = npd ** 3
    patch_dim = C * ps ** 3

    # Patchify (pure layout; single tiny XLA transpose outside the kernel).
    x = img.reshape(B, C, npd, ps, npd, ps, npd, ps)
    x = jnp.transpose(x, (0, 2, 4, 6, 1, 3, 5, 7)).reshape(B, P, patch_dim)

    leaves, treedef = jax.tree_util.tree_flatten(params)
    kernel = functools.partial(_vqae_kernel, treedef, len(leaves), cfg["num_heads"])

    in_specs = [pl.BlockSpec((1, P, patch_dim), lambda b: (b, 0, 0))]
    for leaf in leaves:
        in_specs.append(pl.BlockSpec(leaf.shape, _const_index_map(leaf.ndim)))

    out_shape = (
        jax.ShapeDtypeStruct((B, P, cfg["output_dim"]), jnp.float32),   # decode_upsample_f
        jax.ShapeDtypeStruct((B, 1, 1), jnp.float32),                   # per-batch SSE
        jax.ShapeDtypeStruct((B, 1, P), jnp.int32),                     # indices (lane-dense)
    )
    out_specs = (
        pl.BlockSpec((1, P, cfg["output_dim"]), lambda b: (b, 0, 0)),
        pl.BlockSpec((1, 1, 1), lambda b: (b, 0, 0)),
        pl.BlockSpec((1, 1, P), lambda b: (b, 0, 0)),
    )

    dec_up, sse, idx = pl.pallas_call(
        kernel,
        out_shape=out_shape,
        grid=(B,),
        in_specs=in_specs,
        out_specs=out_specs,
        compiler_params=pltpu.CompilerParams(dimension_semantics=("parallel",)),
    )(x, *leaves)

    # nn.MSELoss over (B, cd, npd, npd, npd); permutation-invariant, so flat sum works.
    l = jnp.sum(sse) / (B * P * cfg["codebook_dim"])
    indice = idx.reshape(B, npd, npd, npd)
    # l_encoder2embed / l_embed2encoder share the same forward value (MSE symmetric);
    # .detach() / straight-through only affect gradients (forward-only here).
    return dec_up, l, l, indice


if __name__ == "__main__":
    key = jax.random.PRNGKey(0)
    pkey, xkey = jax.random.split(key)
    params, cfg = init_vqae(pkey)
    S = cfg["img_size"]
    img = jax.random.normal(xkey, (2, 1, S, S, S), jnp.float32)

    fwd = jax.jit(lambda im: vqae_forward(params, cfg, im))
    out = fwd(img)
    jax.block_until_ready(out)

    dec_up, l1, l2, indice = out
    assert dec_up.shape == (2, cfg["npd"] ** 3, cfg["output_dim"])
    assert l1.shape == () and l2.shape == ()
    assert indice.shape == (2, cfg["npd"], cfg["npd"], cfg["npd"]) and indice.dtype == jnp.int32
    assert bool(jnp.isfinite(dec_up).all()) and bool(jnp.isfinite(l1))
    assert bool((indice >= 0).all()) and bool((indice < cfg["n_code"]).all())
    print("KERNEL_OK")
</pallas_src>

<mosaic_0001>
module attributes {stable_mosaic.version = 11 : i64} {
  func.func @_vqae_kernel(%arg0: i32, %arg1: memref<1x8x64xf32, #tpu.memory_space<vmem>>, %arg2: memref<1x64xf32, #tpu.memory_space<vmem>>, %arg3: memref<1x32xf32, #tpu.memory_space<vmem>>, %arg4: memref<64x64xf32, #tpu.memory_space<vmem>>, %arg5: memref<64x32xf32, #tpu.memory_space<vmem>>, %arg6: memref<1x64xf32, #tpu.memory_space<vmem>>, %arg7: memref<1x64xf32, #tpu.memory_space<vmem>>, %arg8: memref<64x64xf32, #tpu.memory_space<vmem>>, %arg9: memref<64x64xf32, #tpu.memory_space<vmem>>, %arg10: memref<3x1x256xf32, #tpu.memory_space<vmem>>, %arg11: memref<3x64x256xf32, #tpu.memory_space<vmem>>, %arg12: memref<3x1x64xf32, #tpu.memory_space<vmem>>, %arg13: memref<3x256x64xf32, #tpu.memory_space<vmem>>, %arg14: memref<3x1x64xf32, #tpu.memory_space<vmem>>, %arg15: memref<3x1x64xf32, #tpu.memory_space<vmem>>, %arg16: memref<3x1x64xf32, #tpu.memory_space<vmem>>, %arg17: memref<3x1x64xf32, #tpu.memory_space<vmem>>, %arg18: memref<1x64xf32, #tpu.memory_space<vmem>>, %arg19: memref<1x64xf32, #tpu.memory_space<vmem>>, %arg20: memref<1x64xf32, #tpu.memory_space<vmem>>, %arg21: memref<32x64xf32, #tpu.memory_space<vmem>>, %arg22: memref<8x64xf32, #tpu.memory_space<vmem>>, %arg23: memref<3x1x64xf32, #tpu.memory_space<vmem>>, %arg24: memref<3x64x64xf32, #tpu.memory_space<vmem>>, %arg25: memref<3x1x192xf32, #tpu.memory_space<vmem>>, %arg26: memref<3x64x192xf32, #tpu.memory_space<vmem>>, %arg27: memref<2x1x256xf32, #tpu.memory_space<vmem>>, %arg28: memref<2x64x256xf32, #tpu.memory_space<vmem>>, %arg29: memref<2x1x64xf32, #tpu.memory_space<vmem>>, %arg30: memref<2x256x64xf32, #tpu.memory_space<vmem>>, %arg31: memref<2x1x64xf32, #tpu.memory_space<vmem>>, %arg32: memref<2x1x64xf32, #tpu.memory_space<vmem>>, %arg33: memref<2x1x64xf32, #tpu.memory_space<vmem>>, %arg34: memref<2x1x64xf32, #tpu.memory_space<vmem>>, %arg35: memref<1x64xf32, #tpu.memory_space<vmem>>, %arg36: memref<1x64xf32, #tpu.memory_space<vmem>>, %arg37: memref<1x64xf32, #tpu.memory_space<vmem>>, %arg38: memref<64x64xf32, #tpu.memory_space<vmem>>, %arg39: memref<8x64xf32, #tpu.memory_space<vmem>>, %arg40: memref<2x1x64xf32, #tpu.memory_space<vmem>>, %arg41: memref<2x64x64xf32, #tpu.memory_space<vmem>>, %arg42: memref<2x1x192xf32, #tpu.memory_space<vmem>>, %arg43: memref<2x64x192xf32, #tpu.memory_space<vmem>>, %arg44: memref<256x32xf32, #tpu.memory_space<vmem>>, %arg45: memref<1x8x64xf32, #tpu.memory_space<vmem>>, %arg46: memref<1x1x1xf32, #tpu.memory_space<vmem>>, %arg47: memref<1x1x8xi32, #tpu.memory_space<vmem>>) attributes {dimension_semantics = [#tpu.dimension_semantics<parallel>], iteration_bounds = array<i64: 2>, scalar_prefetch = 0 : i64, scratch_operands = 0 : i64, tpu.core_type = #tpu.core_type<tc>, window_params = [{transform_indices = @transform_0, window_bounds = array<i64: 1, 8, 64>}, {pipeline_mode = #tpu.pipeline_mode<synchronous>, transform_indices = @transform_1, window_bounds = array<i64: 1, 64>}, {pipeline_mode = #tpu.pipeline_mode<synchronous>, transform_indices = @transform_2, window_bounds = array<i64: 1, 32>}, {pipeline_mode = #tpu.pipeline_mode<synchronous>, transform_indices = @transform_3, window_bounds = array<i64: 64, 64>}, {pipeline_mode = #tpu.pipeline_mode<synchronous>, transform_indices = @transform_4, window_bounds = array<i64: 64, 32>}, {pipeline_mode = #tpu.pipeline_mode<synchronous>, transform_indices = @transform_5, window_bounds = array<i64: 1, 64>}, {pipeline_mode = #tpu.pipeline_mode<synchronous>, transform_indices = @transform_6, window_bounds = array<i64: 1, 64>}, {pipeline_mode = #tpu.pipeline_mode<synchronous>, transform_indices = @transform_7, window_bounds = array<i64: 64, 64>}, {pipeline_mode = #tpu.pipeline_mode<synchronous>, transform_indices = @transform_8, window_bounds = array<i64: 64, 64>}, {pipeline_mode = #tpu.pipeline_mode<synchronous>, transform_indices = @transform_9, window_bounds = array<i64: 3, 1, 256>}, {pipeline_mode = #tpu.pipeline_mode<synchronous>, transform_indices = @transform_10, window_bounds = array<i64: 3, 64, 256>}, {pipeline_mode = #tpu.pipeline_mode<synchronous>, transform_indices = @transform_11, window_bounds = array<i64: 3, 1, 64>}, {pipeline_mode = #tpu.pipeline_mode<synchronous>, transform_indices = @transform_12, window_bounds = array<i64: 3, 256, 64>}, {pipeline_mode = #tpu.pipeline_mode<synchronous>, transform_indices = @transform_13, window_bounds = array<i64: 3, 1, 64>}, {pipeline_mode = #tpu.pipeline_mode<synchronous>, transform_indices = @transform_14, window_bounds = array<i64: 3, 1, 64>}, {pipeline_mode = #tpu.pipeline_mode<synchronous>, transform_indices = @transform_15, window_bounds = array<i64: 3, 1, 64>}, {pipeline_mode = #tpu.pipeline_mode<synchronous>, transform_indices = @transform_16, window_bounds = array<i64: 3, 1, 64>}, {pipeline_mode = #tpu.pipeline_mode<synchronous>, transform_indices = @transform_17, window_bounds = array<i64: 1, 64>}, {pipeline_mode = #tpu.pipeline_mode<synchronous>, transform_indices = @transform_18, window_bounds = array<i64: 1, 64>}, {pipeline_mode = #tpu.pipeline_mode<synchronous>, transform_indices = @transform_19, window_bounds = array<i64: 1, 64>}, {pipeline_mode = #tpu.pipeline_mode<synchronous>, transform_indices = @transform_20, window_bounds = array<i64: 32, 64>}, {pipeline_mode = #tpu.pipeline_mode<synchronous>, transform_indices = @transform_21, window_bounds = array<i64: 8, 64>}, {pipeline_mode = #tpu.pipeline_mode<synchronous>, transform_indices = @transform_22, window_bounds = array<i64: 3, 1, 64>}, {pipeline_mode = #tpu.pipeline_mode<synchronous>, transform_indices = @transform_23, window_bounds = array<i64: 3, 64, 64>}, {pipeline_mode = #tpu.pipeline_mode<synchronous>, transform_indices = @transform_24, window_bounds = array<i64: 3, 1, 192>}, {pipeline_mode = #tpu.pipeline_mode<synchronous>, transform_indices = @transform_25, window_bounds = array<i64: 3, 64, 192>}, {pipeline_mode = #tpu.pipeline_mode<synchronous>, transform_indices = @transform_26, window_bounds = array<i64: 2, 1, 256>}, {pipeline_mode = #tpu.pipeline_mode<synchronous>, transform_indices = @transform_27, window_bounds = array<i64: 2, 64, 256>}, {pipeline_mode = #tpu.pipeline_mode<synchronous>, transform_indices = @transform_28, window_bounds = array<i64: 2, 1, 64>}, {pipeline_mode = #tpu.pipeline_mode<synchronous>, transform_indices = @transform_29, window_bounds = array<i64: 2, 256, 64>}, {pipeline_mode = #tpu.pipeline_mode<synchronous>, transform_indices = @transform_30, window_bounds = array<i64: 2, 1, 64>}, {pipeline_mode = #tpu.pipeline_mode<synchronous>, transform_indices = @transform_31, window_bounds = array<i64: 2, 1, 64>}, {pipeline_mode = #tpu.pipeline_mode<synchronous>, transform_indices = @transform_32, window_bounds = array<i64: 2, 1, 64>}, {pipeline_mode = #tpu.pipeline_mode<synchronous>, transform_indices = @transform_33, window_bounds = array<i64: 2, 1, 64>}, {pipeline_mode = #tpu.pipeline_mode<synchronous>, transform_indices = @transform_34, window_bounds = array<i64: 1, 64>}, {pipeline_mode = #tpu.pipeline_mode<synchronous>, transform_indices = @transform_35, window_bounds = array<i64: 1, 64>}, {pipeline_mode = #tpu.pipeline_mode<synchronous>, transform_indices = @transform_36, window_bounds = array<i64: 1, 64>}, {pipeline_mode = #tpu.pipeline_mode<synchronous>, transform_indices = @transform_37, window_bounds = array<i64: 64, 64>}, {pipeline_mode = #tpu.pipeline_mode<synchronous>, transform_indices = @transform_38, window_bounds = array<i64: 8, 64>}, {pipeline_mode = #tpu.pipeline_mode<synchronous>, transform_indices = @transform_39, window_bounds = array<i64: 2, 1, 64>}, {pipeline_mode = #tpu.pipeline_mode<synchronous>, transform_indices = @transform_40, window_bounds = array<i64: 2, 64, 64>}, {pipeline_mode = #tpu.pipeline_mode<synchronous>, transform_indices = @transform_41, window_bounds = array<i64: 2, 1, 192>}, {pipeline_mode = #tpu.pipeline_mode<synchronous>, transform_indices = @transform_42, window_bounds = array<i64: 2, 64, 192>}, {pipeline_mode = #tpu.pipeline_mode<synchronous>, transform_indices = @transform_43, window_bounds = array<i64: 256, 32>}, {transform_indices = @transform_44, window_bounds = array<i64: 1, 8, 64>}, {transform_indices = @transform_45, window_bounds = array<i64: 1, 1, 1>}, {transform_indices = @transform_46, window_bounds = array<i64: 1, 1, 8>}]} {
    %c0 = arith.constant 0 : index
    %c0_0 = arith.constant 0 : index
    %c0_1 = arith.constant 0 : index
    %0 = vector.load %arg1[%c0, %c0_0, %c0_1] : memref<1x8x64xf32, #tpu.memory_space<vmem>>, vector<1x8x64xf32>
    %1 = vector.shape_cast %0 : vector<1x8x64xf32> to vector<8x64xf32>
    %c0_2 = arith.constant 0 : index
    %c0_3 = arith.constant 0 : index
    %2 = vector.load %arg38[%c0_2, %c0_3] : memref<64x64xf32, #tpu.memory_space<vmem>>, vector<64x64xf32>
    %c0_4 = arith.constant 0 : index
    %c0_5 = arith.constant 0 : index
    %3 = vector.load %arg37[%c0_4, %c0_5] : memref<1x64xf32, #tpu.memory_space<vmem>>, vector<1x64xf32>
    %cst = arith.constant dense<0.000000e+00> : vector<8x64xf32>
    %4 = tpu.matmul %1, %2, %cst {dimension_numbers = #tpu.dot_dimension_numbers<[1], [0], [0], [1], [0, 0, 1, 1], [], []>} : vector<8x64xf32>, vector<64x64xf32>, vector<8x64xf32> -> vector<8x64xf32>
    %5 = vector.broadcast %3 : vector<1x64xf32> to vector<8x64xf32>
    %6 = arith.addf %4, %5 : vector<8x64xf32>
    %c0_6 = arith.constant 0 : index
    %c0_7 = arith.constant 0 : index
    %7 = vector.load %arg39[%c0_6, %c0_7] : memref<8x64xf32, #tpu.memory_space<vmem>>, vector<8x64xf32>
    %8 = arith.addf %6, %7 : vector<8x64xf32>
    %c0_8 = arith.constant 0 : index
    %c0_9 = arith.constant 0 : index
    %c0_10 = arith.constant 0 : index
    %9 = vector.load %arg32[%c0_8, %c0_9, %c0_10] : memref<2x1x64xf32, #tpu.memory_space<vmem>>, vector<1x1x64xf32>
    %10 = vector.shape_cast %9 : vector<1x1x64xf32> to vector<1x64xf32>
    %c0_11 = arith.constant 0 : index
    %c0_12 = arith.constant 0 : index
    %c0_13 = arith.constant 0 : index
    %11 = vector.load %arg31[%c0_11, %c0_12, %c0_13] : memref<2x1x64xf32, #tpu.memory_space<vmem>>, vector<1x1x64xf32>
    %12 = vector.shape_cast %11 : vector<1x1x64xf32> to vector<1x64xf32>
    %cst_14 = arith.constant dense<0.000000e+00> : vector<8xf32>
    %13 = vector.multi_reduction <add>, %8, %cst_14 [1] : vector<8x64xf32> to vector<8xf32>
    %14 = vector.shape_cast %13 : vector<8xf32> to vector<8x1xf32>
    %cst_15 = arith.constant 6.400000e+01 : f32
    %15 = vector.broadcast %cst_15 : f32 to vector<8x1xf32>
    %16 = arith.divf %14, %15 : vector<8x1xf32>
    %17 = vector.broadcast %16 : vector<8x1xf32> to vector<8x64xf32>
    %18 = arith.subf %8, %17 : vector<8x64xf32>
    %19 = arith.mulf %18, %18 : vector<8x64xf32>
    %cst_16 = arith.constant dense<0.000000e+00> : vector<8xf32>
    %20 = vector.multi_reduction <add>, %19, %cst_16 [1] : vector<8x64xf32> to vector<8xf32>
    %21 = vector.shape_cast %20 : vector<8xf32> to vector<8x1xf32>
    %cst_17 = arith.constant 6.400000e+01 : f32
    %22 = vector.broadcast %cst_17 : f32 to vector<8x1xf32>
    %23 = arith.divf %21, %22 : vector<8x1xf32>
    %24 = vector.broadcast %16 : vector<8x1xf32> to vector<8x64xf32>
    %25 = arith.subf %8, %24 : vector<8x64xf32>
    %cst_18 = arith.constant 9.99999974E-6 : f32
    %26 = vector.broadcast %cst_18 : f32 to vector<8x1xf32>
    %27 = arith.addf %23, %26 : vector<8x1xf32>
    %28 = math.rsqrt %27 : vector<8x1xf32>
    %29 = vector.broadcast %28 : vector<8x1xf32> to vector<8x64xf32>
    %30 = arith.mulf %25, %29 : vector<8x64xf32>
    %31 = vector.broadcast %10 : vector<1x64xf32> to vector<8x64xf32>
    %32 = arith.mulf %30, %31 : vector<8x64xf32>
    %33 = vector.broadcast %12 : vector<1x64xf32> to vector<8x64xf32>
    %34 = arith.addf %32, %33 : vector<8x64xf32>
    %c0_19 = arith.constant 0 : index
    %c0_20 = arith.constant 0 : index
    %c0_21 = arith.constant 0 : index
    %35 = vector.load %arg43[%c0_19, %c0_20, %c0_21] : memref<2x64x192xf32, #tpu.memory_space<vmem>>, vector<1x64x192xf32>
    %36 = vector.shape_cast %35 : vector<1x64x192xf32> to vector<64x192xf32>
    %c0_22 = arith.constant 0 : index
    %c0_23 = arith.constant 0 : index
    %c0_24 = arith.constant 0 : index
    %37 = vector.load %arg42[%c0_22, %c0_23, %c0_24] : memref<2x1x192xf32, #tpu.memory_space<vmem>>, vector<1x1x192xf32>
    %38 = vector.shape_cast %37 : vector<1x1x192xf32> to vector<1x192xf32>
    %c0_25 = arith.constant 0 : index
    %c0_26 = arith.constant 0 : index
    %c0_27 = arith.constant 0 : index
    %39 = vector.load %arg41[%c0_25, %c0_26, %c0_27] : memref<2x64x64xf32, #tpu.memory_space<vmem>>, vector<1x64x64xf32>
    %40 = vector.shape_cast %39 : vector<1x64x64xf32> to vector<64x64xf32>
    %c0_28 = arith.constant 0 : index
    %c0_29 = arith.constant 0 : index
    %c0_30 = arith.constant 0 : index
    %41 = vector.load %arg40[%c0_28, %c0_29, %c0_30] : memref<2x1x64xf32, #tpu.memory_space<vmem>>, vector<1x1x64xf32>
    %42 = vector.shape_cast %41 : vector<1x1x64xf32> to vector<1x64xf32>
    %cst_31 = arith.constant dense<0.000000e+00> : vector<8x192xf32>
    %43 = tpu.matmul %34, %36, %cst_31 {dimension_numbers = #tpu.dot_dimension_numbers<[1], [0], [0], [1], [0, 0, 1, 1], [], []>} : vector<8x64xf32>, vector<64x192xf32>, vector<8x192xf32> -> vector<8x192xf32>
    %44 = vector.broadcast %38 : vector<1x192xf32> to vector<8x192xf32>
    %45 = arith.addf %43, %44 : vector<8x192xf32>
    %46 = vector.extract_strided_slice %45 {offsets = [0, 0], sizes = [8, 64], strides = [1, 1]} : vector<8x192xf32> to vector<8x64xf32>
    %47 = vector.extract_strided_slice %45 {offsets = [0, 64], sizes = [8, 64], strides = [1, 1]} : vector<8x192xf32> to vector<8x64xf32>
    %48 = vector.extract_strided_slice %45 {offsets = [0, 128], sizes = [8, 64], strides = [1, 1]} : vector<8x192xf32> to vector<8x64xf32>
    %49 = vector.extract_strided_slice %46 {offsets = [0, 0], sizes = [8, 16], strides = [1, 1]} : vector<8x64xf32> to vector<8x16xf32>
    %50 = vector.extract_strided_slice %47 {offsets = [0, 0], sizes = [8, 16], strides = [1, 1]} : vector<8x64xf32> to vector<8x16xf32>
    %51 = vector.extract_strided_slice %48 {offsets = [0, 0], sizes = [8, 16], strides = [1, 1]} : vector<8x64xf32> to vector<8x16xf32>
    %52 = tpu.transpose %50, [1, 0] : vector<8x16xf32> -> vector<16x8xf32>
    %cst_32 = arith.constant dense<0.000000e+00> : vector<8x8xf32>
    %53 = tpu.matmul %49, %52, %cst_32 {dimension_numbers = #tpu.dot_dimension_numbers<[1], [0], [0], [1], [0, 0, 1, 1], [], []>} : vector<8x16xf32>, vector<16x8xf32>, vector<8x8xf32> -> vector<8x8xf32>
    %cst_33 = arith.constant 2.500000e-01 : f32
    %54 = vector.broadcast %cst_33 : f32 to vector<8x8xf32>
    %55 = arith.mulf %53, %54 : vector<8x8xf32>
    %cst_34 = arith.constant dense<0xFF800000> : vector<8xf32>
    %56 = vector.multi_reduction <maximumf>, %55, %cst_34 [1] : vector<8x8xf32> to vector<8xf32>
    %57 = vector.shape_cast %56 : vector<8xf32> to vector<8x1xf32>
    %58 = vector.broadcast %57 : vector<8x1xf32> to vector<8x8xf32>
    %59 = arith.subf %55, %58 : vector<8x8xf32>
    %60 = math.exp %59 : vector<8x8xf32>
    %cst_35 = arith.constant dense<0.000000e+00> : vector<8xf32>
    %61 = vector.multi_reduction <add>, %60, %cst_35 [1] : vector<8x8xf32> to vector<8xf32>
    %62 = vector.shape_cast %61 : vector<8xf32> to vector<8x1xf32>
    %63 = vector.broadcast %62 : vector<8x1xf32> to vector<8x8xf32>
    %64 = arith.divf %60, %63 : vector<8x8xf32>
    %cst_36 = arith.constant dense<0.000000e+00> : vector<8x16xf32>
    %65 = tpu.matmul %64, %51, %cst_36 {dimension_numbers = #tpu.dot_dimension_numbers<[1], [0], [0], [1], [0, 0, 1, 1], [], []>} : vector<8x8xf32>, vector<8x16xf32>, vector<8x16xf32> -> vector<8x16xf32>
    %66 = vector.extract_strided_slice %46 {offsets = [0, 16], sizes = [8, 16], strides = [1, 1]} : vector<8x64xf32> to vector<8x16xf32>
    %67 = vector.extract_strided_slice %47 {offsets = [0, 16], sizes = [8, 16], strides = [1, 1]} : vector<8x64xf32> to vector<8x16xf32>
    %68 = vector.extract_strided_slice %48 {offsets = [0, 16], sizes = [8, 16], strides = [1, 1]} : vector<8x64xf32> to vector<8x16xf32>
    %69 = tpu.transpose %67, [1, 0] : vector<8x16xf32> -> vector<16x8xf32>
    %cst_37 = arith.constant dense<0.000000e+00> : vector<8x8xf32>
    %70 = tpu.matmul %66, %69, %cst_37 {dimension_numbers = #tpu.dot_dimension_numbers<[1], [0], [0], [1], [0, 0, 1, 1], [], []>} : vector<8x16xf32>, vector<16x8xf32>, vector<8x8xf32> -> vector<8x8xf32>
    %cst_38 = arith.constant 2.500000e-01 : f32
    %71 = vector.broadcast %cst_38 : f32 to vector<8x8xf32>
    %72 = arith.mulf %70, %71 : vector<8x8xf32>
    %cst_39 = arith.constant dense<0xFF800000> : vector<8xf32>
    %73 = vector.multi_reduction <maximumf>, %72, %cst_39 [1] : vector<8x8xf32> to vector<8xf32>
    %74 = vector.shape_cast %73 : vector<8xf32> to vector<8x1xf32>
    %75 = vector.broadcast %74 : vector<8x1xf32> to vector<8x8xf32>
    %76 = arith.subf %72, %75 : vector<8x8xf32>
    %77 = math.exp %76 : vector<8x8xf32>
    %cst_40 = arith.constant dense<0.000000e+00> : vector<8xf32>
    %78 = vector.multi_reduction <add>, %77, %cst_40 [1] : vector<8x8xf32> to vector<8xf32>
    %79 = vector.shape_cast %78 : vector<8xf32> to vector<8x1xf32>
    %80 = vector.broadcast %79 : vector<8x1xf32> to vector<8x8xf32>
    %81 = arith.divf %77, %80 : vector<8x8xf32>
    %cst_41 = arith.constant dense<0.000000e+00> : vector<8x16xf32>
    %82 = tpu.matmul %81, %68, %cst_41 {dimension_numbers = #tpu.dot_dimension_numbers<[1], [0], [0], [1], [0, 0, 1, 1], [], []>} : vector<8x8xf32>, vector<8x16xf32>, vector<8x16xf32> -> vector<8x16xf32>
    %83 = vector.extract_strided_slice %46 {offsets = [0, 32], sizes = [8, 16], strides = [1, 1]} : vector<8x64xf32> to vector<8x16xf32>
    %84 = vector.extract_strided_slice %47 {offsets = [0, 32], sizes = [8, 16], strides = [1, 1]} : vector<8x64xf32> to vector<8x16xf32>
    %85 = vector.extract_strided_slice %48 {offsets = [0, 32], sizes = [8, 16], strides = [1, 1]} : vector<8x64xf32> to vector<8x16xf32>
    %86 = tpu.transpose %84, [1, 0] : vector<8x16xf32> -> vector<16x8xf32>
    %cst_42 = arith.constant dense<0.000000e+00> : vector<8x8xf32>
    %87 = tpu.matmul %83, %86, %cst_42 {dimension_numbers = #tpu.dot_dimension_numbers<[1], [0], [0], [1], [0, 0, 1, 1], [], []>} : vector<8x16xf32>, vector<16x8xf32>, vector<8x8xf32> -> vector<8x8xf32>
    %cst_43 = arith.constant 2.500000e-01 : f32
    %88 = vector.broadcast %cst_43 : f32 to vector<8x8xf32>
    %89 = arith.mulf %87, %88 : vector<8x8xf32>
    %cst_44 = arith.constant dense<0xFF800000> : vector<8xf32>
    %90 = vector.multi_reduction <maximumf>, %89, %cst_44 [1] : vector<8x8xf32> to vector<8xf32>
    %91 = vector.shape_cast %90 : vector<8xf32> to vector<8x1xf32>
    %92 = vector.broadcast %91 : vector<8x1xf32> to vector<8x8xf32>
    %93 = arith.subf %89, %92 : vector<8x8xf32>
    %94 = math.exp %93 : vector<8x8xf32>
    %cst_45 = arith.constant dense<0.000000e+00> : vector<8xf32>
    %95 = vector.multi_reduction <add>, %94, %cst_45 [1] : vector<8x8xf32> to vector<8xf32>
    %96 = vector.shape_cast %95 : vector<8xf32> to vector<8x1xf32>
    %97 = vector.broadcast %96 : vector<8x1xf32> to vector<8x8xf32>
    %98 = arith.divf %94, %97 : vector<8x8xf32>
    %cst_46 = arith.constant dense<0.000000e+00> : vector<8x16xf32>
    %99 = tpu.matmul %98, %85, %cst_46 {dimension_numbers = #tpu.dot_dimension_numbers<[1], [0], [0], [1], [0, 0, 1, 1], [], []>} : vector<8x8xf32>, vector<8x16xf32>, vector<8x16xf32> -> vector<8x16xf32>
    %100 = vector.extract_strided_slice %46 {offsets = [0, 48], sizes = [8, 16], strides = [1, 1]} : vector<8x64xf32> to vector<8x16xf32>
    %101 = vector.extract_strided_slice %47 {offsets = [0, 48], sizes = [8, 16], strides = [1, 1]} : vector<8x64xf32> to vector<8x16xf32>
    %102 = vector.extract_strided_slice %48 {offsets = [0, 48], sizes = [8, 16], strides = [1, 1]} : vector<8x64xf32> to vector<8x16xf32>
    %103 = tpu.transpose %101, [1, 0] : vector<8x16xf32> -> vector<16x8xf32>
    %cst_47 = arith.constant dense<0.000000e+00> : vector<8x8xf32>
    %104 = tpu.matmul %100, %103, %cst_47 {dimension_numbers = #tpu.dot_dimension_numbers<[1], [0], [0], [1], [0, 0, 1, 1], [], []>} : vector<8x16xf32>, vector<16x8xf32>, vector<8x8xf32> -> vector<8x8xf32>
    %cst_48 = arith.constant 2.500000e-01 : f32
    %105 = vector.broadcast %cst_48 : f32 to vector<8x8xf32>
    %106 = arith.mulf %104, %105 : vector<8x8xf32>
    %cst_49 = arith.constant dense<0xFF800000> : vector<8xf32>
    %107 = vector.multi_reduction <maximumf>, %106, %cst_49 [1] : vector<8x8xf32> to vector<8xf32>
    %108 = vector.shape_cast %107 : vector<8xf32> to vector<8x1xf32>
    %109 = vector.broadcast %108 : vector<8x1xf32> to vector<8x8xf32>
    %110 = arith.subf %106, %109 : vector<8x8xf32>
    %111 = math.exp %110 : vector<8x8xf32>
    %cst_50 = arith.constant dense<0.000000e+00> : vector<8xf32>
    %112 = vector.multi_reduction <add>, %111, %cst_50 [1] : vector<8x8xf32> to vector<8xf32>
    %113 = vector.shape_cast %112 : vector<8xf32> to vector<8x1xf32>
    %114 = vector.broadcast %113 : vector<8x1xf32> to vector<8x8xf32>
    %115 = arith.divf %111, %114 : vector<8x8xf32>
    %cst_51 = arith.constant dense<0.000000e+00> : vector<8x16xf32>
    %116 = tpu.matmul %115, %102, %cst_51 {dimension_numbers = #tpu.dot_dimension_numbers<[1], [0], [0], [1], [0, 0, 1, 1], [], []>} : vector<8x8xf32>, vector<8x16xf32>, vector<8x16xf32> -> vector<8x16xf32>
    %117 = tpu.concatenate %65, %82, %99, %116 in 1 : vector<8x16xf32>, vector<8x16xf32>, vector<8x16xf32>, vector<8x16xf32> -> vector<8x64xf32>
    %cst_52 = arith.constant dense<0.000000e+00> : vector<8x64xf32>
    %118 = tpu.matmul %117, %40, %cst_52 {dimension_numbers = #tpu.dot_dimension_numbers<[1], [0], [0], [1], [0, 0, 1, 1], [], []>} : vector<8x64xf32>, vector<64x64xf32>, vector<8x64xf32> -> vector<8x64xf32>
    %119 = vector.broadcast %42 : vector<1x64xf32> to vector<8x64xf32>
    %120 = arith.addf %118, %119 : vector<8x64xf32>
    %121 = arith.addf %8, %120 : vector<8x64xf32>
    %c0_53 = arith.constant 0 : index
    %c0_54 = arith.constant 0 : index
    %c0_55 = arith.constant 0 : index
    %122 = vector.load %arg34[%c0_53, %c0_54, %c0_55] : memref<2x1x64xf32, #tpu.memory_space<vmem>>, vector<1x1x64xf32>
    %123 = vector.shape_cast %122 : vector<1x1x64xf32> to vector<1x64xf32>
    %c0_56 = arith.constant 0 : index
    %c0_57 = arith.constant 0 : index
    %c0_58 = arith.constant 0 : index
    %124 = vector.load %arg33[%c0_56, %c0_57, %c0_58] : memref<2x1x64xf32, #tpu.memory_space<vmem>>, vector<1x1x64xf32>
    %125 = vector.shape_cast %124 : vector<1x1x64xf32> to vector<1x64xf32>
    %cst_59 = arith.constant dense<0.000000e+00> : vector<8xf32>
    %126 = vector.multi_reduction <add>, %121, %cst_59 [1] : vector<8x64xf32> to vector<8xf32>
    %127 = vector.shape_cast %126 : vector<8xf32> to vector<8x1xf32>
    %cst_60 = arith.constant 6.400000e+01 : f32
    %128 = vector.broadcast %cst_60 : f32 to vector<8x1xf32>
    %129 = arith.divf %127, %128 : vector<8x1xf32>
    %130 = vector.broadcast %129 : vector<8x1xf32> to vector<8x64xf32>
    %131 = arith.subf %121, %130 : vector<8x64xf32>
    %132 = arith.mulf %131, %131 : vector<8x64xf32>
    %cst_61 = arith.constant dense<0.000000e+00> : vector<8xf32>
    %133 = vector.multi_reduction <add>, %132, %cst_61 [1] : vector<8x64xf32> to vector<8xf32>
    %134 = vector.shape_cast %133 : vector<8xf32> to vector<8x1xf32>
    %cst_62 = arith.constant 6.400000e+01 : f32
    %135 = vector.broadcast %cst_62 : f32 to vector<8x1xf32>
    %136 = arith.divf %134, %135 : vector<8x1xf32>
    %137 = vector.broadcast %129 : vector<8x1xf32> to vector<8x64xf32>
    %138 = arith.subf %121, %137 : vector<8x64xf32>
    %cst_63 = arith.constant 9.99999974E-6 : f32
    %139 = vector.broadcast %cst_63 : f32 to vector<8x1xf32>
    %140 = arith.addf %136, %139 : vector<8x1xf32>
    %141 = math.rsqrt %140 : vector<8x1xf32>
    %142 = vector.broadcast %141 : vector<8x1xf32> to vector<8x64xf32>
    %143 = arith.mulf %138, %142 : vector<8x64xf32>
    %144 = vector.broadcast %123 : vector<1x64xf32> to vector<8x64xf32>
    %145 = arith.mulf %143, %144 : vector<8x64xf32>
    %146 = vector.broadcast %125 : vector<1x64xf32> to vector<8x64xf32>
    %147 = arith.addf %145, %146 : vector<8x64xf32>
    %c0_64 = arith.constant 0 : index
    %c0_65 = arith.constant 0 : index
    %c0_66 = arith.constant 0 : index
    %148 = vector.load %arg28[%c0_64, %c0_65, %c0_66] : memref<2x64x256xf32, #tpu.memory_space<vmem>>, vector<1x64x256xf32>
    %149 = vector.shape_cast %148 : vector<1x64x256xf32> to vector<64x256xf32>
    %c0_67 = arith.constant 0 : index
    %c0_68 = arith.constant 0 : index
    %c0_69 = arith.constant 0 : index
    %150 = vector.load %arg27[%c0_67, %c0_68, %c0_69] : memref<2x1x256xf32, #tpu.memory_space<vmem>>, vector<1x1x256xf32>
    %151 = vector.shape_cast %150 : vector<1x1x256xf32> to vector<1x256xf32>
    %cst_70 = arith.constant dense<0.000000e+00> : vector<8x256xf32>
    %152 = tpu.matmul %147, %149, %cst_70 {dimension_numbers = #tpu.dot_dimension_numbers<[1], [0], [0], [1], [0, 0, 1, 1], [], []>} : vector<8x64xf32>, vector<64x256xf32>, vector<8x256xf32> -> vector<8x256xf32>
    %153 = vector.broadcast %151 : vector<1x256xf32> to vector<8x256xf32>
    %154 = arith.addf %152, %153 : vector<8x256xf32>
    %155 = arith.mulf %154, %154 : vector<8x256xf32>
    %156 = arith.mulf %154, %155 : vector<8x256xf32>
    %cst_71 = arith.constant 4.471500e-02 : f32
    %157 = vector.broadcast %cst_71 : f32 to vector<8x256xf32>
    %158 = arith.mulf %157, %156 : vector<8x256xf32>
    %159 = arith.addf %154, %158 : vector<8x256xf32>
    %cst_72 = arith.constant 0.797884583 : f32
    %160 = vector.broadcast %cst_72 : f32 to vector<8x256xf32>
    %161 = arith.mulf %160, %159 : vector<8x256xf32>
    %162 = math.tanh %161 : vector<8x256xf32>
    %cst_73 = arith.constant 1.000000e+00 : f32
    %163 = vector.broadcast %cst_73 : f32 to vector<8x256xf32>
    %164 = arith.addf %163, %162 : vector<8x256xf32>
    %cst_74 = arith.constant 5.000000e-01 : f32
    %165 = vector.broadcast %cst_74 : f32 to vector<8x256xf32>
    %166 = arith.mulf %165, %164 : vector<8x256xf32>
    %167 = arith.mulf %154, %166 : vector<8x256xf32>
    %c0_75 = arith.constant 0 : index
    %c0_76 = arith.constant 0 : index
    %c0_77 = arith.constant 0 : index
    %168 = vector.load %arg30[%c0_75, %c0_76, %c0_77] : memref<2x256x64xf32, #tpu.memory_space<vmem>>, vector<1x256x64xf32>
    %169 = vector.shape_cast %168 : vector<1x256x64xf32> to vector<256x64xf32>
    %c0_78 = arith.constant 0 : index
    %c0_79 = arith.constant 0 : index
    %c0_80 = arith.constant 0 : index
    %170 = vector.load %arg29[%c0_78, %c0_79, %c0_80] : memref<2x1x64xf32, #tpu.memory_space<vmem>>, vector<1x1x64xf32>
    %171 = vector.shape_cast %170 : vector<1x1x64xf32> to vector<1x64xf32>
    %cst_81 = arith.constant dense<0.000000e+00> : vector<8x64xf32>
    %172 = tpu.matmul %167, %169, %cst_81 {dimension_numbers = #tpu.dot_dimension_numbers<[1], [0], [0], [1], [0, 0, 1, 1], [], []>} : vector<8x256xf32>, vector<256x64xf32>, vector<8x64xf32> -> vector<8x64xf32>
    %173 = vector.broadcast %171 : vector<1x64xf32> to vector<8x64xf32>
    %174 = arith.addf %172, %173 : vector<8x64xf32>
    %175 = arith.addf %121, %174 : vector<8x64xf32>
    %c1 = arith.constant 1 : index
    %c0_82 = arith.constant 0 : index
    %c0_83 = arith.constant 0 : index
    %176 = vector.load %arg32[%c1, %c0_82, %c0_83] : memref<2x1x64xf32, #tpu.memory_space<vmem>>, vector<1x1x64xf32>
    %177 = vector.shape_cast %176 : vector<1x1x64xf32> to vector<1x64xf32>
    %c1_84 = arith.constant 1 : index
    %c0_85 = arith.constant 0 : index
    %c0_86 = arith.constant 0 : index
    %178 = vector.load %arg31[%c1_84, %c0_85, %c0_86] : memref<2x1x64xf32, #tpu.memory_space<vmem>>, vector<1x1x64xf32>
    %179 = vector.shape_cast %178 : vector<1x1x64xf32> to vector<1x64xf32>
    %cst_87 = arith.constant dense<0.000000e+00> : vector<8xf32>
    %180 = vector.multi_reduction <add>, %175, %cst_87 [1] : vector<8x64xf32> to vector<8xf32>
    %181 = vector.shape_cast %180 : vector<8xf32> to vector<8x1xf32>
    %cst_88 = arith.constant 6.400000e+01 : f32
    %182 = vector.broadcast %cst_88 : f32 to vector<8x1xf32>
    %183 = arith.divf %181, %182 : vector<8x1xf32>
    %184 = vector.broadcast %183 : vector<8x1xf32> to vector<8x64xf32>
    %185 = arith.subf %175, %184 : vector<8x64xf32>
    %186 = arith.mulf %185, %185 : vector<8x64xf32>
    %cst_89 = arith.constant dense<0.000000e+00> : vector<8xf32>
    %187 = vector.multi_reduction <add>, %186, %cst_89 [1] : vector<8x64xf32> to vector<8xf32>
    %188 = vector.shape_cast %187 : vector<8xf32> to vector<8x1xf32>
    %cst_90 = arith.constant 6.400000e+01 : f32
    %189 = vector.broadcast %cst_90 : f32 to vector<8x1xf32>
    %190 = arith.divf %188, %189 : vector<8x1xf32>
    %191 = vector.broadcast %183 : vector<8x1xf32> to vector<8x64xf32>
    %192 = arith.subf %175, %191 : vector<8x64xf32>
    %cst_91 = arith.constant 9.99999974E-6 : f32
    %193 = vector.broadcast %cst_91 : f32 to vector<8x1xf32>
    %194 = arith.addf %190, %193 : vector<8x1xf32>
    %195 = math.rsqrt %194 : vector<8x1xf32>
    %196 = vector.broadcast %195 : vector<8x1xf32> to vector<8x64xf32>
    %197 = arith.mulf %192, %196 : vector<8x64xf32>
    %198 = vector.broadcast %177 : vector<1x64xf32> to vector<8x64xf32>
    %199 = arith.mulf %197, %198 : vector<8x64xf32>
    %200 = vector.broadcast %179 : vector<1x64xf32> to vector<8x64xf32>
    %201 = arith.addf %199, %200 : vector<8x64xf32>
    %c1_92 = arith.constant 1 : index
    %c0_93 = arith.constant 0 : index
    %c0_94 = arith.constant 0 : index
    %202 = vector.load %arg43[%c1_92, %c0_93, %c0_94] : memref<2x64x192xf32, #tpu.memory_space<vmem>>, vector<1x64x192xf32>
    %203 = vector.shape_cast %202 : vector<1x64x192xf32> to vector<64x192xf32>
    %c1_95 = arith.constant 1 : index
    %c0_96 = arith.constant 0 : index
    %c0_97 = arith.constant 0 : index
    %204 = vector.load %arg42[%c1_95, %c0_96, %c0_97] : memref<2x1x192xf32, #tpu.memory_space<vmem>>, vector<1x1x192xf32>
    %205 = vector.shape_cast %204 : vector<1x1x192xf32> to vector<1x192xf32>
    %c1_98 = arith.constant 1 : index
    %c0_99 = arith.constant 0 : index
    %c0_100 = arith.constant 0 : index
    %206 = vector.load %arg41[%c1_98, %c0_99, %c0_100] : memref<2x64x64xf32, #tpu.memory_space<vmem>>, vector<1x64x64xf32>
    %207 = vector.shape_cast %206 : vector<1x64x64xf32> to vector<64x64xf32>
    %c1_101 = arith.constant 1 : index
    %c0_102 = arith.constant 0 : index
    %c0_103 = arith.constant 0 : index
    %208 = vector.load %arg40[%c1_101, %c0_102, %c0_103] : memref<2x1x64xf32, #tpu.memory_space<vmem>>, vector<1x1x64xf32>
    %209 = vector.shape_cast %208 : vector<1x1x64xf32> to vector<1x64xf32>
    %cst_104 = arith.constant dense<0.000000e+00> : vector<8x192xf32>
    %210 = tpu.matmul %201, %203, %cst_104 {dimension_numbers = #tpu.dot_dimension_numbers<[1], [0], [0], [1], [0, 0, 1, 1], [], []>} : vector<8x64xf32>, vector<64x192xf32>, vector<8x192xf32> -> vector<8x192xf32>
    %211 = vector.broadcast %205 : vector<1x192xf32> to vector<8x192xf32>
    %212 = arith.addf %210, %211 : vector<8x192xf32>
    %213 = vector.extract_strided_slice %212 {offsets = [0, 0], sizes = [8, 64], strides = [1, 1]} : vector<8x192xf32> to vector<8x64xf32>
    %214 = vector.extract_strided_slice %212 {offsets = [0, 64], sizes = [8, 64], strides = [1, 1]} : vector<8x192xf32> to vector<8x64xf32>
    %215 = vector.extract_strided_slice %212 {offsets = [0, 128], sizes = [8, 64], strides = [1, 1]} : vector<8x192xf32> to vector<8x64xf32>
    %216 = vector.extract_strided_slice %213 {offsets = [0, 0], sizes = [8, 16], strides = [1, 1]} : vector<8x64xf32> to vector<8x16xf32>
    %217 = vector.extract_strided_slice %214 {offsets = [0, 0], sizes = [8, 16], strides = [1, 1]} : vector<8x64xf32> to vector<8x16xf32>
    %218 = vector.extract_strided_slice %215 {offsets = [0, 0], sizes = [8, 16], strides = [1, 1]} : vector<8x64xf32> to vector<8x16xf32>
    %219 = tpu.transpose %217, [1, 0] : vector<8x16xf32> -> vector<16x8xf32>
    %cst_105 = arith.constant dense<0.000000e+00> : vector<8x8xf32>
    %220 = tpu.matmul %216, %219, %cst_105 {dimension_numbers = #tpu.dot_dimension_numbers<[1], [0], [0], [1], [0, 0, 1, 1], [], []>} : vector<8x16xf32>, vector<16x8xf32>, vector<8x8xf32> -> vector<8x8xf32>
    %cst_106 = arith.constant 2.500000e-01 : f32
    %221 = vector.broadcast %cst_106 : f32 to vector<8x8xf32>
    %222 = arith.mulf %220, %221 : vector<8x8xf32>
    %cst_107 = arith.constant dense<0xFF800000> : vector<8xf32>
    %223 = vector.multi_reduction <maximumf>, %222, %cst_107 [1] : vector<8x8xf32> to vector<8xf32>
    %224 = vector.shape_cast %223 : vector<8xf32> to vector<8x1xf32>
    %225 = vector.broadcast %224 : vector<8x1xf32> to vector<8x8xf32>
    %226 = arith.subf %222, %225 : vector<8x8xf32>
    %227 = math.exp %226 : vector<8x8xf32>
    %cst_108 = arith.constant dense<0.000000e+00> : vector<8xf32>
    %228 = vector.multi_reduction <add>, %227, %cst_108 [1] : vector<8x8xf32> to vector<8xf32>
    %229 = vector.shape_cast %228 : vector<8xf32> to vector<8x1xf32>
    %230 = vector.broadcast %229 : vector<8x1xf32> to vector<8x8xf32>
    %231 = arith.divf %227, %230 : vector<8x8xf32>
    %cst_109 = arith.constant dense<0.000000e+00> : vector<8x16xf32>
    %232 = tpu.matmul %231, %218, %cst_109 {dimension_numbers = #tpu.dot_dimension_numbers<[1], [0], [0], [1], [0, 0, 1, 1], [], []>} : vector<8x8xf32>, vector<8x16xf32>, vector<8x16xf32> -> vector<8x16xf32>
    %233 = vector.extract_strided_slice %213 {offsets = [0, 16], sizes = [8, 16], strides = [1, 1]} : vector<8x64xf32> to vector<8x16xf32>
    %234 = vector.extract_strided_slice %214 {offsets = [0, 16], sizes = [8, 16], strides = [1, 1]} : vector<8x64xf32> to vector<8x16xf32>
    %235 = vector.extract_strided_slice %215 {offsets = [0, 16], sizes = [8, 16], strides = [1, 1]} : vector<8x64xf32> to vector<8x16xf32>
    %236 = tpu.transpose %234, [1, 0] : vector<8x16xf32> -> vector<16x8xf32>
    %cst_110 = arith.constant dense<0.000000e+00> : vector<8x8xf32>
    %237 = tpu.matmul %233, %236, %cst_110 {dimension_numbers = #tpu.dot_dimension_numbers<[1], [0], [0], [1], [0, 0, 1, 1], [], []>} : vector<8x16xf32>, vector<16x8xf32>, vector<8x8xf32> -> vector<8x8xf32>
    %cst_111 = arith.constant 2.500000e-01 : f32
    %238 = vector.broadcast %cst_111 : f32 to vector<8x8xf32>
    %239 = arith.mulf %237, %238 : vector<8x8xf32>
    %cst_112 = arith.constant dense<0xFF800000> : vector<8xf32>
    %240 = vector.multi_reduction <maximumf>, %239, %cst_112 [1] : vector<8x8xf32> to vector<8xf32>
    %241 = vector.shape_cast %240 : vector<8xf32> to vector<8x1xf32>
    %242 = vector.broadcast %241 : vector<8x1xf32> to vector<8x8xf32>
    %243 = arith.subf %239, %242 : vector<8x8xf32>
    %244 = math.exp %243 : vector<8x8xf32>
    %cst_113 = arith.constant dense<0.000000e+00> : vector<8xf32>
    %245 = vector.multi_reduction <add>, %244, %cst_113 [1] : vector<8x8xf32> to vector<8xf32>
    %246 = vector.shape_cast %245 : vector<8xf32> to vector<8x1xf32>
    %247 = vector.broadcast %246 : vector<8x1xf32> to vector<8x8xf32>
    %248 = arith.divf %244, %247 : vector<8x8xf32>
    %cst_114 = arith.constant dense<0.000000e+00> : vector<8x16xf32>
    %249 = tpu.matmul %248, %235, %cst_114 {dimension_numbers = #tpu.dot_dimension_numbers<[1], [0], [0], [1], [0, 0, 1, 1], [], []>} : vector<8x8xf32>, vector<8x16xf32>, vector<8x16xf32> -> vector<8x16xf32>
    %250 = vector.extract_strided_slice %213 {offsets = [0, 32], sizes = [8, 16], strides = [1, 1]} : vector<8x64xf32> to vector<8x16xf32>
    %251 = vector.extract_strided_slice %214 {offsets = [0, 32], sizes = [8, 16], strides = [1, 1]} : vector<8x64xf32> to vector<8x16xf32>
    %252 = vector.extract_strided_slice %215 {offsets = [0, 32], sizes = [8, 16], strides = [1, 1]} : vector<8x64xf32> to vector<8x16xf32>
    %253 = tpu.transpose %251, [1, 0] : vector<8x16xf32> -> vector<16x8xf32>
    %cst_115 = arith.constant dense<0.000000e+00> : vector<8x8xf32>
    %254 = tpu.matmul %250, %253, %cst_115 {dimension_numbers = #tpu.dot_dimension_numbers<[1], [0], [0], [1], [0, 0, 1, 1], [], []>} : vector<8x16xf32>, vector<16x8xf32>, vector<8x8xf32> -> vector<8x8xf32>
    %cst_116 = arith.constant 2.500000e-01 : f32
    %255 = vector.broadcast %cst_116 : f32 to vector<8x8xf32>
    %256 = arith.mulf %254, %255 : vector<8x8xf32>
    %cst_117 = arith.constant dense<0xFF800000> : vector<8xf32>
    %257 = vector.multi_reduction <maximumf>, %256, %cst_117 [1] : vector<8x8xf32> to vector<8xf32>
    %258 = vector.shape_cast %257 : vector<8xf32> to vector<8x1xf32>
    %259 = vector.broadcast %258 : vector<8x1xf32> to vector<8x8xf32>
    %260 = arith.subf %256, %259 : vector<8x8xf32>
    %261 = math.exp %260 : vector<8x8xf32>
    %cst_118 = arith.constant dense<0.000000e+00> : vector<8xf32>
    %262 = vector.multi_reduction <add>, %261, %cst_118 [1] : vector<8x8xf32> to vector<8xf32>
    %263 = vector.shape_cast %262 : vector<8xf32> to vector<8x1xf32>
    %264 = vector.broadcast %263 : vector<8x1xf32> to vector<8x8xf32>
    %265 = arith.divf %261, %264 : vector<8x8xf32>
    %cst_119 = arith.constant dense<0.000000e+00> : vector<8x16xf32>
    %266 = tpu.matmul %265, %252, %cst_119 {dimension_numbers = #tpu.dot_dimension_numbers<[1], [0], [0], [1], [0, 0, 1, 1], [], []>} : vector<8x8xf32>, vector<8x16xf32>, vector<8x16xf32> -> vector<8x16xf32>
    %267 = vector.extract_strided_slice %213 {offsets = [0, 48], sizes = [8, 16], strides = [1, 1]} : vector<8x64xf32> to vector<8x16xf32>
    %268 = vector.extract_strided_slice %214 {offsets = [0, 48], sizes = [8, 16], strides = [1, 1]} : vector<8x64xf32> to vector<8x16xf32>
    %269 = vector.extract_strided_slice %215 {offsets = [0, 48], sizes = [8, 16], strides = [1, 1]} : vector<8x64xf32> to vector<8x16xf32>
    %270 = tpu.transpose %268, [1, 0] : vector<8x16xf32> -> vector<16x8xf32>
    %cst_120 = arith.constant dense<0.000000e+00> : vector<8x8xf32>
    %271 = tpu.matmul %267, %270, %cst_120 {dimension_numbers = #tpu.dot_dimension_numbers<[1], [0], [0], [1], [0, 0, 1, 1], [], []>} : vector<8x16xf32>, vector<16x8xf32>, vector<8x8xf32> -> vector<8x8xf32>
    %cst_121 = arith.constant 2.500000e-01 : f32
    %272 = vector.broadcast %cst_121 : f32 to vector<8x8xf32>
    %273 = arith.mulf %271, %272 : vector<8x8xf32>
    %cst_122 = arith.constant dense<0xFF800000> : vector<8xf32>
    %274 = vector.multi_reduction <maximumf>, %273, %cst_122 [1] : vector<8x8xf32> to vector<8xf32>
    %275 = vector.shape_cast %274 : vector<8xf32> to vector<8x1xf32>
    %276 = vector.broadcast %275 : vector<8x1xf32> to vector<8x8xf32>
    %277 = arith.subf %273, %276 : vector<8x8xf32>
    %278 = math.exp %277 : vector<8x8xf32>
    %cst_123 = arith.constant dense<0.000000e+00> : vector<8xf32>
    %279 = vector.multi_reduction <add>, %278, %cst_123 [1] : vector<8x8xf32> to vector<8xf32>
    %280 = vector.shape_cast %279 : vector<8xf32> to vector<8x1xf32>
    %281 = vector.broadcast %280 : vector<8x1xf32> to vector<8x8xf32>
    %282 = arith.divf %278, %281 : vector<8x8xf32>
    %cst_124 = arith.constant dense<0.000000e+00> : vector<8x16xf32>
    %283 = tpu.matmul %282, %269, %cst_124 {dimension_numbers = #tpu.dot_dimension_numbers<[1], [0], [0], [1], [0, 0, 1, 1], [], []>} : vector<8x8xf32>, vector<8x16xf32>, vector<8x16xf32> -> vector<8x16xf32>
    %284 = tpu.concatenate %232, %249, %266, %283 in 1 : vector<8x16xf32>, vector<8x16xf32>, vector<8x16xf32>, vector<8x16xf32> -> vector<8x64xf32>
    %cst_125 = arith.constant dense<0.000000e+00> : vector<8x64xf32>
    %285 = tpu.matmul %284, %207, %cst_125 {dimension_numbers = #tpu.dot_dimension_numbers<[1], [0], [0], [1], [0, 0, 1, 1], [], []>} : vector<8x64xf32>, vector<64x64xf32>, vector<8x64xf32> -> vector<8x64xf32>
    %286 = vector.broadcast %209 : vector<1x64xf32> to vector<8x64xf32>
    %287 = arith.addf %285, %286 : vector<8x64xf32>
    %288 = arith.addf %175, %287 : vector<8x64xf32>
    %c1_126 = arith.constant 1 : index
    %c0_127 = arith.constant 0 : index
    %c0_128 = arith.constant 0 : index
    %289 = vector.load %arg34[%c1_126, %c0_127, %c0_128] : memref<2x1x64xf32, #tpu.memory_space<vmem>>, vector<1x1x64xf32>
    %290 = vector.shape_cast %289 : vector<1x1x64xf32> to vector<1x64xf32>
    %c1_129 = arith.constant 1 : index
    %c0_130 = arith.constant 0 : index
    %c0_131 = arith.constant 0 : index
    %291 = vector.load %arg33[%c1_129, %c0_130, %c0_131] : memref<2x1x64xf32, #tpu.memory_space<vmem>>, vector<1x1x64xf32>
    %292 = vector.shape_cast %291 : vector<1x1x64xf32> to vector<1x64xf32>
    %cst_132 = arith.constant dense<0.000000e+00> : vector<8xf32>
    %293 = vector.multi_reduction <add>, %288, %cst_132 [1] : vector<8x64xf32> to vector<8xf32>
    %294 = vector.shape_cast %293 : vector<8xf32> to vector<8x1xf32>
    %cst_133 = arith.constant 6.400000e+01 : f32
    %295 = vector.broadcast %cst_133 : f32 to vector<8x1xf32>
    %296 = arith.divf %294, %295 : vector<8x1xf32>
    %297 = vector.broadcast %296 : vector<8x1xf32> to vector<8x64xf32>
    %298 = arith.subf %288, %297 : vector<8x64xf32>
    %299 = arith.mulf %298, %298 : vector<8x64xf32>
    %cst_134 = arith.constant dense<0.000000e+00> : vector<8xf32>
    %300 = vector.multi_reduction <add>, %299, %cst_134 [1] : vector<8x64xf32> to vector<8xf32>
    %301 = vector.shape_cast %300 : vector<8xf32> to vector<8x1xf32>
    %cst_135 = arith.constant 6.400000e+01 : f32
    %302 = vector.broadcast %cst_135 : f32 to vector<8x1xf32>
    %303 = arith.divf %301, %302 : vector<8x1xf32>
    %304 = vector.broadcast %296 : vector<8x1xf32> to vector<8x64xf32>
    %305 = arith.subf %288, %304 : vector<8x64xf32>
    %cst_136 = arith.constant 9.99999974E-6 : f32
    %306 = vector.broadcast %cst_136 : f32 to vector<8x1xf32>
    %307 = arith.addf %303, %306 : vector<8x1xf32>
    %308 = math.rsqrt %307 : vector<8x1xf32>
    %309 = vector.broadcast %308 : vector<8x1xf32> to vector<8x64xf32>
    %310 = arith.mulf %305, %309 : vector<8x64xf32>
    %311 = vector.broadcast %290 : vector<1x64xf32> to vector<8x64xf32>
    %312 = arith.mulf %310, %311 : vector<8x64xf32>
    %313 = vector.broadcast %292 : vector<1x64xf32> to vector<8x64xf32>
    %314 = arith.addf %312, %313 : vector<8x64xf32>
    %c1_137 = arith.constant 1 : index
    %c0_138 = arith.constant 0 : index
    %c0_139 = arith.constant 0 : index
    %315 = vector.load %arg28[%c1_137, %c0_138, %c0_139] : memref<2x64x256xf32, #tpu.memory_space<vmem>>, vector<1x64x256xf32>
    %316 = vector.shape_cast %315 : vector<1x64x256xf32> to vector<64x256xf32>
    %c1_140 = arith.constant 1 : index
    %c0_141 = arith.constant 0 : index
    %c0_142 = arith.constant 0 : index
    %317 = vector.load %arg27[%c1_140, %c0_141, %c0_142] : memref<2x1x256xf32, #tpu.memory_space<vmem>>, vector<1x1x256xf32>
    %318 = vector.shape_cast %317 : vector<1x1x256xf32> to vector<1x256xf32>
    %cst_143 = arith.constant dense<0.000000e+00> : vector<8x256xf32>
    %319 = tpu.matmul %314, %316, %cst_143 {dimension_numbers = #tpu.dot_dimension_numbers<[1], [0], [0], [1], [0, 0, 1, 1], [], []>} : vector<8x64xf32>, vector<64x256xf32>, vector<8x256xf32> -> vector<8x256xf32>
    %320 = vector.broadcast %318 : vector<1x256xf32> to vector<8x256xf32>
    %321 = arith.addf %319, %320 : vector<8x256xf32>
    %322 = arith.mulf %321, %321 : vector<8x256xf32>
    %323 = arith.mulf %321, %322 : vector<8x256xf32>
    %cst_144 = arith.constant 4.471500e-02 : f32
    %324 = vector.broadcast %cst_144 : f32 to vector<8x256xf32>
    %325 = arith.mulf %324, %323 : vector<8x256xf32>
    %326 = arith.addf %321, %325 : vector<8x256xf32>
    %cst_145 = arith.constant 0.797884583 : f32
    %327 = vector.broadcast %cst_145 : f32 to vector<8x256xf32>
    %328 = arith.mulf %327, %326 : vector<8x256xf32>
    %329 = math.tanh %328 : vector<8x256xf32>
    %cst_146 = arith.constant 1.000000e+00 : f32
    %330 = vector.broadcast %cst_146 : f32 to vector<8x256xf32>
    %331 = arith.addf %330, %329 : vector<8x256xf32>
    %cst_147 = arith.constant 5.000000e-01 : f32
    %332 = vector.broadcast %cst_147 : f32 to vector<8x256xf32>
    %333 = arith.mulf %332, %331 : vector<8x256xf32>
    %334 = arith.mulf %321, %333 : vector<8x256xf32>
    %c1_148 = arith.constant 1 : index
    %c0_149 = arith.constant 0 : index
    %c0_150 = arith.constant 0 : index
    %335 = vector.load %arg30[%c1_148, %c0_149, %c0_150] : memref<2x256x64xf32, #tpu.memory_space<vmem>>, vector<1x256x64xf32>
    %336 = vector.shape_cast %335 : vector<1x256x64xf32> to vector<256x64xf32>
    %c1_151 = arith.constant 1 : index
    %c0_152 = arith.constant 0 : index
    %c0_153 = arith.constant 0 : index
    %337 = vector.load %arg29[%c1_151, %c0_152, %c0_153] : memref<2x1x64xf32, #tpu.memory_space<vmem>>, vector<1x1x64xf32>
    %338 = vector.shape_cast %337 : vector<1x1x64xf32> to vector<1x64xf32>
    %cst_154 = arith.constant dense<0.000000e+00> : vector<8x64xf32>
    %339 = tpu.matmul %334, %336, %cst_154 {dimension_numbers = #tpu.dot_dimension_numbers<[1], [0], [0], [1], [0, 0, 1, 1], [], []>} : vector<8x256xf32>, vector<256x64xf32>, vector<8x64xf32> -> vector<8x64xf32>
    %340 = vector.broadcast %338 : vector<1x64xf32> to vector<8x64xf32>
    %341 = arith.addf %339, %340 : vector<8x64xf32>
    %342 = arith.addf %288, %341 : vector<8x64xf32>
    %c0_155 = arith.constant 0 : index
    %c0_156 = arith.constant 0 : index
    %343 = vector.load %arg36[%c0_155, %c0_156] : memref<1x64xf32, #tpu.memory_space<vmem>>, vector<1x64xf32>
    %c0_157 = arith.constant 0 : index
    %c0_158 = arith.constant 0 : index
    %344 = vector.load %arg35[%c0_157, %c0_158] : memref<1x64xf32, #tpu.memory_space<vmem>>, vector<1x64xf32>
    %cst_159 = arith.constant dense<0.000000e+00> : vector<8xf32>
    %345 = vector.multi_reduction <add>, %342, %cst_159 [1] : vector<8x64xf32> to vector<8xf32>
    %346 = vector.shape_cast %345 : vector<8xf32> to vector<8x1xf32>
    %cst_160 = arith.constant 6.400000e+01 : f32
    %347 = vector.broadcast %cst_160 : f32 to vector<8x1xf32>
    %348 = arith.divf %346, %347 : vector<8x1xf32>
    %349 = vector.broadcast %348 : vector<8x1xf32> to vector<8x64xf32>
    %350 = arith.subf %342, %349 : vector<8x64xf32>
    %351 = arith.mulf %350, %350 : vector<8x64xf32>
    %cst_161 = arith.constant dense<0.000000e+00> : vector<8xf32>
    %352 = vector.multi_reduction <add>, %351, %cst_161 [1] : vector<8x64xf32> to vector<8xf32>
    %353 = vector.shape_cast %352 : vector<8xf32> to vector<8x1xf32>
    %cst_162 = arith.constant 6.400000e+01 : f32
    %354 = vector.broadcast %cst_162 : f32 to vector<8x1xf32>
    %355 = arith.divf %353, %354 : vector<8x1xf32>
    %356 = vector.broadcast %348 : vector<8x1xf32> to vector<8x64xf32>
    %357 = arith.subf %342, %356 : vector<8x64xf32>
    %cst_163 = arith.constant 9.99999974E-6 : f32
    %358 = vector.broadcast %cst_163 : f32 to vector<8x1xf32>
    %359 = arith.addf %355, %358 : vector<8x1xf32>
    %360 = math.rsqrt %359 : vector<8x1xf32>
    %361 = vector.broadcast %360 : vector<8x1xf32> to vector<8x64xf32>
    %362 = arith.mulf %357, %361 : vector<8x64xf32>
    %363 = vector.broadcast %343 : vector<1x64xf32> to vector<8x64xf32>
    %364 = arith.mulf %362, %363 : vector<8x64xf32>
    %365 = vector.broadcast %344 : vector<1x64xf32> to vector<8x64xf32>
    %366 = arith.addf %364, %365 : vector<8x64xf32>
    %c0_164 = arith.constant 0 : index
    %c0_165 = arith.constant 0 : index
    %367 = vector.load %arg4[%c0_164, %c0_165] : memref<64x64xf32, #tpu.memory_space<vmem>>, vector<64x64xf32>
    %c0_166 = arith.constant 0 : index
    %c0_167 = arith.constant 0 : index
    %368 = vector.load %arg2[%c0_166, %c0_167] : memref<1x64xf32, #tpu.memory_space<vmem>>, vector<1x64xf32>
    %cst_168 = arith.constant dense<0.000000e+00> : vector<8x64xf32>
    %369 = tpu.matmul %366, %367, %cst_168 {dimension_numbers = #tpu.dot_dimension_numbers<[1], [0], [0], [1], [0, 0, 1, 1], [], []>} : vector<8x64xf32>, vector<64x64xf32>, vector<8x64xf32> -> vector<8x64xf32>
    %370 = vector.broadcast %368 : vector<1x64xf32> to vector<8x64xf32>
    %371 = arith.addf %369, %370 : vector<8x64xf32>
    %372 = math.tanh %371 : vector<8x64xf32>
    %c0_169 = arith.constant 0 : index
    %c0_170 = arith.constant 0 : index
    %373 = vector.load %arg5[%c0_169, %c0_170] : memref<64x32xf32, #tpu.memory_space<vmem>>, vector<64x32xf32>
    %c0_171 = arith.constant 0 : index
    %c0_172 = arith.constant 0 : index
    %374 = vector.load %arg3[%c0_171, %c0_172] : memref<1x32xf32, #tpu.memory_space<vmem>>, vector<1x32xf32>
    %cst_173 = arith.constant dense<0.000000e+00> : vector<8x32xf32>
    %375 = tpu.matmul %372, %373, %cst_173 {dimension_numbers = #tpu.dot_dimension_numbers<[1], [0], [0], [1], [0, 0, 1, 1], [], []>} : vector<8x64xf32>, vector<64x32xf32>, vector<8x32xf32> -> vector<8x32xf32>
    %376 = vector.broadcast %374 : vector<1x32xf32> to vector<8x32xf32>
    %377 = arith.addf %375, %376 : vector<8x32xf32>
    %c0_174 = arith.constant 0 : index
    %c0_175 = arith.constant 0 : index
    %378 = vector.load %arg44[%c0_174, %c0_175] : memref<256x32xf32, #tpu.memory_space<vmem>>, vector<256x32xf32>
    %379 = arith.mulf %377, %377 : vector<8x32xf32>
    %cst_176 = arith.constant dense<0.000000e+00> : vector<8xf32>
    %380 = vector.multi_reduction <add>, %379, %cst_176 [1] : vector<8x32xf32> to vector<8xf32>
    %381 = vector.shape_cast %380 : vector<8xf32> to vector<8x1xf32>
    %382 = math.sqrt %381 : vector<8x1xf32>
    %cst_177 = arith.constant 9.99999996E-13 : f32
    %383 = vector.broadcast %cst_177 : f32 to vector<8x1xf32>
    %384 = arith.maximumf %382, %383 : vector<8x1xf32>
    %385 = vector.broadcast %384 : vector<8x1xf32> to vector<8x32xf32>
    %386 = arith.divf %377, %385 : vector<8x32xf32>
    %387 = tpu.transpose %378, [1, 0] : vector<256x32xf32> -> vector<32x256xf32>
    %cst_178 = arith.constant dense<0.000000e+00> : vector<8x256xf32>
    %388 = tpu.matmul %386, %387, %cst_178 {dimension_numbers = #tpu.dot_dimension_numbers<[1], [0], [0], [1], [0, 0, 1, 1], [], []>} : vector<8x32xf32>, vector<32x256xf32>, vector<8x256xf32> -> vector<8x256xf32>
    %cst_179 = arith.constant dense<0xFF800000> : vector<8xf32>
    %389 = vector.multi_reduction <maximumf>, %388, %cst_179 [1] : vector<8x256xf32> to vector<8xf32>
    %390 = vector.shape_cast %389 : vector<8xf32> to vector<8x1xf32>
    %391 = tpu.iota {dimensions = array<i32: 1>} : vector<8x256xi32>
    %392 = vector.broadcast %390 : vector<8x1xf32> to vector<8x256xf32>
    %393 = arith.cmpf oeq, %388, %392 : vector<8x256xf32>
    %c256_i32 = arith.constant 256 : i32
    %394 = vector.broadcast %c256_i32 : i32 to vector<8x256xi32>
    %395 = arith.select %393, %391, %394 : vector<8x256xi1>, vector<8x256xi32>
    %cst_180 = arith.constant dense<2147483647> : vector<8xi32>
    %396 = vector.multi_reduction <minsi>, %395, %cst_180 [1] : vector<8x256xi32> to vector<8xi32>
    %397 = vector.shape_cast %396 : vector<8xi32> to vector<8x1xi32>
    %398 = vector.broadcast %397 : vector<8x1xi32> to vector<8x256xi32>
    %399 = arith.cmpi eq, %391, %398 : vector<8x256xi32>
    %400 = arith.extui %399 : vector<8x256xi1> to vector<8x256xi32>
    %401 = arith.sitofp %400 : vector<8x256xi32> to vector<8x256xf32>
    %cst_181 = arith.constant dense<0.000000e+00> : vector<8x32xf32>
    %402 = tpu.matmul %401, %378, %cst_181 {dimension_numbers = #tpu.dot_dimension_numbers<[1], [0], [0], [1], [0, 0, 1, 1], [], []>} : vector<8x256xf32>, vector<256x32xf32>, vector<8x32xf32> -> vector<8x32xf32>
    %403 = tpu.iota {dimensions = array<i32: 0>} : vector<8x8xi32>
    %404 = tpu.iota {dimensions = array<i32: 1>} : vector<8x8xi32>
    %405 = arith.cmpi eq, %403, %404 : vector<8x8xi32>
    %406 = arith.sitofp %397 : vector<8x1xi32> to vector<8x1xf32>
    %cst_182 = arith.constant 0.000000e+00 : f32
    %407 = vector.shape_cast %406 : vector<8x1xf32> to vector<8x1xf32>
    %408 = vector.broadcast %407 : vector<8x1xf32> to vector<8x8xf32>
    %409 = vector.broadcast %cst_182 : f32 to vector<8x8xf32>
    %410 = arith.select %405, %408, %409 : vector<8x8xi1>, vector<8x8xf32>
    %cst_183 = arith.constant dense<0.000000e+00> : vector<8xf32>
    %411 = vector.multi_reduction <add>, %410, %cst_183 [0] : vector<8x8xf32> to vector<8xf32>
    %412 = vector.shape_cast %411 : vector<8xf32> to vector<1x8xf32>
    %413 = arith.fptosi %412 : vector<1x8xf32> to vector<1x8xi32>
    %c0_184 = arith.constant 0 : index
    %c0_185 = arith.constant 0 : index
    %c0_186 = arith.constant 0 : index
    %414 = vector.load %arg47[%c0_184, %c0_185, %c0_186] : memref<1x1x8xi32, #tpu.memory_space<vmem>>, vector<1x1x8xi32>
    %415 = vector.shape_cast %414 : vector<1x1x8xi32> to vector<1x8xi32>
    %416 = vector.shape_cast %413 : vector<1x8xi32> to vector<1x1x8xi32>
    tpu.vector_store %arg47[%c0_184, %c0_185, %c0_186], %416 {strides = array<i32>} : memref<1x1x8xi32, #tpu.memory_space<vmem>>, vector<1x1x8xi32>,
    %417 = arith.subf %402, %377 : vector<8x32xf32>
    %418 = arith.mulf %417, %417 : vector<8x32xf32>
    %419 = vector.shape_cast %418 : vector<8x32xf32> to vector<1x8x32xf32>
    %cst_187 = arith.constant dense<0.000000e+00> : vector<1xf32>
    %420 = vector.multi_reduction <add>, %419, %cst_187 [1, 2] : vector<1x8x32xf32> to vector<1xf32>
    %421 = vector.shape_cast %420 : vector<1xf32> to vector<1x1x1xf32>
    %422 = vector.extract %421[0, 0, 0] : f32 from vector<1x1x1xf32>
    %423 = vector.broadcast %422 : f32 to vector<1x1xf32>
    %c0_188 = arith.constant 0 : index
    %c0_189 = arith.constant 0 : index
    %c0_190 = arith.constant 0 : index
    %424 = vector.load %arg46[%c0_188, %c0_189, %c0_190] : memref<1x1x1xf32, #tpu.memory_space<vmem>>, vector<1x1x1xf32>
    %425 = vector.shape_cast %424 : vector<1x1x1xf32> to vector<1x1xf32>
    %426 = vector.shape_cast %423 : vector<1x1xf32> to vector<1x1x1xf32>
    tpu.vector_store %arg46[%c0_188, %c0_189, %c0_190], %426 {strides = array<i32>} : memref<1x1x1xf32, #tpu.memory_space<vmem>>, vector<1x1x1xf32>,
    %c0_191 = arith.constant 0 : index
    %c0_192 = arith.constant 0 : index
    %427 = vector.load %arg21[%c0_191, %c0_192] : memref<32x64xf32, #tpu.memory_space<vmem>>, vector<32x64xf32>
    %c0_193 = arith.constant 0 : index
    %c0_194 = arith.constant 0 : index
    %428 = vector.load %arg20[%c0_193, %c0_194] : memref<1x64xf32, #tpu.memory_space<vmem>>, vector<1x64xf32>
    %cst_195 = arith.constant dense<0.000000e+00> : vector<8x64xf32>
    %429 = tpu.matmul %402, %427, %cst_195 {dimension_numbers = #tpu.dot_dimension_numbers<[1], [0], [0], [1], [0, 0, 1, 1], [], []>} : vector<8x32xf32>, vector<32x64xf32>, vector<8x64xf32> -> vector<8x64xf32>
    %430 = vector.broadcast %428 : vector<1x64xf32> to vector<8x64xf32>
    %431 = arith.addf %429, %430 : vector<8x64xf32>
    %c0_196 = arith.constant 0 : index
    %c0_197 = arith.constant 0 : index
    %432 = vector.load %arg22[%c0_196, %c0_197] : memref<8x64xf32, #tpu.memory_space<vmem>>, vector<8x64xf32>
    %433 = arith.addf %431, %432 : vector<8x64xf32>
    %c0_198 = arith.constant 0 : index
    %c0_199 = arith.constant 0 : index
    %c0_200 = arith.constant 0 : index
    %434 = vector.load %arg15[%c0_198, %c0_199, %c0_200] : memref<3x1x64xf32, #tpu.memory_space<vmem>>, vector<1x1x64xf32>
    %435 = vector.shape_cast %434 : vector<1x1x64xf32> to vector<1x64xf32>
    %c0_201 = arith.constant 0 : index
    %c0_202 = arith.constant 0 : index
    %c0_203 = arith.constant 0 : index
    %436 = vector.load %arg14[%c0_201, %c0_202, %c0_203] : memref<3x1x64xf32, #tpu.memory_space<vmem>>, vector<1x1x64xf32>
    %437 = vector.shape_cast %436 : vector<1x1x64xf32> to vector<1x64xf32>
    %cst_204 = arith.constant dense<0.000000e+00> : vector<8xf32>
    %438 = vector.multi_reduction <add>, %433, %cst_204 [1] : vector<8x64xf32> to vector<8xf32>
    %439 = vector.shape_cast %438 : vector<8xf32> to vector<8x1xf32>
    %cst_205 = arith.constant 6.400000e+01 : f32
    %440 = vector.broadcast %cst_205 : f32 to vector<8x1xf32>
    %441 = arith.divf %439, %440 : vector<8x1xf32>
    %442 = vector.broadcast %441 : vector<8x1xf32> to vector<8x64xf32>
    %443 = arith.subf %433, %442 : vector<8x64xf32>
    %444 = arith.mulf %443, %443 : vector<8x64xf32>
    %cst_206 = arith.constant dense<0.000000e+00> : vector<8xf32>
    %445 = vector.multi_reduction <add>, %444, %cst_206 [1] : vector<8x64xf32> to vector<8xf32>
    %446 = vector.shape_cast %445 : vector<8xf32> to vector<8x1xf32>
    %cst_207 = arith.constant 6.400000e+01 : f32
    %447 = vector.broadcast %cst_207 : f32 to vector<8x1xf32>
    %448 = arith.divf %446, %447 : vector<8x1xf32>
    %449 = vector.broadcast %441 : vector<8x1xf32> to vector<8x64xf32>
    %450 = arith.subf %433, %449 : vector<8x64xf32>
    %cst_208 = arith.constant 9.99999974E-6 : f32
    %451 = vector.broadcast %cst_208 : f32 to vector<8x1xf32>
    %452 = arith.addf %448, %451 : vector<8x1xf32>
    %453 = math.rsqrt %452 : vector<8x1xf32>
    %454 = vector.broadcast %453 : vector<8x1xf32> to vector<8x64xf32>
    %455 = arith.mulf %450, %454 : vector<8x64xf32>
    %456 = vector.broadcast %435 : vector<1x64xf32> to vector<8x64xf32>
    %457 = arith.mulf %455, %456 : vector<8x64xf32>
    %458 = vector.broadcast %437 : vector<1x64xf32> to vector<8x64xf32>
    %459 = arith.addf %457, %458 : vector<8x64xf32>
    %c0_209 = arith.constant 0 : index
    %c0_210 = arith.constant 0 : index
    %c0_211 = arith.constant 0 : index
    %460 = vector.load %arg26[%c0_209, %c0_210, %c0_211] : memref<3x64x192xf32, #tpu.memory_space<vmem>>, vector<1x64x192xf32>
    %461 = vector.shape_cast %460 : vector<1x64x192xf32> to vector<64x192xf32>
    %c0_212 = arith.constant 0 : index
    %c0_213 = arith.constant 0 : index
    %c0_214 = arith.constant 0 : index
    %462 = vector.load %arg25[%c0_212, %c0_213, %c0_214] : memref<3x1x192xf32, #tpu.memory_space<vmem>>, vector<1x1x192xf32>
    %463 = vector.shape_cast %462 : vector<1x1x192xf32> to vector<1x192xf32>
    %c0_215 = arith.constant 0 : index
    %c0_216 = arith.constant 0 : index
    %c0_217 = arith.constant 0 : index
    %464 = vector.load %arg24[%c0_215, %c0_216, %c0_217] : memref<3x64x64xf32, #tpu.memory_space<vmem>>, vector<1x64x64xf32>
    %465 = vector.shape_cast %464 : vector<1x64x64xf32> to vector<64x64xf32>
    %c0_218 = arith.constant 0 : index
    %c0_219 = arith.constant 0 : index
    %c0_220 = arith.constant 0 : index
    %466 = vector.load %arg23[%c0_218, %c0_219, %c0_220] : memref<3x1x64xf32, #tpu.memory_space<vmem>>, vector<1x1x64xf32>
    %467 = vector.shape_cast %466 : vector<1x1x64xf32> to vector<1x64xf32>
    %cst_221 = arith.constant dense<0.000000e+00> : vector<8x192xf32>
    %468 = tpu.matmul %459, %461, %cst_221 {dimension_numbers = #tpu.dot_dimension_numbers<[1], [0], [0], [1], [0, 0, 1, 1], [], []>} : vector<8x64xf32>, vector<64x192xf32>, vector<8x192xf32> -> vector<8x192xf32>
    %469 = vector.broadcast %463 : vector<1x192xf32> to vector<8x192xf32>
    %470 = arith.addf %468, %469 : vector<8x192xf32>
    %471 = vector.extract_strided_slice %470 {offsets = [0, 0], sizes = [8, 64], strides = [1, 1]} : vector<8x192xf32> to vector<8x64xf32>
    %472 = vector.extract_strided_slice %470 {offsets = [0, 64], sizes = [8, 64], strides = [1, 1]} : vector<8x192xf32> to vector<8x64xf32>
    %473 = vector.extract_strided_slice %470 {offsets = [0, 128], sizes = [8, 64], strides = [1, 1]} : vector<8x192xf32> to vector<8x64xf32>
    %474 = vector.extract_strided_slice %471 {offsets = [0, 0], sizes = [8, 16], strides = [1, 1]} : vector<8x64xf32> to vector<8x16xf32>
    %475 = vector.extract_strided_slice %472 {offsets = [0, 0], sizes = [8, 16], strides = [1, 1]} : vector<8x64xf32> to vector<8x16xf32>
    %476 = vector.extract_strided_slice %473 {offsets = [0, 0], sizes = [8, 16], strides = [1, 1]} : vector<8x64xf32> to vector<8x16xf32>
    %477 = tpu.transpose %475, [1, 0] : vector<8x16xf32> -> vector<16x8xf32>
    %cst_222 = arith.constant dense<0.000000e+00> : vector<8x8xf32>
    %478 = tpu.matmul %474, %477, %cst_222 {dimension_numbers = #tpu.dot_dimension_numbers<[1], [0], [0], [1], [0, 0, 1, 1], [], []>} : vector<8x16xf32>, vector<16x8xf32>, vector<8x8xf32> -> vector<8x8xf32>
    %cst_223 = arith.constant 2.500000e-01 : f32
    %479 = vector.broadcast %cst_223 : f32 to vector<8x8xf32>
    %480 = arith.mulf %478, %479 : vector<8x8xf32>
    %cst_224 = arith.constant dense<0xFF800000> : vector<8xf32>
    %481 = vector.multi_reduction <maximumf>, %480, %cst_224 [1] : vector<8x8xf32> to vector<8xf32>
    %482 = vector.shape_cast %481 : vector<8xf32> to vector<8x1xf32>
    %483 = vector.broadcast %482 : vector<8x1xf32> to vector<8x8xf32>
    %484 = arith.subf %480, %483 : vector<8x8xf32>
    %485 = math.exp %484 : vector<8x8xf32>
    %cst_225 = arith.constant dense<0.000000e+00> : vector<8xf32>
    %486 = vector.multi_reduction <add>, %485, %cst_225 [1] : vector<8x8xf32> to vector<8xf32>
    %487 = vector.shape_cast %486 : vector<8xf32> to vector<8x1xf32>
    %488 = vector.broadcast %487 : vector<8x1xf32> to vector<8x8xf32>
    %489 = arith.divf %485, %488 : vector<8x8xf32>
    %cst_226 = arith.constant dense<0.000000e+00> : vector<8x16xf32>
    %490 = tpu.matmul %489, %476, %cst_226 {dimension_numbers = #tpu.dot_dimension_numbers<[1], [0], [0], [1], [0, 0, 1, 1], [], []>} : vector<8x8xf32>, vector<8x16xf32>, vector<8x16xf32> -> vector<8x16xf32>
    %491 = vector.extract_strided_slice %471 {offsets = [0, 16], sizes = [8, 16], strides = [1, 1]} : vector<8x64xf32> to vector<8x16xf32>
    %492 = vector.extract_strided_slice %472 {offsets = [0, 16], sizes = [8, 16], strides = [1, 1]} : vector<8x64xf32> to vector<8x16xf32>
    %493 = vector.extract_strided_slice %473 {offsets = [0, 16], sizes = [8, 16], strides = [1, 1]} : vector<8x64xf32> to vector<8x16xf32>
    %494 = tpu.transpose %492, [1, 0] : vector<8x16xf32> -> vector<16x8xf32>
    %cst_227 = arith.constant dense<0.000000e+00> : vector<8x8xf32>
    %495 = tpu.matmul %491, %494, %cst_227 {dimension_numbers = #tpu.dot_dimension_numbers<[1], [0], [0], [1], [0, 0, 1, 1], [], []>} : vector<8x16xf32>, vector<16x8xf32>, vector<8x8xf32> -> vector<8x8xf32>
    %cst_228 = arith.constant 2.500000e-01 : f32
    %496 = vector.broadcast %cst_228 : f32 to vector<8x8xf32>
    %497 = arith.mulf %495, %496 : vector<8x8xf32>
    %cst_229 = arith.constant dense<0xFF800000> : vector<8xf32>
    %498 = vector.multi_reduction <maximumf>, %497, %cst_229 [1] : vector<8x8xf32> to vector<8xf32>
    %499 = vector.shape_cast %498 : vector<8xf32> to vector<8x1xf32>
    %500 = vector.broadcast %499 : vector<8x1xf32> to vector<8x8xf32>
    %501 = arith.subf %497, %500 : vector<8x8xf32>
    %502 = math.exp %501 : vector<8x8xf32>
    %cst_230 = arith.constant dense<0.000000e+00> : vector<8xf32>
    %503 = vector.multi_reduction <add>, %502, %cst_230 [1] : vector<8x8xf32> to vector<8xf32>
    %504 = vector.shape_cast %503 : vector<8xf32> to vector<8x1xf32>
    %505 = vector.broadcast %504 : vector<8x1xf32> to vector<8x8xf32>
    %506 = arith.divf %502, %505 : vector<8x8xf32>
    %cst_231 = arith.constant dense<0.000000e+00> : vector<8x16xf32>
    %507 = tpu.matmul %506, %493, %cst_231 {dimension_numbers = #tpu.dot_dimension_numbers<[1], [0], [0], [1], [0, 0, 1, 1], [], []>} : vector<8x8xf32>, vector<8x16xf32>, vector<8x16xf32> -> vector<8x16xf32>
    %508 = vector.extract_strided_slice %471 {offsets = [0, 32], sizes = [8, 16], strides = [1, 1]} : vector<8x64xf32> to vector<8x16xf32>
    %509 = vector.extract_strided_slice %472 {offsets = [0, 32], sizes = [8, 16], strides = [1, 1]} : vector<8x64xf32> to vector<8x16xf32>
    %510 = vector.extract_strided_slice %473 {offsets = [0, 32], sizes = [8, 16], strides = [1, 1]} : vector<8x64xf32> to vector<8x16xf32>
    %511 = tpu.transpose %509, [1, 0] : vector<8x16xf32> -> vector<16x8xf32>
    %cst_232 = arith.constant dense<0.000000e+00> : vector<8x8xf32>
    %512 = tpu.matmul %508, %511, %cst_232 {dimension_numbers = #tpu.dot_dimension_numbers<[1], [0], [0], [1], [0, 0, 1, 1], [], []>} : vector<8x16xf32>, vector<16x8xf32>, vector<8x8xf32> -> vector<8x8xf32>
    %cst_233 = arith.constant 2.500000e-01 : f32
    %513 = vector.broadcast %cst_233 : f32 to vector<8x8xf32>
    %514 = arith.mulf %512, %513 : vector<8x8xf32>
    %cst_234 = arith.constant dense<0xFF800000> : vector<8xf32>
    %515 = vector.multi_reduction <maximumf>, %514, %cst_234 [1] : vector<8x8xf32> to vector<8xf32>
    %516 = vector.shape_cast %515 : vector<8xf32> to vector<8x1xf32>
    %517 = vector.broadcast %516 : vector<8x1xf32> to vector<8x8xf32>
    %518 = arith.subf %514, %517 : vector<8x8xf32>
    %519 = math.exp %518 : vector<8x8xf32>
    %cst_235 = arith.constant dense<0.000000e+00> : vector<8xf32>
    %520 = vector.multi_reduction <add>, %519, %cst_235 [1] : vector<8x8xf32> to vector<8xf32>
    %521 = vector.shape_cast %520 : vector<8xf32> to vector<8x1xf32>
    %522 = vector.broadcast %521 : vector<8x1xf32> to vector<8x8xf32>
    %523 = arith.divf %519, %522 : vector<8x8xf32>
    %cst_236 = arith.constant dense<0.000000e+00> : vector<8x16xf32>
    %524 = tpu.matmul %523, %510, %cst_236 {dimension_numbers = #tpu.dot_dimension_numbers<[1], [0], [0], [1], [0, 0, 1, 1], [], []>} : vector<8x8xf32>, vector<8x16xf32>, vector<8x16xf32> -> vector<8x16xf32>
    %525 = vector.extract_strided_slice %471 {offsets = [0, 48], sizes = [8, 16], strides = [1, 1]} : vector<8x64xf32> to vector<8x16xf32>
    %526 = vector.extract_strided_slice %472 {offsets = [0, 48], sizes = [8, 16], strides = [1, 1]} : vector<8x64xf32> to vector<8x16xf32>
    %527 = vector.extract_strided_slice %473 {offsets = [0, 48], sizes = [8, 16], strides = [1, 1]} : vector<8x64xf32> to vector<8x16xf32>
    %528 = tpu.transpose %526, [1, 0] : vector<8x16xf32> -> vector<16x8xf32>
    %cst_237 = arith.constant dense<0.000000e+00> : vector<8x8xf32>
    %529 = tpu.matmul %525, %528, %cst_237 {dimension_numbers = #tpu.dot_dimension_numbers<[1], [0], [0], [1], [0, 0, 1, 1], [], []>} : vector<8x16xf32>, vector<16x8xf32>, vector<8x8xf32> -> vector<8x8xf32>
    %cst_238 = arith.constant 2.500000e-01 : f32
    %530 = vector.broadcast %cst_238 : f32 to vector<8x8xf32>
    %531 = arith.mulf %529, %530 : vector<8x8xf32>
    %cst_239 = arith.constant dense<0xFF800000> : vector<8xf32>
    %532 = vector.multi_reduction <maximumf>, %531, %cst_239 [1] : vector<8x8xf32> to vector<8xf32>
    %533 = vector.shape_cast %532 : vector<8xf32> to vector<8x1xf32>
    %534 = vector.broadcast %533 : vector<8x1xf32> to vector<8x8xf32>
    %535 = arith.subf %531, %534 : vector<8x8xf32>
    %536 = math.exp %535 : vector<8x8xf32>
    %cst_240 = arith.constant dense<0.000000e+00> : vector<8xf32>
    %537 = vector.multi_reduction <add>, %536, %cst_240 [1] : vector<8x8xf32> to vector<8xf32>
    %538 = vector.shape_cast %537 : vector<8xf32> to vector<8x1xf32>
    %539 = vector.broadcast %538 : vector<8x1xf32> to vector<8x8xf32>
    %540 = arith.divf %536, %539 : vector<8x8xf32>
    %cst_241 = arith.constant dense<0.000000e+00> : vector<8x16xf32>
    %541 = tpu.matmul %540, %527, %cst_241 {dimension_numbers = #tpu.dot_dimension_numbers<[1], [0], [0], [1], [0, 0, 1, 1], [], []>} : vector<8x8xf32>, vector<8x16xf32>, vector<8x16xf32> -> vector<8x16xf32>
    %542 = tpu.concatenate %490, %507, %524, %541 in 1 : vector<8x16xf32>, vector<8x16xf32>, vector<8x16xf32>, vector<8x16xf32> -> vector<8x64xf32>
    %cst_242 = arith.constant dense<0.000000e+00> : vector<8x64xf32>
    %543 = tpu.matmul %542, %465, %cst_242 {dimension_numbers = #tpu.dot_dimension_numbers<[1], [0], [0], [1], [0, 0, 1, 1], [], []>} : vector<8x64xf32>, vector<64x64xf32>, vector<8x64xf32> -> vector<8x64xf32>
    %544 = vector.broadcast %467 : vector<1x64xf32> to vector<8x64xf32>
    %545 = arith.addf %543, %544 : vector<8x64xf32>
    %546 = arith.addf %433, %545 : vector<8x64xf32>
    %c0_243 = arith.constant 0 : index
    %c0_244 = arith.constant 0 : index
    %c0_245 = arith.constant 0 : index
    %547 = vector.load %arg17[%c0_243, %c0_244, %c0_245] : memref<3x1x64xf32, #tpu.memory_space<vmem>>, vector<1x1x64xf32>
    %548 = vector.shape_cast %547 : vector<1x1x64xf32> to vector<1x64xf32>
    %c0_246 = arith.constant 0 : index
    %c0_247 = arith.constant 0 : index
    %c0_248 = arith.constant 0 : index
    %549 = vector.load %arg16[%c0_246, %c0_247, %c0_248] : memref<3x1x64xf32, #tpu.memory_space<vmem>>, vector<1x1x64xf32>
    %550 = vector.shape_cast %549 : vector<1x1x64xf32> to vector<1x64xf32>
    %cst_249 = arith.constant dense<0.000000e+00> : vector<8xf32>
    %551 = vector.multi_reduction <add>, %546, %cst_249 [1] : vector<8x64xf32> to vector<8xf32>
    %552 = vector.shape_cast %551 : vector<8xf32> to vector<8x1xf32>
    %cst_250 = arith.constant 6.400000e+01 : f32
    %553 = vector.broadcast %cst_250 : f32 to vector<8x1xf32>
    %554 = arith.divf %552, %553 : vector<8x1xf32>
    %555 = vector.broadcast %554 : vector<8x1xf32> to vector<8x64xf32>
    %556 = arith.subf %546, %555 : vector<8x64xf32>
    %557 = arith.mulf %556, %556 : vector<8x64xf32>
    %cst_251 = arith.constant dense<0.000000e+00> : vector<8xf32>
    %558 = vector.multi_reduction <add>, %557, %cst_251 [1] : vector<8x64xf32> to vector<8xf32>
    %559 = vector.shape_cast %558 : vector<8xf32> to vector<8x1xf32>
    %cst_252 = arith.constant 6.400000e+01 : f32
    %560 = vector.broadcast %cst_252 : f32 to vector<8x1xf32>
    %561 = arith.divf %559, %560 : vector<8x1xf32>
    %562 = vector.broadcast %554 : vector<8x1xf32> to vector<8x64xf32>
    %563 = arith.subf %546, %562 : vector<8x64xf32>
    %cst_253 = arith.constant 9.99999974E-6 : f32
    %564 = vector.broadcast %cst_253 : f32 to vector<8x1xf32>
    %565 = arith.addf %561, %564 : vector<8x1xf32>
    %566 = math.rsqrt %565 : vector<8x1xf32>
    %567 = vector.broadcast %566 : vector<8x1xf32> to vector<8x64xf32>
    %568 = arith.mulf %563, %567 : vector<8x64xf32>
    %569 = vector.broadcast %548 : vector<1x64xf32> to vector<8x64xf32>
    %570 = arith.mulf %568, %569 : vector<8x64xf32>
    %571 = vector.broadcast %550 : vector<1x64xf32> to vector<8x64xf32>
    %572 = arith.addf %570, %571 : vector<8x64xf32>
    %c0_254 = arith.constant 0 : index
    %c0_255 = arith.constant 0 : index
    %c0_256 = arith.constant 0 : index
    %573 = vector.load %arg11[%c0_254, %c0_255, %c0_256] : memref<3x64x256xf32, #tpu.memory_space<vmem>>, vector<1x64x256xf32>
    %574 = vector.shape_cast %573 : vector<1x64x256xf32> to vector<64x256xf32>
    %c0_257 = arith.constant 0 : index
    %c0_258 = arith.constant 0 : index
    %c0_259 = arith.constant 0 : index
    %575 = vector.load %arg10[%c0_257, %c0_258, %c0_259] : memref<3x1x256xf32, #tpu.memory_space<vmem>>, vector<1x1x256xf32>
    %576 = vector.shape_cast %575 : vector<1x1x256xf32> to vector<1x256xf32>
    %cst_260 = arith.constant dense<0.000000e+00> : vector<8x256xf32>
    %577 = tpu.matmul %572, %574, %cst_260 {dimension_numbers = #tpu.dot_dimension_numbers<[1], [0], [0], [1], [0, 0, 1, 1], [], []>} : vector<8x64xf32>, vector<64x256xf32>, vector<8x256xf32> -> vector<8x256xf32>
    %578 = vector.broadcast %576 : vector<1x256xf32> to vector<8x256xf32>
    %579 = arith.addf %577, %578 : vector<8x256xf32>
    %580 = arith.mulf %579, %579 : vector<8x256xf32>
    %581 = arith.mulf %579, %580 : vector<8x256xf32>
    %cst_261 = arith.constant 4.471500e-02 : f32
    %582 = vector.broadcast %cst_261 : f32 to vector<8x256xf32>
    %583 = arith.mulf %582, %581 : vector<8x256xf32>
    %584 = arith.addf %579, %583 : vector<8x256xf32>
    %cst_262 = arith.constant 0.797884583 : f32
    %585 = vector.broadcast %cst_262 : f32 to vector<8x256xf32>
    %586 = arith.mulf %585, %584 : vector<8x256xf32>
    %587 = math.tanh %586 : vector<8x256xf32>
    %cst_263 = arith.constant 1.000000e+00 : f32
    %588 = vector.broadcast %cst_263 : f32 to vector<8x256xf32>
    %589 = arith.addf %588, %587 : vector<8x256xf32>
    %cst_264 = arith.constant 5.000000e-01 : f32
    %590 = vector.broadcast %cst_264 : f32 to vector<8x256xf32>
    %591 = arith.mulf %590, %589 : vector<8x256xf32>
    %592 = arith.mulf %579, %591 : vector<8x256xf32>
    %c0_265 = arith.constant 0 : index
    %c0_266 = arith.constant 0 : index
    %c0_267 = arith.constant 0 : index
    %593 = vector.load %arg13[%c0_265, %c0_266, %c0_267] : memref<3x256x64xf32, #tpu.memory_space<vmem>>, vector<1x256x64xf32>
    %594 = vector.shape_cast %593 : vector<1x256x64xf32> to vector<256x64xf32>
    %c0_268 = arith.constant 0 : index
    %c0_269 = arith.constant 0 : index
    %c0_270 = arith.constant 0 : index
    %595 = vector.load %arg12[%c0_268, %c0_269, %c0_270] : memref<3x1x64xf32, #tpu.memory_space<vmem>>, vector<1x1x64xf32>
    %596 = vector.shape_cast %595 : vector<1x1x64xf32> to vector<1x64xf32>
    %cst_271 = arith.constant dense<0.000000e+00> : vector<8x64xf32>
    %597 = tpu.matmul %592, %594, %cst_271 {dimension_numbers = #tpu.dot_dimension_numbers<[1], [0], [0], [1], [0, 0, 1, 1], [], []>} : vector<8x256xf32>, vector<256x64xf32>, vector<8x64xf32> -> vector<8x64xf32>
    %598 = vector.broadcast %596 : vector<1x64xf32> to vector<8x64xf32>
    %599 = arith.addf %597, %598 : vector<8x64xf32>
    %600 = arith.addf %546, %599 : vector<8x64xf32>
    %c1_272 = arith.constant 1 : index
    %c0_273 = arith.constant 0 : index
    %c0_274 = arith.constant 0 : index
    %601 = vector.load %arg15[%c1_272, %c0_273, %c0_274] : memref<3x1x64xf32, #tpu.memory_space<vmem>>, vector<1x1x64xf32>
    %602 = vector.shape_cast %601 : vector<1x1x64xf32> to vector<1x64xf32>
    %c1_275 = arith.constant 1 : index
    %c0_276 = arith.constant 0 : index
    %c0_277 = arith.constant 0 : index
    %603 = vector.load %arg14[%c1_275, %c0_276, %c0_277] : memref<3x1x64xf32, #tpu.memory_space<vmem>>, vector<1x1x64xf32>
    %604 = vector.shape_cast %603 : vector<1x1x64xf32> to vector<1x64xf32>
    %cst_278 = arith.constant dense<0.000000e+00> : vector<8xf32>
    %605 = vector.multi_reduction <add>, %600, %cst_278 [1] : vector<8x64xf32> to vector<8xf32>
    %606 = vector.shape_cast %605 : vector<8xf32> to vector<8x1xf32>
    %cst_279 = arith.constant 6.400000e+01 : f32
    %607 = vector.broadcast %cst_279 : f32 to vector<8x1xf32>
    %608 = arith.divf %606, %607 : vector<8x1xf32>
    %609 = vector.broadcast %608 : vector<8x1xf32> to vector<8x64xf32>
    %610 = arith.subf %600, %609 : vector<8x64xf32>
    %611 = arith.mulf %610, %610 : vector<8x64xf32>
    %cst_280 = arith.constant dense<0.000000e+00> : vector<8xf32>
    %612 = vector.multi_reduction <add>, %611, %cst_280 [1] : vector<8x64xf32> to vector<8xf32>
    %613 = vector.shape_cast %612 : vector<8xf32> to vector<8x1xf32>
    %cst_281 = arith.constant 6.400000e+01 : f32
    %614 = vector.broadcast %cst_281 : f32 to vector<8x1xf32>
    %615 = arith.divf %613, %614 : vector<8x1xf32>
    %616 = vector.broadcast %608 : vector<8x1xf32> to vector<8x64xf32>
    %617 = arith.subf %600, %616 : vector<8x64xf32>
    %cst_282 = arith.constant 9.99999974E-6 : f32
    %618 = vector.broadcast %cst_282 : f32 to vector<8x1xf32>
    %619 = arith.addf %615, %618 : vector<8x1xf32>
    %620 = math.rsqrt %619 : vector<8x1xf32>
    %621 = vector.broadcast %620 : vector<8x1xf32> to vector<8x64xf32>
    %622 = arith.mulf %617, %621 : vector<8x64xf32>
    %623 = vector.broadcast %602 : vector<1x64xf32> to vector<8x64xf32>
    %624 = arith.mulf %622, %623 : vector<8x64xf32>
    %625 = vector.broadcast %604 : vector<1x64xf32> to vector<8x64xf32>
    %626 = arith.addf %624, %625 : vector<8x64xf32>
    %c1_283 = arith.constant 1 : index
    %c0_284 = arith.constant 0 : index
    %c0_285 = arith.constant 0 : index
    %627 = vector.load %arg26[%c1_283, %c0_284, %c0_285] : memref<3x64x192xf32, #tpu.memory_space<vmem>>, vector<1x64x192xf32>
    %628 = vector.shape_cast %627 : vector<1x64x192xf32> to vector<64x192xf32>
    %c1_286 = arith.constant 1 : index
    %c0_287 = arith.constant 0 : index
    %c0_288 = arith.constant 0 : index
    %629 = vector.load %arg25[%c1_286, %c0_287, %c0_288] : memref<3x1x192xf32, #tpu.memory_space<vmem>>, vector<1x1x192xf32>
    %630 = vector.shape_cast %629 : vector<1x1x192xf32> to vector<1x192xf32>
    %c1_289 = arith.constant 1 : index
    %c0_290 = arith.constant 0 : index
    %c0_291 = arith.constant 0 : index
    %631 = vector.load %arg24[%c1_289, %c0_290, %c0_291] : memref<3x64x64xf32, #tpu.memory_space<vmem>>, vector<1x64x64xf32>
    %632 = vector.shape_cast %631 : vector<1x64x64xf32> to vector<64x64xf32>
    %c1_292 = arith.constant 1 : index
    %c0_293 = arith.constant 0 : index
    %c0_294 = arith.constant 0 : index
    %633 = vector.load %arg23[%c1_292, %c0_293, %c0_294] : memref<3x1x64xf32, #tpu.memory_space<vmem>>, vector<1x1x64xf32>
    %634 = vector.shape_cast %633 : vector<1x1x64xf32> to vector<1x64xf32>
    %cst_295 = arith.constant dense<0.000000e+00> : vector<8x192xf32>
    %635 = tpu.matmul %626, %628, %cst_295 {dimension_numbers = #tpu.dot_dimension_numbers<[1], [0], [0], [1], [0, 0, 1, 1], [], []>} : vector<8x64xf32>, vector<64x192xf32>, vector<8x192xf32> -> vector<8x192xf32>
    %636 = vector.broadcast %630 : vector<1x192xf32> to vector<8x192xf32>
    %637 = arith.addf %635, %636 : vector<8x192xf32>
    %638 = vector.extract_strided_slice %637 {offsets = [0, 0], sizes = [8, 64], strides = [1, 1]} : vector<8x192xf32> to vector<8x64xf32>
    %639 = vector.extract_strided_slice %637 {offsets = [0, 64], sizes = [8, 64], strides = [1, 1]} : vector<8x192xf32> to vector<8x64xf32>
    %640 = vector.extract_strided_slice %637 {offsets = [0, 128], sizes = [8, 64], strides = [1, 1]} : vector<8x192xf32> to vector<8x64xf32>
    %641 = vector.extract_strided_slice %638 {offsets = [0, 0], sizes = [8, 16], strides = [1, 1]} : vector<8x64xf32> to vector<8x16xf32>
    %642 = vector.extract_strided_slice %639 {offsets = [0, 0], sizes = [8, 16], strides = [1, 1]} : vector<8x64xf32> to vector<8x16xf32>
    %643 = vector.extract_strided_slice %640 {offsets = [0, 0], sizes = [8, 16], strides = [1, 1]} : vector<8x64xf32> to vector<8x16xf32>
    %644 = tpu.transpose %642, [1, 0] : vector<8x16xf32> -> vector<16x8xf32>
    %cst_296 = arith.constant dense<0.000000e+00> : vector<8x8xf32>
    %645 = tpu.matmul %641, %644, %cst_296 {dimension_numbers = #tpu.dot_dimension_numbers<[1], [0], [0], [1], [0, 0, 1, 1], [], []>} : vector<8x16xf32>, vector<16x8xf32>, vector<8x8xf32> -> vector<8x8xf32>
    %cst_297 = arith.constant 2.500000e-01 : f32
    %646 = vector.broadcast %cst_297 : f32 to vector<8x8xf32>
    %647 = arith.mulf %645, %646 : vector<8x8xf32>
    %cst_298 = arith.constant dense<0xFF800000> : vector<8xf32>
    %648 = vector.multi_reduction <maximumf>, %647, %cst_298 [1] : vector<8x8xf32> to vector<8xf32>
    %649 = vector.shape_cast %648 : vector<8xf32> to vector<8x1xf32>
    %650 = vector.broadcast %649 : vector<8x1xf32> to vector<8x8xf32>
    %651 = arith.subf %647, %650 : vector<8x8xf32>
    %652 = math.exp %651 : vector<8x8xf32>
    %cst_299 = arith.constant dense<0.000000e+00> : vector<8xf32>
    %653 = vector.multi_reduction <add>, %652, %cst_299 [1] : vector<8x8xf32> to vector<8xf32>
    %654 = vector.shape_cast %653 : vector<8xf32> to vector<8x1xf32>
    %655 = vector.broadcast %654 : vector<8x1xf32> to vector<8x8xf32>
    %656 = arith.divf %652, %655 : vector<8x8xf32>
    %cst_300 = arith.constant dense<0.000000e+00> : vector<8x16xf32>
    %657 = tpu.matmul %656, %643, %cst_300 {dimension_numbers = #tpu.dot_dimension_numbers<[1], [0], [0], [1], [0, 0, 1, 1], [], []>} : vector<8x8xf32>, vector<8x16xf32>, vector<8x16xf32> -> vector<8x16xf32>
    %658 = vector.extract_strided_slice %638 {offsets = [0, 16], sizes = [8, 16], strides = [1, 1]} : vector<8x64xf32> to vector<8x16xf32>
    %659 = vector.extract_strided_slice %639 {offsets = [0, 16], sizes = [8, 16], strides = [1, 1]} : vector<8x64xf32> to vector<8x16xf32>
    %660 = vector.extract_strided_slice %640 {offsets = [0, 16], sizes = [8, 16], strides = [1, 1]} : vector<8x64xf32> to vector<8x16xf32>
    %661 = tpu.transpose %659, [1, 0] : vector<8x16xf32> -> vector<16x8xf32>
    %cst_301 = arith.constant dense<0.000000e+00> : vector<8x8xf32>
    %662 = tpu.matmul %658, %661, %cst_301 {dimension_numbers = #tpu.dot_dimension_numbers<[1], [0], [0], [1], [0, 0, 1, 1], [], []>} : vector<8x16xf32>, vector<16x8xf32>, vector<8x8xf32> -> vector<8x8xf32>
    %cst_302 = arith.constant 2.500000e-01 : f32
    %663 = vector.broadcast %cst_302 : f32 to vector<8x8xf32>
    %664 = arith.mulf %662, %663 : vector<8x8xf32>
    %cst_303 = arith.constant dense<0xFF800000> : vector<8xf32>
    %665 = vector.multi_reduction <maximumf>, %664, %cst_303 [1] : vector<8x8xf32> to vector<8xf32>
    %666 = vector.shape_cast %665 : vector<8xf32> to vector<8x1xf32>
    %667 = vector.broadcast %666 : vector<8x1xf32> to vector<8x8xf32>
    %668 = arith.subf %664, %667 : vector<8x8xf32>
    %669 = math.exp %668 : vector<8x8xf32>
    %cst_304 = arith.constant dense<0.000000e+00> : vector<8xf32>
    %670 = vector.multi_reduction <add>, %669, %cst_304 [1] : vector<8x8xf32> to vector<8xf32>
    %671 = vector.shape_cast %670 : vector<8xf32> to vector<8x1xf32>
    %672 = vector.broadcast %671 : vector<8x1xf32> to vector<8x8xf32>
    %673 = arith.divf %669, %672 : vector<8x8xf32>
    %cst_305 = arith.constant dense<0.000000e+00> : vector<8x16xf32>
    %674 = tpu.matmul %673, %660, %cst_305 {dimension_numbers = #tpu.dot_dimension_numbers<[1], [0], [0], [1], [0, 0, 1, 1], [], []>} : vector<8x8xf32>, vector<8x16xf32>, vector<8x16xf32> -> vector<8x16xf32>
    %675 = vector.extract_strided_slice %638 {offsets = [0, 32], sizes = [8, 16], strides = [1, 1]} : vector<8x64xf32> to vector<8x16xf32>
    %676 = vector.extract_strided_slice %639 {offsets = [0, 32], sizes = [8, 16], strides = [1, 1]} : vector<8x64xf32> to vector<8x16xf32>
    %677 = vector.extract_strided_slice %640 {offsets = [0, 32], sizes = [8, 16], strides = [1, 1]} : vector<8x64xf32> to vector<8x16xf32>
    %678 = tpu.transpose %676, [1, 0] : vector<8x16xf32> -> vector<16x8xf32>
    %cst_306 = arith.constant dense<0.000000e+00> : vector<8x8xf32>
    %679 = tpu.matmul %675, %678, %cst_306 {dimension_numbers = #tpu.dot_dimension_numbers<[1], [0], [0], [1], [0, 0, 1, 1], [], []>} : vector<8x16xf32>, vector<16x8xf32>, vector<8x8xf32> -> vector<8x8xf32>
    %cst_307 = arith.constant 2.500000e-01 : f32
    %680 = vector.broadcast %cst_307 : f32 to vector<8x8xf32>
    %681 = arith.mulf %679, %680 : vector<8x8xf32>
    %cst_308 = arith.constant dense<0xFF800000> : vector<8xf32>
    %682 = vector.multi_reduction <maximumf>, %681, %cst_308 [1] : vector<8x8xf32> to vector<8xf32>
    %683 = vector.shape_cast %682 : vector<8xf32> to vector<8x1xf32>
    %684 = vector.broadcast %683 : vector<8x1xf32> to vector<8x8xf32>
    %685 = arith.subf %681, %684 : vector<8x8xf32>
    %686 = math.exp %685 : vector<8x8xf32>
    %cst_309 = arith.constant dense<0.000000e+00> : vector<8xf32>
    %687 = vector.multi_reduction <add>, %686, %cst_309 [1] : vector<8x8xf32> to vector<8xf32>
    %688 = vector.shape_cast %687 : vector<8xf32> to vector<8x1xf32>
    %689 = vector.broadcast %688 : vector<8x1xf32> to vector<8x8xf32>
    %690 = arith.divf %686, %689 : vector<8x8xf32>
    %cst_310 = arith.constant dense<0.000000e+00> : vector<8x16xf32>
    %691 = tpu.matmul %690, %677, %cst_310 {dimension_numbers = #tpu.dot_dimension_numbers<[1], [0], [0], [1], [0, 0, 1, 1], [], []>} : vector<8x8xf32>, vector<8x16xf32>, vector<8x16xf32> -> vector<8x16xf32>
    %692 = vector.extract_strided_slice %638 {offsets = [0, 48], sizes = [8, 16], strides = [1, 1]} : vector<8x64xf32> to vector<8x16xf32>
    %693 = vector.extract_strided_slice %639 {offsets = [0, 48], sizes = [8, 16], strides = [1, 1]} : vector<8x64xf32> to vector<8x16xf32>
    %694 = vector.extract_strided_slice %640 {offsets = [0, 48], sizes = [8, 16], strides = [1, 1]} : vector<8x64xf32> to vector<8x16xf32>
    %695 = tpu.transpose %693, [1, 0] : vector<8x16xf32> -> vector<16x8xf32>
    %cst_311 = arith.constant dense<0.000000e+00> : vector<8x8xf32>
    %696 = tpu.matmul %692, %695, %cst_311 {dimension_numbers = #tpu.dot_dimension_numbers<[1], [0], [0], [1], [0, 0, 1, 1], [], []>} : vector<8x16xf32>, vector<16x8xf32>, vector<8x8xf32> -> vector<8x8xf32>
    %cst_312 = arith.constant 2.500000e-01 : f32
    %697 = vector.broadcast %cst_312 : f32 to vector<8x8xf32>
    %698 = arith.mulf %696, %697 : vector<8x8xf32>
    %cst_313 = arith.constant dense<0xFF800000> : vector<8xf32>
    %699 = vector.multi_reduction <maximumf>, %698, %cst_313 [1] : vector<8x8xf32> to vector<8xf32>
    %700 = vector.shape_cast %699 : vector<8xf32> to vector<8x1xf32>
    %701 = vector.broadcast %700 : vector<8x1xf32> to vector<8x8xf32>
    %702 = arith.subf %698, %701 : vector<8x8xf32>
    %703 = math.exp %702 : vector<8x8xf32>
    %cst_314 = arith.constant dense<0.000000e+00> : vector<8xf32>
    %704 = vector.multi_reduction <add>, %703, %cst_314 [1] : vector<8x8xf32> to vector<8xf32>
    %705 = vector.shape_cast %704 : vector<8xf32> to vector<8x1xf32>
    %706 = vector.broadcast %705 : vector<8x1xf32> to vector<8x8xf32>
    %707 = arith.divf %703, %706 : vector<8x8xf32>
    %cst_315 = arith.constant dense<0.000000e+00> : vector<8x16xf32>
    %708 = tpu.matmul %707, %694, %cst_315 {dimension_numbers = #tpu.dot_dimension_numbers<[1], [0], [0], [1], [0, 0, 1, 1], [], []>} : vector<8x8xf32>, vector<8x16xf32>, vector<8x16xf32> -> vector<8x16xf32>
    %709 = tpu.concatenate %657, %674, %691, %708 in 1 : vector<8x16xf32>, vector<8x16xf32>, vector<8x16xf32>, vector<8x16xf32> -> vector<8x64xf32>
    %cst_316 = arith.constant dense<0.000000e+00> : vector<8x64xf32>
    %710 = tpu.matmul %709, %632, %cst_316 {dimension_numbers = #tpu.dot_dimension_numbers<[1], [0], [0], [1], [0, 0, 1, 1], [], []>} : vector<8x64xf32>, vector<64x64xf32>, vector<8x64xf32> -> vector<8x64xf32>
    %711 = vector.broadcast %634 : vector<1x64xf32> to vector<8x64xf32>
    %712 = arith.addf %710, %711 : vector<8x64xf32>
    %713 = arith.addf %600, %712 : vector<8x64xf32>
    %c1_317 = arith.constant 1 : index
    %c0_318 = arith.constant 0 : index
    %c0_319 = arith.constant 0 : index
    %714 = vector.load %arg17[%c1_317, %c0_318, %c0_319] : memref<3x1x64xf32, #tpu.memory_space<vmem>>, vector<1x1x64xf32>
    %715 = vector.shape_cast %714 : vector<1x1x64xf32> to vector<1x64xf32>
    %c1_320 = arith.constant 1 : index
    %c0_321 = arith.constant 0 : index
    %c0_322 = arith.constant 0 : index
    %716 = vector.load %arg16[%c1_320, %c0_321, %c0_322] : memref<3x1x64xf32, #tpu.memory_space<vmem>>, vector<1x1x64xf32>
    %717 = vector.shape_cast %716 : vector<1x1x64xf32> to vector<1x64xf32>
    %cst_323 = arith.constant dense<0.000000e+00> : vector<8xf32>
    %718 = vector.multi_reduction <add>, %713, %cst_323 [1] : vector<8x64xf32> to vector<8xf32>
    %719 = vector.shape_cast %718 : vector<8xf32> to vector<8x1xf32>
    %cst_324 = arith.constant 6.400000e+01 : f32
    %720 = vector.broadcast %cst_324 : f32 to vector<8x1xf32>
    %721 = arith.divf %719, %720 : vector<8x1xf32>
    %722 = vector.broadcast %721 : vector<8x1xf32> to vector<8x64xf32>
    %723 = arith.subf %713, %722 : vector<8x64xf32>
    %724 = arith.mulf %723, %723 : vector<8x64xf32>
    %cst_325 = arith.constant dense<0.000000e+00> : vector<8xf32>
    %725 = vector.multi_reduction <add>, %724, %cst_325 [1] : vector<8x64xf32> to vector<8xf32>
    %726 = vector.shape_cast %725 : vector<8xf32> to vector<8x1xf32>
    %cst_326 = arith.constant 6.400000e+01 : f32
    %727 = vector.broadcast %cst_326 : f32 to vector<8x1xf32>
    %728 = arith.divf %726, %727 : vector<8x1xf32>
    %729 = vector.broadcast %721 : vector<8x1xf32> to vector<8x64xf32>
    %730 = arith.subf %713, %729 : vector<8x64xf32>
    %cst_327 = arith.constant 9.99999974E-6 : f32
    %731 = vector.broadcast %cst_327 : f32 to vector<8x1xf32>
    %732 = arith.addf %728, %731 : vector<8x1xf32>
    %733 = math.rsqrt %732 : vector<8x1xf32>
    %734 = vector.broadcast %733 : vector<8x1xf32> to vector<8x64xf32>
    %735 = arith.mulf %730, %734 : vector<8x64xf32>
    %736 = vector.broadcast %715 : vector<1x64xf32> to vector<8x64xf32>
    %737 = arith.mulf %735, %736 : vector<8x64xf32>
    %738 = vector.broadcast %717 : vector<1x64xf32> to vector<8x64xf32>
    %739 = arith.addf %737, %738 : vector<8x64xf32>
    %c1_328 = arith.constant 1 : index
    %c0_329 = arith.constant 0 : index
    %c0_330 = arith.constant 0 : index
    %740 = vector.load %arg11[%c1_328, %c0_329, %c0_330] : memref<3x64x256xf32, #tpu.memory_space<vmem>>, vector<1x64x256xf32>
    %741 = vector.shape_cast %740 : vector<1x64x256xf32> to vector<64x256xf32>
    %c1_331 = arith.constant 1 : index
    %c0_332 = arith.constant 0 : index
    %c0_333 = arith.constant 0 : index
    %742 = vector.load %arg10[%c1_331, %c0_332, %c0_333] : memref<3x1x256xf32, #tpu.memory_space<vmem>>, vector<1x1x256xf32>
    %743 = vector.shape_cast %742 : vector<1x1x256xf32> to vector<1x256xf32>
    %cst_334 = arith.constant dense<0.000000e+00> : vector<8x256xf32>
    %744 = tpu.matmul %739, %741, %cst_334 {dimension_numbers = #tpu.dot_dimension_numbers<[1], [0], [0], [1], [0, 0, 1, 1], [], []>} : vector<8x64xf32>, vector<64x256xf32>, vector<8x256xf32> -> vector<8x256xf32>
    %745 = vector.broadcast %743 : vector<1x256xf32> to vector<8x256xf32>
    %746 = arith.addf %744, %745 : vector<8x256xf32>
    %747 = arith.mulf %746, %746 : vector<8x256xf32>
    %748 = arith.mulf %746, %747 : vector<8x256xf32>
    %cst_335 = arith.constant 4.471500e-02 : f32
    %749 = vector.broadcast %cst_335 : f32 to vector<8x256xf32>
    %750 = arith.mulf %749, %748 : vector<8x256xf32>
    %751 = arith.addf %746, %750 : vector<8x256xf32>
    %cst_336 = arith.constant 0.797884583 : f32
    %752 = vector.broadcast %cst_336 : f32 to vector<8x256xf32>
    %753 = arith.mulf %752, %751 : vector<8x256xf32>
    %754 = math.tanh %753 : vector<8x256xf32>
    %cst_337 = arith.constant 1.000000e+00 : f32
    %755 = vector.broadcast %cst_337 : f32 to vector<8x256xf32>
    %756 = arith.addf %755, %754 : vector<8x256xf32>
    %cst_338 = arith.constant 5.000000e-01 : f32
    %757 = vector.broadcast %cst_338 : f32 to vector<8x256xf32>
    %758 = arith.mulf %757, %756 : vector<8x256xf32>
    %759 = arith.mulf %746, %758 : vector<8x256xf32>
    %c1_339 = arith.constant 1 : index
    %c0_340 = arith.constant 0 : index
    %c0_341 = arith.constant 0 : index
    %760 = vector.load %arg13[%c1_339, %c0_340, %c0_341] : memref<3x256x64xf32, #tpu.memory_space<vmem>>, vector<1x256x64xf32>
    %761 = vector.shape_cast %760 : vector<1x256x64xf32> to vector<256x64xf32>
    %c1_342 = arith.constant 1 : index
    %c0_343 = arith.constant 0 : index
    %c0_344 = arith.constant 0 : index
    %762 = vector.load %arg12[%c1_342, %c0_343, %c0_344] : memref<3x1x64xf32, #tpu.memory_space<vmem>>, vector<1x1x64xf32>
    %763 = vector.shape_cast %762 : vector<1x1x64xf32> to vector<1x64xf32>
    %cst_345 = arith.constant dense<0.000000e+00> : vector<8x64xf32>
    %764 = tpu.matmul %759, %761, %cst_345 {dimension_numbers = #tpu.dot_dimension_numbers<[1], [0], [0], [1], [0, 0, 1, 1], [], []>} : vector<8x256xf32>, vector<256x64xf32>, vector<8x64xf32> -> vector<8x64xf32>
    %765 = vector.broadcast %763 : vector<1x64xf32> to vector<8x64xf32>
    %766 = arith.addf %764, %765 : vector<8x64xf32>
    %767 = arith.addf %713, %766 : vector<8x64xf32>
    %c2 = arith.constant 2 : index
    %c0_346 = arith.constant 0 : index
    %c0_347 = arith.constant 0 : index
    %768 = vector.load %arg15[%c2, %c0_346, %c0_347] : memref<3x1x64xf32, #tpu.memory_space<vmem>>, vector<1x1x64xf32>
    %769 = vector.shape_cast %768 : vector<1x1x64xf32> to vector<1x64xf32>
    %c2_348 = arith.constant 2 : index
    %c0_349 = arith.constant 0 : index
    %c0_350 = arith.constant 0 : index
    %770 = vector.load %arg14[%c2_348, %c0_349, %c0_350] : memref<3x1x64xf32, #tpu.memory_space<vmem>>, vector<1x1x64xf32>
    %771 = vector.shape_cast %770 : vector<1x1x64xf32> to vector<1x64xf32>
    %cst_351 = arith.constant dense<0.000000e+00> : vector<8xf32>
    %772 = vector.multi_reduction <add>, %767, %cst_351 [1] : vector<8x64xf32> to vector<8xf32>
    %773 = vector.shape_cast %772 : vector<8xf32> to vector<8x1xf32>
    %cst_352 = arith.constant 6.400000e+01 : f32
    %774 = vector.broadcast %cst_352 : f32 to vector<8x1xf32>
    %775 = arith.divf %773, %774 : vector<8x1xf32>
    %776 = vector.broadcast %775 : vector<8x1xf32> to vector<8x64xf32>
    %777 = arith.subf %767, %776 : vector<8x64xf32>
    %778 = arith.mulf %777, %777 : vector<8x64xf32>
    %cst_353 = arith.constant dense<0.000000e+00> : vector<8xf32>
    %779 = vector.multi_reduction <add>, %778, %cst_353 [1] : vector<8x64xf32> to vector<8xf32>
    %780 = vector.shape_cast %779 : vector<8xf32> to vector<8x1xf32>
    %cst_354 = arith.constant 6.400000e+01 : f32
    %781 = vector.broadcast %cst_354 : f32 to vector<8x1xf32>
    %782 = arith.divf %780, %781 : vector<8x1xf32>
    %783 = vector.broadcast %775 : vector<8x1xf32> to vector<8x64xf32>
    %784 = arith.subf %767, %783 : vector<8x64xf32>
    %cst_355 = arith.constant 9.99999974E-6 : f32
    %785 = vector.broadcast %cst_355 : f32 to vector<8x1xf32>
    %786 = arith.addf %782, %785 : vector<8x1xf32>
    %787 = math.rsqrt %786 : vector<8x1xf32>
    %788 = vector.broadcast %787 : vector<8x1xf32> to vector<8x64xf32>
    %789 = arith.mulf %784, %788 : vector<8x64xf32>
    %790 = vector.broadcast %769 : vector<1x64xf32> to vector<8x64xf32>
    %791 = arith.mulf %789, %790 : vector<8x64xf32>
    %792 = vector.broadcast %771 : vector<1x64xf32> to vector<8x64xf32>
    %793 = arith.addf %791, %792 : vector<8x64xf32>
    %c2_356 = arith.constant 2 : index
    %c0_357 = arith.constant 0 : index
    %c0_358 = arith.constant 0 : index
    %794 = vector.load %arg26[%c2_356, %c0_357, %c0_358] : memref<3x64x192xf32, #tpu.memory_space<vmem>>, vector<1x64x192xf32>
    %795 = vector.shape_cast %794 : vector<1x64x192xf32> to vector<64x192xf32>
    %c2_359 = arith.constant 2 : index
    %c0_360 = arith.constant 0 : index
    %c0_361 = arith.constant 0 : index
    %796 = vector.load %arg25[%c2_359, %c0_360, %c0_361] : memref<3x1x192xf32, #tpu.memory_space<vmem>>, vector<1x1x192xf32>
    %797 = vector.shape_cast %796 : vector<1x1x192xf32> to vector<1x192xf32>
    %c2_362 = arith.constant 2 : index
    %c0_363 = arith.constant 0 : index
    %c0_364 = arith.constant 0 : index
    %798 = vector.load %arg24[%c2_362, %c0_363, %c0_364] : memref<3x64x64xf32, #tpu.memory_space<vmem>>, vector<1x64x64xf32>
    %799 = vector.shape_cast %798 : vector<1x64x64xf32> to vector<64x64xf32>
    %c2_365 = arith.constant 2 : index
    %c0_366 = arith.constant 0 : index
    %c0_367 = arith.constant 0 : index
    %800 = vector.load %arg23[%c2_365, %c0_366, %c0_367] : memref<3x1x64xf32, #tpu.memory_space<vmem>>, vector<1x1x64xf32>
    %801 = vector.shape_cast %800 : vector<1x1x64xf32> to vector<1x64xf32>
    %cst_368 = arith.constant dense<0.000000e+00> : vector<8x192xf32>
    %802 = tpu.matmul %793, %795, %cst_368 {dimension_numbers = #tpu.dot_dimension_numbers<[1], [0], [0], [1], [0, 0, 1, 1], [], []>} : vector<8x64xf32>, vector<64x192xf32>, vector<8x192xf32> -> vector<8x192xf32>
    %803 = vector.broadcast %797 : vector<1x192xf32> to vector<8x192xf32>
    %804 = arith.addf %802, %803 : vector<8x192xf32>
    %805 = vector.extract_strided_slice %804 {offsets = [0, 0], sizes = [8, 64], strides = [1, 1]} : vector<8x192xf32> to vector<8x64xf32>
    %806 = vector.extract_strided_slice %804 {offsets = [0, 64], sizes = [8, 64], strides = [1, 1]} : vector<8x192xf32> to vector<8x64xf32>
    %807 = vector.extract_strided_slice %804 {offsets = [0, 128], sizes = [8, 64], strides = [1, 1]} : vector<8x192xf32> to vector<8x64xf32>
    %808 = vector.extract_strided_slice %805 {offsets = [0, 0], sizes = [8, 16], strides = [1, 1]} : vector<8x64xf32> to vector<8x16xf32>
    %809 = vector.extract_strided_slice %806 {offsets = [0, 0], sizes = [8, 16], strides = [1, 1]} : vector<8x64xf32> to vector<8x16xf32>
    %810 = vector.extract_strided_slice %807 {offsets = [0, 0], sizes = [8, 16], strides = [1, 1]} : vector<8x64xf32> to vector<8x16xf32>
    %811 = tpu.transpose %809, [1, 0] : vector<8x16xf32> -> vector<16x8xf32>
    %cst_369 = arith.constant dense<0.000000e+00> : vector<8x8xf32>
    %812 = tpu.matmul %808, %811, %cst_369 {dimension_numbers = #tpu.dot_dimension_numbers<[1], [0], [0], [1], [0, 0, 1, 1], [], []>} : vector<8x16xf32>, vector<16x8xf32>, vector<8x8xf32> -> vector<8x8xf32>
    %cst_370 = arith.constant 2.500000e-01 : f32
    %813 = vector.broadcast %cst_370 : f32 to vector<8x8xf32>
    %814 = arith.mulf %812, %813 : vector<8x8xf32>
    %cst_371 = arith.constant dense<0xFF800000> : vector<8xf32>
    %815 = vector.multi_reduction <maximumf>, %814, %cst_371 [1] : vector<8x8xf32> to vector<8xf32>
    %816 = vector.shape_cast %815 : vector<8xf32> to vector<8x1xf32>
    %817 = vector.broadcast %816 : vector<8x1xf32> to vector<8x8xf32>
    %818 = arith.subf %814, %817 : vector<8x8xf32>
    %819 = math.exp %818 : vector<8x8xf32>
    %cst_372 = arith.constant dense<0.000000e+00> : vector<8xf32>
    %820 = vector.multi_reduction <add>, %819, %cst_372 [1] : vector<8x8xf32> to vector<8xf32>
    %821 = vector.shape_cast %820 : vector<8xf32> to vector<8x1xf32>
    %822 = vector.broadcast %821 : vector<8x1xf32> to vector<8x8xf32>
    %823 = arith.divf %819, %822 : vector<8x8xf32>
    %cst_373 = arith.constant dense<0.000000e+00> : vector<8x16xf32>
    %824 = tpu.matmul %823, %810, %cst_373 {dimension_numbers = #tpu.dot_dimension_numbers<[1], [0], [0], [1], [0, 0, 1, 1], [], []>} : vector<8x8xf32>, vector<8x16xf32>, vector<8x16xf32> -> vector<8x16xf32>
    %825 = vector.extract_strided_slice %805 {offsets = [0, 16], sizes = [8, 16], strides = [1, 1]} : vector<8x64xf32> to vector<8x16xf32>
    %826 = vector.extract_strided_slice %806 {offsets = [0, 16], sizes = [8, 16], strides = [1, 1]} : vector<8x64xf32> to vector<8x16xf32>
    %827 = vector.extract_strided_slice %807 {offsets = [0, 16], sizes = [8, 16], strides = [1, 1]} : vector<8x64xf32> to vector<8x16xf32>
    %828 = tpu.transpose %826, [1, 0] : vector<8x16xf32> -> vector<16x8xf32>
    %cst_374 = arith.constant dense<0.000000e+00> : vector<8x8xf32>
    %829 = tpu.matmul %825, %828, %cst_374 {dimension_numbers = #tpu.dot_dimension_numbers<[1], [0], [0], [1], [0, 0, 1, 1], [], []>} : vector<8x16xf32>, vector<16x8xf32>, vector<8x8xf32> -> vector<8x8xf32>
    %cst_375 = arith.constant 2.500000e-01 : f32
    %830 = vector.broadcast %cst_375 : f32 to vector<8x8xf32>
    %831 = arith.mulf %829, %830 : vector<8x8xf32>
    %cst_376 = arith.constant dense<0xFF800000> : vector<8xf32>
    %832 = vector.multi_reduction <maximumf>, %831, %cst_376 [1] : vector<8x8xf32> to vector<8xf32>
    %833 = vector.shape_cast %832 : vector<8xf32> to vector<8x1xf32>
    %834 = vector.broadcast %833 : vector<8x1xf32> to vector<8x8xf32>
    %835 = arith.subf %831, %834 : vector<8x8xf32>
    %836 = math.exp %835 : vector<8x8xf32>
    %cst_377 = arith.constant dense<0.000000e+00> : vector<8xf32>
    %837 = vector.multi_reduction <add>, %836, %cst_377 [1] : vector<8x8xf32> to vector<8xf32>
    %838 = vector.shape_cast %837 : vector<8xf32> to vector<8x1xf32>
    %839 = vector.broadcast %838 : vector<8x1xf32> to vector<8x8xf32>
    %840 = arith.divf %836, %839 : vector<8x8xf32>
    %cst_378 = arith.constant dense<0.000000e+00> : vector<8x16xf32>
    %841 = tpu.matmul %840, %827, %cst_378 {dimension_numbers = #tpu.dot_dimension_numbers<[1], [0], [0], [1], [0, 0, 1, 1], [], []>} : vector<8x8xf32>, vector<8x16xf32>, vector<8x16xf32> -> vector<8x16xf32>
    %842 = vector.extract_strided_slice %805 {offsets = [0, 32], sizes = [8, 16], strides = [1, 1]} : vector<8x64xf32> to vector<8x16xf32>
    %843 = vector.extract_strided_slice %806 {offsets = [0, 32], sizes = [8, 16], strides = [1, 1]} : vector<8x64xf32> to vector<8x16xf32>
    %844 = vector.extract_strided_slice %807 {offsets = [0, 32], sizes = [8, 16], strides = [1, 1]} : vector<8x64xf32> to vector<8x16xf32>
    %845 = tpu.transpose %843, [1, 0] : vector<8x16xf32> -> vector<16x8xf32>
    %cst_379 = arith.constant dense<0.000000e+00> : vector<8x8xf32>
    %846 = tpu.matmul %842, %845, %cst_379 {dimension_numbers = #tpu.dot_dimension_numbers<[1], [0], [0], [1], [0, 0, 1, 1], [], []>} : vector<8x16xf32>, vector<16x8xf32>, vector<8x8xf32> -> vector<8x8xf32>
    %cst_380 = arith.constant 2.500000e-01 : f32
    %847 = vector.broadcast %cst_380 : f32 to vector<8x8xf32>
    %848 = arith.mulf %846, %847 : vector<8x8xf32>
    %cst_381 = arith.constant dense<0xFF800000> : vector<8xf32>
    %849 = vector.multi_reduction <maximumf>, %848, %cst_381 [1] : vector<8x8xf32> to vector<8xf32>
    %850 = vector.shape_cast %849 : vector<8xf32> to vector<8x1xf32>
    %851 = vector.broadcast %850 : vector<8x1xf32> to vector<8x8xf32>
    %852 = arith.subf %848, %851 : vector<8x8xf32>
    %853 = math.exp %852 : vector<8x8xf32>
    %cst_382 = arith.constant dense<0.000000e+00> : vector<8xf32>
    %854 = vector.multi_reduction <add>, %853, %cst_382 [1] : vector<8x8xf32> to vector<8xf32>
    %855 = vector.shape_cast %854 : vector<8xf32> to vector<8x1xf32>
    %856 = vector.broadcast %855 : vector<8x1xf32> to vector<8x8xf32>
    %857 = arith.divf %853, %856 : vector<8x8xf32>
    %cst_383 = arith.constant dense<0.000000e+00> : vector<8x16xf32>
    %858 = tpu.matmul %857, %844, %cst_383 {dimension_numbers = #tpu.dot_dimension_numbers<[1], [0], [0], [1], [0, 0, 1, 1], [], []>} : vector<8x8xf32>, vector<8x16xf32>, vector<8x16xf32> -> vector<8x16xf32>
    %859 = vector.extract_strided_slice %805 {offsets = [0, 48], sizes = [8, 16], strides = [1, 1]} : vector<8x64xf32> to vector<8x16xf32>
    %860 = vector.extract_strided_slice %806 {offsets = [0, 48], sizes = [8, 16], strides = [1, 1]} : vector<8x64xf32> to vector<8x16xf32>
    %861 = vector.extract_strided_slice %807 {offsets = [0, 48], sizes = [8, 16], strides = [1, 1]} : vector<8x64xf32> to vector<8x16xf32>
    %862 = tpu.transpose %860, [1, 0] : vector<8x16xf32> -> vector<16x8xf32>
    %cst_384 = arith.constant dense<0.000000e+00> : vector<8x8xf32>
    %863 = tpu.matmul %859, %862, %cst_384 {dimension_numbers = #tpu.dot_dimension_numbers<[1], [0], [0], [1], [0, 0, 1, 1], [], []>} : vector<8x16xf32>, vector<16x8xf32>, vector<8x8xf32> -> vector<8x8xf32>
    %cst_385 = arith.constant 2.500000e-01 : f32
    %864 = vector.broadcast %cst_385 : f32 to vector<8x8xf32>
    %865 = arith.mulf %863, %864 : vector<8x8xf32>
    %cst_386 = arith.constant dense<0xFF800000> : vector<8xf32>
    %866 = vector.multi_reduction <maximumf>, %865, %cst_386 [1] : vector<8x8xf32> to vector<8xf32>
    %867 = vector.shape_cast %866 : vector<8xf32> to vector<8x1xf32>
    %868 = vector.broadcast %867 : vector<8x1xf32> to vector<8x8xf32>
    %869 = arith.subf %865, %868 : vector<8x8xf32>
    %870 = math.exp %869 : vector<8x8xf32>
    %cst_387 = arith.constant dense<0.000000e+00> : vector<8xf32>
    %871 = vector.multi_reduction <add>, %870, %cst_387 [1] : vector<8x8xf32> to vector<8xf32>
    %872 = vector.shape_cast %871 : vector<8xf32> to vector<8x1xf32>
    %873 = vector.broadcast %872 : vector<8x1xf32> to vector<8x8xf32>
    %874 = arith.divf %870, %873 : vector<8x8xf32>
    %cst_388 = arith.constant dense<0.000000e+00> : vector<8x16xf32>
    %875 = tpu.matmul %874, %861, %cst_388 {dimension_numbers = #tpu.dot_dimension_numbers<[1], [0], [0], [1], [0, 0, 1, 1], [], []>} : vector<8x8xf32>, vector<8x16xf32>, vector<8x16xf32> -> vector<8x16xf32>
    %876 = tpu.concatenate %824, %841, %858, %875 in 1 : vector<8x16xf32>, vector<8x16xf32>, vector<8x16xf32>, vector<8x16xf32> -> vector<8x64xf32>
    %cst_389 = arith.constant dense<0.000000e+00> : vector<8x64xf32>
    %877 = tpu.matmul %876, %799, %cst_389 {dimension_numbers = #tpu.dot_dimension_numbers<[1], [0], [0], [1], [0, 0, 1, 1], [], []>} : vector<8x64xf32>, vector<64x64xf32>, vector<8x64xf32> -> vector<8x64xf32>
    %878 = vector.broadcast %801 : vector<1x64xf32> to vector<8x64xf32>
    %879 = arith.addf %877, %878 : vector<8x64xf32>
    %880 = arith.addf %767, %879 : vector<8x64xf32>
    %c2_390 = arith.constant 2 : index
    %c0_391 = arith.constant 0 : index
    %c0_392 = arith.constant 0 : index
    %881 = vector.load %arg17[%c2_390, %c0_391, %c0_392] : memref<3x1x64xf32, #tpu.memory_space<vmem>>, vector<1x1x64xf32>
    %882 = vector.shape_cast %881 : vector<1x1x64xf32> to vector<1x64xf32>
    %c2_393 = arith.constant 2 : index
    %c0_394 = arith.constant 0 : index
    %c0_395 = arith.constant 0 : index
    %883 = vector.load %arg16[%c2_393, %c0_394, %c0_395] : memref<3x1x64xf32, #tpu.memory_space<vmem>>, vector<1x1x64xf32>
    %884 = vector.shape_cast %883 : vector<1x1x64xf32> to vector<1x64xf32>
    %cst_396 = arith.constant dense<0.000000e+00> : vector<8xf32>
    %885 = vector.multi_reduction <add>, %880, %cst_396 [1] : vector<8x64xf32> to vector<8xf32>
    %886 = vector.shape_cast %885 : vector<8xf32> to vector<8x1xf32>
    %cst_397 = arith.constant 6.400000e+01 : f32
    %887 = vector.broadcast %cst_397 : f32 to vector<8x1xf32>
    %888 = arith.divf %886, %887 : vector<8x1xf32>
    %889 = vector.broadcast %888 : vector<8x1xf32> to vector<8x64xf32>
    %890 = arith.subf %880, %889 : vector<8x64xf32>
    %891 = arith.mulf %890, %890 : vector<8x64xf32>
    %cst_398 = arith.constant dense<0.000000e+00> : vector<8xf32>
    %892 = vector.multi_reduction <add>, %891, %cst_398 [1] : vector<8x64xf32> to vector<8xf32>
    %893 = vector.shape_cast %892 : vector<8xf32> to vector<8x1xf32>
    %cst_399 = arith.constant 6.400000e+01 : f32
    %894 = vector.broadcast %cst_399 : f32 to vector<8x1xf32>
    %895 = arith.divf %893, %894 : vector<8x1xf32>
    %896 = vector.broadcast %888 : vector<8x1xf32> to vector<8x64xf32>
    %897 = arith.subf %880, %896 : vector<8x64xf32>
    %cst_400 = arith.constant 9.99999974E-6 : f32
    %898 = vector.broadcast %cst_400 : f32 to vector<8x1xf32>
    %899 = arith.addf %895, %898 : vector<8x1xf32>
    %900 = math.rsqrt %899 : vector<8x1xf32>
    %901 = vector.broadcast %900 : vector<8x1xf32> to vector<8x64xf32>
    %902 = arith.mulf %897, %901 : vector<8x64xf32>
    %903 = vector.broadcast %882 : vector<1x64xf32> to vector<8x64xf32>
    %904 = arith.mulf %902, %903 : vector<8x64xf32>
    %905 = vector.broadcast %884 : vector<1x64xf32> to vector<8x64xf32>
    %906 = arith.addf %904, %905 : vector<8x64xf32>
    %c2_401 = arith.constant 2 : index
    %c0_402 = arith.constant 0 : index
    %c0_403 = arith.constant 0 : index
    %907 = vector.load %arg11[%c2_401, %c0_402, %c0_403] : memref<3x64x256xf32, #tpu.memory_space<vmem>>, vector<1x64x256xf32>
    %908 = vector.shape_cast %907 : vector<1x64x256xf32> to vector<64x256xf32>
    %c2_404 = arith.constant 2 : index
    %c0_405 = arith.constant 0 : index
    %c0_406 = arith.constant 0 : index
    %909 = vector.load %arg10[%c2_404, %c0_405, %c0_406] : memref<3x1x256xf32, #tpu.memory_space<vmem>>, vector<1x1x256xf32>
    %910 = vector.shape_cast %909 : vector<1x1x256xf32> to vector<1x256xf32>
    %cst_407 = arith.constant dense<0.000000e+00> : vector<8x256xf32>
    %911 = tpu.matmul %906, %908, %cst_407 {dimension_numbers = #tpu.dot_dimension_numbers<[1], [0], [0], [1], [0, 0, 1, 1], [], []>} : vector<8x64xf32>, vector<64x256xf32>, vector<8x256xf32> -> vector<8x256xf32>
    %912 = vector.broadcast %910 : vector<1x256xf32> to vector<8x256xf32>
    %913 = arith.addf %911, %912 : vector<8x256xf32>
    %914 = arith.mulf %913, %913 : vector<8x256xf32>
    %915 = arith.mulf %913, %914 : vector<8x256xf32>
    %cst_408 = arith.constant 4.471500e-02 : f32
    %916 = vector.broadcast %cst_408 : f32 to vector<8x256xf32>
    %917 = arith.mulf %916, %915 : vector<8x256xf32>
    %918 = arith.addf %913, %917 : vector<8x256xf32>
    %cst_409 = arith.constant 0.797884583 : f32
    %919 = vector.broadcast %cst_409 : f32 to vector<8x256xf32>
    %920 = arith.mulf %919, %918 : vector<8x256xf32>
    %921 = math.tanh %920 : vector<8x256xf32>
    %cst_410 = arith.constant 1.000000e+00 : f32
    %922 = vector.broadcast %cst_410 : f32 to vector<8x256xf32>
    %923 = arith.addf %922, %921 : vector<8x256xf32>
    %cst_411 = arith.constant 5.000000e-01 : f32
    %924 = vector.broadcast %cst_411 : f32 to vector<8x256xf32>
    %925 = arith.mulf %924, %923 : vector<8x256xf32>
    %926 = arith.mulf %913, %925 : vector<8x256xf32>
    %c2_412 = arith.constant 2 : index
    %c0_413 = arith.constant 0 : index
    %c0_414 = arith.constant 0 : index
    %927 = vector.load %arg13[%c2_412, %c0_413, %c0_414] : memref<3x256x64xf32, #tpu.memory_space<vmem>>, vector<1x256x64xf32>
    %928 = vector.shape_cast %927 : vector<1x256x64xf32> to vector<256x64xf32>
    %c2_415 = arith.constant 2 : index
    %c0_416 = arith.constant 0 : index
    %c0_417 = arith.constant 0 : index
    %929 = vector.load %arg12[%c2_415, %c0_416, %c0_417] : memref<3x1x64xf32, #tpu.memory_space<vmem>>, vector<1x1x64xf32>
    %930 = vector.shape_cast %929 : vector<1x1x64xf32> to vector<1x64xf32>
    %cst_418 = arith.constant dense<0.000000e+00> : vector<8x64xf32>
    %931 = tpu.matmul %926, %928, %cst_418 {dimension_numbers = #tpu.dot_dimension_numbers<[1], [0], [0], [1], [0, 0, 1, 1], [], []>} : vector<8x256xf32>, vector<256x64xf32>, vector<8x64xf32> -> vector<8x64xf32>
    %932 = vector.broadcast %930 : vector<1x64xf32> to vector<8x64xf32>
    %933 = arith.addf %931, %932 : vector<8x64xf32>
    %934 = arith.addf %880, %933 : vector<8x64xf32>
    %c0_419 = arith.constant 0 : index
    %c0_420 = arith.constant 0 : index
    %935 = vector.load %arg19[%c0_419, %c0_420] : memref<1x64xf32, #tpu.memory_space<vmem>>, vector<1x64xf32>
    %c0_421 = arith.constant 0 : index
    %c0_422 = arith.constant 0 : index
    %936 = vector.load %arg18[%c0_421, %c0_422] : memref<1x64xf32, #tpu.memory_space<vmem>>, vector<1x64xf32>
    %cst_423 = arith.constant dense<0.000000e+00> : vector<8xf32>
    %937 = vector.multi_reduction <add>, %934, %cst_423 [1] : vector<8x64xf32> to vector<8xf32>
    %938 = vector.shape_cast %937 : vector<8xf32> to vector<8x1xf32>
    %cst_424 = arith.constant 6.400000e+01 : f32
    %939 = vector.broadcast %cst_424 : f32 to vector<8x1xf32>
    %940 = arith.divf %938, %939 : vector<8x1xf32>
    %941 = vector.broadcast %940 : vector<8x1xf32> to vector<8x64xf32>
    %942 = arith.subf %934, %941 : vector<8x64xf32>
    %943 = arith.mulf %942, %942 : vector<8x64xf32>
    %cst_425 = arith.constant dense<0.000000e+00> : vector<8xf32>
    %944 = vector.multi_reduction <add>, %943, %cst_425 [1] : vector<8x64xf32> to vector<8xf32>
    %945 = vector.shape_cast %944 : vector<8xf32> to vector<8x1xf32>
    %cst_426 = arith.constant 6.400000e+01 : f32
    %946 = vector.broadcast %cst_426 : f32 to vector<8x1xf32>
    %947 = arith.divf %945, %946 : vector<8x1xf32>
    %948 = vector.broadcast %940 : vector<8x1xf32> to vector<8x64xf32>
    %949 = arith.subf %934, %948 : vector<8x64xf32>
    %cst_427 = arith.constant 9.99999974E-6 : f32
    %950 = vector.broadcast %cst_427 : f32 to vector<8x1xf32>
    %951 = arith.addf %947, %950 : vector<8x1xf32>
    %952 = math.rsqrt %951 : vector<8x1xf32>
    %953 = vector.broadcast %952 : vector<8x1xf32> to vector<8x64xf32>
    %954 = arith.mulf %949, %953 : vector<8x64xf32>
    %955 = vector.broadcast %935 : vector<1x64xf32> to vector<8x64xf32>
    %956 = arith.mulf %954, %955 : vector<8x64xf32>
    %957 = vector.broadcast %936 : vector<1x64xf32> to vector<8x64xf32>
    %958 = arith.addf %956, %957 : vector<8x64xf32>
    %c0_428 = arith.constant 0 : index
    %c0_429 = arith.constant 0 : index
    %959 = vector.load %arg8[%c0_428, %c0_429] : memref<64x64xf32, #tpu.memory_space<vmem>>, vector<64x64xf32>
    %c0_430 = arith.constant 0 : index
    %c0_431 = arith.constant 0 : index
    %960 = vector.load %arg6[%c0_430, %c0_431] : memref<1x64xf32, #tpu.memory_space<vmem>>, vector<1x64xf32>
    %cst_432 = arith.constant dense<0.000000e+00> : vector<8x64xf32>
    %961 = tpu.matmul %958, %959, %cst_432 {dimension_numbers = #tpu.dot_dimension_numbers<[1], [0], [0], [1], [0, 0, 1, 1], [], []>} : vector<8x64xf32>, vector<64x64xf32>, vector<8x64xf32> -> vector<8x64xf32>
    %962 = vector.broadcast %960 : vector<1x64xf32> to vector<8x64xf32>
    %963 = arith.addf %961, %962 : vector<8x64xf32>
    %964 = math.tanh %963 : vector<8x64xf32>
    %c0_433 = arith.constant 0 : index
    %c0_434 = arith.constant 0 : index
    %965 = vector.load %arg9[%c0_433, %c0_434] : memref<64x64xf32, #tpu.memory_space<vmem>>, vector<64x64xf32>
    %c0_435 = arith.constant 0 : index
    %c0_436 = arith.constant 0 : index
    %966 = vector.load %arg7[%c0_435, %c0_436] : memref<1x64xf32, #tpu.memory_space<vmem>>, vector<1x64xf32>
    %cst_437 = arith.constant dense<0.000000e+00> : vector<8x64xf32>
    %967 = tpu.matmul %964, %965, %cst_437 {dimension_numbers = #tpu.dot_dimension_numbers<[1], [0], [0], [1], [0, 0, 1, 1], [], []>} : vector<8x64xf32>, vector<64x64xf32>, vector<8x64xf32> -> vector<8x64xf32>
    %968 = vector.broadcast %966 : vector<1x64xf32> to vector<8x64xf32>
    %969 = arith.addf %967, %968 : vector<8x64xf32>
    %c0_438 = arith.constant 0 : index
    %c0_439 = arith.constant 0 : index
    %c0_440 = arith.constant 0 : index
    %970 = vector.load %arg45[%c0_438, %c0_439, %c0_440] : memref<1x8x64xf32, #tpu.memory_space<vmem>>, vector<1x8x64xf32>
    %971 = vector.shape_cast %970 : vector<1x8x64xf32> to vector<8x64xf32>
    %972 = vector.shape_cast %969 : vector<8x64xf32> to vector<1x8x64xf32>
    tpu.vector_store %arg45[%c0_438, %c0_439, %c0_440], %972 {strides = array<i32>} : memref<1x8x64xf32, #tpu.memory_space<vmem>>, vector<1x8x64xf32>,
    return
  }
  func.func @transform_0(%arg0: i32) -> (i32, i32, i32) {
    %c0_i32 = arith.constant 0 : i32
    %c0_i32_0 = arith.constant 0 : i32
    %c0_i32_1 = arith.constant 0 : i32
    return %arg0, %c0_i32, %c0_i32_0 : i32, i32, i32
  }
  func.func @transform_1(%arg0: i32) -> (i32, i32) {
    %c0_i32 = arith.constant 0 : i32
    %c0_i32_0 = arith.constant 0 : i32
    %c0_i32_1 = arith.constant 0 : i32
    return %c0_i32, %c0_i32_0 : i32, i32
  }
  func.func @transform_2(%arg0: i32) -> (i32, i32) {
    %c0_i32 = arith.constant 0 : i32
    %c0_i32_0 = arith.constant 0 : i32
    %c0_i32_1 = arith.constant 0 : i32
    return %c0_i32, %c0_i32_0 : i32, i32
  }
  func.func @transform_3(%arg0: i32) -> (i32, i32) {
    %c0_i32 = arith.constant 0 : i32
    %c0_i32_0 = arith.constant 0 : i32
    %c0_i32_1 = arith.constant 0 : i32
    return %c0_i32, %c0_i32_0 : i32, i32
  }
  func.func @transform_4(%arg0: i32) -> (i32, i32) {
    %c0_i32 = arith.constant 0 : i32
    %c0_i32_0 = arith.constant 0 : i32
    %c0_i32_1 = arith.constant 0 : i32
    return %c0_i32, %c0_i32_0 : i32, i32
  }
  func.func @transform_5(%arg0: i32) -> (i32, i32) {
    %c0_i32 = arith.constant 0 : i32
    %c0_i32_0 = arith.constant 0 : i32
    %c0_i32_1 = arith.constant 0 : i32
    return %c0_i32, %c0_i32_0 : i32, i32
  }
  func.func @transform_6(%arg0: i32) -> (i32, i32) {
    %c0_i32 = arith.constant 0 : i32
    %c0_i32_0 = arith.constant 0 : i32
    %c0_i32_1 = arith.constant 0 : i32
    return %c0_i32, %c0_i32_0 : i32, i32
  }
  func.func @transform_7(%arg0: i32) -> (i32, i32) {
    %c0_i32 = arith.constant 0 : i32
    %c0_i32_0 = arith.constant 0 : i32
    %c0_i32_1 = arith.constant 0 : i32
    return %c0_i32, %c0_i32_0 : i32, i32
  }
  func.func @transform_8(%arg0: i32) -> (i32, i32) {
    %c0_i32 = arith.constant 0 : i32
    %c0_i32_0 = arith.constant 0 : i32
    %c0_i32_1 = arith.constant 0 : i32
    return %c0_i32, %c0_i32_0 : i32, i32
  }
  func.func @transform_9(%arg0: i32) -> (i32, i32, i32) {
    %c0_i32 = arith.constant 0 : i32
    %c0_i32_0 = arith.constant 0 : i32
    %c0_i32_1 = arith.constant 0 : i32
    %c0_i32_2 = arith.constant 0 : i32
    return %c0_i32, %c0_i32_0, %c0_i32_1 : i32, i32, i32
  }
  func.func @transform_10(%arg0: i32) -> (i32, i32, i32) {
    %c0_i32 = arith.constant 0 : i32
    %c0_i32_0 = arith.constant 0 : i32
    %c0_i32_1 = arith.constant 0 : i32
    %c0_i32_2 = arith.constant 0 : i32
    return %c0_i32, %c0_i32_0, %c0_i32_1 : i32, i32, i32
  }
  func.func @transform_11(%arg0: i32) -> (i32, i32, i32) {
    %c0_i32 = arith.constant 0 : i32
    %c0_i32_0 = arith.constant 0 : i32
    %c0_i32_1 = arith.constant 0 : i32
    %c0_i32_2 = arith.constant 0 : i32
    return %c0_i32, %c0_i32_0, %c0_i32_1 : i32, i32, i32
  }
  func.func @transform_12(%arg0: i32) -> (i32, i32, i32) {
    %c0_i32 = arith.constant 0 : i32
    %c0_i32_0 = arith.constant 0 : i32
    %c0_i32_1 = arith.constant 0 : i32
    %c0_i32_2 = arith.constant 0 : i32
    return %c0_i32, %c0_i32_0, %c0_i32_1 : i32, i32, i32
  }
  func.func @transform_13(%arg0: i32) -> (i32, i32, i32) {
    %c0_i32 = arith.constant 0 : i32
    %c0_i32_0 = arith.constant 0 : i32
    %c0_i32_1 = arith.constant 0 : i32
    %c0_i32_2 = arith.constant 0 : i32
    return %c0_i32, %c0_i32_0, %c0_i32_1 : i32, i32, i32
  }
  func.func @transform_14(%arg0: i32) -> (i32, i32, i32) {
    %c0_i32 = arith.constant 0 : i32
    %c0_i32_0 = arith.constant 0 : i32
    %c0_i32_1 = arith.constant 0 : i32
    %c0_i32_2 = arith.constant 0 : i32
    return %c0_i32, %c0_i32_0, %c0_i32_1 : i32, i32, i32
  }
  func.func @transform_15(%arg0: i32) -> (i32, i32, i32) {
    %c0_i32 = arith.constant 0 : i32
    %c0_i32_0 = arith.constant 0 : i32
    %c0_i32_1 = arith.constant 0 : i32
    %c0_i32_2 = arith.constant 0 : i32
    return %c0_i32, %c0_i32_0, %c0_i32_1 : i32, i32, i32
  }
  func.func @transform_16(%arg0: i32) -> (i32, i32, i32) {
    %c0_i32 = arith.constant 0 : i32
    %c0_i32_0 = arith.constant 0 : i32
    %c0_i32_1 = arith.constant 0 : i32
    %c0_i32_2 = arith.constant 0 : i32
    return %c0_i32, %c0_i32_0, %c0_i32_1 : i32, i32, i32
  }
  func.func @transform_17(%arg0: i32) -> (i32, i32) {
    %c0_i32 = arith.constant 0 : i32
    %c0_i32_0 = arith.constant 0 : i32
    %c0_i32_1 = arith.constant 0 : i32
    return %c0_i32, %c0_i32_0 : i32, i32
  }
  func.func @transform_18(%arg0: i32) -> (i32, i32) {
    %c0_i32 = arith.constant 0 : i32
    %c0_i32_0 = arith.constant 0 : i32
    %c0_i32_1 = arith.constant 0 : i32
    return %c0_i32, %c0_i32_0 : i32, i32
  }
  func.func @transform_19(%arg0: i32) -> (i32, i32) {
    %c0_i32 = arith.constant 0 : i32
    %c0_i32_0 = arith.constant 0 : i32
    %c0_i32_1 = arith.constant 0 : i32
    return %c0_i32, %c0_i32_0 : i32, i32
  }
  func.func @transform_20(%arg0: i32) -> (i32, i32) {
    %c0_i32 = arith.constant 0 : i32
    %c0_i32_0 = arith.constant 0 : i32
    %c0_i32_1 = arith.constant 0 : i32
    return %c0_i32, %c0_i32_0 : i32, i32
  }
  func.func @transform_21(%arg0: i32) -> (i32, i32) {
    %c0_i32 = arith.constant 0 : i32
    %c0_i32_0 = arith.constant 0 : i32
    %c0_i32_1 = arith.constant 0 : i32
    return %c0_i32, %c0_i32_0 : i32, i32
  }
  func.func @transform_22(%arg0: i32) -> (i32, i32, i32) {
    %c0_i32 = arith.constant 0 : i32
    %c0_i32_0 = arith.constant 0 : i32
    %c0_i32_1 = arith.constant 0 : i32
    %c0_i32_2 = arith.constant 0 : i32
    return %c0_i32, %c0_i32_0, %c0_i32_1 : i32, i32, i32
  }
  func.func @transform_23(%arg0: i32) -> (i32, i32, i32) {
    %c0_i32 = arith.constant 0 : i32
    %c0_i32_0 = arith.constant 0 : i32
    %c0_i32_1 = arith.constant 0 : i32
    %c0_i32_2 = arith.constant 0 : i32
    return %c0_i32, %c0_i32_0, %c0_i32_1 : i32, i32, i32
  }
  func.func @transform_24(%arg0: i32) -> (i32, i32, i32) {
    %c0_i32 = arith.constant 0 : i32
    %c0_i32_0 = arith.constant 0 : i32
    %c0_i32_1 = arith.constant 0 : i32
    %c0_i32_2 = arith.constant 0 : i32
    return %c0_i32, %c0_i32_0, %c0_i32_1 : i32, i32, i32
  }
  func.func @transform_25(%arg0: i32) -> (i32, i32, i32) {
    %c0_i32 = arith.constant 0 : i32
    %c0_i32_0 = arith.constant 0 : i32
    %c0_i32_1 = arith.constant 0 : i32
    %c0_i32_2 = arith.constant 0 : i32
    return %c0_i32, %c0_i32_0, %c0_i32_1 : i32, i32, i32
  }
  func.func @transform_26(%arg0: i32) -> (i32, i32, i32) {
    %c0_i32 = arith.constant 0 : i32
    %c0_i32_0 = arith.constant 0 : i32
    %c0_i32_1 = arith.constant 0 : i32
    %c0_i32_2 = arith.constant 0 : i32
    return %c0_i32, %c0_i32_0, %c0_i32_1 : i32, i32, i32
  }
  func.func @transform_27(%arg0: i32) -> (i32, i32, i32) {
    %c0_i32 = arith.constant 0 : i32
    %c0_i32_0 = arith.constant 0 : i32
    %c0_i32_1 = arith.constant 0 : i32
    %c0_i32_2 = arith.constant 0 : i32
    return %c0_i32, %c0_i32_0, %c0_i32_1 : i32, i32, i32
  }
  func.func @transform_28(%arg0: i32) -> (i32, i32, i32) {
    %c0_i32 = arith.constant 0 : i32
    %c0_i32_0 = arith.constant 0 : i32
    %c0_i32_1 = arith.constant 0 : i32
    %c0_i32_2 = arith.constant 0 : i32
    return %c0_i32, %c0_i32_0, %c0_i32_1 : i32, i32, i32
  }
  func.func @transform_29(%arg0: i32) -> (i32, i32, i32) {
    %c0_i32 = arith.constant 0 : i32
    %c0_i32_0 = arith.constant 0 : i32
    %c0_i32_1 = arith.constant 0 : i32
    %c0_i32_2 = arith.constant 0 : i32
    return %c0_i32, %c0_i32_0, %c0_i32_1 : i32, i32, i32
  }
  func.func @transform_30(%arg0: i32) -> (i32, i32, i32) {
    %c0_i32 = arith.constant 0 : i32
    %c0_i32_0 = arith.constant 0 : i32
    %c0_i32_1 = arith.constant 0 : i32
    %c0_i32_2 = arith.constant 0 : i32
    return %c0_i32, %c0_i32_0, %c0_i32_1 : i32, i32, i32
  }
  func.func @transform_31(%arg0: i32) -> (i32, i32, i32) {
    %c0_i32 = arith.constant 0 : i32
    %c0_i32_0 = arith.constant 0 : i32
    %c0_i32_1 = arith.constant 0 : i32
    %c0_i32_2 = arith.constant 0 : i32
    return %c0_i32, %c0_i32_0, %c0_i32_1 : i32, i32, i32
  }
  func.func @transform_32(%arg0: i32) -> (i32, i32, i32) {
    %c0_i32 = arith.constant 0 : i32
    %c0_i32_0 = arith.constant 0 : i32
    %c0_i32_1 = arith.constant 0 : i32
    %c0_i32_2 = arith.constant 0 : i32
    return %c0_i32, %c0_i32_0, %c0_i32_1 : i32, i32, i32
  }
  func.func @transform_33(%arg0: i32) -> (i32, i32, i32) {
    %c0_i32 = arith.constant 0 : i32
    %c0_i32_0 = arith.constant 0 : i32
    %c0_i32_1 = arith.constant 0 : i32
    %c0_i32_2 = arith.constant 0 : i32
    return %c0_i32, %c0_i32_0, %c0_i32_1 : i32, i32, i32
  }
  func.func @transform_34(%arg0: i32) -> (i32, i32) {
    %c0_i32 = arith.constant 0 : i32
    %c0_i32_0 = arith.constant 0 : i32
    %c0_i32_1 = arith.constant 0 : i32
    return %c0_i32, %c0_i32_0 : i32, i32
  }
  func.func @transform_35(%arg0: i32) -> (i32, i32) {
    %c0_i32 = arith.constant 0 : i32
    %c0_i32_0 = arith.constant 0 : i32
    %c0_i32_1 = arith.constant 0 : i32
    return %c0_i32, %c0_i32_0 : i32, i32
  }
  func.func @transform_36(%arg0: i32) -> (i32, i32) {
    %c0_i32 = arith.constant 0 : i32
    %c0_i32_0 = arith.constant 0 : i32
    %c0_i32_1 = arith.constant 0 : i32
    return %c0_i32, %c0_i32_0 : i32, i32
  }
  func.func @transform_37(%arg0: i32) -> (i32, i32) {
    %c0_i32 = arith.constant 0 : i32
    %c0_i32_0 = arith.constant 0 : i32
    %c0_i32_1 = arith.constant 0 : i32
    return %c0_i32, %c0_i32_0 : i32, i32
  }
  func.func @transform_38(%arg0: i32) -> (i32, i32) {
    %c0_i32 = arith.constant 0 : i32
    %c0_i32_0 = arith.constant 0 : i32
    %c0_i32_1 = arith.constant 0 : i32
    return %c0_i32, %c0_i32_0 : i32, i32
  }
  func.func @transform_39(%arg0: i32) -> (i32, i32, i32) {
    %c0_i32 = arith.constant 0 : i32
    %c0_i32_0 = arith.constant 0 : i32
    %c0_i32_1 = arith.constant 0 : i32
    %c0_i32_2 = arith.constant 0 : i32
    return %c0_i32, %c0_i32_0, %c0_i32_1 : i32, i32, i32
  }
  func.func @transform_40(%arg0: i32) -> (i32, i32, i32) {
    %c0_i32 = arith.constant 0 : i32
    %c0_i32_0 = arith.constant 0 : i32
    %c0_i32_1 = arith.constant 0 : i32
    %c0_i32_2 = arith.constant 0 : i32
    return %c0_i32, %c0_i32_0, %c0_i32_1 : i32, i32, i32
  }
  func.func @transform_41(%arg0: i32) -> (i32, i32, i32) {
    %c0_i32 = arith.constant 0 : i32
    %c0_i32_0 = arith.constant 0 : i32
    %c0_i32_1 = arith.constant 0 : i32
    %c0_i32_2 = arith.constant 0 : i32
    return %c0_i32, %c0_i32_0, %c0_i32_1 : i32, i32, i32
  }
  func.func @transform_42(%arg0: i32) -> (i32, i32, i32) {
    %c0_i32 = arith.constant 0 : i32
    %c0_i32_0 = arith.constant 0 : i32
    %c0_i32_1 = arith.constant 0 : i32
    %c0_i32_2 = arith.constant 0 : i32
    return %c0_i32, %c0_i32_0, %c0_i32_1 : i32, i32, i32
  }
  func.func @transform_43(%arg0: i32) -> (i32, i32) {
    %c0_i32 = arith.constant 0 : i32
    %c0_i32_0 = arith.constant 0 : i32
    %c0_i32_1 = arith.constant 0 : i32
    return %c0_i32, %c0_i32_0 : i32, i32
  }
  func.func @transform_44(%arg0: i32) -> (i32, i32, i32) {
    %c0_i32 = arith.constant 0 : i32
    %c0_i32_0 = arith.constant 0 : i32
    %c0_i32_1 = arith.constant 0 : i32
    return %arg0, %c0_i32, %c0_i32_0 : i32, i32, i32
  }
  func.func @transform_45(%arg0: i32) -> (i32, i32, i32) {
    %c0_i32 = arith.constant 0 : i32
    %c0_i32_0 = arith.constant 0 : i32
    %c0_i32_1 = arith.constant 0 : i32
    return %arg0, %c0_i32, %c0_i32_0 : i32, i32, i32
  }
  func.func @transform_46(%arg0: i32) -> (i32, i32, i32) {
    %c0_i32 = arith.constant 0 : i32
    %c0_i32_0 = arith.constant 0 : i32
    %c0_i32_1 = arith.constant 0 : i32
    return %arg0, %c0_i32, %c0_i32_0 : i32, i32, i32
  }
}

</mosaic_0001>

<bundles_post_ra>
// kernel: _lambda_.1
= control target key start
LH: loop header
LB: loop body
LE: loop exit
PB: predicated region body
PF: predicated region fallthrough
CT: control target
= control target key end

     0   :  { %s11109_s6 = smov 1   ;;  %s11110_s10 = smov 2   ;;  %s12555_s0 = inlined_call_operand.smem [shape: u32[47], index: -1, kind: input, shape index: {}] }
   0x1   :  { %s11192_s5 = sld [smem:[%s12555_s0]]   ;;  %s11111_s14 = smov 3  }
   0x2   :  { %s11197_s9 = sld [smem:[%s12555_s0 + %s11109_s6]]   ;;  %s11112_s18 = smov 4  }
   0x3   :  { %s11202_s13 = sld [smem:[%s12555_s0 + %s11110_s10]]   ;;  %s11113_s22 = smov 5  }
   0x4   :  { %s11207_s17 = sld [smem:[%s12555_s0 + %s11111_s14]]   ;;  %s11114_s26 = smov 6  }
   0x5   :  { %s11212_s21 = sld [smem:[%s12555_s0 + %s11112_s18]]   ;;  %s11115_s30 = smov 7  }
   0x6   :  { %s11217_s25 = sld [smem:[%s12555_s0 + %s11113_s22]]   ;;  %s11116_s4 = smov 8  }
   0x7   :  { %12623 = sst [smem:[#allocation32_spill]] %s11192_s5  ;;  %s11117_s10 = smov 9  }
   0x8   :  { %12624 = sst [smem:[#allocation33_spill]] %s11197_s9  ;;  %s11118_s15 = smov 10  }
   0x9   :  { %12625 = sst [smem:[#allocation34_spill]] %s11202_s13  ;;  %s11119_s20 = smov 11  }
   0xa   :  { %12626 = sst [smem:[#allocation35_spill]] %s11207_s17  ;;  %s11121_s1 = smov 13  }
   0xb   :  { %12627 = sst [smem:[#allocation36_spill]] %s11212_s21  ;;  %s11122_s7 = smov 14  }
   0xc   :  { %12628 = sst [smem:[#allocation37_spill]] %s11217_s25  ;;  %s11124_s22 = smov 16  }
   0xd   :  { %s11222_s29 = sld [smem:[%s12555_s0 + %s11114_s26]]   ;;  %s11120_s26 = smov 12  }
   0xe   :  { %s11227_s3 = sld [smem:[%s12555_s0 + %s11115_s30]]   ;;  %s11125_s28 = smov 17  }
   0xf   :  { %s11232_s8 = sld [smem:[%s12555_s0 + %s11116_s4]]  }
  0x10   :  { %s11237_s14 = sld [smem:[%s12555_s0 + %s11117_s10]]  }
  0x11   :  { %s11242_s19 = sld [smem:[%s12555_s0 + %s11118_s15]]   ;;  %s11123_s15 = smov 15  }
  0x12   :  { %s11247_s24 = sld [smem:[%s12555_s0 + %s11119_s20]]  }
  0x13   :  { %12629 = sst [smem:[#allocation38_spill]] %s11222_s29 }
  0x14   :  { %12630 = sst [smem:[#allocation39_spill]] %s11227_s3 }
  0x15   :  { %12631 = sst [smem:[#allocation40_spill]] %s11232_s8 }
  0x16   :  { %12632 = sst [smem:[#allocation41_spill]] %s11237_s14 }
  0x17   :  { %12633 = sst [smem:[#allocation42_spill]] %s11242_s19 }
  0x18   :  { %12634 = sst [smem:[#allocation43_spill]] %s11247_s24 }
  0x19   :  { %s11252_s30 = sld [smem:[%s12555_s0 + %s11120_s26]]  }
  0x1a   :  { %s11257_s6 = sld [smem:[%s12555_s0 + %s11121_s1]]  }
  0x1b   :  { %s11262_s12 = sld [smem:[%s12555_s0 + %s11122_s7]]   ;;  %s11126_s7 = smov 18  }
  0x1c   :  { %s11267_s20 = sld [smem:[%s12555_s0 + %s11123_s15]]   ;;  %s11127_s15 = smov 19  }
  0x1d   :  { %s11272_s27 = sld [smem:[%s12555_s0 + %s11124_s22]]   ;;  %s11128_s22 = smov 20  }
  0x1e   :  { %s11277_s4 = sld [smem:[%s12555_s0 + %s11125_s28]]   ;;  %s11129_s28 = smov 21  }
  0x1f   :  { %12635 = sst [smem:[#allocation44_spill]] %s11252_s30 }
  0x20   :  { %12636 = sst [smem:[#allocation45_spill]] %s11257_s6 }
  0x21   :  { %12637 = sst [smem:[#allocation46_spill]] %s11262_s12 }
  0x22   :  { %12638 = sst [smem:[#allocation47_spill]] %s11267_s20 }
  0x23   :  { %12639 = sst [smem:[#allocation48_spill]] %s11272_s27 }
  0x24   :  { %12640 = sst [smem:[#allocation49_spill]] %s11277_s4 }
  0x25   :  { %s11282_s29 = sld [smem:[%s12555_s0 + %s11126_s7]]   ;;  %s11130_s7 = smov 22  }
  0x26   :  { %s11287_s25 = sld [smem:[%s12555_s0 + %s11127_s15]]   ;;  %s11131_s15 = smov 23  }
  0x27   :  { %s11292_s24 = sld [smem:[%s12555_s0 + %s11128_s22]]   ;;  %s11132_s22 = smov 24  }
  0x28   :  { %s11297_s4 = sld [smem:[%s12555_s0 + %s11129_s28]]   ;;  %s11133_s28 = smov 25  }
  0x29   :  { %s11307_s14 = sld [smem:[%s12555_s0 + %s11131_s15]]   ;;  %s11135_s15 = smov 27  }
  0x2a   :  { %s11312_s30 = sld [smem:[%s12555_s0 + %s11132_s22]]   ;;  %s11136_s22 = smov 28  }
  0x2b   :  { %12641 = sst [smem:[#allocation50_spill]] %s11282_s29 }
  0x2c   :  { %12642 = sst [smem:[#allocation51_spill]] %s11287_s25 }
  0x2d   :  { %s11302_s29 = sld [smem:[%s12555_s0 + %s11130_s7]]   ;;  %s11134_s7 = smov 26  }
  0x2e   :  { %12643 = sst [smem:[#allocation52_spill]] %s11297_s4 }
  0x2f   :  { %12645 = sst [smem:[#allocation54_spill]] %s11307_s14 }
  0x30   :  { %12646 = sst [smem:[#allocation55_spill]] %s11312_s30 }
  0x31   :  { %s11317_s20 = sld [smem:[%s12555_s0 + %s11133_s28]]   ;;  %s11137_s28 = smov 29  }
  0x32   :  { %s11322_s27 = sld [smem:[%s12555_s0 + %s11134_s7]]   ;;  %s11138_s7 = smov 30  }
  0x33   :  { %12644 = sst [smem:[#allocation53_spill]] %s11302_s29 }
  0x34   :  { %s11327_s19 = sld [smem:[%s12555_s0 + %s11135_s15]]   ;;  %s11139_s15 = smov 31  }
  0x35   :  { %s11332_s29 = sld [smem:[%s12555_s0 + %s11136_s22]]   ;;  %s11140_s22 = smov 32  }
  0x36   :  { %s11337_s30 = sld [smem:[%s12555_s0 + %s11137_s28]]   ;;  %s11141_s28 = smov 33  }
  0x37   :  { %s11342_s6 = sld [smem:[%s12555_s0 + %s11138_s7]]   ;;  %s11142_s7 = smov 34  }
  0x38   :  { %12647 = sst [smem:[#allocation56_spill]] %s11322_s27 }
  0x39   :  { %s11347_s12 = sld [smem:[%s12555_s0 + %s11139_s15]]   ;;  %s11143_s15 = smov 35  }
  0x3a   :  { %12648 = sst [smem:[#allocation57_spill]] %s11327_s19 }
  0x3b   :  { %12649 = sst [smem:[#allocation58_spill]] %s11332_s29 }
  0x3c   :  { %s11352_s25 = sld [smem:[%s12555_s0 + %s11140_s22]]   ;;  %s11144_s22 = smov 36  }
  0x3d   :  { %12650 = sst [smem:[#allocation59_spill]] %s11342_s6 }
  0x3e   :  { %s11357_s13 = sld [smem:[%s12555_s0 + %s11141_s28]]   ;;  %s11145_s28 = smov 37  }
  0x3f   :  { %12651 = sst [smem:[#allocation60_spill]] %s11347_s12 }
  0x40   :  { %s11362_s9 = sld [smem:[%s12555_s0 + %s11142_s7]]   ;;  %s11146_s7 = smov 38  }
  0x41   :  { %s11367_s21 = sld [smem:[%s12555_s0 + %s11143_s15]]   ;;  %s11147_s15 = smov 39  }
  0x42   :  { %12652 = sst [smem:[#allocation61_spill]] %s11352_s25 }
  0x43   :  { %s11372_s17 = sld [smem:[%s12555_s0 + %s11144_s22]]   ;;  %s11148_s22 = smov 40  }
  0x44   :  { %12653 = sst [smem:[#allocation62_spill]] %s11357_s13 }
  0x45   :  { %s11377_s29 = sld [smem:[%s12555_s0 + %s11145_s28]]   ;;  %s11149_s28 = smov 41  }
  0x46   :  { %12654 = sst [smem:[#allocation63_spill]] %s11362_s9 }
  0x47   :  { %12655 = sst [smem:[#allocation64_spill]] %s11367_s21 }
  0x48   :  { %s11382_s9 = sld [smem:[%s12555_s0 + %s11146_s7]]   ;;  %s11150_s7 = smov 42  }
  0x49   :  { %12656 = sst [smem:[#allocation65_spill]] %s11372_s17 }
  0x4a   :  { %s11387_s21 = sld [smem:[%s12555_s0 + %s11147_s15]]   ;;  %s11151_s15 = smov 43  }
  0x4b   :  { %s11392_s27 = sld [smem:[%s12555_s0 + %s11148_s22]]   ;;  %s11152_s22 = smov 44  }
  0x4c   :  { %s11397_s25 = sld [smem:[%s12555_s0 + %s11149_s28]]   ;;  %s11153_s28 = smov 45  }
  0x4d   :  { %s11402_s13 = sld [smem:[%s12555_s0 + %s11150_s7]]   ;;  %s11154_s7 = smov 46  }
  0x4e   :  { %12657 = sst [smem:[#allocation66_spill]] %s11382_s9 }
  0x4f   :  { %s11412_s6 = sld [smem:[%s12555_s0 + %s11152_s22]]  }
  0x50   :  { %12658 = sst [smem:[#allocation67_spill]] %s11387_s21 }
  0x51   :  { %s11407_s21 = sld [smem:[%s12555_s0 + %s11151_s15]]  }
  0x52   :  { %12659 = sst [smem:[#allocation68_spill]] %s11397_s25 }
  0x53   :  { %12660 = sst [smem:[#allocation69_spill]] %s11402_s13 }
  0x54   :  { %s11417_s25 = sld [smem:[%s12555_s0 + %s11153_s28]]  }
  0x55   :  { %s11422_s12 = sld [smem:[%s12555_s0 + %s11154_s7]]  }
  0x5b   :  { %12661 = sst [smem:[#allocation70_spill]] %s11422_s12 }
  0x5c   :  { %99 = vsyncpa [#allocation3], 0 }
  0x5d   :  { %100 = vsyncpa [#allocation6], 0 }
  0x5e   :  { %101 = vsyncpa [#allocation9], 0 }
  0x5f   :  { %102 = vsyncpa [#allocation12], 0 }
  0x60   :  { %103 = vsyncpa [#allocation15], 0 }
  0x61   :  { %104 = vsyncpa [#allocation18], 0 }
  0x62   :  { %105 = vsyncpa [#allocation21], 0 }
  0x63   :  { %106 = vsyncpa [#allocation4], 0 }
  0x64   :  { %108 = vsyncpa [#allocation4 + $0x1], 0  ;;  %s11424_s15 = smov 0   ;;  %s11426_s16 = smov 0  }
  0x65   :  { %s11428_s18 = smov 0   ;;  %s11430_s22 = smov 0  }
  0x66 LB: > { %s12662_s19 = sld [smem:[#allocation57_spill]]  ;;  %s12663_s14 = sld [smem:[#allocation54_spill]]  ;;  %s11103_s18 = sphi %s11428_s18, %s12753_s18   ;;  %s11099_s16 = sphi %s11426_s16, %s12755_s16   ;;  %s11095_s15 = sphi %s11424_s15, %s12754_s15   ;;  %s11107_s22 = sphi %s11430_s22, %s12751_s22  }
  0x67   : > { %s12664_s3 = sld [smem:[#allocation39_spill]]  ;;  %s12665_s13 = sld [smem:[#allocation69_spill]] }
  0x68   : > { %s12666_s9 = sld [smem:[#allocation66_spill]]  ;;  %s12667_s8 = sld [smem:[#allocation40_spill]] }
  0x69   : > { %s12668_s4 = sld [smem:[#allocation52_spill]]  ;;  %12669 = sst [smem:[#allocation71_spill]] %s11095_s15 }
  0x6a   : > { %12670 = sst [smem:[#allocation72_spill]] %s11103_s18  ;;  %s11445_s0 = sadd.s32 4294967295, %s11107_s22  }
  0x6b   : > { %12671 = sst [smem:[#allocation73_spill]] %s11107_s22  ;;  %s8626_s23 = sadd.s32 4294967294, %s11107_s22  }
  0x6c   : > { %s11449_s26 = sadd.s32 1, %s11107_s22   ;;  %s1050_s28 = sadd.s32 1, %s11103_s18 }
  0x6d   : > { %12672 = sst [smem:[#allocation74_spill]] %s11449_s26  ;;  %s1047_s1 = ssub.s32 %s11107_s22, %s11449_s26 }
  0x6e   : > { %p1060_p0 = scmp.ne.s32.totalorder %s11103_s18, %s11099_s16  ;;  %p1048_p1 = scmp.eq.s32.totalorder %s1047_s1, 0 }
  0x6f   : > { %p1061_p2 = scmp.eq.s32.totalorder %s11445_s0, 1  ;;  %p1066_p3 = scmp.ne.s32.totalorder %s11099_s16, %s11095_s15 }
  0x70   : > { %p1067_p4 = scmp.eq.s32.totalorder %s8626_s23, 1  ;;  %p8627_p7 = scmp.ge.s32.totalorder %s11107_s22, 1 }
  0x71   : > { %s11460_s2 = scalar_select %p1048_p1, %s11103_s18, %s1050_s28  }
  0x72   : > { %p11462_p5 = por %p1061_p2, %p1060_p0  ;;  %p11466_p6 = por %p1067_p4, %p1066_p3 }
  0x73   : > { %12673 = sst [smem:[#allocation75_spill]] %s11460_s2  ;;  %p1126_p8 = scmp.lt.s32.totalorder %s11107_s22, 3 }
  0x74   : > { %s12674_s7 = scalar_select %p11462_p5, 1, 0 }
  0x75   : > { %s12675_s10 = scalar_select %p11466_p6, 1, 0 }
  0x76   : > { %p12581_p9 = scmp.eq.s32.totalorder %s11445_s0, 0  ;;  %p11473_p10 = pnand %p8627_p7, %p1126_p8 }
  0x77   : > { %12676 = sst [smem:[#allocation76_spill]] %s12675_s10  ;;  %s11155_s23 = smov [#allocation5]  }
  0x78   : > { %s12677_s11 = scalar_select %p11473_p10, 1, 0 }
  0x79   : > { %p10344_p11 = pneg %p11473_p10  ;;  %s1169_s28 = sshll.u32 %s11155_s23, 4  ;;  %s11479_s28 = int_to_ptr.vmem [resolvable:$true] %s1169_s28 }
  0x7a   : > { %s11156_s2 = smov [#allocation8]   ;;  %s11157_s26 = smov [#allocation11]  }
  0x7b   : > { %p11483_p12 = pnand %p12581_p9, %p10344_p11  ;;  %s1229_s18 = sshll.u32 %s11156_s2, 4  ;;  %s11487_s18 = int_to_ptr.vmem [resolvable:$true] %s1229_s18 }
  0x7c   : > { %s11489_s10 = sshll.u32 %s11157_s26, 4  ;;  %s10653_s15 = scalar_lea.hbm %s12667_s8, 1024  ;;  %s1259_s10 = int_to_ptr.vmem [resolvable:$true] %s11489_s10 }
  0x7d   : > { %p10654_p13 = scmp.ne.s32.totalorder %s12667_s8, %s10653_s15  ;;  %p11495_p0 = pneg %p11483_p12 }
  0x7e   : > { %p10660_p3 = scmp.lt.u32.totalorder %s10653_s15, %s12667_s8 }
  0x7f   : > { %p10656_p1 = pnand %p11495_p0, %p10654_p13 }
  0x81   : > { %p10657_p2 = pneg %p10656_p1 }
  0x83   : > { %p10662_p4 = pnand %p10660_p3, %p10657_p2 }
  0x85   : > { %10665 = shalt.err (!%p10662_p4)
}
  0x86   : > { %s10666_s26 = scalar_lea.vmem %s11479_s28, 1024  ;;  %p10674_p9 = scmp.lt.s32.totalorder %s11479_s28, %s11479_s28 }
  0x87   : > { %p10667_p7 = scmp.ne.s32.totalorder %s11479_s28, %s10666_s26  ;;  %p10675_p6 = scmp.lt.s32.totalorder %s10666_s26, %s10666_s26 }
  0x89   : > { %p10669_p8 = pnand %p10667_p7, %p11495_p0  ;;  %p10676_p5 = por %p10675_p6, %p10674_p9 }
  0x8b   : > { %p10670_p11 = pneg %p10669_p8 }
  0x8d   : > { %p10677_p10 = pnand %p10676_p5, %p10670_p11 }
  0x8f   : > { %10680 = shalt.err (!%p10677_p10)
}
  0x90   : > { %s12585_s2 = smov 128   ;;  %s12587_s15 = smov 8  }
  0x91   : > { %10350 = dma.hbm_to_vmem [thread:$0]  (!%p11483_p12), %s12667_s8, 1024, %s11479_s28, [#allocation6], %s12585_s2, %s12585_s2, %s12587_s15  }
  0x92   : > { %s10681_s22 = scalar_lea.hbm %s12668_s4, 128 }
  0x93   : > { %p10682_p13 = scmp.ne.s32.totalorder %s12668_s4, %s10681_s22  ;;  %p10688_p9 = scmp.lt.u32.totalorder %s10681_s22, %s12668_s4 }
  0x95   : > { %p10684_p6 = pnand %p10682_p13, %p11495_p0 }
  0x97   : > { %p10685_p5 = pneg %p10684_p6 }
  0x99   : > { %p10690_p10 = pnand %p10688_p9, %p10685_p5 }
  0x9b   : > { %10693 = shalt.err (!%p10690_p10)
}
  0x9c   : > { %s10694_s26 = scalar_lea.vmem %s11487_s18, 128  ;;  %p10702_p4 = scmp.lt.s32.totalorder %s11487_s18, %s11487_s18 }
  0x9d   : > { %p10695_p1 = scmp.ne.s32.totalorder %s11487_s18, %s10694_s26  ;;  %p10703_p7 = scmp.lt.s32.totalorder %s10694_s26, %s10694_s26 }
  0x9f   : > { %p10697_p2 = pnand %p10695_p1, %p11495_p0  ;;  %p10704_p8 = por %p10703_p7, %p10702_p4 }
  0xa1   : > { %p10698_p3 = pneg %p10697_p2 }
  0xa3   : > { %p10705_p11 = pnand %p10704_p8, %p10698_p3 }
  0xa5   : > { %10708 = shalt.err (!%p10705_p11)
}
  0xa6   : > { %10356 = dma.hbm_to_vmem [thread:$0]  (!%p11483_p12), %s12668_s4, 128, %s11487_s18, [#allocation9]  }
  0xa7   : > { %s10709_s22 = scalar_lea.hbm %s11317_s20, 6144 }
  0xa8   : > { %p10710_p13 = scmp.ne.s32.totalorder %s11317_s20, %s10709_s22  ;;  %p10716_p9 = scmp.lt.u32.totalorder %s10709_s22, %s11317_s20 }
  0xaa   : > { %p10712_p6 = pnand %p10710_p13, %p11495_p0 }
  0xac   : > { %p10713_p5 = pneg %p10712_p6 }
  0xae   : > { %p10718_p10 = pnand %p10716_p9, %p10713_p5 }
  0xb0   : > { %10721 = shalt.err (!%p10718_p10)
}
  0xb1   : > { %s10722_s28 = scalar_lea.vmem %s1259_s10, 6144  ;;  %p10730_p4 = scmp.lt.s32.totalorder %s1259_s10, %s1259_s10 }
  0xb2   : > { %p10723_p1 = scmp.ne.s32.totalorder %s1259_s10, %s10722_s28  ;;  %p10731_p7 = scmp.lt.s32.totalorder %s10722_s28, %s10722_s28 }
  0xb4   : > { %p10725_p2 = pnand %p10723_p1, %p11495_p0  ;;  %p10732_p8 = por %p10731_p7, %p10730_p4 }
  0xb6   : > { %p10726_p3 = pneg %p10725_p2 }
  0xb8   : > { %p10733_p11 = pnand %p10732_p8, %p10726_p3 }
  0xba   : > { %10736 = shalt.err (!%p10733_p11)
}
  0xbb   : > { %s12591_s18 = smov 256   ;;  %s12593_s26 = smov 16  }
  0xbc   : > { %10362 = dma.hbm_to_vmem [thread:$0]  (!%p11483_p12), %s11317_s20, 6144, %s1259_s10, [#allocation12], %s12591_s18, %s12591_s18, %s12593_s26  }
  0xbd   : > { %s11162_s22 = smov [#allocation14]   ;;  %s11163_s28 = smov [#allocation17]  }
  0xbe   : > { %s1290_s2 = sshll.u32 %s11162_s22, 4  ;;  %s1338_s15 = sshll.u32 %s11163_s28, 4  ;;  %s1291_s2 = int_to_ptr.vmem [resolvable:$true] %s1290_s2  ;;  %s1339_s15 = int_to_ptr.vmem [resolvable:$true] %s1338_s15 }
  0xbf   : > { %s10737_s4 = scalar_lea.hbm %s11337_s30, 8192 }
  0xc0   : > { %p10738_p13 = scmp.ne.s32.totalorder %s11337_s30, %s10737_s4  ;;  %p10744_p9 = scmp.lt.u32.totalorder %s10737_s4, %s11337_s30 }
  0xc2   : > { %p10740_p6 = pnand %p10738_p13, %p11495_p0 }
  0xc4   : > { %p10741_p5 = pneg %p10740_p6 }
  0xc6   : > { %p10746_p10 = pnand %p10744_p9, %p10741_p5 }
  0xc8   : > { %10749 = shalt.err (!%p10746_p10)
}
  0xc9   : > { %s10750_s8 = scalar_lea.vmem %s1291_s2, 8192  ;;  %p10758_p4 = scmp.lt.s32.totalorder %s1291_s2, %s1291_s2 }
  0xca   : > { %p10751_p1 = scmp.ne.s32.totalorder %s1291_s2, %s10750_s8  ;;  %p10759_p7 = scmp.lt.s32.totalorder %s10750_s8, %s10750_s8 }
  0xcc   : > { %p10753_p2 = pnand %p10751_p1, %p11495_p0  ;;  %p10760_p8 = por %p10759_p7, %p10758_p4 }
  0xce   : > { %p10754_p3 = pneg %p10753_p2 }
  0xd0   : > { %p10761_p11 = pnand %p10760_p8, %p10754_p3 }
  0xd2   : > { %10764 = shalt.err (!%p10761_p11)
}
  0xd3   : > { %s12680_s10 = smov 8   ;;  %s12681_s22 = smov 128  }
  0xd4   : > { %10368 = dma.hbm_to_vmem [thread:$0]  (!%p11483_p12), %s11337_s30, 8192, %s1291_s2, [#allocation15], %s12681_s22, %s12681_s22, %s12680_s10  }
  0xd5   : > { %s10765_s4 = scalar_lea.hbm %s12666_s9, 128 }
  0xd6   : > { %p10766_p13 = scmp.ne.s32.totalorder %s12666_s9, %s10765_s4  ;;  %p10772_p9 = scmp.lt.u32.totalorder %s10765_s4, %s12666_s9 }
  0xd8   : > { %p10768_p6 = pnand %p10766_p13, %p11495_p0 }
  0xda   : > { %p10769_p5 = pneg %p10768_p6 }
  0xdc   : > { %p10774_p10 = pnand %p10772_p9, %p10769_p5 }
  0xde   : > { %10777 = shalt.err (!%p10774_p10)
}
  0xdf   : > { %s10778_s8 = scalar_lea.vmem %s1339_s15, 128  ;;  %p10786_p4 = scmp.lt.s32.totalorder %s1339_s15, %s1339_s15 }
  0xe0   : > { %p10779_p1 = scmp.ne.s32.totalorder %s1339_s15, %s10778_s8  ;;  %p10787_p7 = scmp.lt.s32.totalorder %s10778_s8, %s10778_s8 }
  0xe2   : > { %p10781_p2 = pnand %p10779_p1, %p11495_p0  ;;  %p10788_p8 = por %p10787_p7, %p10786_p4 }
  0xe4   : > { %p10782_p3 = pneg %p10781_p2 }
  0xe6   : > { %p10789_p11 = pnand %p10788_p8, %p10782_p3 }
  0xe8   : > { %10792 = shalt.err (!%p10789_p11)
}
  0xe9   : > { %10374 = dma.hbm_to_vmem [thread:$0]  (!%p11483_p12), %s12666_s9, 128, %s1339_s15, [#allocation18]  }
  0xea   : > { %s11164_s2 = smov [#allocation20]   ;;  %s11165_s4 = smov [#allocation2]  }
  0xeb   : > { %s1367_s28 = sshll.u32 %s11164_s2, 4  ;;  %s1156_s18 = sshll.u32 %s11165_s4, 4  ;;  %s1368_s28 = int_to_ptr.vmem [resolvable:$true] %s1367_s28  ;;  %s1157_s18 = int_to_ptr.vmem [resolvable:$true] %s1156_s18 }
  0xec   : > { %s10793_s26 = scalar_lea.hbm %s12665_s13, 4096 }
  0xed   : > { %p10794_p13 = scmp.ne.s32.totalorder %s12665_s13, %s10793_s26  ;;  %p10800_p9 = scmp.lt.u32.totalorder %s10793_s26, %s12665_s13 }
  0xef   : > { %p10796_p6 = pnand %p10794_p13, %p11495_p0 }
  0xf1   : > { %p10797_p5 = pneg %p10796_p6 }
  0xf3   : > { %p10802_p10 = pnand %p10800_p9, %p10797_p5 }
  0xf5   : > { %10805 = shalt.err (!%p10802_p10)
}
  0xf6   : > { %s10806_s8 = scalar_lea.vmem %s1368_s28, 4096  ;;  %p10814_p4 = scmp.lt.s32.totalorder %s1368_s28, %s1368_s28 }
  0xf7   : > { %p10807_p1 = scmp.ne.s32.totalorder %s1368_s28, %s10806_s8  ;;  %p10815_p7 = scmp.lt.s32.totalorder %s10806_s8, %s10806_s8 }
  0xf9   : > { %p10809_p2 = pnand %p10807_p1, %p11495_p0  ;;  %p10816_p8 = por %p10815_p7, %p10814_p4 }
  0xfb   : > { %p10810_p3 = pneg %p10809_p2 }
  0xfd   : > { %p10817_p11 = pnand %p10816_p8, %p10810_p3 }
  0xff   : > { %10820 = shalt.err (!%p10817_p11)
}
 0x100   : > { %s12682_s15 = smov 16   ;;  %s12683_s2 = smov 256  }
 0x101   : > { %10380 = dma.hbm_to_vmem [thread:$0]  (!%p11483_p12), %s12665_s13, 4096, %s1368_s28, [#allocation21], %s12683_s2, %s12683_s2, %s12682_s15  }
 0x102   : > { %s10821_s26 = scalar_lea.hbm %s12664_s3, 1024 }
 0x103   : > { %p10822_p13 = scmp.ne.s32.totalorder %s12664_s3, %s10821_s26  ;;  %p10828_p9 = scmp.lt.u32.totalorder %s10821_s26, %s12664_s3 }
 0x105   : > { %p10824_p6 = pnand %p10822_p13, %p11495_p0 }
 0x107   : > { %p10825_p5 = pneg %p10824_p6 }
 0x109   : > { %p10830_p10 = pnand %p10828_p9, %p10825_p5 }
 0x10b   : > { %10833 = shalt.err (!%p10830_p10)
}
 0x10c   : > { %s10834_s4 = scalar_lea.vmem %s1157_s18, 1024  ;;  %p10842_p4 = scmp.lt.s32.totalorder %s1157_s18, %s1157_s18 }
 0x10d   : > { %p10835_p1 = scmp.ne.s32.totalorder %s1157_s18, %s10834_s4  ;;  %p10843_p7 = scmp.lt.s32.totalorder %s10834_s4, %s10834_s4 }
 0x10f   : > { %p10837_p2 = pnand %p10835_p1, %p11495_p0  ;;  %p10844_p8 = por %p10843_p7, %p10842_p4 }
 0x111   : > { %p10838_p3 = pneg %p10837_p2 }
 0x113   : > { %p10845_p11 = pnand %p10844_p8, %p10838_p3 }
 0x115   : > { %10848 = shalt.err (!%p10845_p11)
}
 0x116   : > { %10347 = dma.hbm_to_vmem [thread:$0]  (!%p11483_p12), %s12664_s3, 1024, %s1157_s18, [#allocation3], %s12681_s22, %s12681_s22, %s12680_s10  }
 0x117   : > { %s11166_s28 = smov [#allocation7]   ;;  %s11167_s26 = smov [#allocation10]  }
 0x118   : > { %s1215_s8 = sshll.u32 %s11166_s28, 4  ;;  %s1242_s9 = sshll.u32 %s11167_s26, 4  ;;  %s1216_s8 = int_to_ptr.vmem [resolvable:$true] %s1215_s8  ;;  %s1243_s9 = int_to_ptr.vmem [resolvable:$true] %s1242_s9 }
 0x119   : > { %s10849_s4 = scalar_lea.hbm %s11292_s24, 512 }
 0x11a   : > { %p10850_p13 = scmp.ne.s32.totalorder %s11292_s24, %s10849_s4  ;;  %p10856_p9 = scmp.lt.u32.totalorder %s10849_s4, %s11292_s24 }
 0x11c   : > { %p10852_p6 = pnand %p10850_p13, %p11495_p0 }
 0x11e   : > { %p10853_p5 = pneg %p10852_p6 }
 0x120   : > { %p10858_p10 = pnand %p10856_p9, %p10853_p5 }
 0x122   : > { %10861 = shalt.err (!%p10858_p10)
}
 0x123   : > { %s10862_s13 = scalar_lea.vmem %s1216_s8, 512  ;;  %p10870_p4 = scmp.lt.s32.totalorder %s1216_s8, %s1216_s8 }
 0x124   : > { %p10863_p1 = scmp.ne.s32.totalorder %s1216_s8, %s10862_s13  ;;  %p10871_p7 = scmp.lt.s32.totalorder %s10862_s13, %s10862_s13 }
 0x126   : > { %p10865_p2 = pnand %p10863_p1, %p11495_p0  ;;  %p10872_p8 = por %p10871_p7, %p10870_p4 }
 0x128   : > { %p10866_p3 = pneg %p10865_p2 }
 0x12a   : > { %p10873_p11 = pnand %p10872_p8, %p10866_p3 }
 0x12c   : > { %10876 = shalt.err (!%p10873_p11)
}
 0x12d   : > { %10353 = dma.hbm_to_vmem [thread:$0]  (!%p11483_p12), %s11292_s24, 512, %s1216_s8, [#allocation6], %s12681_s22, %s12681_s22, %s12680_s10  }
 0x12e   : > { %s10877_s18 = scalar_lea.hbm %s12663_s14, 3072 }
 0x12f   : > { %p10878_p13 = scmp.ne.s32.totalorder %s12663_s14, %s10877_s18  ;;  %p10884_p9 = scmp.lt.u32.totalorder %s10877_s18, %s12663_s14 }
 0x131   : > { %p10880_p6 = pnand %p10878_p13, %p11495_p0 }
 0x133   : > { %p10881_p5 = pneg %p10880_p6 }
 0x135   : > { %p10886_p10 = pnand %p10884_p9, %p10881_p5 }
 0x137   : > { %10889 = shalt.err (!%p10886_p10)
}
 0x138   : > { %s10890_s13 = scalar_lea.vmem %s1243_s9, 3072  ;;  %p10898_p4 = scmp.lt.s32.totalorder %s1243_s9, %s1243_s9 }
 0x139   : > { %p10891_p1 = scmp.ne.s32.totalorder %s1243_s9, %s10890_s13  ;;  %p10899_p7 = scmp.lt.s32.totalorder %s10890_s13, %s10890_s13 }
 0x13b   : > { %p10893_p2 = pnand %p10891_p1, %p11495_p0  ;;  %p10900_p8 = por %p10899_p7, %p10898_p4 }
 0x13d   : > { %p10894_p3 = pneg %p10893_p2 }
 0x13f   : > { %p10901_p11 = pnand %p10900_p8, %p10894_p3 }
 0x141   : > { %10904 = shalt.err (!%p10901_p11)
}
 0x142   : > { %10359 = dma.hbm_to_vmem [thread:$0]  (!%p11483_p12), %s12663_s14, 3072, %s1243_s9, [#allocation9], %s12681_s22, %s12681_s22, %s12680_s10  }
 0x143   : > { %s11168_s28 = smov [#allocation13]   ;;  %s11169_s26 = smov [#allocation16]  }
 0x144   : > { %s1274_s8 = sshll.u32 %s11168_s28, 4  ;;  %s1324_s4 = sshll.u32 %s11169_s26, 4  ;;  %s1275_s8 = int_to_ptr.vmem [resolvable:$true] %s1274_s8  ;;  %s1325_s4 = int_to_ptr.vmem [resolvable:$true] %s1324_s4 }
 0x145   : > { %s10905_s18 = scalar_lea.hbm %s12662_s19, 4096 }
 0x146   : > { %p10906_p13 = scmp.ne.s32.totalorder %s12662_s19, %s10905_s18  ;;  %p10912_p9 = scmp.lt.u32.totalorder %s10905_s18, %s12662_s19 }
 0x148   : > { %p10908_p6 = pnand %p10906_p13, %p11495_p0 }
 0x14a   : > { %p10909_p5 = pneg %p10908_p6 }
 0x14c   : > { %p10914_p10 = pnand %p10912_p9, %p10909_p5 }
 0x14e   : > { %10917 = shalt.err (!%p10914_p10)
}
 0x14f   : > { %s10918_s13 = scalar_lea.vmem %s1275_s8, 4096  ;;  %p10926_p4 = scmp.lt.s32.totalorder %s1275_s8, %s1275_s8 }
 0x150   : > { %p10919_p1 = scmp.ne.s32.totalorder %s1275_s8, %s10918_s13  ;;  %p10927_p7 = scmp.lt.s32.totalorder %s10918_s13, %s10918_s13 }
 0x152   : > { %p10921_p2 = pnand %p10919_p1, %p11495_p0  ;;  %p10928_p8 = por %p10927_p7, %p10926_p4 }
 0x154   : > { %p10922_p3 = pneg %p10921_p2 }
 0x156   : > { %p10929_p11 = pnand %p10928_p8, %p10922_p3 }
 0x158   : > { %10932 = shalt.err (!%p10929_p11)
}
 0x159   : > { %10365 = dma.hbm_to_vmem [thread:$0]  (!%p11483_p12), %s12662_s19, 4096, %s1275_s8, [#allocation12], %s12683_s2, %s12683_s2, %s12682_s15  }
 0x15a   : > { %s10933_s9 = scalar_lea.hbm %s11377_s29, 1024 }
 0x15b   : > { %p10934_p13 = scmp.ne.s32.totalorder %s11377_s29, %s10933_s9  ;;  %p10940_p9 = scmp.lt.u32.totalorder %s10933_s9, %s11377_s29 }
 0x15d   : > { %p10936_p6 = pnand %p10934_p13, %p11495_p0 }
 0x15f   : > { %p10937_p5 = pneg %p10936_p6 }
 0x161   : > { %p10942_p10 = pnand %p10940_p9, %p10937_p5 }
 0x163   : > { %10945 = shalt.err (!%p10942_p10)
}
 0x164   : > { %s10946_s28 = scalar_lea.vmem %s1325_s4, 1024  ;;  %p10954_p4 = scmp.lt.s32.totalorder %s1325_s4, %s1325_s4 }
 0x165   : > { %p10947_p1 = scmp.ne.s32.totalorder %s1325_s4, %s10946_s28  ;;  %p10955_p7 = scmp.lt.s32.totalorder %s10946_s28, %s10946_s28 }
 0x167   : > { %p10949_p2 = pnand %p10947_p1, %p11495_p0  ;;  %p10956_p8 = por %p10955_p7, %p10954_p4 }
 0x169   : > { %p10950_p3 = pneg %p10949_p2 }
 0x16b   : > { %p10957_p11 = pnand %p10956_p8, %p10950_p3 }
 0x16d   : > { %10960 = shalt.err (!%p10957_p11)
}
 0x16e   : > { %10371 = dma.hbm_to_vmem [thread:$0]  (!%p11483_p12), %s11377_s29, 1024, %s1325_s4, [#allocation15], %s12681_s22, %s12681_s22, %s12680_s10  }
 0x16f   : > { %s11170_s15 = smov [#allocation19]   ;;  %s11171_s8 = smov [#allocation22]  }
 0x170   : > { %s1351_s2 = sshll.u32 %s11170_s15, 4  ;;  %s1380_s26 = sshll.u32 %s11171_s8, 4  ;;  %s1352_s2 = int_to_ptr.vmem [resolvable:$true] %s1351_s2  ;;  %s1381_s26 = int_to_ptr.vmem [resolvable:$true] %s1380_s26 }
 0x171   : > { %s10961_s18 = scalar_lea.hbm %s11392_s27, 2048 }
 0x172   : > { %p10962_p13 = scmp.ne.s32.totalorder %s11392_s27, %s10961_s18  ;;  %p10968_p9 = scmp.lt.u32.totalorder %s10961_s18, %s11392_s27 }
 0x174   : > { %p10964_p6 = pnand %p10962_p13, %p11495_p0 }
 0x176   : > { %p10965_p5 = pneg %p10964_p6 }
 0x178   : > { %p10970_p10 = pnand %p10968_p9, %p10965_p5 }
 0x17a   : > { %10973 = shalt.err (!%p10970_p10)
}
 0x17b   : > { %s10974_s13 = scalar_lea.vmem %s1352_s2, 2048  ;;  %p10982_p4 = scmp.lt.s32.totalorder %s1352_s2, %s1352_s2 }
 0x17c   : > { %p10975_p1 = scmp.ne.s32.totalorder %s1352_s2, %s10974_s13  ;;  %p10983_p7 = scmp.lt.s32.totalorder %s10974_s13, %s10974_s13 }
 0x17e   : > { %p10977_p2 = pnand %p10975_p1, %p11495_p0  ;;  %p10984_p8 = por %p10983_p7, %p10982_p4 }
 0x180   : > { %p10978_p3 = pneg %p10977_p2 }
 0x182   : > { %p10985_p11 = pnand %p10984_p8, %p10978_p3 }
 0x184   : > { %10988 = shalt.err (!%p10985_p11)
}
 0x185   : > { %10377 = dma.hbm_to_vmem [thread:$0]  (!%p11483_p12), %s11392_s27, 2048, %s1352_s2, [#allocation18], %s12681_s22, %s12681_s22, %s12680_s10  }
 0x186   : > { %s10989_s4 = scalar_lea.hbm %s11407_s21, 4096 }
 0x187   : > { %p10990_p13 = scmp.ne.s32.totalorder %s11407_s21, %s10989_s4  ;;  %p10996_p9 = scmp.lt.u32.totalorder %s10989_s4, %s11407_s21 }
 0x189   : > { %p10992_p6 = pnand %p10990_p13, %p11495_p0 }
 0x18b   : > { %p10993_p5 = pneg %p10992_p6 }
 0x18d   : > { %p10998_p10 = pnand %p10996_p9, %p10993_p5 }
 0x18f   : > { %11001 = shalt.err (!%p10998_p10)
}
 0x190   : > { %s11002_s9 = scalar_lea.vmem %s1381_s26, 4096  ;;  %p11010_p4 = scmp.lt.s32.totalorder %s1381_s26, %s1381_s26 }
 0x191   : > { %p11003_p1 = scmp.ne.s32.totalorder %s1381_s26, %s11002_s9  ;;  %p11011_p7 = scmp.lt.s32.totalorder %s11002_s9, %s11002_s9 }
 0x193   : > { %p11005_p2 = pnand %p11003_p1, %p11495_p0  ;;  %p11012_p8 = por %p11011_p7, %p11010_p4 }
 0x195   : > { %p11006_p3 = pneg %p11005_p2 }
 0x197   : > { %p11013_p11 = pnand %p11012_p8, %p11006_p3 }
 0x199   : > { %11016 = shalt.err (!%p11013_p11)
}
 0x19a   : > { %10383 = dma.hbm_to_vmem [thread:$0]  (!%p11483_p12), %s11407_s21, 4096, %s1381_s26, [#allocation21], %s12681_s22, %s12681_s22, %s12680_s10  }
 0x19b   : > { %p12684_p13 = scmp.ne.s32.totalorder %s12677_s11, 0 }
 0x19c   : > { %p12685_p6 = scmp.eq.s32.totalorder (!%p12684_p13), %s11445_s0, 0 }
 0x19d   : > { %1403 = sbr.rel (%p12684_p13) target bundleno = 17662 (0x44fe), region = 196 }
 0x1a4   : > { %11062 = dma.done.wait (%p12685_p6), [#allocation3], 1024   ;;  %p12686_p0 = pmov %p12685_p6 }
 0x1a6   : > { %11064 = vsyncadd (%p12686_p0), [#allocation3], 4294966272  ;;  %p12687_p5 = pmov %p12686_p0 }
 0x1a7   : > { %p12688_p9 = pmov %p12686_p0 }
 0x1a8   : > { %11066 = dma.done.wait (%p12687_p5), [#allocation6], 1536  }
 0x1a9   : > { %11068 = vsyncadd (%p12688_p9), [#allocation6], 4294965760  ;;  %p12689_p10 = pmov %p12686_p0 }
 0x1aa   : > { %p12690_p12 = pmov %p12686_p0 }
 0x1ab   : > { %11070 = dma.done.wait (%p12689_p10), [#allocation9], 3200  }
 0x1ac   : > { %11072 = vsyncadd (%p12690_p12), [#allocation9], 4294964096  ;;  %p12691_p1 = pmov %p12686_p0 }
 0x1ad   : > { %p12692_p2 = pmov %p12686_p0 }
 0x1ae   : > { %11074 = dma.done.wait (%p12691_p1), [#allocation12], 10240  }
 0x1af   : > { %11076 = vsyncadd (%p12692_p2), [#allocation12], 4294957056  ;;  %p12693_p3 = pmov %p12686_p0 }
 0x1b0   : > { %p12694_p4 = pmov %p12686_p0 }
 0x1b1   : > { %11078 = dma.done.wait (%p12693_p3), [#allocation15], 9216  }
 0x1b2   : > { %11080 = vsyncadd (%p12694_p4), [#allocation15], 4294958080  ;;  %p12695_p7 = pmov %p12686_p0 }
 0x1b3   : > { %p12696_p8 = pmov %p12686_p0 }
 0x1b4   : > { %11082 = dma.done.wait (%p12695_p7), [#allocation18], 2176  }
 0x1b5   : > { %11084 = vsyncadd (%p12696_p8), [#allocation18], 4294965120  ;;  %p12697_p11 = pmov %p12686_p0 }
 0x1b6   : > { %p12698_p13 = pmov %p12686_p0 }
 0x1b7   : > { %11086 = dma.done.wait (%p12697_p11), [#allocation21], 8192  }
 0x1b8   : > { %11088 = vsyncadd (%p12698_p13), [#allocation21], 4294959104  ;;  %v11172_v0 = vmov 0.0|0.0   ;;  %vm11173_vm0 = vmmov 0   ;;  %v11174_v1 = vmov 0.0   ;;  %v1577_v2 = vld [vmem:[#allocation16] sm:$0xff]  ;;  %v1725_v60 = vlaneseq }
 0x1b9   : > { %9760 = vmatprep.subr.bf16.mxu0 %v11172_v0  ;;  %9375 = vmatprep.mubr.msk.f32.mxu0 %vm11173_vm0, %v11174_v1  ;;  %v1578_v3 = vld [vmem:[#allocation16 + $0x8] sm:$0xff]  ;;  %v1579_v4 = vld [vmem:[#allocation16 + $0x10] sm:$0xff]  ;;  %v1580_v6 = vld [vmem:[#allocation16 + $0x18] sm:$0xff]  ;;  %p1566_p6 = scmp.lt.s32.totalorder %s11445_s0, 1  ;;  %s12699_s5 = sld [smem:[#allocation32_spill]]  ;;  %vm1592_vm1 = vcmask 523264  }
 0x1ba   : > { %1802 = vmatprep.mubr.f32.mxu1 %v11174_v1  ;;  %v9761_v5 = vpack.c.bf16 %v1578_v3, %v1577_v2  ;;  %v9764_v7 = vpack.c.bf16 %v1580_v6, %v1579_v4  ;;  %v1581_v8 = vld [vmem:[#allocation16 + $0x20] sm:$0xff]  ;;  %v1582_v9 = vld [vmem:[#allocation16 + $0x28] sm:$0xff]  ;;  %s12700_s17 = sld [smem:[#allocation65_spill]]  ;;  %v1583_v11 = vld [vmem:[#allocation16 + $0x30] sm:$0xff]  ;;  %s12701_s10 = sld [smem:[#allocation60_spill]]  ;;  %v11732_v61 = vshrl.u32 %v1725_v60, 7 }
 0x1bb   : > { %s11708_s11 = scalar_select %p1566_p6, %s11445_s0, 1  ;;  %v9767_v10 = vpack.c.bf16 %v1582_v9, %v1581_v8  ;;  %v1584_v12 = vld [vmem:[#allocation16 + $0x38] sm:$0xff]  ;;  %v1666_v17 = vld [vmem:[#allocation17] sm:$0xff]  ;;  %v1699_v27 = vld [vmem:[#allocation20 + $0x8] sm:$0xff]  ;;  %vm1812_vm2 = vcmask 130048   ;;  %vm1888_vm3 = vcmask 64512  }
 0x1bc   : > { %9762 = vmatpush3.bf16.msra.mxu0 %v9761_v5  ;;  %v9770_v13 = vpack.c.bf16 %v1584_v12, %v1583_v11  ;;  %v1701_v28 = vld [vmem:[#allocation20 + $0x18] sm:$0xff]  ;;  %v1698_v30 = vld [vmem:[#allocation20] sm:$0xff]  ;;  %v1700_v31 = vld [vmem:[#allocation20 + $0x10] sm:$0xff]  ;;  %s12702_s22 = sld [smem:[#allocation59_spill]]  ;;  %s12704_s15 = sld [smem:[#allocation68_spill]]  ;;  %v11735_v62 = vsub.s32 0, %v11732_v61 }
 0x1bd   : > { %9763 = vmatprep.subr.bf16.mxu0 %v11172_v0  ;;  %s8657_s1 = sshll.u32 %s11708_s11, 3  ;;  %v9772_v29 = vpack.c.bf16 %v1701_v28, %v1699_v27  ;;  %v9774_v32 = vpack.c.bf16 %v1700_v31, %v1698_v30  ;;  %v1703_v33 = vld [vmem:[#allocation20 + $0x28] sm:$0xff]  ;;  %v1705_v34 = vld [vmem:[#allocation20 + $0x38] sm:$0xff]  ;;  %v1702_v35 = vld [vmem:[#allocation20 + $0x20] sm:$0xff]  ;;  %v11739_v2 = vsub.s32 1, %v11732_v61  ;;  %s12609_s8 = smov 112  }
 0x1be   : > { %v9776_v36 = vpack.c.bf16 %v1705_v34, %v1703_v33  ;;  %v1704_v37 = vld [vmem:[#allocation20 + $0x30] sm:$0xff]  ;;  %v1707_v38 = vld [vmem:[#allocation20 + $0x48] sm:$0xff]  ;;  %v1709_v39 = vld [vmem:[#allocation20 + $0x58] sm:$0xff]  ;;  %s12607_s26 = smov 64   ;;  %s12605_s18 = smov 48   ;;  %vm2485_vm4 = vcmask 261120  }
 0x1bf   : > { %s1569_s23 = scalar_lea.vmem %s12699_s5, %s8657_s1  ;;  %9773 = vmatprep.subr.bf16.mxu1 %v9772_v29  ;;  %v9778_v40 = vpack.c.bf16 %v1704_v37, %v1702_v35  ;;  %v9780_v41 = vpack.c.bf16 %v1709_v39, %v1707_v38  ;;  %v1706_v42 = vld [vmem:[#allocation20 + $0x40] sm:$0xff]  ;;  %v1708_v43 = vld [vmem:[#allocation20 + $0x50] sm:$0xff]  ;;  %v1711_v44 = vld [vmem:[#allocation20 + $0x68] sm:$0xff]  ;;  %s12603_s13 = smov 32   ;;  %vm2487_vm5 = vcmask 392192  }
 0x1c0   : > { %9765 = vmatpush3.bf16.msra.mxu0 %v9764_v7  ;;  %v1576_v14 = vld [vmem:[%s1569_s23] sm:$0xff]  ;;  %9775 = vmatpush1.bf16.msra.mxu1 %v9774_v32  ;;  %v1713_v45 = vld [vmem:[#allocation20 + $0x78] sm:$0xff]  ;;  %v9782_v46 = vpack.c.bf16 %v1708_v43, %v1706_v42  ;;  %v1710_v48 = vld [vmem:[#allocation20 + $0x60] sm:$0xff]  ;;  %s12601_s4 = smov 96   ;;  %s12599_s9 = smov 16  }
 0x1c1   : > { %9766 = vmatprep.subr.bf16.mxu0 %v11172_v0  ;;  %v8658_v15 = vld [vmem:[%s12700_s17] ss:$0 sm:$0xff]  ;;  %9777 = vmatprep.subr.bf16.mxu1 %v9776_v36  ;;  %v9784_v47 = vpack.c.bf16 %v1713_v45, %v1711_v44  ;;  %s12597_s1 = smov 80   ;;  %s12706_s23 = sld [smem:[#allocation67_spill]]  ;;  %vm11970_vm6 = vmpackc.low %vm2485_vm4, %vm2485_vm4 }
 0x1c2   : > { %s12703_s28 = smov %s12702_s22  ;;  %v1712_v49 = vld [vmem:[#allocation20 + $0x70] sm:$0xff]  ;;  %s12705_s2 = smov %s12704_s15 }
 0x1c3   : > { %v9786_v50 = vpack.c.bf16 %v1712_v49, %v1710_v48  ;;  %v8660_v55 = vld [vmem:[%s12701_s10] ss:$0 sm:$0xff]  ;;  %s12722_s3 = sld [smem:[#allocation64_spill]]  ;;  %s12724_s5 = sld [smem:[#allocation63_spill]] }
 0x1c4   : > { %9768 = vmatpush3.bf16.msra.mxu0 %v9767_v10  ;;  %9779 = vmatpush1.bf16.msra.mxu1 %v9778_v40  ;;  %v8661_v57 = vld [vmem:[%s12702_s22] ss:$0 sm:$0xff]  ;;  %s12707_s22 = sld [smem:[#allocation62_spill]]  ;;  %s12739_s14 = sld [smem:[#allocation44_spill]] }
 0x1c5   : > { %9769 = vmatprep.subr.bf16.mxu0 %v11172_v0  ;;  %9781 = vmatprep.subr.bf16.mxu1 %v9780_v41  ;;  %v1714_v63 = vld [vmem:[%s12704_s15] sm:$0x3]  ;;  %s12709_s15 = sld [smem:[#allocation61_spill]]  ;;  %s12729_s12 = sld [smem:[#allocation70_spill]] }
 0x1c6   : > { %v1728_v3 = vrot.slane %v1714_v63, %v11735_v62  ;;  %v1732_v4 = vrot.slane %v1714_v63, %v11739_v2  ;;  %s12740_s17 = sld [smem:[#allocation41_spill]]  ;;  %s12741_s19 = sld [smem:[#allocation43_spill]] }
 0x1c7   : > { %p12746_p5 = scmp.ne.s32.totalorder %s12674_s7, 0 }
 0x1c8   : > { %9771 = vmatpush3.bf16.msra.mxu0 %v9770_v13  ;;  %9783 = vmatpush1.bf16.msra.mxu1 %v9782_v46 }
 0x1c9   : > { %9378 = vmatprep.subr.mxu0 %v11174_v1  ;;  %9785 = vmatprep.subr.bf16.mxu1 %v9784_v47 }
 0x1cb   : > { %9376 = vmatmul.mubr.msk.f32.vlgmr.msra.gmra.mrb[0].mxu0 %vm1592_vm1, %v1576_v14 }
 0x1cc   : > { %9380 = vmatprep.mubr.msk.f32.mxu0 %vm11173_vm0, %v11174_v1  ;;  %9787 = vmatpush1.bf16.msra.mxu1 %v9786_v50 }
 0x1cd   : > { %9383 = vmatprep.subr.mxu1 %v11174_v1 }
 0x29e   : > { %v1662_v16 = vpop.f32.mrb[0].mxu0 }
 0x29f   : > { %v1663_v18 = vadd.f32 %v8658_v15, %v1662_v16  ;;  %v9377_v19 = vpop.f32.mrb[1].mxu0 }
 0x2a1   : > { %v11719_v20 = vadd.f32 %v1666_v17, %v1663_v18 }
 0x2a3   : > { %v1670_v21 = vsel %vm1592_vm1, %v11719_v20, 0.0 }
 0x2a4   : > { %1671 = vadd.xlane.f32.xlu0 %v1670_v21 }
 0x331   : > { %v1672_v22 = vpop.xlane.xlu0 %1671 }
 0x332   : > { %v1674_v23 = vmul.f32 0.015625, %v1672_v22 }
 0x334   : > { %v1675_v24 = vsub.f32 %v11719_v20, %v1674_v23 }
 0x336   : > { %v1676_v25 = vmul.f32 %v1675_v24, %v1675_v24 }
 0x338   : > { %v1677_v26 = vsel %vm1592_vm1, %v1676_v25, 0.0 }
 0x339   : > { %1678 = vadd.xlane.f32.xlu0 %v1677_v26 }
 0x3c6   : > { %v1679_v51 = vpop.xlane.xlu0 %1678 }
 0x3c7   : > { %v1680_v52 = vmul.f32 0.015625, %v1679_v51 }
 0x3c9   : > { %v1681_v53 = vadd.f32 1e-05, %v1680_v52 }
 0x3cb   : > { %10521 = vrsqrt.f32 %v1681_v53 }
 0x3d5   : > { %v10522_v54 = vpop.eup %10521 }
 0x3d6   : > { %v1683_v56 = vmul.f32 %v10522_v54, %v1675_v24 }
 0x3d8   : > { %v1690_v58 = vmul.f32 %v8660_v55, %v1683_v56 }
 0x3da   : > { %v1697_v59 = vadd.f32 %v8661_v57, %v1690_v58 }
 0x3dc   : > { %8662 = vmatmul.mubr.msk.f32.vlgmr.msra.gmra.mrb[0].mxu1 %vm1592_vm1, %v1697_v59 }
 0x3dd   : > { %9385 = vmatprep.mubr.msk.f32.mxu1 %vm11173_vm0, %v11174_v1 }
 0x4af   : > { %v1804_v5 = vpop.f32.mrb[0].mxu1 }
 0x4b0   : > { %v1805_v6 = vadd.f32 %v1804_v5, %v1728_v3  ;;  %v1806_v7 = vpop.f32.mrb[1].mxu1 }
 0x4b1   : > { %v11743_v8 = vadd.f32 %v1806_v7, %v1732_v4 }
 0x4b2   : > { %1973 = vrot.lane.b32.xlu0 %v1805_v6, %s12609_s8  ;;  %1810 = vrot.lane.b32.xlu1 %v1805_v6, %s12607_s26 }
 0x4b3   : > { %9384 = vmatpush3.msra.mxu1 %v11743_v8 }
 0x4b4   : > { %9393 = vmatprep.subr.mxu1 %v11174_v1 }
 0x4b6   : > { %1975 = vrot.lane.b32.xlu1 %v1805_v6, %s12605_s18 }
 0x4ba   : > { %2142 = vrot.lane.b32.xlu1 %v1805_v6, %s12603_s13 }
 0x4be   : > { %2140 = vrot.lane.b32.xlu1 %v1805_v6, %s12601_s4 }
 0x4c2   : > { %2308 = vrot.lane.b32.xlu1 %v1805_v6, %s12599_s9 }
 0x4c6   : > { %2306 = vrot.lane.b32.xlu1 %v1805_v6, %s12597_s1 }
 0x524   : > { %v1811_v9 = vpop.permute.xlu1 %1810  ;;  %v1974_v11 = vpop.permute.xlu0 %1973 }
 0x525   : > { %9379 = vmatpush3.xpose.msk.msra.mxu0 %vm1812_vm2, %v1811_v9 }
 0x526   : > { %9388 = vmatprep.subr.mxu0 %v11174_v1 }
 0x528   : > { %9381 = vmatmul.mubr.msk.f32.vlgmr.msra.gmra.mrb[2].mxu0 %vm1812_vm2, %v1805_v6  ;;  %v1976_v10 = vpop.permute.xlu1 %1975 }
 0x529   : > { %9389 = vmatpush3.xpose.msk.msra.mxu0 %vm1812_vm2, %v1976_v10  ;;  %9390 = vmatprep.mubr.msk.f32.mxu0 %vm11173_vm0, %v11174_v1  ;;  %v1715_v10 = vld [vmem:[#allocation19] sm:$0xff] }
 0x52a   : > { %9398 = vmatprep.subr.mxu0 %v11174_v1 }
 0x52c   : > { %9391 = vmatmul.mubr.msk.f32.vlgmr.msra.gmra.mrb[4].mxu0 %vm1812_vm2, %v1974_v11  ;;  %v2143_v12 = vpop.permute.xlu1 %2142  ;;  %v1716_v11 = vld [vmem:[#allocation19 + $0x8] sm:$0xff] }
 0x52d   : > { %9399 = vmatpush3.xpose.msk.msra.mxu0 %vm1812_vm2, %v2143_v12  ;;  %9400 = vmatprep.mubr.msk.f32.mxu0 %vm11173_vm0, %v11174_v1  ;;  %v9789_v12 = vpack.c.bf16 %v1716_v11, %v1715_v10  ;;  %v2612_v11 = vld [vmem:[#allocation13 + $0x70] sm:$0xff] }
 0x52e   : > { %9408 = vmatprep.subr.mxu0 %v11174_v1 }
 0x530   : > { %v2141_v13 = vpop.permute.xlu1 %2140 }
 0x531   : > { %9401 = vmatmul.mubr.msk.f32.vlgmr.msra.gmra.mrb[6].mxu0 %vm1812_vm2, %v2141_v13  ;;  %v1717_v13 = vld [vmem:[#allocation19 + $0x10] sm:$0xff] }
 0x532   : > { %9410 = vmatprep.mubr.msk.f32.mxu0 %vm11173_vm0, %v11174_v1 }
 0x534   : > { %v2309_v14 = vpop.permute.xlu1 %2308 }
 0x535   : > { %9409 = vmatpush3.xpose.msk.msra.mxu0 %vm1812_vm2, %v2309_v14  ;;  %v1718_v14 = vld [vmem:[#allocation19 + $0x18] sm:$0xff] }
 0x536   : > { %9788 = vmatprep.subr.bf16.mxu0 %v11172_v0 }
 0x538   : > { %v2307_v15 = vpop.permute.xlu1 %2306 }
 0x539   : > { %9411 = vmatmul.mubr.msk.f32.vlgmr.msra.gmra.mrb[8].mxu0 %vm1812_vm2, %v2307_v15  ;;  %v9792_v15 = vpack.c.bf16 %v1718_v14, %v1717_v13 }
 0x53a   : > { %9434 = vmatprep.mubr.msk.f32.mxu0 %vm11173_vm0, %v11174_v1  ;;  %9790 = vmatpush3.bf16.msra.mxu0 %v9789_v12 }
 0x53b   : > { %9791 = vmatprep.subr.bf16.mxu0 %v11172_v0 }
 0x53e   : > { %9793 = vmatpush3.bf16.msra.mxu0 %v9792_v15 }
 0x53f   : > { %9794 = vmatprep.subr.bf16.mxu0 %v11172_v0 }
 0x5fb   : > { %v1883_v16 = vpop.f32.mrb[2].mxu0 }
 0x5fc   : > { %v1887_v17 = vmul.f32 0.25, %v1883_v16  ;;  %v9382_v18 = vpop.f32.mrb[3].mxu0  ;;  %v1719_v16 = vld [vmem:[#allocation19 + $0x20] sm:$0xff] }
 0x5fd   : > { %v1721_v18 = vld [vmem:[#allocation19 + $0x30] sm:$0xff] }
 0x5fe   : > { %v1889_v19 = vsel %vm1888_vm3, %v1887_v17, -inf }
 0x5ff   : > { %1890 = vmax.xlane.f32.xlu1 %v1889_v19  ;;  %v2047_v21 = vpop.f32.mrb[4].mxu0 }
 0x600   : > { %v2051_v22 = vmul.f32 0.25, %v2047_v21  ;;  %v9392_v23 = vpop.f32.mrb[5].mxu0  ;;  %v1722_v21 = vld [vmem:[#allocation19 + $0x38] sm:$0xff] }
 0x601   : > { %v9798_v23 = vpack.c.bf16 %v1722_v21, %v1721_v18 }
 0x602   : > { %v2052_v24 = vsel %vm1888_vm3, %v2051_v22, -inf }
 0x603   : > { %2053 = vmax.xlane.f32.xlu0 %v2052_v24 }
 0x604   : > { %v2214_v25 = vpop.f32.mrb[6].mxu0 }
 0x605   : > { %v2218_v26 = vmul.f32 0.25, %v2214_v25  ;;  %v9402_v27 = vpop.f32.mrb[7].mxu0 }
 0x607   : > { %v2219_v28 = vsel %vm1888_vm3, %v2218_v26, -inf }
 0x608   : > { %2220 = vmax.xlane.f32.xlu1 %v2219_v28 }
 0x60c   : > { %v2380_v29 = vpop.f32.mrb[8].mxu0 }
 0x60d   : > { %v2384_v30 = vmul.f32 0.25, %v2380_v29  ;;  %v9412_v31 = vpop.f32.mrb[9].mxu0 }
 0x60f   : > { %v2385_v32 = vsel %vm1888_vm3, %v2384_v30, -inf }
 0x610   : > { %2386 = vmax.xlane.f32.xlu0 %v2385_v32 }
 0x619   : > { %2064 = vrot.lane.b32.xlu1 %v11743_v8, %s12609_s8 }
 0x68c   : > { %v1891_v33 = vpop.xlane.xlu1 %1890 }
 0x68d   : > { %v1892_v34 = vsub.f32 %v1887_v17, %v1891_v33  ;;  %v1720_v17 = vld [vmem:[#allocation19 + $0x28] sm:$0xff] }
 0x68e   : > { %v9795_v19 = vpack.c.bf16 %v1720_v17, %v1719_v16  ;;  %v8677_v17 = vld [vmem:[%s12707_s22] ss:$0 sm:$0xff] }
 0x68f   : > { %v1893_v35 = vmul.f32 1.442695, %v1892_v34 }
 0x690   : > { %v2054_v36 = vpop.xlane.xlu0 %2053  ;;  %9796 = vmatpush3.bf16.msra.mxu0 %v9795_v19  ;;  %v8678_v19 = vld [vmem:[%s12709_s15] ss:$0 sm:$0xff] }
 0x691   : > { %10523 = vpow2.f32 %v1893_v35  ;;  %v2055_v37 = vsub.f32 %v2051_v22, %v2054_v36  ;;  %9797 = vmatprep.subr.bf16.mxu0 %v11172_v0 }
 0x693   : > { %v2056_v38 = vmul.f32 1.442695, %v2055_v37  ;;  %v8675_v37 = vld [vmem:[%s12706_s23] ss:$0 sm:$0xff] }
 0x694   : > { %9799 = vmatpush3.bf16.msra.mxu0 %v9798_v23  ;;  %v2734_v23 = vld [vmem:[#allocation14 + $0x80] sm:$0xff] }
 0x695   : > { %10525 = vpow2.f32 %v2056_v38  ;;  %v2221_v39 = vpop.xlane.xlu1 %2220 }
 0x696   : > { %v2222_v40 = vsub.f32 %v2218_v26, %v2221_v39 }
 0x698   : > { %v2223_v41 = vmul.f32 1.442695, %v2222_v40 }
 0x699   : > { %v2065_v53 = vpop.permute.xlu1 %2064 }
 0x69a   : > { %10527 = vpow2.f32 %v2223_v41 }
 0x69b   : > { %v10524_v42 = vpop.eup %10523 }
 0x69c   : > { %v1895_v43 = vsel %vm1888_vm3, %v10524_v42, 0.0 }
 0x69d   : > { %1896 = vadd.xlane.f32.xlu1 %v1895_v43  ;;  %v2387_v44 = vpop.xlane.xlu0 %2386 }
 0x69e   : > { %v2388_v45 = vsub.f32 %v2384_v30, %v2387_v44 }
 0x69f   : > { %v10526_v46 = vpop.eup %10525 }
 0x6a0   : > { %v2389_v47 = vmul.f32 1.442695, %v2388_v45  ;;  %v2058_v48 = vsel %vm1888_vm3, %v10526_v46, 0.0 }
 0x6a1   : > { %2059 = vadd.xlane.f32.xlu0 %v2058_v48  ;;  %v2599_v48 = vld [vmem:[#allocation13 + $0x8] sm:$0xff] }
 0x6a2   : > { %10529 = vpow2.f32 %v2389_v47 }
 0x6a4   : > { %v10528_v49 = vpop.eup %10527 }
 0x6a5   : > { %v2225_v50 = vsel %vm1888_vm3, %v10528_v49, 0.0 }
 0x6a6   : > { %2226 = vadd.xlane.f32.xlu1 %v2225_v50 }
 0x6ac   : > { %v10530_v51 = vpop.eup %10529 }
 0x6ad   : > { %v2391_v52 = vsel %vm1888_vm3, %v10530_v51, 0.0 }
 0x6ae   : > { %2392 = vadd.xlane.f32.xlu0 %v2391_v52  ;;  %v2600_v52 = vld [vmem:[#allocation13 + $0x10] sm:$0xff] }
 0x6b7   : > { %2396 = vrot.lane.b32.xlu1 %v11743_v8, %s12597_s1  ;;  %s12708_s1 = smov %s12707_s22  ;;  %s12711_s22 = sld [smem:[#allocation56_spill]] }
 0x6c4   : > { %2230 = vrot.lane.b32.xlu0 %v11743_v8, %s12601_s4  ;;  %s12712_s4 = smov %s12711_s22 }
 0x72a   : > { %v1897_v54 = vpop.xlane.xlu1 %1896 }
 0x72b   : > { %10531 = vrcp.f32 %v1897_v54  ;;  %v2605_v54 = vld [vmem:[#allocation13 + $0x38] sm:$0xff] }
 0x72e   : > { %v2060_v55 = vpop.xlane.xlu0 %2059 }
 0x72f   : > { %10533 = vrcp.f32 %v2060_v55 }
 0x733   : > { %v2227_v56 = vpop.xlane.xlu1 %2226 }
 0x734   : > { %10535 = vrcp.f32 %v2227_v56  ;;  %v2602_v56 = vld [vmem:[#allocation13 + $0x20] sm:$0xff] }
 0x735   : > { %v10532_v57 = vpop.eup %10531 }
 0x736   : > { %v1899_v58 = vmul.f32 %v10532_v57, %v10524_v42  ;;  %v2604_v57 = vld [vmem:[#allocation13 + $0x30] sm:$0xff] }
 0x737   : > { %v2397_v7 = vpop.permute.xlu1 %2396 }
 0x738   : > { %9386 = vmatmul.mubr.msk.f32.vlgmr.msra.gmra.mrb[2].mxu1 %vm1888_vm3, %v1899_v58  ;;  %v9806_v58 = vpack.c.bf16 %v2604_v57, %v2602_v56  ;;  %v2728_v56 = vld [vmem:[#allocation14 + $0x50] sm:$0xff]  ;;  %v2729_v57 = vld [vmem:[#allocation14 + $0x58] sm:$0xff] }
 0x739   : > { %v10534_v59 = vpop.eup %10533  ;;  %9394 = vmatpush3.msra.mxu1 %v2065_v53  ;;  %9395 = vmatprep.mubr.msk.f32.mxu1 %vm11173_vm0, %v11174_v1 }
 0x73a   : > { %v2062_v63 = vmul.f32 %v10534_v59, %v10526_v46  ;;  %9403 = vmatprep.subr.mxu1 %v11174_v1  ;;  %v2607_v59 = vld [vmem:[#allocation13 + $0x48] sm:$0xff] }
 0x73b   : > { %v2393_v3 = vpop.xlane.xlu0 %2392 }
 0x73c   : > { %10537 = vrcp.f32 %v2393_v3  ;;  %9396 = vmatmul.mubr.msk.f32.vlgmr.msra.gmra.mrb[4].mxu1 %vm1888_vm3, %v2062_v63  ;;  %v2609_v63 = vld [vmem:[#allocation13 + $0x58] sm:$0xff] }
 0x73d   : > { %9405 = vmatprep.mubr.msk.f32.mxu1 %vm11173_vm0, %v11174_v1  ;;  %v9808_v3 = vpack.c.bf16 %v2609_v63, %v2607_v59  ;;  %v2747_v59 = vld [vmem:[#allocation14 + $0xe8] sm:$0xff]  ;;  %v9838_v63 = vpack.c.bf16 %v2729_v57, %v2728_v56  ;;  %v2867_v57 = vld [vmem:[#allocation20 + $0xb8] sm:$0xff] }
 0x73e   : > { %v10536_v4 = vpop.eup %10535 }
 0x73f   : > { %v2231_v5 = vpop.permute.xlu0 %2230  ;;  %v2229_v6 = vmul.f32 %v10536_v4, %v10528_v49  ;;  %v2601_v49 = vld [vmem:[#allocation13 + $0x18] sm:$0xff]  ;;  %v2606_v4 = vld [vmem:[#allocation13 + $0x40] sm:$0xff] }
 0x740   : > { %9404 = vmatpush3.msra.mxu1 %v2231_v5  ;;  %v9800_v50 = vpack.c.bf16 %v2601_v49, %v2599_v48  ;;  %v2608_v5 = vld [vmem:[#allocation13 + $0x50] sm:$0xff]  ;;  %v2742_v48 = vld [vmem:[#allocation14 + $0xc0] sm:$0xff]  ;;  %v2743_v49 = vld [vmem:[#allocation14 + $0xc8] sm:$0xff] }
 0x741   : > { %9406 = vmatmul.mubr.msk.f32.vlgmr.msra.gmra.mrb[6].mxu1 %vm1888_vm3, %v2229_v6  ;;  %9413 = vmatprep.subr.mxu1 %v11174_v1  ;;  %v9810_v6 = vpack.c.bf16 %v2608_v5, %v2606_v4  ;;  %v2730_v4 = vld [vmem:[#allocation14 + $0x60] sm:$0xff]  ;;  %v2731_v5 = vld [vmem:[#allocation14 + $0x68] sm:$0xff] }
 0x742   : > { %9414 = vmatpush3.msra.mxu1 %v2397_v7  ;;  %9415 = vmatprep.mubr.msk.f32.mxu1 %vm11173_vm0, %v11174_v1  ;;  %v2611_v7 = vld [vmem:[#allocation13 + $0x68] sm:$0xff] }
 0x743   : > { %9801 = vmatprep.subr.bf16.mxu1 %v9800_v50  ;;  %v2726_v50 = vld [vmem:[#allocation14 + $0x40] sm:$0xff] }
 0x746   : > { %v10538_v8 = vpop.eup %10537 }
 0x747   : > { %v2395_v9 = vmul.f32 %v10538_v8, %v10530_v51  ;;  %v2598_v51 = vld [vmem:[#allocation13] sm:$0xff]  ;;  %v2613_v8 = vld [vmem:[#allocation13 + $0x78] sm:$0xff] }
 0x748   : > { %v9802_v53 = vpack.c.bf16 %v2600_v52, %v2598_v51  ;;  %v9812_v10 = vpack.c.bf16 %v2613_v8, %v2611_v7  ;;  %v9832_v51 = vpack.c.bf16 %v2743_v49, %v2742_v48  ;;  %v2727_v52 = vld [vmem:[#allocation14 + $0x48] sm:$0xff]  ;;  %v2749_v7 = vld [vmem:[#allocation14 + $0xf8] sm:$0xff]  ;;  %v9842_v8 = vpack.c.bf16 %v2731_v5, %v2730_v4  ;;  %v2869_v4 = vld [vmem:[#allocation20 + $0xc8] sm:$0xff] }
 0x749   : > { %9416 = vmatmul.mubr.msk.f32.vlgmr.msra.gmra.mrb[8].mxu1 %vm1888_vm3, %v2395_v9  ;;  %v2610_v9 = vld [vmem:[#allocation13 + $0x60] sm:$0xff] }
 0x74a   : > { %2693 = vmatprep.mubr.f32.mxu1 %v11174_v1  ;;  %9803 = vmatpush1.bf16.msra.mxu1 %v9802_v53  ;;  %v9814_v12 = vpack.c.bf16 %v2612_v11, %v2610_v9  ;;  %v2744_v53 = vld [vmem:[#allocation14 + $0xd0] sm:$0xff]  ;;  %v2733_v11 = vld [vmem:[#allocation14 + $0x78] sm:$0xff]  ;;  %v2871_v5 = vld [vmem:[#allocation20 + $0xd8] sm:$0xff] }
 0x80b   : > { %v1969_v22 = vpop.f32.mrb[2].mxu1 }
 0x80c   : > { %v9387_v24 = vpop.f32.mrb[3].mxu1 }
 0x80d   : > { %v2735_v24 = vld [vmem:[#allocation14 + $0x88] sm:$0xff] }
 0x80f   : > { %v2136_v25 = vpop.f32.mrb[4].mxu1 }
 0x810   : > { %2473 = vrot.lane.b32.xlu1 %v2136_v25, %s12599_s9  ;;  %v9397_v26 = vpop.f32.mrb[5].mxu1  ;;  %s12710_s9 = smov %s12709_s15  ;;  %v9816_v25 = vpack.c.bf16 %v2735_v24, %v2734_v23  ;;  %s12713_s15 = sld [smem:[#allocation58_spill]] }
 0x811   : > { %v2718_v26 = vld [vmem:[#allocation14] sm:$0xff] }
 0x812   : > { %9817 = vmatprep.subr.bf16.mxu0 %v9816_v25 }
 0x814   : > { %v2302_v27 = vpop.f32.mrb[6].mxu1 }
 0x815   : > { %2477 = vrot.lane.b32.xlu0 %v2302_v27, %s12603_s13  ;;  %v9407_v28 = vpop.f32.mrb[7].mxu1  ;;  %v2719_v27 = vld [vmem:[#allocation14 + $0x8] sm:$0xff] }
 0x816   : > { %v9818_v28 = vpack.c.bf16 %v2719_v27, %v2718_v26  ;;  %s12714_s13 = smov %s12713_s15 }
 0x81c   : > { %v2468_v29 = vpop.f32.mrb[8].mxu1 }
 0x81d   : > { %2481 = vrot.lane.b32.xlu1 %v2468_v29, %s12605_s18  ;;  %v9417_v30 = vpop.f32.mrb[9].mxu1  ;;  %v2736_v29 = vld [vmem:[#allocation14 + $0x90] sm:$0xff]  ;;  %s12717_s18 = smov 16  }
 0x81e   : > { %v2737_v30 = vld [vmem:[#allocation14 + $0x98] sm:$0xff] }
 0x882   : > { %v2474_v31 = vpop.permute.xlu1 %2473 }
 0x883   : > { %v2484_v33 = vsel %vm1812_vm2, %v1969_v22, %v2474_v31  ;;  %v9820_v31 = vpack.c.bf16 %v2737_v30, %v2736_v29 }
 0x887   : > { %v2478_v32 = vpop.permute.xlu0 %2477 }
 0x888   : > { %v2486_v34 = vsel %vm2485_vm4, %v2484_v33, %v2478_v32  ;;  %v2720_v32 = vld [vmem:[#allocation14 + $0x10] sm:$0xff]  ;;  %v2721_v33 = vld [vmem:[#allocation14 + $0x18] sm:$0xff] }
 0x88f   : > { %v2482_v35 = vpop.permute.xlu1 %2481 }
 0x890   : > { %v2488_v36 = vsel %vm2487_vm5, %v2486_v34, %v2482_v35  ;;  %v9822_v34 = vpack.c.bf16 %v2721_v33, %v2720_v32  ;;  %v2738_v35 = vld [vmem:[#allocation14 + $0xa0] sm:$0xff] }
 0x891   : > { %9435 = vmatmul.mubr.msk.f32.vlgmr.msra.gmra.mrb[10].mxu0 %vm1592_vm1, %v2488_v36  ;;  %v2739_v36 = vld [vmem:[#allocation14 + $0xa8] sm:$0xff] }
 0x892   : > { %9819 = vmatpush3.bf16.msra.mxu0 %v9818_v28 }
 0x893   : > { %9821 = vmatprep.subr.bf16.mxu0 %v9820_v31 }
 0x896   : > { %9823 = vmatpush3.bf16.msra.mxu0 %v9822_v34 }
 0x964   : > { %v2564_v38 = vpop.f32.mrb[10].mxu0 }
 0x965   : > { %v2565_v39 = vadd.f32 %v8675_v37, %v2564_v38  ;;  %v9436_v40 = vpop.f32.mrb[11].mxu0  ;;  %v9824_v37 = vpack.c.bf16 %v2739_v36, %v2738_v35  ;;  %v2722_v38 = vld [vmem:[#allocation14 + $0x20] sm:$0xff] }
 0x967   : > { %v11813_v41 = vadd.f32 %v2565_v39, %v11719_v20  ;;  %v2603_v20 = vld [vmem:[#allocation13 + $0x28] sm:$0xff]  ;;  %9825 = vmatprep.subr.bf16.mxu0 %v9824_v37 }
 0x968   : > { %v9804_v55 = vpack.c.bf16 %v2605_v54, %v2603_v20  ;;  %v2723_v39 = vld [vmem:[#allocation14 + $0x28] sm:$0xff]  ;;  %v2745_v20 = vld [vmem:[#allocation14 + $0xd8] sm:$0xff]  ;;  %v9834_v54 = vpack.c.bf16 %v2727_v52, %v2726_v50  ;;  %v2861_v52 = vld [vmem:[#allocation20 + $0x88] sm:$0xff] }
 0x969   : > { %v2571_v42 = vsel %vm1592_vm1, %v11813_v41, 0.0  ;;  %v9826_v40 = vpack.c.bf16 %v2723_v39, %v2722_v38 }
 0x96a   : > { %2572 = vadd.xlane.f32.xlu0 %v2571_v42  ;;  %9805 = vmatprep.subr.bf16.mxu1 %v9804_v55  ;;  %v2740_v42 = vld [vmem:[#allocation14 + $0xb0] sm:$0xff]  ;;  %v9836_v55 = vpack.c.bf16 %v2745_v20, %v2744_v53  ;;  %v2863_v53 = vld [vmem:[#allocation20 + $0x98] sm:$0xff] }
 0x96b   : > { %9807 = vmatpush1.bf16.msra.mxu1 %v9806_v58  ;;  %9827 = vmatpush3.bf16.msra.mxu0 %v9826_v40  ;;  %v2746_v58 = vld [vmem:[#allocation14 + $0xe0] sm:$0xff]  ;;  %v8680_v40 = vld [vmem:[%s12713_s15] ss:$0 sm:$0xff]  ;;  %v9848_v20 = vpack.c.bf16 %v2863_v53, %v2861_v52  ;;  %s12716_s15 = smov 96  }
 0x96c   : > { %9809 = vmatprep.subr.bf16.mxu1 %v9808_v3  ;;  %v9840_v3 = vpack.c.bf16 %v2747_v59, %v2746_v58  ;;  %v2864_v59 = vld [vmem:[#allocation20 + $0xa0] sm:$0xff] }
 0x96f   : > { %9811 = vmatpush1.bf16.msra.mxu1 %v9810_v6  ;;  %v2748_v6 = vld [vmem:[#allocation14 + $0xf0] sm:$0xff] }
 0x970   : > { %9813 = vmatprep.subr.bf16.mxu1 %v9812_v10  ;;  %v9844_v9 = vpack.c.bf16 %v2749_v7, %v2748_v6  ;;  %v2732_v10 = vld [vmem:[#allocation14 + $0x70] sm:$0xff]  ;;  %v9856_v6 = vpack.c.bf16 %v2871_v5, %v2869_v4  ;;  %v2868_v7 = vld [vmem:[#allocation20 + $0xc0] sm:$0xff] }
 0x973   : > { %9815 = vmatpush1.bf16.msra.mxu1 %v9814_v12  ;;  %v9846_v12 = vpack.c.bf16 %v2733_v11, %v2732_v10  ;;  %v2873_v10 = vld [vmem:[#allocation20 + $0xe8] sm:$0xff]  ;;  %v2875_v11 = vld [vmem:[#allocation20 + $0xf8] sm:$0xff] }
 0x974   : > { %9849 = vmatprep.subr.bf16.mxu1 %v9848_v20 }
 0x9f7   : > { %v2573_v43 = vpop.xlane.xlu0 %2572 }
 0x9f8   : > { %v2574_v44 = vmul.f32 0.015625, %v2573_v43  ;;  %v2741_v43 = vld [vmem:[#allocation14 + $0xb8] sm:$0xff] }
 0x9fa   : > { %v2575_v45 = vsub.f32 %v11813_v41, %v2574_v44  ;;  %v9828_v44 = vpack.c.bf16 %v2741_v43, %v2740_v42 }
 0x9fc   : > { %v2576_v46 = vmul.f32 %v2575_v45, %v2575_v45  ;;  %9829 = vmatprep.subr.bf16.mxu0 %v9828_v44 }
 0x9fe   : > { %v2577_v47 = vsel %vm1592_vm1, %v2576_v46, 0.0  ;;  %v2725_v46 = vld [vmem:[#allocation14 + $0x38] sm:$0xff] }
 0x9ff   : > { %2578 = vadd.xlane.f32.xlu1 %v2577_v47 }
 0xa8c   : > { %v2579_v13 = vpop.xlane.xlu1 %2578 }
 0xa8d   : > { %v2580_v14 = vmul.f32 0.015625, %v2579_v13  ;;  %v2614_v13 = vld [vmem:[%s12711_s22] sm:$0x3]  ;;  %s12715_s22 = smov 32  }
 0xa8f   : > { %v2581_v15 = vadd.f32 1e-05, %v2580_v14  ;;  %v2619_v14 = vrot.slane %v2614_v13, %v11735_v62 }
 0xa91   : > { %10539 = vrsqrt.f32 %v2581_v15  ;;  %v2623_v15 = vrot.slane %v2614_v13, %v11739_v2  ;;  %v9860_v13 = vpack.c.bf16 %v2875_v11, %v2873_v10 }
 0xa9b   : > { %v10540_v16 = vpop.eup %10539 }
 0xa9c   : > { %v2583_v18 = vmul.f32 %v10540_v16, %v2575_v45  ;;  %v2724_v45 = vld [vmem:[#allocation14 + $0x30] sm:$0xff] }
 0xa9d   : > { %v9830_v47 = vpack.c.bf16 %v2725_v46, %v2724_v45 }
 0xa9e   : > { %v2590_v21 = vmul.f32 %v8677_v17, %v2583_v18 }
 0xa9f   : > { %9831 = vmatpush3.bf16.msra.mxu0 %v9830_v47 }
 0xaa0   : > { %v2597_v22 = vadd.f32 %v8678_v19, %v2590_v21  ;;  %9833 = vmatprep.subr.bf16.mxu0 %v9832_v51 }
 0xaa2   : > { %8679 = vmatmul.mubr.msk.f32.vlgmr.msra.gmra.mrb[10].mxu1 %vm1592_vm1, %v2597_v22 }
 0xaa3   : > { %2967 = vmatprep.mubr.f32.mxu1 %v11174_v1  ;;  %9835 = vmatpush3.bf16.msra.mxu0 %v9834_v54  ;;  %v2860_v54 = vld [vmem:[#allocation20 + $0x80] sm:$0xff] }
 0xaa4   : > { %9837 = vmatprep.subr.bf16.mxu0 %v9836_v55  ;;  %v2862_v55 = vld [vmem:[#allocation20 + $0x90] sm:$0xff] }
 0xaa5   : > { %v9850_v56 = vpack.c.bf16 %v2862_v55, %v2860_v54 }
 0xaa7   : > { %9839 = vmatpush3.bf16.msra.mxu0 %v9838_v63  ;;  %9851 = vmatpush1.bf16.msra.mxu1 %v9850_v56  ;;  %v2866_v63 = vld [vmem:[#allocation20 + $0xb0] sm:$0xff] }
 0xaa8   : > { %9841 = vmatprep.subr.bf16.mxu0 %v9840_v3  ;;  %v9854_v3 = vpack.c.bf16 %v2866_v63, %v2864_v59 }
 0xaab   : > { %9843 = vmatpush3.bf16.msra.mxu0 %v9842_v8  ;;  %v2870_v8 = vld [vmem:[#allocation20 + $0xd0] sm:$0xff] }
 0xaac   : > { %9845 = vmatprep.subr.bf16.mxu0 %v9844_v9  ;;  %v9858_v9 = vpack.c.bf16 %v2870_v8, %v2868_v7 }
 0xaaf   : > { %9847 = vmatpush3.bf16.msra.mxu0 %v9846_v12  ;;  %v2872_v12 = vld [vmem:[#allocation20 + $0xe0] sm:$0xff] }
 0xab0   : > { %9457 = vmatprep.subr.mxu0 %v11174_v1 }
 0xb75   : > { %v2695_v16 = vpop.f32.mrb[10].mxu1 }
 0xb76   : > { %v2696_v17 = vadd.f32 %v2695_v16, %v2619_v14  ;;  %v2697_v18 = vpop.f32.mrb[11].mxu1  ;;  %v2874_v14 = vld [vmem:[#allocation20 + $0xf0] sm:$0xff] }
 0xb77   : > { %v2698_v19 = vadd.f32 %v2697_v18, %v2623_v15  ;;  %v9862_v15 = vpack.c.bf16 %v2874_v14, %v2872_v12 }
 0xb78   : > { %v2700_v21 = vmul.f32 %v2696_v17, %v2696_v17 }
 0xb79   : > { %v2701_v22 = vmul.f32 %v2698_v19, %v2698_v19 }
 0xb7a   : > { %v2702_v23 = vmul.f32 %v2700_v21, %v2696_v17  ;;  %v8683_v21 = vld [vmem:[%s12701_s10 + $0x1] ss:$0 sm:$0xff]  ;;  %s12736_s10 = sld [smem:[#allocation42_spill]] }
 0xb7b   : > { %v2703_v24 = vmul.f32 %v2701_v22, %v2698_v19 }
 0xb7c   : > { %v2704_v25 = vmul.f32 0.044715, %v2702_v23  ;;  %v8684_v23 = vld [vmem:[%s12703_s28 + $0x1] ss:$0 sm:$0xff] }
 0xb7d   : > { %v2705_v26 = vmul.f32 0.044715, %v2703_v24 }
 0xb7e   : > { %v2706_v27 = vadd.f32 %v2704_v25, %v2696_v17 }
 0xb7f   : > { %v2707_v28 = vadd.f32 %v2705_v26, %v2698_v19  ;;  %v8685_v26 = vld [vmem:[%s12705_s2 + $0x2] sm:$0x3]  ;;  %s12720_s2 = smov 112  }
 0xb80   : > { %v2708_v29 = vmul.f32 0.7978846, %v2706_v27  ;;  %v2893_v27 = vrot.slane %v8685_v26, %v11735_v62 }
 0xb81   : > { %v2709_v30 = vmul.f32 0.7978846, %v2707_v28 }
 0xb82   : > { %10541 = vtanh.f32 %v2708_v29 }
 0xb83   : > { %10543 = vtanh.f32 %v2709_v30 }
 0xb8c   : > { %v10542_v31 = vpop.eup %10541 }
 0xb8d   : > { %v10544_v32 = vpop.eup %10543  ;;  %v2712_v33 = vadd.f32 1.0, %v10542_v31  ;;  %v2897_v31 = vrot.slane %v8685_v26, %v11739_v2 }
 0xb8e   : > { %v2713_v34 = vadd.f32 1.0, %v10544_v32 }
 0xb8f   : > { %v2714_v35 = vmul.f32 0.5, %v2712_v33 }
 0xb90   : > { %v2715_v36 = vmul.f32 0.5, %v2713_v34 }
 0xb91   : > { %v2716_v38 = vmul.f32 %v2714_v35, %v2696_v17 }
 0xb92   : > { %v2717_v37 = vmul.f32 %v2715_v36, %v2698_v19 }
 0xb94   : > { %2821 = vmatprep.mubr.f32.mxu0 %v2717_v37 }
 0xb95   : > { %2822 = vmatmul.mubr.f32.vlgmr.msra.gmra.mrb[12].mxu0 %v2716_v38 }
 0xb96   : > { %9459 = vmatprep.mubr.msk.f32.mxu0 %vm11173_vm0, %v11174_v1 }
 0xc68   : > { %v9006_v39 = vpop.f32.mrb[12].mxu0 }
 0xc69   : > { %v9007_v42 = vpop.f32.mrb[13].mxu0 }
 0xc6a   : > { %v9008_v43 = vadd.f32 %v9007_v42, %v9006_v39 }
 0xc6c   : > { %v2824_v44 = vadd.f32 %v9008_v43, %v8680_v40 }
 0xc6e   : > { %v11831_v45 = vadd.f32 %v2824_v44, %v11813_v41  ;;  %v2865_v41 = vld [vmem:[#allocation20 + $0xa8] sm:$0xff] }
 0xc6f   : > { %v9852_v58 = vpack.c.bf16 %v2867_v57, %v2865_v41 }
 0xc70   : > { %v2832_v46 = vsel %vm1592_vm1, %v11831_v45, 0.0 }
 0xc71   : > { %2833 = vadd.xlane.f32.xlu0 %v2832_v46  ;;  %9853 = vmatprep.subr.bf16.mxu1 %v9852_v58 }
 0xc72   : > { %9855 = vmatpush1.bf16.msra.mxu1 %v9854_v3 }
 0xc73   : > { %9857 = vmatprep.subr.bf16.mxu1 %v9856_v6 }
 0xc76   : > { %9859 = vmatpush1.bf16.msra.mxu1 %v9858_v9 }
 0xc77   : > { %9861 = vmatprep.subr.bf16.mxu1 %v9860_v13 }
 0xc7a   : > { %9863 = vmatpush1.bf16.msra.mxu1 %v9862_v15 }
 0xc7b   : > { %9437 = vmatprep.subr.mxu1 %v11174_v1 }
 0xcfe   : > { %v2834_v47 = vpop.xlane.xlu0 %2833 }
 0xcff   : > { %v2835_v48 = vmul.f32 0.015625, %v2834_v47 }
 0xd01   : > { %v2836_v49 = vsub.f32 %v11831_v45, %v2835_v48 }
 0xd03   : > { %v2837_v50 = vmul.f32 %v2836_v49, %v2836_v49 }
 0xd05   : > { %v2838_v51 = vsel %vm1592_vm1, %v2837_v50, 0.0 }
 0xd06   : > { %2839 = vadd.xlane.f32.xlu0 %v2838_v51 }
 0xd93   : > { %v2840_v16 = vpop.xlane.xlu0 %2839 }
 0xd94   : > { %v2841_v17 = vmul.f32 0.015625, %v2840_v16 }
 0xd96   : > { %v2842_v18 = vadd.f32 1e-05, %v2841_v17 }
 0xd98   : > { %10545 = vrsqrt.f32 %v2842_v18 }
 0xda2   : > { %v10546_v19 = vpop.eup %10545 }
 0xda3   : > { %v2844_v22 = vmul.f32 %v10546_v19, %v2836_v49 }
 0xda5   : > { %v2851_v24 = vmul.f32 %v8683_v21, %v2844_v22 }
 0xda7   : > { %v2858_v25 = vadd.f32 %v8684_v23, %v2851_v24 }
 0xda9   : > { %8687 = vmatmul.mubr.msk.f32.vlgmr.msra.gmra.mrb[12].mxu1 %vm1592_vm1, %v2858_v25 }
 0xdaa   : > { %9439 = vmatprep.mubr.msk.f32.mxu1 %vm11173_vm0, %v11174_v1 }
 0xe7c   : > { %v2969_v28 = vpop.f32.mrb[12].mxu1 }
 0xe7d   : > { %v2970_v29 = vadd.f32 %v2969_v28, %v2893_v27  ;;  %v2971_v30 = vpop.f32.mrb[13].mxu1 }
 0xe7e   : > { %v11853_v33 = vadd.f32 %v2971_v30, %v2897_v31 }
 0xe7f   : > { %2975 = vrot.lane.b32.xlu1 %v2970_v29, %s12607_s26  ;;  %s12718_s26 = smov 48  }
 0xe83   : > { %3136 = vrot.lane.b32.xlu1 %v2970_v29, %s12609_s8  ;;  %s12719_s8 = smov 80  }
 0xe87   : > { %3305 = vrot.lane.b32.xlu1 %v2970_v29, %s12715_s22 }
 0xe8b   : > { %3303 = vrot.lane.b32.xlu1 %v2970_v29, %s12716_s15 }
 0xe8f   : > { %3471 = vrot.lane.b32.xlu1 %v2970_v29, %s12717_s18 }
 0xef1   : > { %v2976_v32 = vpop.permute.xlu1 %2975 }
 0xef2   : > { %9438 = vmatpush3.xpose.msk.msra.mxu1 %vm1812_vm2, %v2976_v32 }
 0xef3   : > { %9442 = vmatprep.subr.mxu1 %v11174_v1 }
 0xef5   : > { %9440 = vmatmul.mubr.msk.f32.vlgmr.msra.gmra.mrb[14].mxu1 %vm1812_vm2, %v2970_v29  ;;  %v3137_v34 = vpop.permute.xlu1 %3136 }
 0xef6   : > { %9443 = vmatpush3.msra.mxu1 %v11853_v33  ;;  %9444 = vmatprep.mubr.msk.f32.mxu1 %vm11173_vm0, %v11174_v1 }
 0xef7   : > { %9447 = vmatprep.subr.mxu1 %v11174_v1 }
 0xef9   : > { %v3306_v35 = vpop.permute.xlu1 %3305 }
 0xefa   : > { %9458 = vmatpush3.xpose.msk.msra.mxu0 %vm1812_vm2, %v3306_v35 }
 0xefb   : > { %9467 = vmatprep.subr.mxu0 %v11174_v1 }
 0xefd   : > { %v3304_v36 = vpop.permute.xlu1 %3303 }
 0xefe   : > { %9460 = vmatmul.mubr.msk.f32.vlgmr.msra.gmra.mrb[14].mxu0 %vm1812_vm2, %v3304_v36  ;;  %v2879_v36 = vld [vmem:[#allocation19 + $0x40] sm:$0xff] }
 0xeff   : > { %9469 = vmatprep.mubr.msk.f32.mxu0 %vm11173_vm0, %v11174_v1 }
 0xf01   : > { %v3472_v37 = vpop.permute.xlu1 %3471 }
 0xf02   : > { %9468 = vmatpush3.xpose.msk.msra.mxu0 %vm1812_vm2, %v3472_v37  ;;  %v2880_v37 = vld [vmem:[#allocation19 + $0x48] sm:$0xff] }
 0xf03   : > { %9864 = vmatprep.subr.bf16.mxu0 %v11172_v0 }
 0xfc8   : > { %v3047_v38 = vpop.f32.mrb[14].mxu1 }
 0xfc9   : > { %v3051_v39 = vmul.f32 0.25, %v3047_v38  ;;  %v9441_v40 = vpop.f32.mrb[15].mxu1  ;;  %v2881_v38 = vld [vmem:[#allocation19 + $0x50] sm:$0xff] }
 0xfca   : > { %v2882_v40 = vld [vmem:[#allocation19 + $0x58] sm:$0xff] }
 0xfcb   : > { %v3052_v42 = vsel %vm1888_vm3, %v3051_v39, -inf }
 0xfcc   : > { %3053 = vmax.xlane.f32.xlu0 %v3052_v42  ;;  %v9868_v42 = vpack.c.bf16 %v2882_v40, %v2881_v38 }
 0xfd1   : > { %v3377_v43 = vpop.f32.mrb[14].mxu0 }
 0xfd2   : > { %v9461_v44 = vpop.f32.mrb[15].mxu0  ;;  %v3381_v51 = vmul.f32 0.25, %v3377_v43  ;;  %v2883_v43 = vld [vmem:[#allocation19 + $0x60] sm:$0xff] }
 0xfd3   : > { %v2884_v44 = vld [vmem:[#allocation19 + $0x68] sm:$0xff] }
 0xfd4   : > { %v3382_v52 = vsel %vm1888_vm3, %v3381_v51, -inf }
0x1059   : > { %v3054_v46 = vpop.xlane.xlu0 %3053 }
0x105a   : > { %v3055_v47 = vsub.f32 %v3051_v39, %v3054_v46  ;;  %v9865_v39 = vpack.c.bf16 %v2880_v37, %v2879_v36  ;;  %v9871_v46 = vpack.c.bf16 %v2884_v44, %v2883_v43  ;;  %v8705_v44 = vld [vmem:[%s12710_s9 + $0x1] ss:$0 sm:$0xff]  ;;  %s12735_s9 = sld [smem:[#allocation53_spill]] }
0x105c   : > { %v3056_v48 = vmul.f32 1.442695, %v3055_v47  ;;  %v2885_v47 = vld [vmem:[#allocation19 + $0x70] sm:$0xff] }
0x105e   : > { %10547 = vpow2.f32 %v3056_v48  ;;  %v2886_v48 = vld [vmem:[#allocation19 + $0x78] sm:$0xff] }
0x1068   : > { %v10548_v49 = vpop.eup %10547 }
0x1069   : > { %v3058_v50 = vsel %vm1888_vm3, %v10548_v49, 0.0 }
0x106a   : > { %3059 = vadd.xlane.f32.xlu0 %v3058_v50 }
0x1080   : > { %3138 = vrot.lane.b32.xlu0 %v2970_v29, %s12718_s26 }
0x1084   : > { %3469 = vrot.lane.b32.xlu0 %v2970_v29, %s12719_s8 }
0x10a3   : > { %3383 = vmax.xlane.f32.xlu0 %v3382_v52 }
0x10f7   : > { %v3060_v53 = vpop.xlane.xlu0 %3059 }
0x10f8   : > { %10549 = vrcp.f32 %v3060_v53 }
0x10fb   : > { %v3139_v20 = vpop.permute.xlu0 %3138 }
0x10ff   : > { %v3470_v54 = vpop.permute.xlu0 %3469 }
0x1100   : > { %9470 = vmatmul.mubr.msk.f32.vlgmr.msra.gmra.mrb[16].mxu0 %vm1812_vm2, %v3470_v54 }
0x1101   : > { %9493 = vmatprep.mubr.msk.f32.mxu0 %vm11173_vm0, %v11174_v1  ;;  %9866 = vmatpush3.bf16.msra.mxu0 %v9865_v39 }
0x1102   : > { %v10550_v55 = vpop.eup %10549  ;;  %9867 = vmatprep.subr.bf16.mxu0 %v11172_v0 }
0x1103   : > { %v3062_v56 = vmul.f32 %v10550_v55, %v10548_v49  ;;  %v9874_v49 = vpack.c.bf16 %v2886_v48, %v2885_v47  ;;  %v3900_v48 = vld [vmem:[#allocation14 + $0x180] sm:$0xff] }
0x1105   : > { %9445 = vmatmul.mubr.msk.f32.vlgmr.msra.gmra.mrb[16].mxu1 %vm1888_vm3, %v3062_v56  ;;  %9869 = vmatpush3.bf16.msra.mxu0 %v9868_v42  ;;  %v8704_v42 = vld [vmem:[%s12708_s1 + $0x1] ss:$0 sm:$0xff]  ;;  %s12721_s1 = sld [smem:[#allocation35_spill]] }
0x1106   : > { %9448 = vmatpush3.xpose.msk.msra.mxu1 %vm1812_vm2, %v3139_v20  ;;  %9449 = vmatprep.mubr.msk.f32.mxu1 %vm11173_vm0, %v11174_v1 }
0x1107   : > { %9452 = vmatprep.subr.mxu1 %v11174_v1  ;;  %9870 = vmatprep.subr.bf16.mxu0 %v11172_v0 }
0x1109   : > { %9450 = vmatmul.mubr.msk.f32.vlgmr.msra.gmra.mrb[18].mxu1 %vm1812_vm2, %v3137_v34  ;;  %9872 = vmatpush3.bf16.msra.mxu0 %v9871_v46 }
0x110a   : > { %9454 = vmatprep.mubr.msk.f32.mxu1 %vm11173_vm0, %v11174_v1  ;;  %9873 = vmatprep.subr.bf16.mxu0 %v11172_v0 }
0x110d   : > { %9875 = vmatpush3.bf16.msra.mxu0 %v9874_v49  ;;  %v3901_v49 = vld [vmem:[#allocation14 + $0x188] sm:$0xff] }
0x1130   : > { %v3384_v41 = vpop.xlane.xlu0 %3383 }
0x1131   : > { %v3385_v57 = vsub.f32 %v3381_v51, %v3384_v41 }
0x1133   : > { %v3386_v58 = vmul.f32 1.442695, %v3385_v57 }
0x1135   : > { %10551 = vpow2.f32 %v3386_v58 }
0x113f   : > { %v10552_v5 = vpop.eup %10551 }
0x1140   : > { %v3388_v8 = vsel %vm1888_vm3, %v10552_v5, 0.0 }
0x11d3   : > { %v3543_v59 = vpop.f32.mrb[16].mxu0 }
0x11d4   : > { %v3547_v63 = vmul.f32 0.25, %v3543_v59  ;;  %v9471_v3 = vpop.f32.mrb[17].mxu0 }
0x11d6   : > { %v3548_v4 = vsel %vm1888_vm3, %v3547_v63, -inf }
0x11d7   : > { %3549 = vmax.xlane.f32.xlu0 %v3548_v4 }
0x11d8   : > { %v11884_v6 = vpop.f32.mrb[16].mxu1 }
0x11d9   : > { %v9446_v7 = vpop.f32.mrb[17].mxu1 }
0x11db   : > { %3389 = vadd.xlane.f32.xlu0 %v3388_v8 }
0x11dc   : > { %v3210_v9 = vpop.f32.mrb[18].mxu1 }
0x11dd   : > { %v3214_v10 = vmul.f32 0.25, %v3210_v9  ;;  %v9451_v11 = vpop.f32.mrb[19].mxu1 }
0x11df   : > { %v3215_v12 = vsel %vm1888_vm3, %v3214_v10, -inf }
0x11e0   : > { %3216 = vmax.xlane.f32.xlu1 %v3215_v12 }
0x11f1   : > { %3227 = vrot.lane.b32.xlu0 %v11853_v33, %s12720_s2 }
0x1264   : > { %v3550_v13 = vpop.xlane.xlu0 %3549 }
0x1265   : > { %v3551_v14 = vsub.f32 %v3547_v63, %v3550_v13  ;;  %v8700_v63 = vld [vmem:[%s12706_s23 + $0x1] ss:$0 sm:$0xff]  ;;  %v3763_v13 = vld [vmem:[#allocation13 + $0x88] sm:$0xff] }
0x1267   : > { %v3552_v15 = vmul.f32 1.442695, %v3551_v14  ;;  %v3765_v14 = vld [vmem:[#allocation13 + $0x98] sm:$0xff] }
0x1268   : > { %v3390_v16 = vpop.xlane.xlu0 %3389 }
0x1269   : > { %10553 = vpow2.f32 %v3552_v15  ;;  %v9876_v15 = vpack.c.bf16 %v3765_v14, %v3763_v13  ;;  %v3908_v13 = vld [vmem:[#allocation14 + $0x1c0] sm:$0xff]  ;;  %v3909_v14 = vld [vmem:[#allocation14 + $0x1c8] sm:$0xff] }
0x126c   : > { %v3228_v17 = vpop.permute.xlu0 %3227 }
0x126d   : > { %9453 = vmatpush3.msra.mxu1 %v3228_v17  ;;  %v3217_v21 = vpop.xlane.xlu1 %3216  ;;  %v3764_v17 = vld [vmem:[#allocation13 + $0x90] sm:$0xff] }
0x126e   : > { %9462 = vmatprep.subr.mxu1 %v11174_v1  ;;  %v3218_v22 = vsub.f32 %v3214_v10, %v3217_v21 }
0x1270   : > { %v3219_v23 = vmul.f32 1.442695, %v3218_v22  ;;  %v3766_v22 = vld [vmem:[#allocation13 + $0xa0] sm:$0xff] }
0x1272   : > { %10555 = vpow2.f32 %v3219_v23  ;;  %v3768_v23 = vld [vmem:[#allocation13 + $0xb0] sm:$0xff] }
0x1273   : > { %v10554_v18 = vpop.eup %10553 }
0x1274   : > { %v3554_v19 = vsel %vm1888_vm3, %v10554_v18, 0.0 }
0x1275   : > { %3555 = vadd.xlane.f32.xlu1 %v3554_v19  ;;  %v3769_v19 = vld [vmem:[#allocation13 + $0xb8] sm:$0xff] }
0x127c   : > { %v10556_v24 = vpop.eup %10555 }
0x127d   : > { %v3221_v25 = vsel %vm1888_vm3, %v10556_v24, 0.0 }
0x1286   : > { %3393 = vrot.lane.b32.xlu1 %v11853_v33, %s12716_s15 }
0x12aa   : > { %3222 = vadd.xlane.f32.xlu1 %v3221_v25  ;;  %v3771_v25 = vld [vmem:[#allocation13 + $0xc8] sm:$0xff] }
0x12bb   : > { %3559 = vrot.lane.b32.xlu1 %v11853_v33, %s12719_s8 }
0x1302   : > { %v3556_v26 = vpop.xlane.xlu1 %3555 }
0x1306   : > { %v3394_v27 = vpop.permute.xlu1 %3393 }
0x1337   : > { %v3223_v28 = vpop.xlane.xlu1 %3222 }
0x1338   : > { %10557 = vrcp.f32 %v3223_v28  ;;  %v3770_v28 = vld [vmem:[#allocation13 + $0xc0] sm:$0xff] }
0x1339   : > { %10559 = vrcp.f32 %v3390_v16  ;;  %v3762_v16 = vld [vmem:[#allocation13 + $0x80] sm:$0xff] }
0x133a   : > { %10561 = vrcp.f32 %v3556_v26  ;;  %v3773_v26 = vld [vmem:[#allocation13 + $0xd8] sm:$0xff] }
0x133b   : > { %v3560_v33 = vpop.permute.xlu1 %3559 }
0x1342   : > { %v10558_v29 = vpop.eup %10557 }
0x1343   : > { %v3225_v30 = vmul.f32 %v10558_v29, %v10556_v24  ;;  %v10560_v31 = vpop.eup %10559  ;;  %v9882_v24 = vpack.c.bf16 %v3768_v23, %v3766_v22  ;;  %v3772_v29 = vld [vmem:[#allocation13 + $0xd0] sm:$0xff]  ;;  %v3895_v23 = vld [vmem:[#allocation14 + $0x158] sm:$0xff] }
0x1344   : > { %v3392_v32 = vmul.f32 %v10560_v31, %v10552_v5  ;;  %v10562_v34 = vpop.eup %10561  ;;  %v3775_v31 = vld [vmem:[#allocation13 + $0xe8] sm:$0xff]  ;;  %v3894_v22 = vld [vmem:[#allocation14 + $0x150] sm:$0xff] }
0x1345   : > { %9455 = vmatmul.mubr.msk.f32.vlgmr.msra.gmra.mrb[20].mxu1 %vm1888_vm3, %v3225_v30  ;;  %v3558_v35 = vmul.f32 %v10562_v34, %v10554_v18  ;;  %v9878_v18 = vpack.c.bf16 %v3764_v17, %v3762_v16  ;;  %v9886_v30 = vpack.c.bf16 %v3772_v29, %v3770_v28  ;;  %v3774_v34 = vld [vmem:[#allocation13 + $0xe0] sm:$0xff]  ;;  %v9908_v16 = vpack.c.bf16 %v3909_v14, %v3908_v13  ;;  %v3893_v17 = vld [vmem:[#allocation14 + $0x148] sm:$0xff] }
0x1346   : > { %9463 = vmatpush3.msra.mxu1 %v3394_v27  ;;  %9464 = vmatprep.mubr.msk.f32.mxu1 %vm11173_vm0, %v11174_v1  ;;  %v9884_v27 = vpack.c.bf16 %v3773_v26, %v3771_v25  ;;  %v3913_v25 = vld [vmem:[#allocation14 + $0x1e8] sm:$0xff]  ;;  %v9914_v26 = vpack.c.bf16 %v3895_v23, %v3894_v22  ;;  %v3896_v28 = vld [vmem:[#allocation14 + $0x160] sm:$0xff]  ;;  %v4028_v22 = vld [vmem:[%s12721_s1 + $0x20] sm:$0xff] }
0x1347   : > { %9472 = vmatprep.subr.mxu1 %v11174_v1  ;;  %v3897_v29 = vld [vmem:[#allocation14 + $0x168] sm:$0xff]  ;;  %v4029_v23 = vld [vmem:[%s12721_s1 + $0x28] sm:$0xff] }
0x1349   : > { %9465 = vmatmul.mubr.msk.f32.vlgmr.msra.gmra.mrb[22].mxu1 %vm1888_vm3, %v3392_v32  ;;  %v3777_v32 = vld [vmem:[#allocation13 + $0xf8] sm:$0xff] }
0x134a   : > { %9473 = vmatpush3.msra.mxu1 %v3560_v33  ;;  %9474 = vmatprep.mubr.msk.f32.mxu1 %vm11173_vm0, %v11174_v1  ;;  %v9888_v33 = vpack.c.bf16 %v3777_v32, %v3775_v31  ;;  %v3915_v31 = vld [vmem:[#allocation14 + $0x1f8] sm:$0xff]  ;;  %v9918_v32 = vpack.c.bf16 %v3897_v29, %v3896_v28 }
0x134b   : > { %9877 = vmatprep.subr.bf16.mxu1 %v9876_v15  ;;  %v3892_v15 = vld [vmem:[#allocation14 + $0x140] sm:$0xff] }
0x134d   : > { %9475 = vmatmul.mubr.msk.f32.vlgmr.msra.gmra.mrb[24].mxu1 %vm1888_vm3, %v3558_v35  ;;  %v3776_v35 = vld [vmem:[#allocation13 + $0xf0] sm:$0xff] }
0x134e   : > { %3858 = vmatprep.mubr.f32.mxu1 %v11174_v1  ;;  %9879 = vmatpush1.bf16.msra.mxu1 %v9878_v18  ;;  %v9890_v36 = vpack.c.bf16 %v3776_v35, %v3774_v34  ;;  %v3910_v18 = vld [vmem:[#allocation14 + $0x1d0] sm:$0xff]  ;;  %v3899_v35 = vld [vmem:[#allocation14 + $0x178] sm:$0xff] }
0x1418   : > { %v3299_v50 = vpop.f32.mrb[20].mxu1 }
0x1419   : > { %3636 = vrot.lane.b32.xlu0 %v3299_v50, %s12717_s18  ;;  %v9456_v51 = vpop.f32.mrb[21].mxu1  ;;  %v9892_v50 = vpack.c.bf16 %v3901_v49, %v3900_v48 }
0x141a   : > { %v3884_v51 = vld [vmem:[#allocation14 + $0x100] sm:$0xff] }
0x141b   : > { %9893 = vmatprep.subr.bf16.mxu0 %v9892_v50 }
0x141c   : > { %v3465_v52 = vpop.f32.mrb[22].mxu1 }
0x141d   : > { %3640 = vrot.lane.b32.xlu1 %v3465_v52, %s12715_s22  ;;  %v9466_v53 = vpop.f32.mrb[23].mxu1  ;;  %v3885_v52 = vld [vmem:[#allocation14 + $0x108] sm:$0xff] }
0x141e   : > { %v9894_v53 = vpack.c.bf16 %v3885_v52, %v3884_v51 }
0x1420   : > { %v3631_v20 = vpop.f32.mrb[24].mxu1 }
0x1421   : > { %3644 = vrot.lane.b32.xlu0 %v3631_v20, %s12718_s26  ;;  %v9476_v54 = vpop.f32.mrb[25].mxu1  ;;  %v3902_v20 = vld [vmem:[#allocation14 + $0x190] sm:$0xff] }
0x1422   : > { %v3903_v54 = vld [vmem:[#allocation14 + $0x198] sm:$0xff] }
0x148b   : > { %v3637_v55 = vpop.permute.xlu0 %3636 }
0x148c   : > { %v3647_v41 = vsel %vm1812_vm2, %v11884_v6, %v3637_v55  ;;  %v9896_v55 = vpack.c.bf16 %v3903_v54, %v3902_v20 }
0x148f   : > { %v3641_v56 = vpop.permute.xlu1 %3640 }
0x1490   : > { %v3648_v57 = vsel %vm2485_vm4, %v3647_v41, %v3641_v56  ;;  %v3886_v56 = vld [vmem:[#allocation14 + $0x110] sm:$0xff]  ;;  %v3887_v41 = vld [vmem:[#allocation14 + $0x118] sm:$0xff] }
0x1493   : > { %v3645_v58 = vpop.permute.xlu0 %3644 }
0x1494   : > { %v3649_v59 = vsel %vm2487_vm5, %v3648_v57, %v3645_v58  ;;  %v9898_v57 = vpack.c.bf16 %v3887_v41, %v3886_v56  ;;  %v3904_v58 = vld [vmem:[#allocation14 + $0x1a0] sm:$0xff] }
0x1495   : > { %9494 = vmatmul.mubr.msk.f32.vlgmr.msra.gmra.mrb[18].mxu0 %vm1592_vm1, %v3649_v59  ;;  %v3905_v59 = vld [vmem:[#allocation14 + $0x1a8] sm:$0xff] }
0x1496   : > { %9895 = vmatpush3.bf16.msra.mxu0 %v9894_v53 }
0x1497   : > { %9897 = vmatprep.subr.bf16.mxu0 %v9896_v55 }
0x149a   : > { %9899 = vmatpush3.bf16.msra.mxu0 %v9898_v57 }
0x1568   : > { %v3725_v3 = vpop.f32.mrb[18].mxu0 }
0x1569   : > { %v3726_v4 = vadd.f32 %v8700_v63, %v3725_v3  ;;  %v9495_v5 = vpop.f32.mrb[19].mxu0  ;;  %v9900_v63 = vpack.c.bf16 %v3905_v59, %v3904_v58  ;;  %v3888_v3 = vld [vmem:[#allocation14 + $0x120] sm:$0xff] }
0x156b   : > { %v11919_v7 = vadd.f32 %v3726_v4, %v11831_v45  ;;  %v3767_v45 = vld [vmem:[#allocation13 + $0xa8] sm:$0xff]  ;;  %9901 = vmatprep.subr.bf16.mxu0 %v9900_v63 }
0x156c   : > { %v9880_v21 = vpack.c.bf16 %v3769_v19, %v3767_v45  ;;  %v3889_v4 = vld [vmem:[#allocation14 + $0x128] sm:$0xff]  ;;  %v3911_v45 = vld [vmem:[#allocation14 + $0x1d8] sm:$0xff]  ;;  %v9910_v19 = vpack.c.bf16 %v3893_v17, %v3892_v15 }
0x156d   : > { %v3734_v8 = vsel %vm1592_vm1, %v11919_v7, 0.0  ;;  %v9902_v5 = vpack.c.bf16 %v3889_v4, %v3888_v3  ;;  %v4024_v17 = vld [vmem:[%s12721_s1] sm:$0xff] }
0x156e   : > { %3735 = vadd.xlane.f32.xlu1 %v3734_v8  ;;  %9881 = vmatprep.subr.bf16.mxu1 %v9880_v21  ;;  %v3906_v8 = vld [vmem:[#allocation14 + $0x1b0] sm:$0xff]  ;;  %v9912_v21 = vpack.c.bf16 %v3911_v45, %v3910_v18  ;;  %v4025_v18 = vld [vmem:[%s12721_s1 + $0x8] sm:$0xff] }
0x156f   : > { %9883 = vmatpush1.bf16.msra.mxu1 %v9882_v24  ;;  %9903 = vmatpush3.bf16.msra.mxu0 %v9902_v5  ;;  %v3912_v24 = vld [vmem:[#allocation14 + $0x1e0] sm:$0xff]  ;;  %v8709_v5 = vld [vmem:[%s12714_s13 + $0x1] ss:$0 sm:$0xff]  ;;  %v9925_v45 = vpack.c.bf16 %v4025_v18, %v4024_v17  ;;  %s12738_s13 = sld [smem:[#allocation47_spill]] }
0x1570   : > { %9885 = vmatprep.subr.bf16.mxu1 %v9884_v27  ;;  %v9916_v27 = vpack.c.bf16 %v3913_v25, %v3912_v24  ;;  %v9931_v24 = vpack.c.bf16 %v4029_v23, %v4028_v22  ;;  %v4030_v25 = vld [vmem:[%s12721_s1 + $0x30] sm:$0xff] }
0x1573   : > { %9887 = vmatpush1.bf16.msra.mxu1 %v9886_v30  ;;  %v3914_v30 = vld [vmem:[#allocation14 + $0x1f0] sm:$0xff] }
0x1574   : > { %9889 = vmatprep.subr.bf16.mxu1 %v9888_v33  ;;  %v9920_v34 = vpack.c.bf16 %v3915_v31, %v3914_v30  ;;  %v3898_v33 = vld [vmem:[#allocation14 + $0x170] sm:$0xff] }
0x1577   : > { %9891 = vmatpush1.bf16.msra.mxu1 %v9890_v36  ;;  %v9922_v36 = vpack.c.bf16 %v3899_v35, %v3898_v33 }
0x1578   : > { %9924 = vmatprep.subr.bf16.mxu1 %v11172_v0 }
0x15fb   : > { %v3736_v9 = vpop.xlane.xlu1 %3735 }
0x15fc   : > { %v3737_v6 = vmul.f32 0.015625, %v3736_v9  ;;  %v3907_v9 = vld [vmem:[#allocation14 + $0x1b8] sm:$0xff] }
0x15fe   : > { %v3738_v10 = vsub.f32 %v11919_v7, %v3737_v6  ;;  %v9904_v6 = vpack.c.bf16 %v3907_v9, %v3906_v8 }
0x1600   : > { %v3739_v11 = vmul.f32 %v3738_v10, %v3738_v10  ;;  %9905 = vmatprep.subr.bf16.mxu0 %v9904_v6 }
0x1602   : > { %v3740_v12 = vsel %vm1592_vm1, %v3739_v11, 0.0  ;;  %v3891_v11 = vld [vmem:[#allocation14 + $0x138] sm:$0xff] }
0x1603   : > { %3741 = vadd.xlane.f32.xlu0 %v3740_v12 }
0x1690   : > { %v3742_v37 = vpop.xlane.xlu0 %3741 }
0x1691   : > { %v3743_v38 = vmul.f32 0.015625, %v3742_v37  ;;  %v8706_v37 = vld [vmem:[%s12712_s4 + $0x2] sm:$0x3]  ;;  %s12723_s4 = sld [smem:[#allocation36_spill]] }
0x1693   : > { %v3744_v39 = vadd.f32 1e-05, %v3743_v38  ;;  %v3784_v38 = vrot.slane %v8706_v37, %v11735_v62 }
0x1695   : > { %10563 = vrsqrt.f32 %v3744_v39  ;;  %v3788_v39 = vrot.slane %v8706_v37, %v11739_v2 }
0x1697   : > { %v4113_v33 = vld [vmem:[%s12723_s4] sm:$0xff]  ;;  %v4114_v35 = vld [vmem:[%s12723_s4 + $0x8] sm:$0xff] }
0x169f   : > { %v10564_v40 = vpop.eup %10563 }
0x16a0   : > { %v3746_v43 = vmul.f32 %v10564_v40, %v3738_v10  ;;  %v3890_v10 = vld [vmem:[#allocation14 + $0x130] sm:$0xff] }
0x16a1   : > { %v9906_v12 = vpack.c.bf16 %v3891_v11, %v3890_v10 }
0x16a2   : > { %v3753_v46 = vmul.f32 %v8704_v42, %v3746_v43 }
0x16a3   : > { %9907 = vmatpush3.bf16.msra.mxu0 %v9906_v12 }
0x16a4   : > { %v3760_v47 = vadd.f32 %v8705_v44, %v3753_v46  ;;  %9909 = vmatprep.subr.bf16.mxu0 %v9908_v16 }
0x16a6   : > { %8707 = vmatmul.mubr.msk.f32.vlgmr.msra.gmra.mrb[26].mxu1 %vm1592_vm1, %v3760_v47 }
0x16a7   : > { %9512 = vmatprep.mubr.msk.f32.mxu1 %vm11173_vm0, %v11174_v1  ;;  %9911 = vmatpush3.bf16.msra.mxu0 %v9910_v19  ;;  %v4027_v19 = vld [vmem:[%s12721_s1 + $0x18] sm:$0xff] }
0x16a8   : > { %9913 = vmatprep.subr.bf16.mxu0 %v9912_v21  ;;  %9926 = vmatpush3.bf16.msra.mxu1 %v9925_v45  ;;  %v4207_v45 = vld [vmem:[#allocation22 + $0x30] sm:$0xff] }
0x16a9   : > { %9927 = vmatprep.subr.bf16.mxu1 %v11172_v0 }
0x16ab   : > { %9915 = vmatpush3.bf16.msra.mxu0 %v9914_v26  ;;  %v4031_v26 = vld [vmem:[%s12721_s1 + $0x38] sm:$0xff] }
0x16ac   : > { %9917 = vmatprep.subr.bf16.mxu0 %v9916_v27  ;;  %v9934_v27 = vpack.c.bf16 %v4031_v26, %v4030_v25 }
0x16af   : > { %9919 = vmatpush3.bf16.msra.mxu0 %v9918_v32  ;;  %v8710_v32 = vld [vmem:[%s12722_s3] ss:$0 sm:$0xff]  ;;  %s12730_s3 = sld [smem:[#allocation51_spill]] }
0x16b0   : > { %9921 = vmatprep.subr.bf16.mxu0 %v9920_v34 }
0x16b3   : > { %9923 = vmatpush3.bf16.msra.mxu0 %v9922_v36  ;;  %v8711_v36 = vld [vmem:[%s12724_s5] ss:$0 sm:$0xff]  ;;  %s12728_s5 = sld [smem:[#allocation34_spill]] }
0x1779   : > { %v3860_v40 = vpop.f32.mrb[26].mxu1 }
0x177a   : > { %v3861_v42 = vadd.f32 %v3860_v40, %v3784_v38  ;;  %v3862_v43 = vpop.f32.mrb[27].mxu1  ;;  %v9937_v38 = vpack.c.bf16 %v4114_v35, %v4113_v33  ;;  %v4115_v40 = vld [vmem:[%s12723_s4 + $0x10] sm:$0xff]  ;;  %v4228_v33 = vld [vmem:[#allocation22 + $0xd8] sm:$0xff] }
0x177b   : > { %v3863_v44 = vadd.f32 %v3862_v43, %v3788_v39 }
0x177c   : > { %v3865_v46 = vmul.f32 %v3861_v42, %v3861_v42 }
0x177d   : > { %v3866_v47 = vmul.f32 %v3863_v44, %v3863_v44 }
0x177e   : > { %v3867_v48 = vmul.f32 %v3865_v46, %v3861_v42  ;;  %v4118_v46 = vld [vmem:[%s12723_s4 + $0x28] sm:$0xff] }
0x177f   : > { %v3868_v49 = vmul.f32 %v3866_v47, %v3863_v44 }
0x1780   : > { %v3869_v50 = vmul.f32 0.044715, %v3867_v48  ;;  %v4119_v48 = vld [vmem:[%s12723_s4 + $0x30] sm:$0xff] }
0x1781   : > { %v3870_v51 = vmul.f32 0.044715, %v3868_v49  ;;  %v4120_v49 = vld [vmem:[%s12723_s4 + $0x38] sm:$0xff] }
0x1782   : > { %v3871_v52 = vadd.f32 %v3869_v50, %v3861_v42  ;;  %v9946_v50 = vpack.c.bf16 %v4120_v49, %v4119_v48  ;;  %v4232_v48 = vld [vmem:[#allocation22 + $0xf8] sm:$0xff]  ;;  %v4215_v49 = vld [vmem:[#allocation22 + $0x70] sm:$0xff] }
0x1783   : > { %v3872_v53 = vadd.f32 %v3870_v51, %v3863_v44 }
0x1784   : > { %v3873_v20 = vmul.f32 0.7978846, %v3871_v52 }
0x1785   : > { %v3874_v54 = vmul.f32 0.7978846, %v3872_v53 }
0x1786   : > { %10565 = vtanh.f32 %v3873_v20 }
0x1787   : > { %10567 = vtanh.f32 %v3874_v54 }
0x1790   : > { %v10566_v55 = vpop.eup %10565 }
0x1791   : > { %v10568_v56 = vpop.eup %10567  ;;  %v3877_v41 = vadd.f32 1.0, %v10566_v55 }
0x1792   : > { %v3878_v57 = vadd.f32 1.0, %v10568_v56  ;;  %v4217_v56 = vld [vmem:[#allocation22 + $0x80] sm:$0xff] }
0x1793   : > { %v3879_v58 = vmul.f32 0.5, %v3877_v41  ;;  %v4218_v41 = vld [vmem:[#allocation22 + $0x88] sm:$0xff] }
0x1794   : > { %v3880_v59 = vmul.f32 0.5, %v3878_v57  ;;  %v4201_v57 = vld [vmem:[#allocation22] sm:$0xff] }
0x1795   : > { %v3881_v3 = vmul.f32 %v3879_v58, %v3861_v42  ;;  %v4116_v42 = vld [vmem:[%s12723_s4 + $0x18] sm:$0xff]  ;;  %v9948_v58 = vpack.c.bf16 %v4218_v41, %v4217_v56 }
0x1796   : > { %v3882_v63 = vmul.f32 %v3880_v59, %v3863_v44  ;;  %v9940_v43 = vpack.c.bf16 %v4116_v42, %v4115_v40  ;;  %v4117_v44 = vld [vmem:[%s12723_s4 + $0x20] sm:$0xff]  ;;  %v4202_v59 = vld [vmem:[#allocation22 + $0x8] sm:$0xff]  ;;  %s12734_s4 = smov 64  }
0x1797   : > { %v9943_v47 = vpack.c.bf16 %v4118_v46, %v4117_v44  ;;  %9950 = vmatprep.subr.msk.bf16.mxu0 %vm11970_vm6, %v9948_v58  ;;  %v4230_v40 = vld [vmem:[#allocation22 + $0xe8] sm:$0xff] }
0x1798   : > { %3988 = vmatprep.mubr.f32.mxu0 %v3882_v63  ;;  %v4219_v63 = vld [vmem:[#allocation22 + $0x90] sm:$0xff]  ;;  %v4214_v44 = vld [vmem:[#allocation22 + $0x68] sm:$0xff] }
0x1799   : > { %3989 = vmatmul.mubr.f32.vlgmr.msra.gmra.mrb[20].mxu0 %v3881_v3  ;;  %v4220_v3 = vld [vmem:[#allocation22 + $0x98] sm:$0xff] }
0x186c   : > { %v9066_v4 = vpop.f32.mrb[20].mxu0 }
0x186d   : > { %v9067_v8 = vpop.f32.mrb[21].mxu0 }
0x186e   : > { %v9068_v9 = vadd.f32 %v9067_v8, %v9066_v4  ;;  %v9951_v4 = vpack.c.bf16 %v4202_v59, %v4201_v57  ;;  %v4203_v8 = vld [vmem:[#allocation22 + $0x10] sm:$0xff] }
0x1870   : > { %v3991_v6 = vadd.f32 %v9068_v9, %v8709_v5  ;;  %v9954_v5 = vpack.c.bf16 %v4220_v3, %v4219_v63  ;;  %v4204_v9 = vld [vmem:[#allocation22 + $0x18] sm:$0xff]  ;;  %9953 = vmatpush3.bf16.xpose.msk.msra.mxu0 %vm11970_vm6, %v9951_v4 }
0x1872   : > { %v3994_v10 = vadd.f32 %v3991_v6, %v11919_v7  ;;  %v4026_v7 = vld [vmem:[%s12721_s1 + $0x10] sm:$0xff]  ;;  %s12725_s1 = sld [smem:[#allocation33_spill]]  ;;  %9956 = vmatprep.subr.msk.bf16.mxu0 %vm11970_vm6, %v9954_v5 }
0x1873   : > { %v9928_v21 = vpack.c.bf16 %v4027_v19, %v4026_v7  ;;  %v4221_v6 = vld [vmem:[#allocation22 + $0xa0] sm:$0xff]  ;;  %v4208_v7 = vld [vmem:[#allocation22 + $0x38] sm:$0xff] }
0x1874   : > { %v3997_v11 = vsel %vm1592_vm1, %v3994_v10, 0.0  ;;  %v4225_v19 = vld [vmem:[#allocation22 + $0xc0] sm:$0xff]  ;;  %v9969_v22 = vpack.c.bf16 %v4208_v7, %v4207_v45 }
0x1875   : > { %3998 = vadd.xlane.f32.xlu0 %v3997_v11  ;;  %9929 = vmatpush3.bf16.msra.mxu1 %v9928_v21  ;;  %v9957_v11 = vpack.c.bf16 %v4204_v9, %v4203_v8  ;;  %v4226_v21 = vld [vmem:[#allocation22 + $0xc8] sm:$0xff] }
0x1876   : > { %9930 = vmatprep.subr.bf16.mxu1 %v11172_v0  ;;  %v9972_v23 = vpack.c.bf16 %v4226_v21, %v4225_v19  ;;  %v4549_v19 = vld [vmem:[#allocation7] sm:$0xff]  ;;  %v4550_v21 = vld [vmem:[#allocation7 + $0x8] sm:$0xff] }
0x1878   : > { %v8712_v51 = vld [vmem:[%s12725_s1] ss:$0 sm:$0xff]  ;;  %9959 = vmatpush3.bf16.xpose.msk.msra.mxu0 %vm11970_vm6, %v9957_v11  ;;  %s1575_s1 = scalar_lea.vmem %s12729_s12, %s11708_s11  ;;  %s12737_s12 = sld [smem:[#allocation48_spill]] }
0x1879   : > { %9932 = vmatpush3.bf16.msra.mxu1 %v9931_v24  ;;  %v8714_v24 = vld [vmem:[%s12728_s5] ss:$0 sm:$0xff]  ;;  %s12731_s5 = sld [smem:[#allocation46_spill]] }
0x187a   : > { %9933 = vmatprep.subr.bf16.mxu1 %v11172_v0 }
0x187d   : > { %9935 = vmatpush3.bf16.msra.mxu1 %v9934_v27 }
0x187e   : > { %9936 = vmatprep.subr.bf16.mxu1 %v11172_v0 }
0x1902   : > { %v3999_v12 = vpop.xlane.xlu0 %3998 }
0x1903   : > { %v4000_v13 = vmul.f32 0.015625, %v3999_v12 }
0x1905   : > { %v4001_v14 = vsub.f32 %v3994_v10, %v4000_v13  ;;  %v4222_v10 = vld [vmem:[#allocation22 + $0xa8] sm:$0xff]  ;;  %v4205_v13 = vld [vmem:[#allocation22 + $0x20] sm:$0xff] }
0x1906   : > { %v9960_v12 = vpack.c.bf16 %v4222_v10, %v4221_v6 }
0x1907   : > { %v4002_v15 = vmul.f32 %v4001_v14, %v4001_v14 }
0x1908   : > { %9962 = vmatprep.subr.msk.bf16.mxu0 %vm11970_vm6, %v9960_v12 }
0x1909   : > { %v4003_v16 = vsel %vm1592_vm1, %v4002_v15, 0.0  ;;  %v4223_v15 = vld [vmem:[#allocation22 + $0xb0] sm:$0xff] }
0x190a   : > { %4004 = vadd.xlane.f32.xlu1 %v4003_v16  ;;  %v4224_v16 = vld [vmem:[#allocation22 + $0xb8] sm:$0xff] }
0x190b   : > { %v9966_v18 = vpack.c.bf16 %v4224_v16, %v4223_v15 }
0x1997   : > { %v4005_v28 = vpop.xlane.xlu1 %4004 }
0x1998   : > { %v4006_v29 = vmul.f32 0.015625, %v4005_v28 }
0x199a   : > { %v4007_v30 = vadd.f32 1e-05, %v4006_v29 }
0x199c   : > { %10569 = vrsqrt.f32 %v4007_v30  ;;  %v4209_v30 = vld [vmem:[#allocation22 + $0x40] sm:$0xff] }
0x19a6   : > { %v10570_v31 = vpop.eup %10569 }
0x19a7   : > { %v4009_v34 = vmul.f32 %v10570_v31, %v4001_v14  ;;  %v4206_v14 = vld [vmem:[#allocation22 + $0x28] sm:$0xff] }
0x19a8   : > { %v9963_v17 = vpack.c.bf16 %v4206_v14, %v4205_v13  ;;  %v4210_v31 = vld [vmem:[#allocation22 + $0x48] sm:$0xff] }
0x19a9   : > { %v4016_v37 = vmul.f32 %v8710_v32, %v4009_v34  ;;  %v9975_v32 = vpack.c.bf16 %v4210_v31, %v4209_v30  ;;  %v4227_v34 = vld [vmem:[#allocation22 + $0xd0] sm:$0xff] }
0x19aa   : > { %9965 = vmatpush3.bf16.xpose.msk.msra.mxu0 %vm11970_vm6, %v9963_v17  ;;  %v9978_v35 = vpack.c.bf16 %v4228_v33, %v4227_v34 }
0x19ab   : > { %v4023_v39 = vadd.f32 %v8711_v36, %v4016_v37  ;;  %9968 = vmatprep.subr.msk.bf16.mxu0 %vm11970_vm6, %v9966_v18  ;;  %v4211_v36 = vld [vmem:[#allocation22 + $0x50] sm:$0xff]  ;;  %v4212_v37 = vld [vmem:[#allocation22 + $0x58] sm:$0xff] }
0x19ad   : > { %9513 = vmatmul.mubr.msk.f32.vlgmr.msra.gmra.mrb[28].mxu1 %vm1592_vm1, %v4023_v39  ;;  %v4229_v39 = vld [vmem:[#allocation22 + $0xe0] sm:$0xff] }
0x19ae   : > { %9938 = vmatpush3.bf16.msra.mxu1 %v9937_v38  ;;  %9531 = vmatprep.mubr.msk.f32.mxu1 %vm11173_vm0, %v11174_v1  ;;  %v9981_v38 = vpack.c.bf16 %v4212_v37, %v4211_v36  ;;  %v9984_v42 = vpack.c.bf16 %v4230_v40, %v4229_v39  ;;  %v4551_v36 = vld [vmem:[#allocation7 + $0x10] sm:$0xff]  ;;  %v4552_v37 = vld [vmem:[#allocation7 + $0x18] sm:$0xff] }
0x19af   : > { %9939 = vmatprep.subr.bf16.mxu1 %v11172_v0 }
0x19b2   : > { %9941 = vmatpush3.bf16.msra.mxu1 %v9940_v43  ;;  %9971 = vmatpush3.bf16.xpose.msk.msra.mxu0 %vm11970_vm6, %v9969_v22  ;;  %v4213_v43 = vld [vmem:[#allocation22 + $0x60] sm:$0xff] }
0x19b3   : > { %9942 = vmatprep.subr.bf16.mxu1 %v11172_v0  ;;  %9974 = vmatprep.subr.msk.bf16.mxu0 %vm11970_vm6, %v9972_v23  ;;  %v9987_v46 = vpack.c.bf16 %v4214_v44, %v4213_v43  ;;  %v8753_v43 = vld [vmem:[%s12730_s3] ss:$0 sm:$0xff]  ;;  %s12732_s3 = sld [smem:[#allocation45_spill]] }
0x19b6   : > { %9944 = vmatpush3.bf16.msra.mxu1 %v9943_v47  ;;  %v4231_v47 = vld [vmem:[#allocation22 + $0xf0] sm:$0xff] }
0x19b7   : > { %9945 = vmatprep.subr.bf16.mxu1 %v11172_v0 }
0x19ba   : > { %9947 = vmatpush3.bf16.msra.mxu1 %v9946_v50  ;;  %9977 = vmatpush3.bf16.xpose.msk.msra.mxu0 %vm11970_vm6, %v9975_v32  ;;  %v9990_v50 = vpack.c.bf16 %v4232_v48, %v4231_v47 }
0x19bb   : > { %9997 = vmatprep.subr.bf16.mxu1 %v9948_v58  ;;  %9980 = vmatprep.subr.msk.bf16.mxu0 %vm11970_vm6, %v9978_v35 }
0x19c2   : > { %9983 = vmatpush3.bf16.xpose.msk.msra.mxu0 %vm11970_vm6, %v9981_v38 }
0x19c3   : > { %9986 = vmatprep.subr.msk.bf16.mxu0 %vm11970_vm6, %v9984_v42 }
0x19ca   : > { %9989 = vmatpush3.bf16.xpose.msk.msra.mxu0 %vm11970_vm6, %v9987_v46 }
0x19cb   : > { %9992 = vmatprep.subr.msk.bf16.mxu0 %vm11970_vm6, %v9990_v50 }
0x1a80   : > { %v4108_v52 = vpop.f32.mrb[28].mxu1 }
0x1a81   : > { %v4109_v53 = vadd.f32 %v8712_v51, %v4108_v52  ;;  %v9514_v20 = vpop.f32.mrb[29].mxu1  ;;  %v4216_v51 = vld [vmem:[#allocation22 + $0x78] sm:$0xff] }
0x1a82   : > { %v9993_v52 = vpack.c.bf16 %v4216_v51, %v4215_v49 }
0x1a83   : > { %10571 = vtanh.f32 %v4109_v53 }
0x1a84   : > { %9995 = vmatpush3.bf16.xpose.msk.msra.mxu0 %vm11970_vm6, %v9993_v52  ;;  %vm4532_vm6 = vcmask 57344  }
0x1a85   : > { %9555 = vmatprep.subr.mxu0 %v11174_v1 }
0x1a8d   : > { %v10572_v54 = vpop.eup %10571 }
0x1a8e   : > { %9532 = vmatmul.mubr.msk.f32.vlgmr.msra.gmra.mrb[30].mxu1 %vm1592_vm1, %v10572_v54 }
0x1a8f   : > { %9999 = vmatpush3.bf16.msra.mxu1 %v9951_v4 }
0x1a90   : > { %10001 = vmatprep.subr.bf16.mxu1 %v9954_v5  ;;  %v4421_v5 = vand.u32 127, %v1725_v60 }
0x1a92   : > { %v4422_v8 = vadd.s32 128, %v4421_v5  ;;  %vm4521_vm13 = vcmp.eq.s32.totalorder %v11732_v61, %v4421_v5 }
0x1a93   : > { %10003 = vmatpush3.bf16.msra.mxu1 %v9957_v11 }
0x1a94   : > { %10005 = vmatprep.subr.bf16.mxu1 %v9960_v12 }
0x1a97   : > { %10007 = vmatpush3.bf16.msra.mxu1 %v9963_v17 }
0x1a98   : > { %10009 = vmatprep.subr.bf16.mxu1 %v9966_v18 }
0x1a9b   : > { %10011 = vmatpush3.bf16.msra.mxu1 %v9969_v22 }
0x1a9c   : > { %10013 = vmatprep.subr.bf16.mxu1 %v9972_v23  ;;  %v10029_v23 = vpack.c.bf16 %v4550_v21, %v4549_v19 }
0x1a9f   : > { %10015 = vmatpush3.bf16.msra.mxu1 %v9975_v32 }
0x1aa0   : > { %10017 = vmatprep.subr.bf16.mxu1 %v9978_v35 }
0x1aa3   : > { %10019 = vmatpush3.bf16.msra.mxu1 %v9981_v38  ;;  %v10032_v38 = vpack.c.bf16 %v4552_v37, %v4551_v36 }
0x1aa4   : > { %10021 = vmatprep.subr.bf16.mxu1 %v9984_v42 }
0x1aa7   : > { %10023 = vmatpush3.bf16.msra.mxu1 %v9987_v46  ;;  %v4633_v46 = vld [vmem:[#allocation8] sm:$0xff] }
0x1aa8   : > { %10025 = vmatprep.subr.bf16.mxu1 %v9990_v50 }
0x1aab   : > { %10027 = vmatpush3.bf16.msra.mxu1 %v9993_v52 }
0x1aac   : > { %10028 = vmatprep.subr.bf16.mxu1 %v11172_v0 }
0x1b61   : > { %v4197_v25 = vpop.f32.mrb[30].mxu1 }
0x1b62   : > { %v11993_v26 = vadd.f32 %v8714_v24, %v4197_v25  ;;  %v9533_v27 = vpop.f32.mrb[31].mxu1  ;;  %v11182_v25 = vmov 1.0  }
0x1b64   : > { %v4233_v28 = vmul.f32 %v11993_v26, %v11993_v26 }
0x1b66   : > { %v4234_v29 = vsel %vm2485_vm4, %v4233_v28, 0.0 }
0x1b67   : > { %4235 = vadd.xlane.f32.xlu0 %v4234_v29 }
0x1bf4   : > { %v4236_v53 = vpop.xlane.xlu0 %4235 }
0x1bf5   : > { %10573 = vrsqrt.f32 %v4236_v53  ;;  %vm4239_vm7 = vcmp.eq.f32.partialorder %v4236_v53, inf  ;;  %v4242_v56 = vand.u32 2147483648, %v4236_v53  ;;  %vm4241_vm8 = vcmp.eq.f32.partialorder %v4236_v53, 0.0 }
0x1bff   : > { %v10574_v20 = vpop.eup %10573 }
0x1c00   : > { %v4238_v54 = vmul.f32 %v10574_v20, %v4236_v53 }
0x1c02   : > { %v4240_v41 = vsel %vm4239_vm7, %v4236_v53, %v4238_v54 }
0x1c03   : > { %v4243_v57 = vsel %vm4241_vm8, %v4242_v56, %v4240_v41  ;;  %v4665_v56 = vld [vmem:[#allocation11 + $0x8] sm:$0xff]  ;;  %v4667_v41 = vld [vmem:[#allocation11 + $0x18] sm:$0xff] }
0x1c04   : > { %v4244_v58 = vmax.f32 %v4243_v57, 1e-12  ;;  %v10034_v57 = vpack.c.bf16 %v4667_v41, %v4665_v56 }
0x1c06   : > { %10575 = vrcp.f32 %v4244_v58  ;;  %v4664_v58 = vld [vmem:[#allocation11] sm:$0xff] }
0x1c10   : > { %v10576_v59 = vpop.eup %10575 }
0x1c11   : > { %v4246_v63 = vmul.f32 %v10576_v59, %v11993_v26  ;;  %v4666_v59 = vld [vmem:[#allocation11 + $0x10] sm:$0xff] }
0x1c13   : > { %9119 = vmatprep.mubr.msk.f32.mxu0 %vm2485_vm4, %v4246_v63 }
0x1c14   : > { %9120 = vmatmul.mubr.msk.f32.vlgmr.msra.gmra.mrb[22].mxu0 %vm2485_vm4, %v4246_v63  ;;  %v10036_v63 = vpack.c.bf16 %v4666_v59, %v4664_v58 }
0x1c15   : > { %9557 = vmatprep.mubr.msk.f32.mxu0 %vm11173_vm0, %v11174_v1 }
0x1ce7   : > { %v4412_v55 = vpop.f32.mrb[22].mxu0 }
0x1ce8   : > { %v4414_v3 = vpop.f32.mrb[23].mxu0 }
0x1ce9   : > { %v4417_v4 = vmax.f32 %v4412_v55, %v4414_v3 }
0x1ceb   : > { %4418 = vmax.xlane.f32.xlu1 %v4417_v4 }
0x1d78   : > { %v4419_v9 = vpop.xlane.xlu1 %4418 }
0x1d79   : > { %vm4423_vm9 = vcmp.eq.f32.partialorder %v4412_v55, %v4419_v9  ;;  %vm4424_vm10 = vcmp.eq.f32.partialorder %v4414_v3, %v4419_v9  ;;  %v4669_v55 = vld [vmem:[#allocation11 + $0x28] sm:$0xff]  ;;  %v4671_v3 = vld [vmem:[#allocation11 + $0x38] sm:$0xff] }
0x1d7a   : > { %v4425_v6 = vsel %vm4423_vm9, %v4421_v5, 256  ;;  %v4426_v10 = vsel %vm4424_vm10, %v4422_v8, 256  ;;  %v10038_v4 = vpack.c.bf16 %v4671_v3, %v4669_v55 }
0x1d7b   : > { %vm4427_vm11 = vcmp.lt.s32.totalorder %v4425_v6, %v4426_v10 }
0x1d7c   : > { %v4428_v11 = vsel %vm4427_vm11, %v4425_v6, %v4426_v10  ;;  %v4673_v6 = vld [vmem:[#allocation11 + $0x48] sm:$0xff]  ;;  %v4675_v10 = vld [vmem:[#allocation11 + $0x58] sm:$0xff] }
0x1d7d   : > { %v4430_v12 = vshra.s32 %v4428_v11, 16  ;;  %v4429_v14 = vand.u32 65535, %v4428_v11  ;;  %v10042_v11 = vpack.c.bf16 %v4675_v10, %v4673_v6 }
0x1d7f   : > { %v4432_v13 = vcvt.s32.f32 %v4430_v12  ;;  %v4431_v16 = vcvt.s32.f32 %v4429_v14  ;;  %v4672_v12 = vld [vmem:[#allocation11 + $0x40] sm:$0xff] }
0x1d81   : > { %4433 = vmin.xlane.f32.xlu0 %v4432_v13 }
0x1e0e   : > { %v4434_v15 = vpop.xlane.xlu0 %4433 }
0x1e0f   : > { %vm4435_vm12 = vcmp.eq.f32.partialorder %v4432_v13, %v4434_v15  ;;  %v4440_v18 = vcvt.f32.s32 %v4434_v15  ;;  %v4674_v13 = vld [vmem:[#allocation11 + $0x50] sm:$0xff]  ;;  %v4677_v15 = vld [vmem:[#allocation11 + $0x68] sm:$0xff] }
0x1e10   : > { %v4436_v17 = vsel %vm4435_vm12, %v4431_v16, inf  ;;  %v10044_v14 = vpack.c.bf16 %v4674_v13, %v4672_v12  ;;  %v4679_v16 = vld [vmem:[#allocation11 + $0x78] sm:$0xff] }
0x1e11   : > { %4437 = vmin.xlane.f32.xlu1 %v4436_v17  ;;  %v4441_v60 = vshll.u32 %v4440_v18, 16  ;;  %v4676_v17 = vld [vmem:[#allocation11 + $0x60] sm:$0xff]  ;;  %v10046_v18 = vpack.c.bf16 %v4679_v16, %v4677_v15 }
0x1e9e   : > { %v4438_v45 = vpop.xlane.xlu1 %4437 }
0x1e9f   : > { %v4439_v7 = vcvt.f32.s32 %v4438_v45  ;;  %v4678_v45 = vld [vmem:[#allocation11 + $0x70] sm:$0xff] }
0x1ea1   : > { %v4442_v22 = vadd.s32 %v4441_v60, %v4439_v7  ;;  %v10048_v60 = vpack.c.bf16 %v4678_v45, %v4676_v17 }
0x1ea3   : > { %v4522_v24 = vcvt.s32.f32 %v4442_v22  ;;  %vm4444_vm14 = vcmp.eq.s32.totalorder %v4422_v8, %v4442_v22  ;;  %vm4443_vm15 = vcmp.eq.s32.totalorder %v4421_v5, %v4442_v22  ;;  %v4668_v5 = vld [vmem:[#allocation11 + $0x20] sm:$0xff]  ;;  %v4670_v8 = vld [vmem:[#allocation11 + $0x30] sm:$0xff] }
0x1ea4   : > { %8751 = vmatprep.mubr.msk.f32.mxu1 %vm4444_vm14, %v11182_v25  ;;  %v10040_v9 = vpack.c.bf16 %v4670_v8, %v4668_v5 }
0x1ea5   : > { %v4523_v27 = vsel %vm4521_vm13, %v4522_v24, 0.0  ;;  %8752 = vmatmul.mubr.msk.f32.vlgmr.msra.gmra.mrb[32].mxu1 %vm4443_vm15, %v11182_v25  ;;  %v8756_v25 = vld [vmem:[%s12732_s3] ss:$0 sm:$0xff] }
0x1ea6   : > { %v4524_v28 = vsel %vm1888_vm3, %v4523_v27, 0.0  ;;  %10030 = vmatpush3.bf16.msra.mxu1 %v10029_v23  ;;  %9542 = vmatprep.mubr.msk.f32.mxu1 %vm11173_vm0, %v11174_v1  ;;  %v8755_v23 = vld [vmem:[%s12731_s5] ss:$0 sm:$0xff] }
0x1ea7   : > { %v4525_v29 = vrot.slane %v4524_v28, 4  ;;  %10031 = vmatprep.subr.bf16.mxu1 %v11172_v0 }
0x1ea9   : > { %v4526_v61 = vadd.f32 %v4525_v29, %v4524_v28 }
0x1eaa   : > { %10033 = vmatpush3.bf16.msra.mxu1 %v10032_v38 }
0x1eab   : > { %v4527_v30 = vrot.slane %v4526_v61, 2  ;;  %10035 = vmatprep.subr.bf16.mxu1 %v10034_v57 }
0x1ead   : > { %v4528_v31 = vadd.f32 %v4527_v30, %v4526_v61 }
0x1eaf   : > { %v4529_v32 = vrot.slane %v4528_v31, 1 }
0x1eb1   : > { %v4530_v34 = vadd.f32 %v4529_v32, %v4528_v31 }
0x1eb3   : > { %v10286_v33 = vtrunc.f32 %v4530_v34 }
0x1eb5   : > { %v10287_v35 = vcvt.f32.s32 %v10286_v33 }
0x1eb7   : > { %4533 = vst.msk [vmem:[%s1575_s1] sm:$0x1] %vm4532_vm6, %v10287_v35  ;;  %s12733_s1 = sld [smem:[#allocation55_spill]] }
0x1ebd   : > { %v4680_v29 = vld [vmem:[%s12733_s1] sm:$0x3] }
0x1ebe   : > { %v4694_v61 = vrot.slane %v4680_v29, %v11735_v62  ;;  %v4698_v34 = vrot.slane %v4680_v29, %v11739_v2 }
0x1f78   : > { %v9153_v39 = vpop.f32.mrb[32].mxu1 }
0x1f79   : > { %v9154_v40 = vpop.f32.mrb[33].mxu1 }
0x1f7a   : > { %v12027_v42 = vadd.f32 %v9154_v40, %v9153_v39 }
0x1f7c   : > { %9543 = vmatmul.mubr.msk.f32.vlgmr.msra.gmra.mrb[34].mxu1 %vm2485_vm4, %v12027_v42 }
0x1f7d   : > { %4768 = vmatprep.mubr.f32.mxu1 %v11174_v1  ;;  %10037 = vmatpush1.bf16.msra.mxu1 %v10036_v63 }
0x1f7e   : > { %10039 = vmatprep.subr.bf16.mxu1 %v10038_v4 }
0x1f81   : > { %10041 = vmatpush1.bf16.msra.mxu1 %v10040_v9 }
0x1f82   : > { %10043 = vmatprep.subr.bf16.mxu1 %v10042_v11 }
0x1f85   : > { %10045 = vmatpush1.bf16.msra.mxu1 %v10044_v14 }
0x1f86   : > { %10047 = vmatprep.subr.bf16.mxu1 %v10046_v18 }
0x1f89   : > { %10049 = vmatpush1.bf16.msra.mxu1 %v10048_v60 }
0x1f8a   : > { %9545 = vmatprep.subr.mxu1 %v11174_v1 }
0x204f   : > { %v4629_v44 = vpop.f32.mrb[34].mxu1 }
0x2050   : > { %v4630_v47 = vadd.f32 %v8753_v43, %v4629_v44  ;;  %v9544_v48 = vpop.f32.mrb[35].mxu1 }
0x2052   : > { %v12033_v49 = vadd.f32 %v4633_v46, %v4630_v47 }
0x2054   : > { %v4637_v50 = vsel %vm1592_vm1, %v12033_v49, 0.0 }
0x2055   : > { %4638 = vadd.xlane.f32.xlu0 %v4637_v50 }
0x20e2   : > { %v4639_v51 = vpop.xlane.xlu0 %4638 }
0x20e3   : > { %v4640_v52 = vmul.f32 0.015625, %v4639_v51 }
0x20e5   : > { %v4641_v53 = vsub.f32 %v12033_v49, %v4640_v52 }
0x20e7   : > { %v4642_v20 = vmul.f32 %v4641_v53, %v4641_v53 }
0x20e9   : > { %v4643_v54 = vsel %vm1592_vm1, %v4642_v20, 0.0 }
0x20ea   : > { %4644 = vadd.xlane.f32.xlu1 %v4643_v54 }
0x2177   : > { %v4645_v7 = vpop.xlane.xlu1 %4644 }
0x2178   : > { %v4646_v19 = vmul.f32 0.015625, %v4645_v7 }
0x217a   : > { %v4647_v21 = vadd.f32 1e-05, %v4646_v19 }
0x217c   : > { %10577 = vrsqrt.f32 %v4647_v21 }
0x2186   : > { %v10578_v22 = vpop.eup %10577 }
0x2187   : > { %v4649_v24 = vmul.f32 %v10578_v22, %v4641_v53 }
0x2189   : > { %v4656_v27 = vmul.f32 %v8755_v23, %v4649_v24 }
0x218b   : > { %v4663_v28 = vadd.f32 %v8756_v25, %v4656_v27 }
0x218d   : > { %8757 = vmatmul.mubr.msk.f32.vlgmr.msra.gmra.mrb[36].mxu1 %vm1592_vm1, %v4663_v28 }
0x218e   : > { %9547 = vmatprep.mubr.msk.f32.mxu1 %vm11173_vm0, %v11174_v1 }
0x2260   : > { %v4770_v30 = vpop.f32.mrb[36].mxu1 }
0x2261   : > { %v4771_v31 = vadd.f32 %v4770_v30, %v4694_v61  ;;  %v4772_v32 = vpop.f32.mrb[37].mxu1 }
0x2262   : > { %v12059_v36 = vadd.f32 %v4772_v32, %v4698_v34 }
0x2263   : > { %4939 = vrot.lane.b32.xlu1 %v4771_v31, %s12718_s26  ;;  %4776 = vrot.lane.b32.xlu0 %v4771_v31, %s12734_s4 }
0x2267   : > { %4937 = vrot.lane.b32.xlu1 %v4771_v31, %s12720_s2  ;;  %5106 = vrot.lane.b32.xlu0 %v4771_v31, %s12715_s22 }
0x226b   : > { %5104 = vrot.lane.b32.xlu1 %v4771_v31, %s12716_s15  ;;  %5272 = vrot.lane.b32.xlu0 %v4771_v31, %s12717_s18 }
0x226f   : > { %5270 = vrot.lane.b32.xlu1 %v4771_v31, %s12719_s8 }
0x22d5   : > { %v4940_v33 = vpop.permute.xlu1 %4939  ;;  %v4777_v35 = vpop.permute.xlu0 %4776 }
0x22d6   : > { %9546 = vmatpush3.xpose.msk.msra.mxu1 %vm1812_vm2, %v4777_v35  ;;  %9556 = vmatpush3.xpose.msk.msra.mxu0 %vm1812_vm2, %v4940_v33 }
0x22d7   : > { %9565 = vmatprep.subr.mxu0 %v11174_v1  ;;  %9550 = vmatprep.subr.mxu1 %v11174_v1 }
0x22d9   : > { %v4938_v37 = vpop.permute.xlu1 %4937  ;;  %9548 = vmatmul.mubr.msk.f32.vlgmr.msra.gmra.mrb[38].mxu1 %vm1812_vm2, %v4771_v31  ;;  %v5107_v38 = vpop.permute.xlu0 %5106 }
0x22da   : > { %9551 = vmatpush3.msra.mxu1 %v12059_v36  ;;  %9558 = vmatmul.mubr.msk.f32.vlgmr.msra.gmra.mrb[24].mxu0 %vm1812_vm2, %v4938_v37  ;;  %v4682_v37 = vld [vmem:[#allocation10 + $0x8] sm:$0xff] }
0x22db   : > { %9566 = vmatpush3.xpose.msk.msra.mxu0 %vm1812_vm2, %v5107_v38  ;;  %9567 = vmatprep.mubr.msk.f32.mxu0 %vm11173_vm0, %v11174_v1  ;;  %v4683_v38 = vld [vmem:[#allocation10 + $0x10] sm:$0xff] }
0x22dc   : > { %9575 = vmatprep.subr.mxu0 %v11174_v1  ;;  %9552 = vmatprep.mubr.msk.f32.mxu1 %vm11173_vm0, %v11174_v1 }
0x22dd   : > { %v5105_v39 = vpop.permute.xlu1 %5104  ;;  %v5273_v40 = vpop.permute.xlu0 %5272  ;;  %9560 = vmatprep.subr.mxu1 %v11174_v1 }
0x22de   : > { %9568 = vmatmul.mubr.msk.f32.vlgmr.msra.gmra.mrb[26].mxu0 %vm1812_vm2, %v5105_v39 }
0x22df   : > { %9576 = vmatpush3.xpose.msk.msra.mxu0 %vm1812_vm2, %v5273_v40  ;;  %9577 = vmatprep.mubr.msk.f32.mxu0 %vm11173_vm0, %v11174_v1  ;;  %v4684_v40 = vld [vmem:[#allocation10 + $0x18] sm:$0xff] }
0x22e0   : > { %10050 = vmatprep.subr.bf16.mxu0 %v11172_v0 }
0x22e1   : > { %v5271_v43 = vpop.permute.xlu1 %5270 }
0x22e2   : > { %9578 = vmatmul.mubr.msk.f32.vlgmr.msra.gmra.mrb[28].mxu0 %vm1812_vm2, %v5271_v43  ;;  %v10054_v43 = vpack.c.bf16 %v4684_v40, %v4683_v38 }
0x22e3   : > { %9601 = vmatprep.mubr.msk.f32.mxu0 %vm11173_vm0, %v11174_v1 }
0x23ac   : > { %v4848_v44 = vpop.f32.mrb[38].mxu1 }
0x23ad   : > { %v4852_v46 = vmul.f32 0.25, %v4848_v44  ;;  %v9549_v47 = vpop.f32.mrb[39].mxu1  ;;  %v5011_v48 = vpop.f32.mrb[24].mxu0  ;;  %v4685_v44 = vld [vmem:[#allocation10 + $0x20] sm:$0xff] }
0x23ae   : > { %v5015_v50 = vmul.f32 0.25, %v5011_v48  ;;  %v9559_v51 = vpop.f32.mrb[25].mxu0  ;;  %v4687_v48 = vld [vmem:[#allocation10 + $0x30] sm:$0xff] }
0x23af   : > { %v4853_v52 = vsel %vm1888_vm3, %v4852_v46, -inf }
0x23b0   : > { %4854 = vmax.xlane.f32.xlu0 %v4853_v52  ;;  %v5016_v53 = vsel %vm1888_vm3, %v5015_v50, -inf }
0x23b1   : > { %5017 = vmax.xlane.f32.xlu1 %v5016_v53  ;;  %v5178_v20 = vpop.f32.mrb[26].mxu0 }
0x23b2   : > { %v5182_v54 = vmul.f32 0.25, %v5178_v20  ;;  %v9569_v56 = vpop.f32.mrb[27].mxu0 }
0x23b4   : > { %v5183_v41 = vsel %vm1888_vm3, %v5182_v54, -inf }
0x23b5   : > { %5184 = vmax.xlane.f32.xlu0 %v5183_v41  ;;  %v5344_v57 = vpop.f32.mrb[28].mxu0 }
0x23b6   : > { %v5348_v58 = vmul.f32 0.25, %v5344_v57  ;;  %v9579_v59 = vpop.f32.mrb[29].mxu0 }
0x23b8   : > { %v5349_v63 = vsel %vm1888_vm3, %v5348_v58, -inf }
0x23b9   : > { %5350 = vmax.xlane.f32.xlu0 %v5349_v63 }
0x23c2   : > { %5028 = vrot.lane.b32.xlu1 %v12059_v36, %s12720_s2 }
0x243d   : > { %v4855_v55 = vpop.xlane.xlu0 %4854 }
0x243e   : > { %v4856_v3 = vsub.f32 %v4852_v46, %v4855_v55  ;;  %v5018_v4 = vpop.xlane.xlu1 %5017  ;;  %v4686_v46 = vld [vmem:[#allocation10 + $0x28] sm:$0xff] }
0x243f   : > { %v5019_v5 = vsub.f32 %v5015_v50, %v5018_v4  ;;  %v10057_v47 = vpack.c.bf16 %v4686_v46, %v4685_v44  ;;  %v4688_v50 = vld [vmem:[#allocation10 + $0x38] sm:$0xff] }
0x2440   : > { %v4857_v8 = vmul.f32 1.442695, %v4856_v3  ;;  %v10060_v51 = vpack.c.bf16 %v4688_v50, %v4687_v48  ;;  %v8772_v46 = vld [vmem:[%s12737_s12] ss:$0 sm:$0xff] }
0x2441   : > { %v5020_v9 = vmul.f32 1.442695, %v5019_v5  ;;  %v8773_v48 = vld [vmem:[%s12738_s13] ss:$0 sm:$0xff] }
0x2442   : > { %10579 = vpow2.f32 %v4857_v8  ;;  %v5185_v6 = vpop.xlane.xlu0 %5184  ;;  %v5029_v21 = vpop.permute.xlu1 %5028  ;;  %v8770_v8 = vld [vmem:[%s12735_s9] ss:$0 sm:$0xff] }
0x2443   : > { %10581 = vpow2.f32 %v5020_v9  ;;  %v5186_v10 = vsub.f32 %v5182_v54, %v5185_v6 }
0x2445   : > { %v5187_v11 = vmul.f32 1.442695, %v5186_v10 }
0x2446   : > { %v5351_v12 = vpop.xlane.xlu0 %5350 }
0x2447   : > { %10583 = vpow2.f32 %v5187_v11  ;;  %v5352_v13 = vsub.f32 %v5348_v58, %v5351_v12 }
0x2449   : > { %v5353_v14 = vmul.f32 1.442695, %v5352_v13 }
0x244b   : > { %10585 = vpow2.f32 %v5353_v14 }
0x244c   : > { %v10580_v15 = vpop.eup %10579 }
0x244d   : > { %v10582_v16 = vpop.eup %10581  ;;  %v4859_v17 = vsel %vm1888_vm3, %v10580_v15, 0.0 }
0x244e   : > { %4860 = vadd.xlane.f32.xlu1 %v4859_v17  ;;  %v5022_v18 = vsel %vm1888_vm3, %v10582_v16, 0.0 }
0x244f   : > { %5023 = vadd.xlane.f32.xlu0 %v5022_v18  ;;  %v5561_v18 = vld [vmem:[%s12736_s10 + $0x8] sm:$0xff] }
0x2451   : > { %v10584_v45 = vpop.eup %10583 }
0x2452   : > { %v5189_v60 = vsel %vm1888_vm3, %v10584_v45, 0.0 }
0x2453   : > { %5190 = vadd.xlane.f32.xlu1 %v5189_v60  ;;  %v5560_v60 = vld [vmem:[%s12736_s10] sm:$0xff] }
0x2455   : > { %v10586_v7 = vpop.eup %10585 }
0x2456   : > { %v5355_v19 = vsel %vm1888_vm3, %v10586_v7, 0.0 }
0x2457   : > { %5356 = vadd.xlane.f32.xlu0 %v5355_v19 }
0x2464   : > { %5360 = vrot.lane.b32.xlu1 %v12059_v36, %s12719_s8 }
0x246d   : > { %5194 = vrot.lane.b32.xlu0 %v12059_v36, %s12716_s15  ;;  %v4681_v36 = vld [vmem:[#allocation10] sm:$0xff] }
0x246e   : > { %v10051_v39 = vpack.c.bf16 %v4682_v37, %v4681_v36  ;;  %v5574_v37 = vld [vmem:[%s12736_s10 + $0x70] sm:$0xff] }
0x2470   : > { %10052 = vmatpush3.bf16.msra.mxu0 %v10051_v39 }
0x2471   : > { %10053 = vmatprep.subr.bf16.mxu0 %v11172_v0 }
0x2474   : > { %10055 = vmatpush3.bf16.msra.mxu0 %v10054_v43 }
0x2475   : > { %10056 = vmatprep.subr.bf16.mxu0 %v11172_v0 }
0x2478   : > { %10058 = vmatpush3.bf16.msra.mxu0 %v10057_v47 }
0x2479   : > { %10059 = vmatprep.subr.bf16.mxu0 %v11172_v0 }
0x247c   : > { %10061 = vmatpush3.bf16.msra.mxu0 %v10060_v51 }
0x24db   : > { %v4861_v22 = vpop.xlane.xlu1 %4860 }
0x24dc   : > { %10587 = vrcp.f32 %v4861_v22  ;;  %v5024_v23 = vpop.xlane.xlu0 %5023  ;;  %v5567_v22 = vld [vmem:[%s12736_s10 + $0x38] sm:$0xff] }
0x24dd   : > { %10589 = vrcp.f32 %v5024_v23 }
0x24e0   : > { %v5191_v24 = vpop.xlane.xlu1 %5190 }
0x24e1   : > { %10591 = vrcp.f32 %v5191_v24  ;;  %v5564_v24 = vld [vmem:[%s12736_s10 + $0x20] sm:$0xff] }
0x24e4   : > { %v5357_v25 = vpop.xlane.xlu0 %5356  ;;  %v5361_v33 = vpop.permute.xlu1 %5360 }
0x24e5   : > { %10593 = vrcp.f32 %v5357_v25  ;;  %v5566_v25 = vld [vmem:[%s12736_s10 + $0x30] sm:$0xff] }
0x24e6   : > { %v10588_v27 = vpop.eup %10587 }
0x24e7   : > { %v4863_v28 = vmul.f32 %v10588_v27, %v10580_v15  ;;  %v10590_v29 = vpop.eup %10589  ;;  %v10068_v27 = vpack.c.bf16 %v5566_v25, %v5564_v24  ;;  %v5690_v24 = vld [vmem:[%s12739_s14 + $0x50] sm:$0xff]  ;;  %v5691_v25 = vld [vmem:[%s12739_s14 + $0x58] sm:$0xff] }
0x24e8   : > { %v5026_v61 = vmul.f32 %v10590_v29, %v10582_v16  ;;  %v5195_v31 = vpop.permute.xlu0 %5194  ;;  %v5571_v29 = vld [vmem:[%s12736_s10 + $0x58] sm:$0xff] }
0x24e9   : > { %9553 = vmatmul.mubr.msk.f32.vlgmr.msra.gmra.mrb[40].mxu1 %vm1888_vm3, %v4863_v28  ;;  %v5569_v28 = vld [vmem:[%s12736_s10 + $0x48] sm:$0xff] }
0x24ea   : > { %9561 = vmatpush3.msra.mxu1 %v5029_v21  ;;  %9562 = vmatprep.mubr.msk.f32.mxu1 %vm11173_vm0, %v11174_v1  ;;  %v5565_v21 = vld [vmem:[%s12736_s10 + $0x28] sm:$0xff] }
0x24eb   : > { %9570 = vmatprep.subr.mxu1 %v11174_v1  ;;  %v10592_v30 = vpop.eup %10591  ;;  %v10066_v23 = vpack.c.bf16 %v5567_v22, %v5565_v21  ;;  %v5707_v21 = vld [vmem:[%s12739_s14 + $0xd8] sm:$0xff] }
0x24ec   : > { %v5193_v32 = vmul.f32 %v10592_v30, %v10584_v45  ;;  %v5568_v30 = vld [vmem:[%s12736_s10 + $0x40] sm:$0xff] }
0x24ed   : > { %9563 = vmatmul.mubr.msk.f32.vlgmr.msra.gmra.mrb[42].mxu1 %vm1888_vm3, %v5026_v61  ;;  %v10070_v61 = vpack.c.bf16 %v5571_v29, %v5569_v28  ;;  %v5709_v28 = vld [vmem:[%s12739_s14 + $0xe8] sm:$0xff]  ;;  %v10100_v29 = vpack.c.bf16 %v5691_v25, %v5690_v24  ;;  %v5829_v25 = vld [vmem:[#allocation11 + $0xb8] sm:$0xff] }
0x24ee   : > { %9571 = vmatpush3.msra.mxu1 %v5195_v31  ;;  %9572 = vmatprep.mubr.msk.f32.mxu1 %vm11173_vm0, %v11174_v1  ;;  %v5570_v31 = vld [vmem:[%s12736_s10 + $0x50] sm:$0xff] }
0x24ef   : > { %9580 = vmatprep.subr.mxu1 %v11174_v1  ;;  %v10594_v34 = vpop.eup %10593 }
0x24f0   : > { %v5359_v35 = vmul.f32 %v10594_v34, %v10586_v7  ;;  %v5562_v7 = vld [vmem:[%s12736_s10 + $0x10] sm:$0xff]  ;;  %v5573_v34 = vld [vmem:[%s12736_s10 + $0x68] sm:$0xff] }
0x24f1   : > { %9573 = vmatmul.mubr.msk.f32.vlgmr.msra.gmra.mrb[44].mxu1 %vm1888_vm3, %v5193_v32  ;;  %v10064_v19 = vpack.c.bf16 %v5562_v7, %v5560_v60  ;;  %v10072_v32 = vpack.c.bf16 %v5570_v31, %v5568_v30  ;;  %v5689_v7 = vld [vmem:[%s12739_s14 + $0x48] sm:$0xff]  ;;  %v5692_v30 = vld [vmem:[%s12739_s14 + $0x60] sm:$0xff] }
0x24f2   : > { %9581 = vmatpush3.msra.mxu1 %v5361_v33  ;;  %9582 = vmatprep.mubr.msk.f32.mxu1 %vm11173_vm0, %v11174_v1  ;;  %v5575_v33 = vld [vmem:[%s12736_s10 + $0x78] sm:$0xff]  ;;  %v5693_v31 = vld [vmem:[%s12739_s14 + $0x68] sm:$0xff] }
0x24f3   : > { %v10074_v36 = vpack.c.bf16 %v5575_v33, %v5573_v34  ;;  %v5711_v34 = vld [vmem:[%s12739_s14 + $0xf8] sm:$0xff]  ;;  %v10104_v33 = vpack.c.bf16 %v5693_v31, %v5692_v30  ;;  %v5831_v30 = vld [vmem:[#allocation11 + $0xc8] sm:$0xff]  ;;  %v5833_v31 = vld [vmem:[#allocation11 + $0xd8] sm:$0xff] }
0x24f5   : > { %9583 = vmatmul.mubr.msk.f32.vlgmr.msra.gmra.mrb[46].mxu1 %vm1888_vm3, %v5359_v35  ;;  %v5572_v35 = vld [vmem:[%s12736_s10 + $0x60] sm:$0xff] }
0x24f6   : > { %5655 = vmatprep.mubr.f32.mxu1 %v11174_v1  ;;  %v10076_v38 = vpack.c.bf16 %v5574_v37, %v5572_v35  ;;  %v5695_v37 = vld [vmem:[%s12739_s14 + $0x78] sm:$0xff] }
0x25bc   : > { %v4933_v52 = vpop.f32.mrb[40].mxu1 }
0x25bd   : > { %v9554_v53 = vpop.f32.mrb[41].mxu1 }
0x25be   : > { %v5697_v53 = vld [vmem:[%s12739_s14 + $0x88] sm:$0xff] }
0x25c0   : > { %v5100_v20 = vpop.f32.mrb[42].mxu1 }
0x25c1   : > { %5437 = vrot.lane.b32.xlu1 %v5100_v20, %s12717_s18  ;;  %v9564_v54 = vpop.f32.mrb[43].mxu1 }
0x25c2   : > { %v5680_v54 = vld [vmem:[%s12739_s14] sm:$0xff] }
0x25c4   : > { %v5266_v56 = vpop.f32.mrb[44].mxu1 }
0x25c5   : > { %5441 = vrot.lane.b32.xlu0 %v5266_v56, %s12715_s22  ;;  %v9574_v41 = vpop.f32.mrb[45].mxu1  ;;  %v5681_v56 = vld [vmem:[%s12739_s14 + $0x8] sm:$0xff] }
0x25c6   : > { %v10080_v41 = vpack.c.bf16 %v5681_v56, %v5680_v54 }
0x25c8   : > { %v5432_v57 = vpop.f32.mrb[46].mxu1 }
0x25c9   : > { %5445 = vrot.lane.b32.xlu1 %v5432_v57, %s12718_s26  ;;  %v9584_v58 = vpop.f32.mrb[47].mxu1  ;;  %v5698_v57 = vld [vmem:[%s12739_s14 + $0x90] sm:$0xff] }
0x25ca   : > { %v5699_v58 = vld [vmem:[%s12739_s14 + $0x98] sm:$0xff] }
0x2633   : > { %v5438_v59 = vpop.permute.xlu1 %5437 }
0x2634   : > { %v5448_v55 = vsel %vm1812_vm2, %v4933_v52, %v5438_v59  ;;  %v5696_v52 = vld [vmem:[%s12739_s14 + $0x80] sm:$0xff]  ;;  %v10082_v59 = vpack.c.bf16 %v5699_v58, %v5698_v57 }
0x2635   : > { %v10078_v20 = vpack.c.bf16 %v5697_v53, %v5696_v52 }
0x2637   : > { %v5442_v63 = vpop.permute.xlu0 %5441  ;;  %10079 = vmatprep.subr.bf16.mxu0 %v10078_v20 }
0x2638   : > { %v5449_v3 = vsel %vm2485_vm4, %v5448_v55, %v5442_v63  ;;  %v5682_v63 = vld [vmem:[%s12739_s14 + $0x10] sm:$0xff]  ;;  %v5683_v55 = vld [vmem:[%s12739_s14 + $0x18] sm:$0xff] }
0x263b   : > { %v5446_v4 = vpop.permute.xlu1 %5445 }
0x263c   : > { %v5450_v5 = vsel %vm2487_vm5, %v5449_v3, %v5446_v4  ;;  %v10084_v3 = vpack.c.bf16 %v5683_v55, %v5682_v63  ;;  %v5700_v4 = vld [vmem:[%s12739_s14 + $0xa0] sm:$0xff] }
0x263d   : > { %9602 = vmatmul.mubr.msk.f32.vlgmr.msra.gmra.mrb[30].mxu0 %vm1592_vm1, %v5450_v5  ;;  %v5701_v5 = vld [vmem:[%s12739_s14 + $0xa8] sm:$0xff] }
0x263e   : > { %10081 = vmatpush3.bf16.msra.mxu0 %v10080_v41 }
0x263f   : > { %10083 = vmatprep.subr.bf16.mxu0 %v10082_v59 }
0x2642   : > { %10085 = vmatpush3.bf16.msra.mxu0 %v10084_v3 }
0x2710   : > { %v5526_v9 = vpop.f32.mrb[30].mxu0 }
0x2711   : > { %v5527_v6 = vadd.f32 %v8770_v8, %v5526_v9  ;;  %v9603_v10 = vpop.f32.mrb[31].mxu0  ;;  %v10086_v8 = vpack.c.bf16 %v5701_v5, %v5700_v4  ;;  %v5684_v9 = vld [vmem:[%s12739_s14 + $0x20] sm:$0xff] }
0x2713   : > { %v12118_v11 = vadd.f32 %v5527_v6, %v12033_v49  ;;  %v5563_v49 = vld [vmem:[%s12736_s10 + $0x18] sm:$0xff]  ;;  %v5685_v6 = vld [vmem:[%s12739_s14 + $0x28] sm:$0xff]  ;;  %10087 = vmatprep.subr.bf16.mxu0 %v10086_v8 }
0x2714   : > { %v10062_v45 = vpack.c.bf16 %v5563_v49, %v5561_v18  ;;  %v10088_v10 = vpack.c.bf16 %v5685_v6, %v5684_v9  ;;  %v5704_v18 = vld [vmem:[%s12739_s14 + $0xc0] sm:$0xff]  ;;  %v5705_v49 = vld [vmem:[%s12739_s14 + $0xc8] sm:$0xff] }
0x2715   : > { %v5533_v12 = vsel %vm1592_vm1, %v12118_v11, 0.0  ;;  %v10094_v60 = vpack.c.bf16 %v5705_v49, %v5704_v18 }
0x2716   : > { %5534 = vadd.xlane.f32.xlu0 %v5533_v12  ;;  %10063 = vmatprep.subr.bf16.mxu1 %v10062_v45  ;;  %v5702_v12 = vld [vmem:[%s12739_s14 + $0xb0] sm:$0xff]  ;;  %v5688_v45 = vld [vmem:[%s12739_s14 + $0x40] sm:$0xff] }
0x2717   : > { %10065 = vmatpush1.bf16.msra.mxu1 %v10064_v19  ;;  %10089 = vmatpush3.bf16.msra.mxu0 %v10088_v10  ;;  %v5706_v19 = vld [vmem:[%s12739_s14 + $0xd0] sm:$0xff]  ;;  %v10096_v22 = vpack.c.bf16 %v5689_v7, %v5688_v45  ;;  %v8775_v10 = vld [vmem:[%s12741_s19] ss:$0 sm:$0xff] }
0x2718   : > { %10067 = vmatprep.subr.bf16.mxu1 %v10066_v23  ;;  %v10098_v23 = vpack.c.bf16 %v5707_v21, %v5706_v19  ;;  %v5823_v7 = vld [vmem:[#allocation11 + $0x88] sm:$0xff]  ;;  %v5825_v19 = vld [vmem:[#allocation11 + $0x98] sm:$0xff] }
0x2719   : > { %v10110_v21 = vpack.c.bf16 %v5825_v19, %v5823_v7 }
0x271b   : > { %10069 = vmatpush1.bf16.msra.mxu1 %v10068_v27  ;;  %v5708_v27 = vld [vmem:[%s12739_s14 + $0xe0] sm:$0xff] }
0x271c   : > { %10071 = vmatprep.subr.bf16.mxu1 %v10070_v61  ;;  %v10102_v61 = vpack.c.bf16 %v5709_v28, %v5708_v27  ;;  %v5826_v28 = vld [vmem:[#allocation11 + $0xa0] sm:$0xff] }
0x271f   : > { %10073 = vmatpush1.bf16.msra.mxu1 %v10072_v32  ;;  %v5710_v32 = vld [vmem:[%s12739_s14 + $0xf0] sm:$0xff] }
0x2720   : > { %10075 = vmatprep.subr.bf16.mxu1 %v10074_v36  ;;  %v10106_v35 = vpack.c.bf16 %v5711_v34, %v5710_v32  ;;  %v5694_v36 = vld [vmem:[%s12739_s14 + $0x70] sm:$0xff]  ;;  %v10118_v32 = vpack.c.bf16 %v5833_v31, %v5831_v30  ;;  %v5830_v34 = vld [vmem:[#allocation11 + $0xc0] sm:$0xff] }
0x2723   : > { %10077 = vmatpush1.bf16.msra.mxu1 %v10076_v38  ;;  %v10108_v38 = vpack.c.bf16 %v5695_v37, %v5694_v36  ;;  %v5835_v36 = vld [vmem:[#allocation11 + $0xe8] sm:$0xff]  ;;  %v5837_v37 = vld [vmem:[#allocation11 + $0xf8] sm:$0xff] }
0x2724   : > { %10111 = vmatprep.subr.bf16.mxu1 %v10110_v21 }
0x27a3   : > { %v5535_v13 = vpop.xlane.xlu0 %5534 }
0x27a4   : > { %v5536_v14 = vmul.f32 0.015625, %v5535_v13  ;;  %v5703_v13 = vld [vmem:[%s12739_s14 + $0xb8] sm:$0xff] }
0x27a6   : > { %v5537_v15 = vsub.f32 %v12118_v11, %v5536_v14  ;;  %v10090_v14 = vpack.c.bf16 %v5703_v13, %v5702_v12 }
0x27a8   : > { %v5538_v16 = vmul.f32 %v5537_v15, %v5537_v15  ;;  %10091 = vmatprep.subr.bf16.mxu0 %v10090_v14 }
0x27aa   : > { %v5539_v17 = vsel %vm1592_vm1, %v5538_v16, 0.0  ;;  %v5687_v16 = vld [vmem:[%s12739_s14 + $0x38] sm:$0xff] }
0x27ab   : > { %5540 = vadd.xlane.f32.xlu1 %v5539_v17 }
0x2838   : > { %v5541_v39 = vpop.xlane.xlu1 %5540 }
0x2839   : > { %v5542_v40 = vmul.f32 0.015625, %v5541_v39  ;;  %v5576_v39 = vld [vmem:[%s12740_s17] sm:$0x3] }
0x283b   : > { %v5543_v43 = vadd.f32 1e-05, %v5542_v40  ;;  %v5581_v40 = vrot.slane %v5576_v39, %v11735_v62 }
0x283d   : > { %10595 = vrsqrt.f32 %v5543_v43  ;;  %v5585_v43 = vrot.slane %v5576_v39, %v11739_v2  ;;  %v10122_v39 = vpack.c.bf16 %v5837_v37, %v5835_v36 }
0x2847   : > { %v10596_v44 = vpop.eup %10595 }
0x2848   : > { %v5545_v47 = vmul.f32 %v10596_v44, %v5537_v15  ;;  %v5686_v15 = vld [vmem:[%s12739_s14 + $0x30] sm:$0xff] }
0x2849   : > { %v10092_v17 = vpack.c.bf16 %v5687_v16, %v5686_v15 }
0x284a   : > { %v5552_v50 = vmul.f32 %v8772_v46, %v5545_v47 }
0x284b   : > { %10093 = vmatpush3.bf16.msra.mxu0 %v10092_v17 }
0x284c   : > { %v5559_v51 = vadd.f32 %v8773_v48, %v5552_v50  ;;  %10095 = vmatprep.subr.bf16.mxu0 %v10094_v60 }
0x284e   : > { %8774 = vmatmul.mubr.msk.f32.vlgmr.msra.gmra.mrb[48].mxu1 %vm1592_vm1, %v5559_v51 }
0x284f   : > { %5929 = vmatprep.mubr.f32.mxu1 %v11174_v1  ;;  %10097 = vmatpush3.bf16.msra.mxu0 %v10096_v22  ;;  %v5822_v22 = vld [vmem:[#allocation11 + $0x80] sm:$0xff] }
0x2850   : > { %10099 = vmatprep.subr.bf16.mxu0 %v10098_v23  ;;  %v5824_v23 = vld [vmem:[#allocation11 + $0x90] sm:$0xff] }
0x2851   : > { %v10112_v24 = vpack.c.bf16 %v5824_v23, %v5822_v22 }
0x2853   : > { %10101 = vmatpush3.bf16.msra.mxu0 %v10100_v29  ;;  %10113 = vmatpush1.bf16.msra.mxu1 %v10112_v24  ;;  %v5828_v29 = vld [vmem:[#allocation11 + $0xb0] sm:$0xff] }
0x2854   : > { %10103 = vmatprep.subr.bf16.mxu0 %v10102_v61  ;;  %v10116_v61 = vpack.c.bf16 %v5828_v29, %v5826_v28 }
0x2857   : > { %10105 = vmatpush3.bf16.msra.mxu0 %v10104_v33  ;;  %v5832_v33 = vld [vmem:[#allocation11 + $0xd0] sm:$0xff] }
0x2858   : > { %10107 = vmatprep.subr.bf16.mxu0 %v10106_v35  ;;  %v10120_v35 = vpack.c.bf16 %v5832_v33, %v5830_v34 }
0x285b   : > { %10109 = vmatpush3.bf16.msra.mxu0 %v10108_v38  ;;  %v5834_v38 = vld [vmem:[#allocation11 + $0xe0] sm:$0xff] }
0x285c   : > { %9624 = vmatprep.subr.mxu0 %v11174_v1 }
0x2921   : > { %v5657_v44 = vpop.f32.mrb[48].mxu1 }
0x2922   : > { %v5658_v46 = vadd.f32 %v5657_v44, %v5581_v40  ;;  %v5659_v47 = vpop.f32.mrb[49].mxu1  ;;  %v5836_v40 = vld [vmem:[#allocation11 + $0xf0] sm:$0xff] }
0x2923   : > { %v5660_v48 = vadd.f32 %v5659_v47, %v5585_v43  ;;  %v10124_v43 = vpack.c.bf16 %v5836_v40, %v5834_v38 }
0x2924   : > { %v5662_v50 = vmul.f32 %v5658_v46, %v5658_v46 }
0x2925   : > { %v5663_v51 = vmul.f32 %v5660_v48, %v5660_v48 }
0x2926   : > { %v5664_v52 = vmul.f32 %v5662_v50, %v5658_v46  ;;  %v8778_v50 = vld [vmem:[%s12731_s5 + $0x1] ss:$0 sm:$0xff] }
0x2927   : > { %v5665_v53 = vmul.f32 %v5663_v51, %v5660_v48 }
0x2928   : > { %v5666_v20 = vmul.f32 0.044715, %v5664_v52  ;;  %v8779_v52 = vld [vmem:[%s12732_s3 + $0x1] ss:$0 sm:$0xff] }
0x2929   : > { %v5667_v54 = vmul.f32 0.044715, %v5665_v53 }
0x292a   : > { %v5668_v56 = vadd.f32 %v5666_v20, %v5658_v46 }
0x292b   : > { %v5669_v41 = vadd.f32 %v5667_v54, %v5660_v48  ;;  %v8780_v54 = vld [vmem:[%s12733_s1 + $0x2] sm:$0x3] }
0x292c   : > { %v5670_v57 = vmul.f32 0.7978846, %v5668_v56  ;;  %v5855_v56 = vrot.slane %v8780_v54, %v11735_v62 }
0x292d   : > { %v5671_v58 = vmul.f32 0.7978846, %v5669_v41 }
0x292e   : > { %10597 = vtanh.f32 %v5670_v57 }
0x292f   : > { %10599 = vtanh.f32 %v5671_v58 }
0x2938   : > { %v10598_v59 = vpop.eup %10597 }
0x2939   : > { %v10600_v63 = vpop.eup %10599  ;;  %v5674_v55 = vadd.f32 1.0, %v10598_v59  ;;  %v5859_v59 = vrot.slane %v8780_v54, %v11739_v2 }
0x293a   : > { %v5675_v3 = vadd.f32 1.0, %v10600_v63 }
0x293b   : > { %v5676_v4 = vmul.f32 0.5, %v5674_v55 }
0x293c   : > { %v5677_v5 = vmul.f32 0.5, %v5675_v3 }
0x293d   : > { %v5678_v9 = vmul.f32 %v5676_v4, %v5658_v46 }
0x293e   : > { %v5679_v8 = vmul.f32 %v5677_v5, %v5660_v48 }
0x2940   : > { %5783 = vmatprep.mubr.f32.mxu0 %v5679_v8 }
0x2941   : > { %5784 = vmatmul.mubr.f32.vlgmr.msra.gmra.mrb[32].mxu0 %v5678_v9 }
0x2942   : > { %9626 = vmatprep.mubr.msk.f32.mxu0 %vm11173_vm0, %v11174_v1 }
0x2a14   : > { %v9218_v6 = vpop.f32.mrb[32].mxu0 }
0x2a15   : > { %v9219_v12 = vpop.f32.mrb[33].mxu0 }
0x2a16   : > { %v9220_v13 = vadd.f32 %v9219_v12, %v9218_v6 }
0x2a18   : > { %v5786_v14 = vadd.f32 %v9220_v13, %v8775_v10 }
0x2a1a   : > { %v12184_v15 = vadd.f32 %v5786_v14, %v12118_v11  ;;  %v5827_v11 = vld [vmem:[#allocation11 + $0xa8] sm:$0xff] }
0x2a1b   : > { %v10114_v27 = vpack.c.bf16 %v5829_v25, %v5827_v11 }
0x2a1c   : > { %v5794_v16 = vsel %vm1592_vm1, %v12184_v15, 0.0 }
0x2a1d   : > { %5795 = vadd.xlane.f32.xlu0 %v5794_v16  ;;  %10115 = vmatprep.subr.bf16.mxu1 %v10114_v27 }
0x2a1e   : > { %10117 = vmatpush1.bf16.msra.mxu1 %v10116_v61 }
0x2a1f   : > { %10119 = vmatprep.subr.bf16.mxu1 %v10118_v32 }
0x2a22   : > { %10121 = vmatpush1.bf16.msra.mxu1 %v10120_v35 }
0x2a23   : > { %10123 = vmatprep.subr.bf16.mxu1 %v10122_v39 }
0x2a26   : > { %10125 = vmatpush1.bf16.msra.mxu1 %v10124_v43 }
0x2a27   : > { %9604 = vmatprep.subr.mxu1 %v11174_v1 }
0x2aaa   : > { %v5796_v17 = vpop.xlane.xlu0 %5795 }
0x2aab   : > { %v5797_v18 = vmul.f32 0.015625, %v5796_v17 }
0x2aad   : > { %v5798_v49 = vsub.f32 %v12184_v15, %v5797_v18 }
0x2aaf   : > { %v5799_v45 = vmul.f32 %v5798_v49, %v5798_v49 }
0x2ab1   : > { %v5800_v60 = vsel %vm1592_vm1, %v5799_v45, 0.0 }
0x2ab2   : > { %5801 = vadd.xlane.f32.xlu0 %v5800_v60 }
0x2b3f   : > { %v5802_v44 = vpop.xlane.xlu0 %5801 }
0x2b40   : > { %v5803_v46 = vmul.f32 0.015625, %v5802_v44 }
0x2b42   : > { %v5804_v47 = vadd.f32 1e-05, %v5803_v46 }
0x2b44   : > { %10601 = vrsqrt.f32 %v5804_v47 }
0x2b4e   : > { %v10602_v48 = vpop.eup %10601 }
0x2b4f   : > { %v5806_v51 = vmul.f32 %v10602_v48, %v5798_v49 }
0x2b51   : > { %v5813_v53 = vmul.f32 %v8778_v50, %v5806_v51 }
0x2b53   : > { %v5820_v20 = vadd.f32 %v8779_v52, %v5813_v53 }
0x2b55   : > { %8782 = vmatmul.mubr.msk.f32.vlgmr.msra.gmra.mrb[50].mxu1 %vm1592_vm1, %v5820_v20 }
0x2b56   : > { %9606 = vmatprep.mubr.msk.f32.mxu1 %vm11173_vm0, %v11174_v1 }
0x2c28   : > { %v5931_v41 = vpop.f32.mrb[50].mxu1 }
0x2c29   : > { %v5932_v57 = vadd.f32 %v5931_v41, %v5855_v56  ;;  %v5933_v58 = vpop.f32.mrb[51].mxu1 }
0x2c2a   : > { %v12206_v55 = vadd.f32 %v5933_v58, %v5859_v59 }
0x2c2b   : > { %5937 = vrot.lane.b32.xlu1 %v5932_v57, %s12734_s4 }
0x2c2f   : > { %6098 = vrot.lane.b32.xlu1 %v5932_v57, %s12720_s2 }
0x2c33   : > { %6267 = vrot.lane.b32.xlu1 %v5932_v57, %s12715_s22 }
0x2c37   : > { %6265 = vrot.lane.b32.xlu1 %v5932_v57, %s12716_s15 }
0x2c3b   : > { %6433 = vrot.lane.b32.xlu1 %v5932_v57, %s12717_s18 }
0x2c9d   : > { %v5938_v63 = vpop.permute.xlu1 %5937 }
0x2c9e   : > { %9605 = vmatpush3.xpose.msk.msra.mxu1 %vm1812_vm2, %v5938_v63 }
0x2c9f   : > { %9609 = vmatprep.subr.mxu1 %v11174_v1 }
0x2ca1   : > { %9607 = vmatmul.mubr.msk.f32.vlgmr.msra.gmra.mrb[52].mxu1 %vm1812_vm2, %v5932_v57  ;;  %v6099_v3 = vpop.permute.xlu1 %6098 }
0x2ca2   : > { %9610 = vmatpush3.msra.mxu1 %v12206_v55  ;;  %9611 = vmatprep.mubr.msk.f32.mxu1 %vm11173_vm0, %v11174_v1 }
0x2ca3   : > { %9614 = vmatprep.subr.mxu1 %v11174_v1 }
0x2ca5   : > { %v6268_v4 = vpop.permute.xlu1 %6267 }
0x2ca6   : > { %9625 = vmatpush3.xpose.msk.msra.mxu0 %vm1812_vm2, %v6268_v4 }
0x2ca7   : > { %9634 = vmatprep.subr.mxu0 %v11174_v1 }
0x2ca9   : > { %v6266_v5 = vpop.permute.xlu1 %6265 }
0x2caa   : > { %9627 = vmatmul.mubr.msk.f32.vlgmr.msra.gmra.mrb[34].mxu0 %vm1812_vm2, %v6266_v5  ;;  %v5841_v5 = vld [vmem:[#allocation10 + $0x40] sm:$0xff] }
0x2cab   : > { %9636 = vmatprep.mubr.msk.f32.mxu0 %vm11173_vm0, %v11174_v1 }
0x2cad   : > { %v6434_v8 = vpop.permute.xlu1 %6433 }
0x2cae   : > { %9635 = vmatpush3.xpose.msk.msra.mxu0 %vm1812_vm2, %v6434_v8  ;;  %v5842_v8 = vld [vmem:[#allocation10 + $0x48] sm:$0xff] }
0x2caf   : > { %10126 = vmatprep.subr.bf16.mxu0 %v11172_v0 }
0x2d74   : > { %v6009_v9 = vpop.f32.mrb[52].mxu1 }
0x2d75   : > { %v6013_v6 = vmul.f32 0.25, %v6009_v9  ;;  %v9608_v10 = vpop.f32.mrb[53].mxu1  ;;  %v5843_v9 = vld [vmem:[#allocation10 + $0x50] sm:$0xff] }
0x2d76   : > { %v5844_v10 = vld [vmem:[#allocation10 + $0x58] sm:$0xff] }
0x2d77   : > { %v6014_v12 = vsel %vm1888_vm3, %v6013_v6, -inf }
0x2d78   : > { %6015 = vmax.xlane.f32.xlu0 %v6014_v12  ;;  %v10130_v12 = vpack.c.bf16 %v5844_v10, %v5843_v9 }
0x2d7d   : > { %v6339_v13 = vpop.f32.mrb[34].mxu0 }
0x2d7e   : > { %v9628_v14 = vpop.f32.mrb[35].mxu0  ;;  %v6343_v60 = vmul.f32 0.25, %v6339_v13  ;;  %v5845_v13 = vld [vmem:[#allocation10 + $0x60] sm:$0xff] }
0x2d7f   : > { %v5846_v14 = vld [vmem:[#allocation10 + $0x68] sm:$0xff] }
0x2d80   : > { %v6344_v7 = vsel %vm1888_vm3, %v6343_v60, -inf }
0x2e05   : > { %v6016_v16 = vpop.xlane.xlu0 %6015 }
0x2e06   : > { %v6017_v17 = vsub.f32 %v6013_v6, %v6016_v16  ;;  %v10127_v6 = vpack.c.bf16 %v5842_v8, %v5841_v5  ;;  %v10133_v16 = vpack.c.bf16 %v5846_v14, %v5845_v13  ;;  %v8800_v14 = vld [vmem:[%s12738_s13 + $0x1] ss:$0 sm:$0xff] }
0x2e08   : > { %v6018_v18 = vmul.f32 1.442695, %v6017_v17  ;;  %v5847_v17 = vld [vmem:[#allocation10 + $0x70] sm:$0xff] }
0x2e0a   : > { %10603 = vpow2.f32 %v6018_v18  ;;  %v5848_v18 = vld [vmem:[#allocation10 + $0x78] sm:$0xff] }
0x2e14   : > { %v10604_v49 = vpop.eup %10603 }
0x2e15   : > { %v6020_v45 = vsel %vm1888_vm3, %v10604_v49, 0.0 }
0x2e16   : > { %6021 = vadd.xlane.f32.xlu0 %v6020_v45 }
0x2e2c   : > { %6100 = vrot.lane.b32.xlu0 %v5932_v57, %s12718_s26 }
0x2e30   : > { %6431 = vrot.lane.b32.xlu0 %v5932_v57, %s12719_s8 }
0x2e4f   : > { %6345 = vmax.xlane.f32.xlu0 %v6344_v7 }
0x2ea3   : > { %v6022_v19 = vpop.xlane.xlu0 %6021 }
0x2ea4   : > { %10605 = vrcp.f32 %v6022_v19 }
0x2ea7   : > { %v6101_v21 = vpop.permute.xlu0 %6100 }
0x2eab   : > { %v6432_v22 = vpop.permute.xlu0 %6431 }
0x2eac   : > { %9637 = vmatmul.mubr.msk.f32.vlgmr.msra.gmra.mrb[36].mxu0 %vm1812_vm2, %v6432_v22 }
0x2ead   : > { %9660 = vmatprep.mubr.msk.f32.mxu0 %vm11173_vm0, %v11174_v1  ;;  %10128 = vmatpush3.bf16.msra.mxu0 %v10127_v6 }
0x2eae   : > { %v10606_v23 = vpop.eup %10605  ;;  %10129 = vmatprep.subr.bf16.mxu0 %v11172_v0 }
0x2eaf   : > { %v6024_v24 = vmul.f32 %v10606_v23, %v10604_v49  ;;  %v10136_v49 = vpack.c.bf16 %v5848_v18, %v5847_v17  ;;  %v8835_v18 = vld [vmem:[%s12739_s14 + $0x180] sm:$0xff] }
0x2eb1   : > { %9612 = vmatmul.mubr.msk.f32.vlgmr.msra.gmra.mrb[54].mxu1 %vm1888_vm3, %v6024_v24  ;;  %10131 = vmatpush3.bf16.msra.mxu0 %v10130_v12  ;;  %v8799_v12 = vld [vmem:[%s12737_s12 + $0x1] ss:$0 sm:$0xff] }
0x2eb2   : > { %9615 = vmatpush3.xpose.msk.msra.mxu1 %vm1812_vm2, %v6101_v21  ;;  %9616 = vmatprep.mubr.msk.f32.mxu1 %vm11173_vm0, %v11174_v1 }
0x2eb3   : > { %9619 = vmatprep.subr.mxu1 %v11174_v1  ;;  %10132 = vmatprep.subr.bf16.mxu0 %v11172_v0 }
0x2eb5   : > { %9617 = vmatmul.mubr.msk.f32.vlgmr.msra.gmra.mrb[56].mxu1 %vm1812_vm2, %v6099_v3  ;;  %10134 = vmatpush3.bf16.msra.mxu0 %v10133_v16 }
0x2eb6   : > { %9621 = vmatprep.mubr.msk.f32.mxu1 %vm11173_vm0, %v11174_v1  ;;  %10135 = vmatprep.subr.bf16.mxu0 %v11172_v0 }
0x2eb9   : > { %10137 = vmatpush3.bf16.msra.mxu0 %v10136_v49  ;;  %v8836_v49 = vld [vmem:[%s12739_s14 + $0x188] sm:$0xff] }
0x2edc   : > { %v6346_v11 = vpop.xlane.xlu0 %6345 }
0x2edd   : > { %v6347_v25 = vsub.f32 %v6343_v60, %v6346_v11 }
0x2edf   : > { %v6348_v27 = vmul.f32 1.442695, %v6347_v25 }
0x2ee1   : > { %10607 = vpow2.f32 %v6348_v27 }
0x2eeb   : > { %v10608_v31 = vpop.eup %10607 }
0x2eec   : > { %v6350_v33 = vsel %vm1888_vm3, %v10608_v31, 0.0 }
0x2f7f   : > { %v6505_v28 = vpop.f32.mrb[36].mxu0 }
0x2f80   : > { %v6509_v29 = vmul.f32 0.25, %v6505_v28  ;;  %v9638_v61 = vpop.f32.mrb[37].mxu0 }
0x2f82   : > { %v6510_v30 = vsel %vm1888_vm3, %v6509_v29, -inf }
0x2f83   : > { %6511 = vmax.xlane.f32.xlu0 %v6510_v30 }
0x2f84   : > { %v12237_v32 = vpop.f32.mrb[54].mxu1 }
0x2f85   : > { %v9613_v34 = vpop.f32.mrb[55].mxu1 }
0x2f87   : > { %6351 = vadd.xlane.f32.xlu0 %v6350_v33 }
0x2f88   : > { %v6172_v35 = vpop.f32.mrb[56].mxu1 }
0x2f89   : > { %v6176_v36 = vmul.f32 0.25, %v6172_v35  ;;  %v9618_v37 = vpop.f32.mrb[57].mxu1 }
0x2f8b   : > { %v6177_v38 = vsel %vm1888_vm3, %v6176_v36, -inf }
0x2f8c   : > { %6178 = vmax.xlane.f32.xlu1 %v6177_v38 }
0x2f9d   : > { %6189 = vrot.lane.b32.xlu0 %v12206_v55, %s12720_s2 }
0x3010   : > { %v6512_v39 = vpop.xlane.xlu0 %6511 }
0x3011   : > { %v6513_v40 = vsub.f32 %v6509_v29, %v6512_v39  ;;  %v8795_v29 = vld [vmem:[%s12735_s9 + $0x1] ss:$0 sm:$0xff]  ;;  %v8802_v39 = vld [vmem:[%s12736_s10 + $0x88] sm:$0xff] }
0x3013   : > { %v6514_v43 = vmul.f32 1.442695, %v6513_v40 }
0x3014   : > { %v6352_v44 = vpop.xlane.xlu0 %6351 }
0x3015   : > { %10609 = vpow2.f32 %v6514_v43  ;;  %v8801_v43 = vld [vmem:[%s12736_s10 + $0x80] sm:$0xff] }
0x3018   : > { %v6190_v46 = vpop.permute.xlu0 %6189 }
0x3019   : > { %9620 = vmatpush3.msra.mxu1 %v6190_v46  ;;  %v6179_v50 = vpop.xlane.xlu1 %6178 }
0x301a   : > { %9629 = vmatprep.subr.mxu1 %v11174_v1  ;;  %v6180_v51 = vsub.f32 %v6176_v36, %v6179_v50 }
0x301c   : > { %v6181_v52 = vmul.f32 1.442695, %v6180_v51  ;;  %v8805_v51 = vld [vmem:[%s12736_s10 + $0xa0] sm:$0xff] }
0x301e   : > { %10611 = vpow2.f32 %v6181_v52  ;;  %v8807_v52 = vld [vmem:[%s12736_s10 + $0xb0] sm:$0xff] }
0x301f   : > { %v10610_v47 = vpop.eup %10609 }
0x3020   : > { %v6516_v48 = vsel %vm1888_vm3, %v10610_v47, 0.0 }
0x3021   : > { %6517 = vadd.xlane.f32.xlu1 %v6516_v48  ;;  %v8808_v48 = vld [vmem:[%s12736_s10 + $0xb8] sm:$0xff] }
0x3028   : > { %v10612_v53 = vpop.eup %10611 }
0x3029   : > { %v6183_v20 = vsel %vm1888_vm3, %v10612_v53, 0.0 }
0x3032   : > { %6355 = vrot.lane.b32.xlu1 %v12206_v55, %s12716_s15 }
0x3056   : > { %6184 = vadd.xlane.f32.xlu1 %v6183_v20  ;;  %v8810_v20 = vld [vmem:[%s12736_s10 + $0xc8] sm:$0xff] }
0x3067   : > { %6521 = vrot.lane.b32.xlu1 %v12206_v55, %s12719_s8 }
0x30ae   : > { %v6518_v54 = vpop.xlane.xlu1 %6517 }
0x30b2   : > { %v6356_v56 = vpop.permute.xlu1 %6355 }
0x30e3   : > { %v6185_v41 = vpop.xlane.xlu1 %6184 }
0x30e4   : > { %10613 = vrcp.f32 %v6185_v41  ;;  %v8809_v41 = vld [vmem:[%s12736_s10 + $0xc0] sm:$0xff] }
0x30e5   : > { %10615 = vrcp.f32 %v6352_v44  ;;  %v8803_v44 = vld [vmem:[%s12736_s10 + $0x90] sm:$0xff] }
0x30e6   : > { %10617 = vrcp.f32 %v6518_v54  ;;  %v10140_v46 = vpack.c.bf16 %v8803_v44, %v8801_v43  ;;  %v8812_v54 = vld [vmem:[%s12736_s10 + $0xd8] sm:$0xff]  ;;  %v8828_v44 = vld [vmem:[%s12739_s14 + $0x148] sm:$0xff] }
0x30e7   : > { %v6522_v55 = vpop.permute.xlu1 %6521 }
0x30ee   : > { %v10614_v57 = vpop.eup %10613 }
0x30ef   : > { %v6187_v58 = vmul.f32 %v10614_v57, %v10612_v53  ;;  %v10616_v59 = vpop.eup %10615  ;;  %v10144_v53 = vpack.c.bf16 %v8807_v52, %v8805_v51  ;;  %v8811_v57 = vld [vmem:[%s12736_s10 + $0xd0] sm:$0xff]  ;;  %v8830_v52 = vld [vmem:[%s12739_s14 + $0x158] sm:$0xff] }
0x30f0   : > { %v6354_v63 = vmul.f32 %v10616_v59, %v10608_v31  ;;  %v10618_v3 = vpop.eup %10617  ;;  %v8814_v59 = vld [vmem:[%s12736_s10 + $0xe8] sm:$0xff]  ;;  %v8829_v51 = vld [vmem:[%s12739_s14 + $0x150] sm:$0xff] }
0x30f1   : > { %9622 = vmatmul.mubr.msk.f32.vlgmr.msra.gmra.mrb[58].mxu1 %vm1888_vm3, %v6187_v58  ;;  %v6520_v4 = vmul.f32 %v10618_v3, %v10610_v47  ;;  %v8806_v47 = vld [vmem:[%s12736_s10 + $0xa8] sm:$0xff]  ;;  %v10148_v58 = vpack.c.bf16 %v8811_v57, %v8809_v41  ;;  %v8813_v3 = vld [vmem:[%s12736_s10 + $0xe0] sm:$0xff] }
0x30f2   : > { %9630 = vmatpush3.msra.mxu1 %v6356_v56  ;;  %9631 = vmatprep.mubr.msk.f32.mxu1 %vm11173_vm0, %v11174_v1  ;;  %v10142_v50 = vpack.c.bf16 %v8808_v48, %v8806_v47  ;;  %v10146_v56 = vpack.c.bf16 %v8812_v54, %v8810_v20  ;;  %v8846_v47 = vld [vmem:[%s12739_s14 + $0x1d8] sm:$0xff]  ;;  %v8848_v20 = vld [vmem:[%s12739_s14 + $0x1e8] sm:$0xff]  ;;  %v10176_v54 = vpack.c.bf16 %v8830_v52, %v8829_v51  ;;  %v8831_v41 = vld [vmem:[%s12739_s14 + $0x160] sm:$0xff] }
0x30f3   : > { %9639 = vmatprep.subr.mxu1 %v11174_v1  ;;  %v8832_v57 = vld [vmem:[%s12739_s14 + $0x168] sm:$0xff]  ;;  %v6996_v52 = vld [vmem:[#allocation11 + $0x138] sm:$0xff] }
0x30f5   : > { %9632 = vmatmul.mubr.msk.f32.vlgmr.msra.gmra.mrb[60].mxu1 %vm1888_vm3, %v6354_v63  ;;  %v8816_v63 = vld [vmem:[%s12736_s10 + $0xf8] sm:$0xff] }
0x30f6   : > { %9640 = vmatpush3.msra.mxu1 %v6522_v55  ;;  %9641 = vmatprep.mubr.msk.f32.mxu1 %vm11173_vm0, %v11174_v1  ;;  %v10150_v55 = vpack.c.bf16 %v8816_v63, %v8814_v59  ;;  %v8850_v59 = vld [vmem:[%s12739_s14 + $0x1f8] sm:$0xff]  ;;  %v10180_v63 = vpack.c.bf16 %v8832_v57, %v8831_v41  ;;  %v6998_v41 = vld [vmem:[#allocation11 + $0x148] sm:$0xff]  ;;  %v7000_v57 = vld [vmem:[#allocation11 + $0x158] sm:$0xff] }
0x30f9   : > { %9642 = vmatmul.mubr.msk.f32.vlgmr.msra.gmra.mrb[62].mxu1 %vm1888_vm3, %v6520_v4  ;;  %v8815_v4 = vld [vmem:[%s12736_s10 + $0xf0] sm:$0xff] }
0x30fa   : > { %6820 = vmatprep.mubr.f32.mxu1 %v11174_v1  ;;  %v10152_v5 = vpack.c.bf16 %v8815_v4, %v8813_v3  ;;  %v8834_v4 = vld [vmem:[%s12739_s14 + $0x178] sm:$0xff] }
0x31c4   : > { %v6261_v45 = vpop.f32.mrb[58].mxu1 }
0x31c5   : > { %6598 = vrot.lane.b32.xlu0 %v6261_v45, %s12717_s18  ;;  %v9623_v60 = vpop.f32.mrb[59].mxu1  ;;  %v10154_v45 = vpack.c.bf16 %v8836_v49, %v8835_v18 }
0x31c6   : > { %v8819_v60 = vld [vmem:[%s12739_s14 + $0x100] sm:$0xff] }
0x31c7   : > { %10155 = vmatprep.subr.bf16.mxu0 %v10154_v45 }
0x31c8   : > { %v6427_v7 = vpop.f32.mrb[60].mxu1 }
0x31c9   : > { %6602 = vrot.lane.b32.xlu1 %v6427_v7, %s12715_s22  ;;  %v9633_v19 = vpop.f32.mrb[61].mxu1  ;;  %v8820_v7 = vld [vmem:[%s12739_s14 + $0x108] sm:$0xff] }
0x31ca   : > { %v10156_v19 = vpack.c.bf16 %v8820_v7, %v8819_v60 }
0x31cc   : > { %v6593_v21 = vpop.f32.mrb[62].mxu1 }
0x31cd   : > { %6606 = vrot.lane.b32.xlu0 %v6593_v21, %s12718_s26  ;;  %v9643_v22 = vpop.f32.mrb[63].mxu1  ;;  %v8837_v21 = vld [vmem:[%s12739_s14 + $0x190] sm:$0xff] }
0x31ce   : > { %v8838_v22 = vld [vmem:[%s12739_s14 + $0x198] sm:$0xff] }
0x3237   : > { %v6599_v23 = vpop.permute.xlu0 %6598 }
0x3238   : > { %v6609_v11 = vsel %vm1812_vm2, %v12237_v32, %v6599_v23  ;;  %v10158_v23 = vpack.c.bf16 %v8838_v22, %v8837_v21 }
0x323b   : > { %v6603_v24 = vpop.permute.xlu1 %6602 }
0x323c   : > { %v6610_v25 = vsel %vm2485_vm4, %v6609_v11, %v6603_v24  ;;  %v8821_v24 = vld [vmem:[%s12739_s14 + $0x110] sm:$0xff]  ;;  %v8822_v11 = vld [vmem:[%s12739_s14 + $0x118] sm:$0xff] }
0x323f   : > { %v6607_v27 = vpop.permute.xlu0 %6606 }
0x3240   : > { %v6611_v28 = vsel %vm2487_vm5, %v6610_v25, %v6607_v27  ;;  %v10160_v25 = vpack.c.bf16 %v8822_v11, %v8821_v24  ;;  %v8839_v27 = vld [vmem:[%s12739_s14 + $0x1a0] sm:$0xff] }
0x3241   : > { %9661 = vmatmul.mubr.msk.f32.vlgmr.msra.gmra.mrb[38].mxu0 %vm1592_vm1, %v6611_v28  ;;  %v8840_v28 = vld [vmem:[%s12739_s14 + $0x1a8] sm:$0xff] }
0x3242   : > { %10157 = vmatpush3.bf16.msra.mxu0 %v10156_v19 }
0x3243   : > { %10159 = vmatprep.subr.bf16.mxu0 %v10158_v23 }
0x3246   : > { %10161 = vmatpush3.bf16.msra.mxu0 %v10160_v25 }
0x3314   : > { %v6687_v61 = vpop.f32.mrb[38].mxu0 }
0x3315   : > { %v6688_v30 = vadd.f32 %v8795_v29, %v6687_v61  ;;  %v9662_v31 = vpop.f32.mrb[39].mxu0  ;;  %v10162_v29 = vpack.c.bf16 %v8840_v28, %v8839_v27  ;;  %v8823_v61 = vld [vmem:[%s12739_s14 + $0x120] sm:$0xff] }
0x3317   : > { %v12272_v34 = vadd.f32 %v6688_v30, %v12184_v15  ;;  %v8804_v15 = vld [vmem:[%s12736_s10 + $0x98] sm:$0xff]  ;;  %v8824_v30 = vld [vmem:[%s12739_s14 + $0x128] sm:$0xff]  ;;  %10163 = vmatprep.subr.bf16.mxu0 %v10162_v29 }
0x3318   : > { %v10138_v40 = vpack.c.bf16 %v8804_v15, %v8802_v39  ;;  %v10164_v31 = vpack.c.bf16 %v8824_v30, %v8823_v61  ;;  %v8843_v39 = vld [vmem:[%s12739_s14 + $0x1c0] sm:$0xff]  ;;  %v8844_v15 = vld [vmem:[%s12739_s14 + $0x1c8] sm:$0xff] }
0x3319   : > { %v6696_v32 = vsel %vm1592_vm1, %v12272_v34, 0.0  ;;  %v10170_v43 = vpack.c.bf16 %v8844_v15, %v8843_v39 }
0x331a   : > { %6697 = vadd.xlane.f32.xlu1 %v6696_v32  ;;  %10139 = vmatprep.subr.bf16.mxu1 %v10138_v40  ;;  %v8841_v32 = vld [vmem:[%s12739_s14 + $0x1b0] sm:$0xff]  ;;  %v8827_v40 = vld [vmem:[%s12739_s14 + $0x140] sm:$0xff] }
0x331b   : > { %10141 = vmatpush1.bf16.msra.mxu1 %v10140_v46  ;;  %10165 = vmatpush3.bf16.msra.mxu0 %v10164_v31  ;;  %v8845_v46 = vld [vmem:[%s12739_s14 + $0x1d0] sm:$0xff]  ;;  %v10172_v48 = vpack.c.bf16 %v8828_v44, %v8827_v40  ;;  %v8852_v31 = vld [vmem:[%s12741_s19 + $0x1] ss:$0 sm:$0xff] }
0x331c   : > { %10143 = vmatprep.subr.bf16.mxu1 %v10142_v50  ;;  %v10174_v50 = vpack.c.bf16 %v8846_v47, %v8845_v46  ;;  %v6990_v44 = vld [vmem:[#allocation11 + $0x108] sm:$0xff]  ;;  %v6992_v46 = vld [vmem:[#allocation11 + $0x118] sm:$0xff] }
0x331d   : > { %v10186_v47 = vpack.c.bf16 %v6992_v46, %v6990_v44 }
0x331f   : > { %10145 = vmatpush1.bf16.msra.mxu1 %v10144_v53  ;;  %v8847_v53 = vld [vmem:[%s12739_s14 + $0x1e0] sm:$0xff] }
0x3320   : > { %10147 = vmatprep.subr.bf16.mxu1 %v10146_v56  ;;  %v10178_v56 = vpack.c.bf16 %v8848_v20, %v8847_v53  ;;  %v6993_v20 = vld [vmem:[#allocation11 + $0x120] sm:$0xff] }
0x3323   : > { %10149 = vmatpush1.bf16.msra.mxu1 %v10148_v58  ;;  %v8849_v58 = vld [vmem:[%s12739_s14 + $0x1f0] sm:$0xff] }
0x3324   : > { %10151 = vmatprep.subr.bf16.mxu1 %v10150_v55  ;;  %v10182_v3 = vpack.c.bf16 %v8850_v59, %v8849_v58  ;;  %v8833_v55 = vld [vmem:[%s12739_s14 + $0x170] sm:$0xff]  ;;  %v10194_v58 = vpack.c.bf16 %v7000_v57, %v6998_v41  ;;  %v6997_v59 = vld [vmem:[#allocation11 + $0x140] sm:$0xff] }
0x3327   : > { %10153 = vmatpush1.bf16.msra.mxu1 %v10152_v5  ;;  %v10184_v5 = vpack.c.bf16 %v8834_v4, %v8833_v55  ;;  %v7002_v55 = vld [vmem:[#allocation11 + $0x168] sm:$0xff]  ;;  %v7004_v4 = vld [vmem:[#allocation11 + $0x178] sm:$0xff] }
0x3328   : > { %10187 = vmatprep.subr.bf16.mxu1 %v10186_v47 }
0x33a7   : > { %v6698_v33 = vpop.xlane.xlu1 %6697 }
0x33a8   : > { %v6699_v35 = vmul.f32 0.015625, %v6698_v33  ;;  %v8842_v33 = vld [vmem:[%s12739_s14 + $0x1b8] sm:$0xff] }
0x33aa   : > { %v6700_v36 = vsub.f32 %v12272_v34, %v6699_v35  ;;  %v10166_v35 = vpack.c.bf16 %v8842_v33, %v8841_v32 }
0x33ac   : > { %v6701_v37 = vmul.f32 %v6700_v36, %v6700_v36  ;;  %10167 = vmatprep.subr.bf16.mxu0 %v10166_v35 }
0x33ae   : > { %v6702_v38 = vsel %vm1592_vm1, %v6701_v37, 0.0  ;;  %v8826_v37 = vld [vmem:[%s12739_s14 + $0x138] sm:$0xff] }
0x33af   : > { %6703 = vadd.xlane.f32.xlu0 %v6702_v38 }
0x343c   : > { %v6704_v8 = vpop.xlane.xlu0 %6703 }
0x343d   : > { %v6705_v9 = vmul.f32 0.015625, %v6704_v8  ;;  %v8817_v8 = vld [vmem:[%s12740_s17 + $0x2] sm:$0x3] }
0x343f   : > { %v6706_v6 = vadd.f32 1e-05, %v6705_v9  ;;  %v6746_v9 = vrot.slane %v8817_v8, %v11735_v62 }
0x3441   : > { %10619 = vrsqrt.f32 %v6706_v6  ;;  %v6750_v6 = vrot.slane %v8817_v8, %v11739_v2  ;;  %v10198_v8 = vpack.c.bf16 %v7004_v4, %v7002_v55 }
0x344b   : > { %v10620_v10 = vpop.eup %10619 }
0x344c   : > { %v6708_v13 = vmul.f32 %v10620_v10, %v6700_v36  ;;  %v8825_v36 = vld [vmem:[%s12739_s14 + $0x130] sm:$0xff] }
0x344d   : > { %v10168_v38 = vpack.c.bf16 %v8826_v37, %v8825_v36 }
0x344e   : > { %v6715_v16 = vmul.f32 %v8799_v12, %v6708_v13 }
0x344f   : > { %10169 = vmatpush3.bf16.msra.mxu0 %v10168_v38 }
0x3450   : > { %v6722_v17 = vadd.f32 %v8800_v14, %v6715_v16  ;;  %10171 = vmatprep.subr.bf16.mxu0 %v10170_v43 }
0x3452   : > { %8818 = vmatmul.mubr.msk.f32.vlgmr.msra.gmra.mrb[64].mxu1 %vm1592_vm1, %v6722_v17 }
0x3453   : > { %7096 = vmatprep.mubr.f32.mxu1 %v11174_v1  ;;  %10173 = vmatpush3.bf16.msra.mxu0 %v10172_v48  ;;  %v6989_v48 = vld [vmem:[#allocation11 + $0x100] sm:$0xff] }
0x3454   : > { %10175 = vmatprep.subr.bf16.mxu0 %v10174_v50  ;;  %v6991_v50 = vld [vmem:[#allocation11 + $0x110] sm:$0xff] }
0x3455   : > { %v10188_v51 = vpack.c.bf16 %v6991_v50, %v6989_v48 }
0x3457   : > { %10177 = vmatpush3.bf16.msra.mxu0 %v10176_v54  ;;  %10189 = vmatpush1.bf16.msra.mxu1 %v10188_v51  ;;  %v6995_v54 = vld [vmem:[#allocation11 + $0x130] sm:$0xff] }
0x3458   : > { %10179 = vmatprep.subr.bf16.mxu0 %v10178_v56  ;;  %v10192_v56 = vpack.c.bf16 %v6995_v54, %v6993_v20 }
0x345b   : > { %10181 = vmatpush3.bf16.msra.mxu0 %v10180_v63  ;;  %v6999_v63 = vld [vmem:[#allocation11 + $0x150] sm:$0xff] }
0x345c   : > { %10183 = vmatprep.subr.bf16.mxu0 %v10182_v3  ;;  %v10196_v3 = vpack.c.bf16 %v6999_v63, %v6997_v59 }
0x345f   : > { %10185 = vmatpush3.bf16.msra.mxu0 %v10184_v5  ;;  %v7001_v5 = vld [vmem:[#allocation11 + $0x160] sm:$0xff] }
0x3460   : > { %9683 = vmatprep.subr.mxu0 %v11174_v1 }
0x3525   : > { %v6822_v10 = vpop.f32.mrb[64].mxu1 }
0x3526   : > { %v6823_v12 = vadd.f32 %v6822_v10, %v6746_v9  ;;  %v6824_v13 = vpop.f32.mrb[65].mxu1  ;;  %v7003_v9 = vld [vmem:[#allocation11 + $0x170] sm:$0xff] }
0x3527   : > { %v6825_v14 = vadd.f32 %v6824_v13, %v6750_v6  ;;  %v10200_v6 = vpack.c.bf16 %v7003_v9, %v7001_v5 }
0x3528   : > { %v6827_v16 = vmul.f32 %v6823_v12, %v6823_v12 }
0x3529   : > { %v6828_v17 = vmul.f32 %v6825_v14, %v6825_v14 }
0x352a   : > { %v6829_v18 = vmul.f32 %v6827_v16, %v6823_v12  ;;  %v8855_v16 = vld [vmem:[%s12731_s5 + $0x2] ss:$0 sm:$0xff] }
0x352b   : > { %v6830_v49 = vmul.f32 %v6828_v17, %v6825_v14 }
0x352c   : > { %v6831_v45 = vmul.f32 0.044715, %v6829_v18  ;;  %v8856_v18 = vld [vmem:[%s12732_s3 + $0x2] ss:$0 sm:$0xff] }
0x352d   : > { %v6832_v60 = vmul.f32 0.044715, %v6830_v49 }
0x352e   : > { %v6833_v7 = vadd.f32 %v6831_v45, %v6823_v12 }
0x352f   : > { %v6834_v19 = vadd.f32 %v6832_v60, %v6825_v14  ;;  %v8857_v60 = vld [vmem:[%s12733_s1 + $0x4] sm:$0x3] }
0x3530   : > { %v6835_v21 = vmul.f32 0.7978846, %v6833_v7  ;;  %v7022_v7 = vrot.slane %v8857_v60, %v11735_v62 }
0x3531   : > { %v6836_v22 = vmul.f32 0.7978846, %v6834_v19 }
0x3532   : > { %10621 = vtanh.f32 %v6835_v21 }
0x3533   : > { %10623 = vtanh.f32 %v6836_v22 }
0x353c   : > { %v10622_v23 = vpop.eup %10621 }
0x353d   : > { %v10624_v24 = vpop.eup %10623  ;;  %v6839_v11 = vadd.f32 1.0, %v10622_v23  ;;  %v7026_v23 = vrot.slane %v8857_v60, %v11739_v2 }
0x353e   : > { %v6840_v25 = vadd.f32 1.0, %v10624_v24 }
0x353f   : > { %v6841_v27 = vmul.f32 0.5, %v6839_v11 }
0x3540   : > { %v6842_v28 = vmul.f32 0.5, %v6840_v25 }
0x3541   : > { %v6843_v61 = vmul.f32 %v6841_v27, %v6823_v12 }
0x3542   : > { %v6844_v29 = vmul.f32 %v6842_v28, %v6825_v14 }
0x3544   : > { %6950 = vmatprep.mubr.f32.mxu0 %v6844_v29 }
0x3545   : > { %6951 = vmatmul.mubr.f32.vlgmr.msra.gmra.mrb[40].mxu0 %v6843_v61 }
0x3546   : > { %9685 = vmatprep.mubr.msk.f32.mxu0 %vm11173_vm0, %v11174_v1 }
0x3618   : > { %v9278_v30 = vpop.f32.mrb[40].mxu0 }
0x3619   : > { %v9279_v32 = vpop.f32.mrb[41].mxu0 }
0x361a   : > { %v9280_v33 = vadd.f32 %v9279_v32, %v9278_v30 }
0x361c   : > { %v6953_v35 = vadd.f32 %v9280_v33, %v8852_v31 }
0x361e   : > { %v12338_v36 = vadd.f32 %v6953_v35, %v12272_v34  ;;  %v6994_v34 = vld [vmem:[#allocation11 + $0x128] sm:$0xff] }
0x361f   : > { %v10190_v53 = vpack.c.bf16 %v6996_v52, %v6994_v34 }
0x3620   : > { %v6961_v37 = vsel %vm1592_vm1, %v12338_v36, 0.0 }
0x3621   : > { %6962 = vadd.xlane.f32.xlu0 %v6961_v37  ;;  %10191 = vmatprep.subr.bf16.mxu1 %v10190_v53 }
0x3622   : > { %10193 = vmatpush1.bf16.msra.mxu1 %v10192_v56 }
0x3623   : > { %10195 = vmatprep.subr.bf16.mxu1 %v10194_v58 }
0x3626   : > { %10197 = vmatpush1.bf16.msra.mxu1 %v10196_v3 }
0x3627   : > { %10199 = vmatprep.subr.bf16.mxu1 %v10198_v8 }
0x362a   : > { %10201 = vmatpush1.bf16.msra.mxu1 %v10200_v6 }
0x362b   : > { %9663 = vmatprep.subr.mxu1 %v11174_v1 }
0x36ae   : > { %v6963_v38 = vpop.xlane.xlu0 %6962 }
0x36af   : > { %v6964_v39 = vmul.f32 0.015625, %v6963_v38 }
0x36b1   : > { %v6965_v15 = vsub.f32 %v12338_v36, %v6964_v39 }
0x36b3   : > { %v6966_v40 = vmul.f32 %v6965_v15, %v6965_v15 }
0x36b5   : > { %v6967_v43 = vsel %vm1592_vm1, %v6966_v40, 0.0 }
0x36b6   : > { %6968 = vadd.xlane.f32.xlu1 %v6967_v43 }
0x3743   : > { %v6969_v10 = vpop.xlane.xlu1 %6968 }
0x3744   : > { %v6970_v12 = vmul.f32 0.015625, %v6969_v10 }
0x3746   : > { %v6971_v13 = vadd.f32 1e-05, %v6970_v12 }
0x3748   : > { %10625 = vrsqrt.f32 %v6971_v13 }
0x3752   : > { %v10626_v14 = vpop.eup %10625 }
0x3753   : > { %v6973_v17 = vmul.f32 %v10626_v14, %v6965_v15 }
0x3755   : > { %v6980_v49 = vmul.f32 %v8855_v16, %v6973_v17 }
0x3757   : > { %v6987_v45 = vadd.f32 %v8856_v18, %v6980_v49 }
0x3759   : > { %8859 = vmatmul.mubr.msk.f32.vlgmr.msra.gmra.mrb[66].mxu1 %vm1592_vm1, %v6987_v45 }
0x375a   : > { %9665 = vmatprep.mubr.msk.f32.mxu1 %vm11173_vm0, %v11174_v1 }
0x382c   : > { %v7098_v19 = vpop.f32.mrb[66].mxu1 }
0x382d   : > { %v7099_v21 = vadd.f32 %v7098_v19, %v7022_v7  ;;  %v7100_v22 = vpop.f32.mrb[67].mxu1 }
0x382e   : > { %v12359_v11 = vadd.f32 %v7100_v22, %v7026_v23 }
0x382f   : > { %7104 = vrot.lane.b32.xlu0 %v7099_v21, %s12734_s4  ;;  %s12745_s4 = sld [smem:[#allocation38_spill]] }
0x3833   : > { %7265 = vrot.lane.b32.xlu0 %v7099_v21, %s12720_s2 }
0x3837   : > { %7434 = vrot.lane.b32.xlu0 %v7099_v21, %s12715_s22 }
0x383b   : > { %7600 = vrot.lane.b32.xlu0 %v7099_v21, %s12717_s18 }
0x38a1   : > { %v7105_v24 = vpop.permute.xlu0 %7104 }
0x38a2   : > { %9664 = vmatpush3.xpose.msk.msra.mxu1 %vm1812_vm2, %v7105_v24 }
0x38a3   : > { %9668 = vmatprep.subr.mxu1 %v11174_v1 }
0x38a5   : > { %9666 = vmatmul.mubr.msk.f32.vlgmr.msra.gmra.mrb[68].mxu1 %vm1812_vm2, %v7099_v21  ;;  %v7266_v25 = vpop.permute.xlu0 %7265 }
0x38a6   : > { %9669 = vmatpush3.msra.mxu1 %v12359_v11  ;;  %9670 = vmatprep.mubr.msk.f32.mxu1 %vm11173_vm0, %v11174_v1 }
0x38a7   : > { %9673 = vmatprep.subr.mxu1 %v11174_v1 }
0x38a9   : > { %v7435_v27 = vpop.permute.xlu0 %7434 }
0x38aa   : > { %9684 = vmatpush3.xpose.msk.msra.mxu0 %vm1812_vm2, %v7435_v27 }
0x38ab   : > { %9693 = vmatprep.subr.mxu0 %v11174_v1 }
0x38ad   : > { %v7601_v40 = vpop.permute.xlu0 %7600 }
0x3978   : > { %v7176_v28 = vpop.f32.mrb[68].mxu1 }
0x3979   : > { %v7180_v29 = vmul.f32 0.25, %v7176_v28  ;;  %v9667_v61 = vpop.f32.mrb[69].mxu1  ;;  %v7008_v28 = vld [vmem:[#allocation10 + $0x80] sm:$0xff] }
0x397a   : > { %v7010_v61 = vld [vmem:[#allocation10 + $0x90] sm:$0xff] }
0x397b   : > { %v7181_v30 = vsel %vm1888_vm3, %v7180_v29, -inf }
0x397c   : > { %7182 = vmax.xlane.f32.xlu1 %v7181_v30 }
0x398d   : > { %7267 = vrot.lane.b32.xlu1 %v7099_v21, %s12718_s26 }
0x3a09   : > { %v7183_v31 = vpop.xlane.xlu1 %7182 }
0x3a0a   : > { %v7184_v32 = vsub.f32 %v7180_v29, %v7183_v31  ;;  %v7009_v29 = vld [vmem:[#allocation10 + $0x88] sm:$0xff]  ;;  %v7011_v31 = vld [vmem:[#allocation10 + $0x98] sm:$0xff] }
0x3a0b   : > { %v10203_v30 = vpack.c.bf16 %v7009_v29, %v7008_v28  ;;  %v8892_v28 = vld [vmem:[%s12736_s10 + $0x170] sm:$0xff] }
0x3a0c   : > { %v7185_v33 = vmul.f32 1.442695, %v7184_v32  ;;  %v10206_v32 = vpack.c.bf16 %v7011_v31, %v7010_v61 }
0x3a0d   : > { %v7268_v38 = vpop.permute.xlu1 %7267 }
0x3a0e   : > { %10627 = vpow2.f32 %v7185_v33  ;;  %v7012_v33 = vld [vmem:[#allocation10 + $0xa0] sm:$0xff] }
0x3a18   : > { %v10628_v35 = vpop.eup %10627 }
0x3a19   : > { %v7187_v37 = vsel %vm1888_vm3, %v10628_v35, 0.0 }
0x3a1a   : > { %7188 = vadd.xlane.f32.xlu1 %v7187_v37 }
0x3a2b   : > { %7432 = vrot.lane.b32.xlu1 %v7099_v21, %s12716_s15 }
0x3a2f   : > { %7598 = vrot.lane.b32.xlu1 %v7099_v21, %s12719_s8 }
0x3aa7   : > { %v7189_v39 = vpop.xlane.xlu1 %7188 }
0x3aa8   : > { %10629 = vrcp.f32 %v7189_v39  ;;  %v7015_v39 = vld [vmem:[#allocation10 + $0xb8] sm:$0xff] }
0x3aab   : > { %v7433_v15 = vpop.permute.xlu1 %7432 }
0x3aac   : > { %9686 = vmatmul.mubr.msk.f32.vlgmr.msra.gmra.mrb[42].mxu0 %vm1812_vm2, %v7433_v15 }
0x3aad   : > { %9694 = vmatpush3.xpose.msk.msra.mxu0 %vm1812_vm2, %v7601_v40  ;;  %9695 = vmatprep.mubr.msk.f32.mxu0 %vm11173_vm0, %v11174_v1 }
0x3aae   : > { %10202 = vmatprep.subr.bf16.mxu0 %v11172_v0 }
0x3aaf   : > { %v7599_v43 = vpop.permute.xlu1 %7598 }
0x3ab0   : > { %9696 = vmatmul.mubr.msk.f32.vlgmr.msra.gmra.mrb[44].mxu0 %vm1812_vm2, %v7599_v43 }
0x3ab1   : > { %9719 = vmatprep.mubr.msk.f32.mxu0 %vm11173_vm0, %v11174_v1  ;;  %10204 = vmatpush3.bf16.msra.mxu0 %v10203_v30 }
0x3ab2   : > { %v10630_v44 = vpop.eup %10629  ;;  %10205 = vmatprep.subr.bf16.mxu0 %v11172_v0 }
0x3ab3   : > { %v7191_v46 = vmul.f32 %v10630_v44, %v10628_v35  ;;  %v7013_v35 = vld [vmem:[#allocation10 + $0xa8] sm:$0xff] }
0x3ab4   : > { %v10209_v37 = vpack.c.bf16 %v7013_v35, %v7012_v33 }
0x3ab5   : > { %9671 = vmatmul.mubr.msk.f32.vlgmr.msra.gmra.mrb[70].mxu1 %vm1888_vm3, %v7191_v46  ;;  %10207 = vmatpush3.bf16.msra.mxu0 %v10206_v32 }
0x3ab6   : > { %9674 = vmatpush3.xpose.msk.msra.mxu1 %vm1812_vm2, %v7268_v38  ;;  %9675 = vmatprep.mubr.msk.f32.mxu1 %vm11173_vm0, %v11174_v1  ;;  %v7014_v38 = vld [vmem:[#allocation10 + $0xb0] sm:$0xff] }
0x3ab7   : > { %9678 = vmatprep.subr.mxu1 %v11174_v1  ;;  %10208 = vmatprep.subr.bf16.mxu0 %v11172_v0  ;;  %v10212_v15 = vpack.c.bf16 %v7015_v39, %v7014_v38 }
0x3ab9   : > { %9676 = vmatmul.mubr.msk.f32.vlgmr.msra.gmra.mrb[72].mxu1 %vm1812_vm2, %v7266_v25  ;;  %10210 = vmatpush3.bf16.msra.mxu0 %v10209_v37 }
0x3aba   : > { %9680 = vmatprep.mubr.msk.f32.mxu1 %vm11173_vm0, %v11174_v1  ;;  %10211 = vmatprep.subr.bf16.mxu0 %v11172_v0 }
0x3abd   : > { %10213 = vmatpush3.bf16.msra.mxu0 %v10212_v15 }
0x3b7f   : > { %v7506_v47 = vpop.f32.mrb[42].mxu0 }
0x3b80   : > { %v7510_v48 = vmul.f32 0.25, %v7506_v47  ;;  %v9687_v50 = vpop.f32.mrb[43].mxu0 }
0x3b82   : > { %v7511_v51 = vsel %vm1888_vm3, %v7510_v48, -inf }
0x3b83   : > { %7512 = vmax.xlane.f32.xlu1 %v7511_v51  ;;  %v7672_v34 = vpop.f32.mrb[44].mxu0 }
0x3b84   : > { %v9697_v52 = vpop.f32.mrb[45].mxu0  ;;  %v7676_v57 = vmul.f32 0.25, %v7672_v34 }
0x3b86   : > { %v7677_v59 = vsel %vm1888_vm3, %v7676_v57, -inf }
0x3b88   : > { %v12390_v53 = vpop.f32.mrb[70].mxu1 }
0x3b89   : > { %v9672_v20 = vpop.f32.mrb[71].mxu1 }
0x3b8c   : > { %v7339_v54 = vpop.f32.mrb[72].mxu1 }
0x3b8d   : > { %v7343_v56 = vmul.f32 0.25, %v7339_v54  ;;  %v9677_v41 = vpop.f32.mrb[73].mxu1 }
0x3b8f   : > { %v7344_v58 = vsel %vm1888_vm3, %v7343_v56, -inf }
0x3b90   : > { %7345 = vmax.xlane.f32.xlu0 %v7344_v58 }
0x3b94   : > { %7678 = vmax.xlane.f32.xlu0 %v7677_v59 }
0x3c10   : > { %v7513_v63 = vpop.xlane.xlu1 %7512 }
0x3c11   : > { %v7514_v3 = vsub.f32 %v7510_v48, %v7513_v63 }
0x3c13   : > { %v7515_v55 = vmul.f32 1.442695, %v7514_v3 }
0x3c15   : > { %10631 = vpow2.f32 %v7515_v55  ;;  %v4534_v55 = vsub.f32 %v12027_v42, %v11993_v26  ;;  %v8878_v26 = vld [vmem:[%s12736_s10 + $0x100] sm:$0xff]  ;;  %v8880_v42 = vld [vmem:[%s12736_s10 + $0x110] sm:$0xff] }
0x3c1d   : > { %v7346_v4 = vpop.xlane.xlu0 %7345 }
0x3c1e   : > { %v7347_v8 = vsub.f32 %v7343_v56, %v7346_v4  ;;  %v8872_v56 = vld [vmem:[%s12735_s9 + $0x2] ss:$0 sm:$0xff] }
0x3c1f   : > { %v10632_v5 = vpop.eup %10631 }
0x3c20   : > { %v7517_v9 = vsel %vm1888_vm3, %v10632_v5, 0.0  ;;  %v7348_v12 = vmul.f32 1.442695, %v7347_v8  ;;  %v4535_v8 = vmul.f32 %v4534_v55, %v4534_v55  ;;  %v8916_v55 = vld [vmem:[%s12739_s14 + $0x2a0] sm:$0xff] }
0x3c21   : > { %7518 = vadd.xlane.f32.xlu1 %v7517_v9  ;;  %v7679_v6 = vpop.xlane.xlu0 %7678 }
0x3c22   : > { %v7680_v10 = vsub.f32 %v7676_v57, %v7679_v6  ;;  %v4536_v9 = vsel %vm2485_vm4, %v4535_v8, 0.0  ;;  %v8879_v6 = vld [vmem:[%s12736_s10 + $0x108] sm:$0xff]  ;;  %v8900_v8 = vld [vmem:[%s12739_s14 + $0x220] sm:$0xff] }
0x3c24   : > { %v7681_v13 = vmul.f32 1.442695, %v7680_v10  ;;  %v8881_v10 = vld [vmem:[%s12736_s10 + $0x118] sm:$0xff] }
0x3c26   : > { %10633 = vpow2.f32 %v7681_v13  ;;  %v10216_v13 = vpack.c.bf16 %v8880_v42, %v8878_v26  ;;  %v8902_v26 = vld [vmem:[%s12739_s14 + $0x230] sm:$0xff]  ;;  %v8903_v42 = vld [vmem:[%s12739_s14 + $0x238] sm:$0xff] }
0x3c27   : > { %10635 = vpow2.f32 %v7348_v12  ;;  %v10214_v12 = vpack.c.bf16 %v8881_v10, %v8879_v6  ;;  %v8918_v6 = vld [vmem:[%s12739_s14 + $0x2b0] sm:$0xff]  ;;  %v8919_v10 = vld [vmem:[%s12739_s14 + $0x2b8] sm:$0xff] }
0x3c30   : > { %v10634_v14 = vpop.eup %10633 }
0x3c31   : > { %v7683_v16 = vsel %vm1888_vm3, %v10634_v14, 0.0  ;;  %v10636_v17 = vpop.eup %10635 }
0x3c32   : > { %7356 = vrot.lane.b32.xlu1 %v12359_v11, %s12720_s2  ;;  %7684 = vadd.xlane.f32.xlu0 %v7683_v16  ;;  %v7350_v18 = vsel %vm1888_vm3, %v10636_v17, 0.0  ;;  %v8885_v16 = vld [vmem:[%s12736_s10 + $0x138] sm:$0xff]  ;;  %s1572_s2 = scalar_lea.vmem %s11417_s25, %s11708_s11  ;;  %s12742_s11 = sld [smem:[#allocation50_spill]] }
0x3c36   : > { %7688 = vrot.lane.b32.xlu1 %v12359_v11, %s12719_s8  ;;  %7351 = vadd.xlane.f32.xlu0 %v7350_v18  ;;  %v8882_v18 = vld [vmem:[%s12736_s10 + $0x120] sm:$0xff] }
0x3c4c   : > { %7522 = vrot.lane.b32.xlu0 %v12359_v11, %s12716_s15 }
0x3cae   : > { %v7519_v49 = vpop.xlane.xlu1 %7518 }
0x3cb2   : > { %v7357_v45 = vpop.permute.xlu1 %7356 }
0x3cb3   : > { %9679 = vmatpush3.msra.mxu1 %v7357_v45 }
0x3cb4   : > { %9688 = vmatprep.subr.mxu1 %v11174_v1 }
0x3cb6   : > { %v7689_v25 = vpop.permute.xlu1 %7688 }
0x3cbf   : > { %v7685_v60 = vpop.xlane.xlu0 %7684 }
0x3cc3   : > { %v7352_v7 = vpop.xlane.xlu0 %7351 }
0x3cc4   : > { %10637 = vrcp.f32 %v7352_v7  ;;  %v8889_v7 = vld [vmem:[%s12736_s10 + $0x158] sm:$0xff] }
0x3cc5   : > { %10639 = vrcp.f32 %v7519_v49  ;;  %v8884_v49 = vld [vmem:[%s12736_s10 + $0x130] sm:$0xff] }
0x3cc6   : > { %10641 = vrcp.f32 %v7685_v60  ;;  %v10220_v45 = vpack.c.bf16 %v8884_v49, %v8882_v18  ;;  %v8887_v60 = vld [vmem:[%s12736_s10 + $0x148] sm:$0xff] }
0x3cc7   : > { %v7523_v23 = vpop.permute.xlu0 %7522  ;;  %v8905_v49 = vld [vmem:[%s12739_s14 + $0x248] sm:$0xff] }
0x3cce   : > { %v10638_v19 = vpop.eup %10637 }
0x3ccf   : > { %v7354_v21 = vmul.f32 %v10638_v19, %v10636_v17  ;;  %v10640_v22 = vpop.eup %10639  ;;  %v10222_v19 = vpack.c.bf16 %v8889_v7, %v8887_v60  ;;  %v8923_v60 = vld [vmem:[%s12739_s14 + $0x2d8] sm:$0xff] }
0x3cd0   : > { %v7521_v24 = vmul.f32 %v10640_v22, %v10632_v5  ;;  %v10642_v11 = vpop.eup %10641  ;;  %v8888_v22 = vld [vmem:[%s12736_s10 + $0x150] sm:$0xff] }
0x3cd1   : > { %9681 = vmatmul.mubr.msk.f32.vlgmr.msra.gmra.mrb[74].mxu1 %vm1888_vm3, %v7354_v21  ;;  %v7687_v27 = vmul.f32 %v10642_v11, %v10634_v14  ;;  %v8883_v14 = vld [vmem:[%s12736_s10 + $0x128] sm:$0xff]  ;;  %v8886_v21 = vld [vmem:[%s12736_s10 + $0x140] sm:$0xff]  ;;  %v8893_v11 = vld [vmem:[%s12736_s10 + $0x178] sm:$0xff] }
0x3cd2   : > { %9689 = vmatpush3.msra.mxu1 %v7523_v23  ;;  %9690 = vmatprep.mubr.msk.f32.mxu1 %vm11173_vm0, %v11174_v1  ;;  %v10218_v17 = vpack.c.bf16 %v8885_v16, %v8883_v14  ;;  %v10224_v23 = vpack.c.bf16 %v8888_v22, %v8886_v21  ;;  %v8920_v14 = vld [vmem:[%s12739_s14 + $0x2c0] sm:$0xff]  ;;  %v8921_v16 = vld [vmem:[%s12739_s14 + $0x2c8] sm:$0xff]  ;;  %v8906_v21 = vld [vmem:[%s12739_s14 + $0x250] sm:$0xff] }
0x3cd3   : > { %9698 = vmatprep.subr.mxu1 %v11174_v1  ;;  %v10246_v18 = vpack.c.bf16 %v8921_v16, %v8920_v14  ;;  %v8907_v22 = vld [vmem:[%s12739_s14 + $0x258] sm:$0xff]  ;;  %v8153_v14 = vld [vmem:[#allocation2] sm:$0xff]  ;;  %v8154_v16 = vld [vmem:[#allocation2 + $0x8] sm:$0xff] }
0x3cd5   : > { %9691 = vmatmul.mubr.msk.f32.vlgmr.msra.gmra.mrb[76].mxu1 %vm1888_vm3, %v7521_v24  ;;  %v8891_v24 = vld [vmem:[%s12736_s10 + $0x168] sm:$0xff] }
0x3cd6   : > { %9699 = vmatpush3.msra.mxu1 %v7689_v25  ;;  %9700 = vmatprep.mubr.msk.f32.mxu1 %vm11173_vm0, %v11174_v1  ;;  %v10226_v25 = vpack.c.bf16 %v8893_v11, %v8891_v24  ;;  %v8925_v24 = vld [vmem:[%s12739_s14 + $0x2e8] sm:$0xff]  ;;  %v10252_v11 = vpack.c.bf16 %v8907_v22, %v8906_v21  ;;  %v8160_v21 = vld [vmem:[#allocation2 + $0x38] sm:$0xff] }
0x3cd7   : > { %10215 = vmatprep.subr.bf16.mxu1 %v10214_v12  ;;  %v10242_v12 = vpack.c.bf16 %v8919_v10, %v8918_v6 }
0x3cd9   : > { %9701 = vmatmul.mubr.msk.f32.vlgmr.msra.gmra.mrb[78].mxu1 %vm1888_vm3, %v7687_v27  ;;  %v8890_v27 = vld [vmem:[%s12736_s10 + $0x160] sm:$0xff] }
0x3cda   : > { %7987 = vmatprep.mubr.f32.mxu1 %v11174_v1  ;;  %10217 = vmatpush1.bf16.msra.mxu1 %v10216_v13  ;;  %v10228_v29 = vpack.c.bf16 %v8892_v28, %v8890_v27  ;;  %v10244_v13 = vpack.c.bf16 %v8903_v42, %v8902_v26  ;;  %v8908_v27 = vld [vmem:[%s12739_s14 + $0x260] sm:$0xff]  ;;  %v8909_v28 = vld [vmem:[%s12739_s14 + $0x268] sm:$0xff] }
0x3cdb   : > { %10219 = vmatprep.subr.bf16.mxu1 %v10218_v17  ;;  %v8904_v17 = vld [vmem:[%s12739_s14 + $0x240] sm:$0xff] }
0x3cdc   : > { %v10248_v7 = vpack.c.bf16 %v8905_v49, %v8904_v17  ;;  %v10263_v17 = vpack.c.bf16 %v8154_v16, %v8153_v14  ;;  %v8156_v49 = vld [vmem:[#allocation2 + $0x18] sm:$0xff] }
0x3cde   : > { %10221 = vmatpush1.bf16.msra.mxu1 %v10220_v45  ;;  %v8922_v45 = vld [vmem:[%s12739_s14 + $0x2d0] sm:$0xff] }
0x3cdf   : > { %10223 = vmatprep.subr.bf16.mxu1 %v10222_v19  ;;  %v10250_v19 = vpack.c.bf16 %v8923_v60, %v8922_v45  ;;  %v8158_v60 = vld [vmem:[#allocation2 + $0x28] sm:$0xff] }
0x3ce2   : > { %10225 = vmatpush1.bf16.msra.mxu1 %v10224_v23  ;;  %v8924_v23 = vld [vmem:[%s12739_s14 + $0x2e0] sm:$0xff] }
0x3ce3   : > { %10227 = vmatprep.subr.bf16.mxu1 %v10226_v25  ;;  %v10254_v25 = vpack.c.bf16 %v8925_v24, %v8924_v23 }
0x3ce6   : > { %10229 = vmatpush1.bf16.msra.mxu1 %v10228_v29  ;;  %v8926_v29 = vld [vmem:[%s12739_s14 + $0x2f0] sm:$0xff] }
0x3ce7   : > { %10262 = vmatprep.subr.bf16.mxu1 %v11172_v0 }
0x3da4   : > { %v7428_v40 = vpop.f32.mrb[74].mxu1 }
0x3da5   : > { %7765 = vrot.lane.b32.xlu1 %v7428_v40, %s12717_s18  ;;  %v9682_v43 = vpop.f32.mrb[75].mxu1  ;;  %s12744_s18 = sld [smem:[#allocation37_spill]] }
0x3da6   : > { %v8876_v43 = vld [vmem:[%s12737_s12 + $0x2] ss:$0 sm:$0xff] }
0x3da8   : > { %v7594_v44 = vpop.f32.mrb[76].mxu1 }
0x3da9   : > { %7769 = vrot.lane.b32.xlu0 %v7594_v44, %s12715_s22  ;;  %v9692_v46 = vpop.f32.mrb[77].mxu1  ;;  %s1553_s22 = sand.u32 1, %s11099_s16  }
0x3daa   : > { %v8877_v46 = vld [vmem:[%s12738_s13 + $0x2] ss:$0 sm:$0xff]  ;;  %s8656_s15 = sshll.u32 %s1553_s22, 3 }
0x3dac   : > { %v7760_v47 = vpop.f32.mrb[78].mxu1 }
0x3dad   : > { %7773 = vrot.lane.b32.xlu1 %v7760_v47, %s12718_s26  ;;  %v9702_v48 = vpop.f32.mrb[79].mxu1  ;;  %s12743_s26 = sld [smem:[#allocation49_spill]] }
0x3e17   : > { %v7766_v50 = vpop.permute.xlu1 %7765 }
0x3e18   : > { %v7776_v34 = vsel %vm1812_vm2, %v12390_v53, %v7766_v50  ;;  %vm4547_vm2 = vcmask 0  }
0x3e1b   : > { %v7770_v51 = vpop.permute.xlu0 %7769 }
0x3e1c   : > { %v7777_v52 = vsel %vm2485_vm4, %v7776_v34, %v7770_v51  ;;  %v8912_v51 = vld [vmem:[%s12739_s14 + $0x280] sm:$0xff]  ;;  %v8913_v34 = vld [vmem:[%s12739_s14 + $0x288] sm:$0xff] }
0x3e1f   : > { %v7774_v20 = vpop.permute.xlu1 %7773 }
0x3e20   : > { %v7778_v54 = vsel %vm2487_vm5, %v7777_v52, %v7774_v20  ;;  %v10230_v52 = vpack.c.bf16 %v8913_v34, %v8912_v51  ;;  %v8896_v20 = vld [vmem:[%s12739_s14 + $0x200] sm:$0xff] }
0x3e21   : > { %9720 = vmatmul.mubr.msk.f32.vlgmr.msra.gmra.mrb[46].mxu0 %vm1592_vm1, %v7778_v54  ;;  %v8897_v54 = vld [vmem:[%s12739_s14 + $0x208] sm:$0xff] }
0x3e22   : > { %10231 = vmatprep.subr.bf16.mxu0 %v10230_v52 }
0x3ef4   : > { %v7854_v41 = vpop.f32.mrb[46].mxu0 }
0x3ef5   : > { %v7855_v57 = vadd.f32 %v8872_v56, %v7854_v41  ;;  %v9721_v58 = vpop.f32.mrb[47].mxu0  ;;  %v10232_v56 = vpack.c.bf16 %v8897_v54, %v8896_v20  ;;  %v8914_v41 = vld [vmem:[%s12739_s14 + $0x290] sm:$0xff] }
0x3ef7   : > { %v12426_v59 = vadd.f32 %v7855_v57, %v12338_v36  ;;  %10233 = vmatpush3.bf16.msra.mxu0 %v10232_v56  ;;  %v8915_v57 = vld [vmem:[%s12739_s14 + $0x298] sm:$0xff] }
0x3ef8   : > { %v10234_v58 = vpack.c.bf16 %v8915_v57, %v8914_v41 }
0x3ef9   : > { %v7863_v53 = vsel %vm1592_vm1, %v12426_v59, 0.0 }
0x3efa   : > { %7864 = vadd.xlane.f32.xlu0 %v7863_v53  ;;  %v8898_v53 = vld [vmem:[%s12739_s14 + $0x210] sm:$0xff]  ;;  %10235 = vmatprep.subr.bf16.mxu0 %v10234_v58 }
0x3f87   : > { %v7865_v63 = vpop.xlane.xlu0 %7864 }
0x3f88   : > { %v7866_v3 = vmul.f32 0.015625, %v7865_v63  ;;  %v8899_v63 = vld [vmem:[%s12739_s14 + $0x218] sm:$0xff] }
0x3f8a   : > { %v7867_v4 = vsub.f32 %v12426_v59, %v7866_v3  ;;  %v10236_v3 = vpack.c.bf16 %v8899_v63, %v8898_v53 }
0x3f8c   : > { %v7868_v5 = vmul.f32 %v7867_v4, %v7867_v4  ;;  %10237 = vmatpush3.bf16.msra.mxu0 %v10236_v3 }
0x3f8e   : > { %v7869_v36 = vsel %vm1592_vm1, %v7868_v5, 0.0 }
0x3f8f   : > { %7870 = vadd.xlane.f32.xlu1 %v7869_v36  ;;  %v8901_v36 = vld [vmem:[%s12739_s14 + $0x228] sm:$0xff] }
0x3f93   : > { %4537 = vadd.xlane.f32.xlu1 %v4536_v9  ;;  %v10240_v9 = vpack.c.bf16 %v8901_v36, %v8900_v8 }
0x401c   : > { %v7871_v61 = vpop.xlane.xlu1 %7870 }
0x401d   : > { %v7872_v30 = vmul.f32 0.015625, %v7871_v61  ;;  %v8927_v61 = vld [vmem:[%s12739_s14 + $0x2f8] sm:$0xff] }
0x401f   : > { %v7873_v31 = vadd.f32 1e-05, %v7872_v30  ;;  %v10256_v30 = vpack.c.bf16 %v8909_v28, %v8908_v27  ;;  %v8930_v27 = vld [vmem:[%s12742_s11] ss:$0 sm:$0xff] }
0x4020   : > { %v4538_v32 = vpop.xlane.xlu1 %4537 }
0x4021   : > { %10643 = vrsqrt.f32 %v7873_v31  ;;  %v4539_v33 = vrot.slane %v4538_v32, 4  ;;  %v10258_v31 = vpack.c.bf16 %v8927_v61, %v8926_v29  ;;  %v8242_v29 = vld [vmem:[#allocation5] sm:$0xff]  ;;  %v8243_v61 = vld [vmem:[#allocation5 + $0x8] sm:$0xff] }
0x4023   : > { %v4540_v35 = vadd.f32 %v4539_v33, %v4538_v32  ;;  %v8910_v32 = vld [vmem:[%s12739_s14 + $0x270] sm:$0xff]  ;;  %v8911_v33 = vld [vmem:[%s12739_s14 + $0x278] sm:$0xff] }
0x4025   : > { %v4541_v37 = vrot.slane %v4540_v35, 2 }
0x4027   : > { %v4542_v38 = vadd.f32 %v4541_v37, %v4540_v35  ;;  %v10260_v35 = vpack.c.bf16 %v8911_v33, %v8910_v32  ;;  %v8894_v37 = vld [vmem:[%s12740_s17 + $0x4] sm:$0x3]  ;;  %v10275_v32 = vpack.c.bf16 %v8243_v61, %v8242_v29 }
0x4029   : > { %v4543_v39 = vrot.slane %v4542_v38, 1 }
0x402b   : > { %v10644_v15 = vpop.eup %10643  ;;  %v4544_v40 = vadd.f32 %v4543_v39, %v4542_v38  ;;  %v7913_v38 = vrot.slane %v8894_v37, %v11735_v62  ;;  %v7917_v39 = vrot.slane %v8894_v37, %v11739_v2  ;;  %v8245_v37 = vld [vmem:[#allocation5 + $0x18] sm:$0xff] }
0x402c   : > { %v7875_v44 = vmul.f32 %v10644_v15, %v7867_v4  ;;  %v8917_v4 = vld [vmem:[%s12739_s14 + $0x2a8] sm:$0xff] }
0x402d   : > { %10288 = vpush %v4544_v40  ;;  %v10238_v5 = vpack.c.bf16 %v8917_v4, %v8916_v55  ;;  %v8929_v4 = vld [vmem:[%s12741_s19 + $0x2] ss:$0 sm:$0xff] }
0x402e   : > { %v7882_v47 = vmul.f32 %v8876_v43, %v7875_v44 }
0x402f   : > { %10239 = vmatprep.subr.bf16.mxu0 %v10238_v5 }
0x4030   : > { %v7889_v48 = vadd.f32 %v8877_v46, %v7882_v47  ;;  %10241 = vmatpush3.bf16.msra.mxu0 %v10240_v9 }
0x4031   : > { %10243 = vmatprep.subr.bf16.mxu0 %v10242_v12 }
0x4032   : > { %8895 = vmatmul.mubr.msk.f32.vlgmr.msra.gmra.mrb[80].mxu1 %vm1592_vm1, %v7889_v48 }
0x4033   : > { %9738 = vmatprep.mubr.msk.f32.mxu1 %vm11173_vm0, %v11174_v1  ;;  %10264 = vmatpush3.bf16.msra.mxu1 %v10263_v17 }
0x4034   : > { %10245 = vmatpush3.bf16.msra.mxu0 %v10244_v13  ;;  %10265 = vmatprep.subr.bf16.mxu1 %v11172_v0 }
0x4035   : > { %10247 = vmatprep.subr.bf16.mxu0 %v10246_v18  ;;  %v8155_v18 = vld [vmem:[#allocation2 + $0x10] sm:$0xff] }
0x4036   : > { %v10266_v45 = vpack.c.bf16 %v8156_v49, %v8155_v18 }
0x4038   : > { %10249 = vmatpush3.bf16.msra.mxu0 %v10248_v7  ;;  %10267 = vmatpush3.bf16.msra.mxu1 %v10266_v45 }
0x4039   : > { %10251 = vmatprep.subr.bf16.mxu0 %v10250_v19  ;;  %10268 = vmatprep.subr.bf16.mxu1 %v11172_v0  ;;  %v8159_v19 = vld [vmem:[#allocation2 + $0x30] sm:$0xff] }
0x403a   : > { %v10272_v22 = vpack.c.bf16 %v8160_v21, %v8159_v19 }
0x403c   : > { %10253 = vmatpush3.bf16.msra.mxu0 %v10252_v11 }
0x403d   : > { %10255 = vmatprep.subr.bf16.mxu0 %v10254_v25 }
0x4040   : > { %10257 = vmatpush3.bf16.msra.mxu0 %v10256_v30  ;;  %v8931_v30 = vld [vmem:[%s12743_s26] ss:$0 sm:$0xff] }
0x4041   : > { %10259 = vmatprep.subr.bf16.mxu0 %v10258_v31 }
0x4044   : > { %10261 = vmatpush3.bf16.msra.mxu0 %v10260_v35  ;;  %v8244_v35 = vld [vmem:[#allocation5 + $0x10] sm:$0xff] }
0x405e   : > { %s10289_s8 = spop %10288 }
0x405f   : > { %v4546_v50 = vstv %s10289_s8  ;;  %s1555_s8 = scalar_lea.vmem [#allocation23], %s8656_s15 }
0x4060   : > { %4548 = vst.msk [vmem:[%s1572_s2] sm:$0x1] %vm4547_vm2, %v4546_v50  ;;  %s8937_s2 = sshll.u32 %s11445_s0, 7  ;;  %s8351_s11 = sshll.u32 %s1555_s8, 4  ;;  %s12518_s11 = int_to_ptr.vmem [resolvable:$true] %s8351_s11 }
0x4061   : > { %s12516_s26 = scalar_lea.hbm %s11412_s6, %s8937_s2  ;;  %s11017_s1 = scalar_lea.vmem %s12518_s11, 128 }
0x4062   : > { %p11018_p0 = scmp.ne.s32.totalorder %s12518_s11, %s11017_s1  ;;  %s11183_s0 = smov [#allocation23]  }
0x4064   : > { %p11019_p9 = pnand %p11018_p0, %p12746_p5 }
0x4066   : > { %p11020_p10 = pneg %p11019_p9 }
0x4105   : > { %v7989_v15 = vpop.f32.mrb[80].mxu1 }
0x4106   : > { %v7990_v40 = vadd.f32 %v7989_v15, %v7913_v38  ;;  %v7991_v43 = vpop.f32.mrb[81].mxu1  ;;  %v10278_v38 = vpack.c.bf16 %v8245_v37, %v8244_v35  ;;  %v8247_v15 = vld [vmem:[#allocation5 + $0x28] sm:$0xff] }
0x4107   : > { %v7992_v44 = vadd.f32 %v7991_v43, %v7917_v39  ;;  %v8246_v39 = vld [vmem:[#allocation5 + $0x20] sm:$0xff]  ;;  %v8248_v43 = vld [vmem:[#allocation5 + $0x30] sm:$0xff] }
0x4108   : > { %v7994_v46 = vmul.f32 %v7990_v40, %v7990_v40 }
0x4109   : > { %v7995_v47 = vmul.f32 %v7992_v44, %v7992_v44 }
0x410a   : > { %v7996_v48 = vmul.f32 %v7994_v46, %v7990_v40 }
0x410b   : > { %v7997_v50 = vmul.f32 %v7995_v47, %v7992_v44 }
0x410c   : > { %v7998_v51 = vmul.f32 0.044715, %v7996_v48 }
0x410d   : > { %v7999_v34 = vmul.f32 0.044715, %v7997_v50 }
0x410e   : > { %v8000_v52 = vadd.f32 %v7998_v51, %v7990_v40 }
0x410f   : > { %v8001_v20 = vadd.f32 %v7999_v34, %v7992_v44  ;;  %v8934_v34 = vld [vmem:[%s12745_s4] ss:$0 sm:$0xff]  ;;  %s11021_s4 = sshll.u32 %s11183_s0, 4  ;;  %s11022_s4 = int_to_ptr.vmem [resolvable:$false] %s11021_s4 }
0x4110   : > { %v8002_v54 = vmul.f32 0.7978846, %v8000_v52  ;;  %s11023_s15 = scalar_lea.vmem %s11022_s4, 256  ;;  %p11024_p12 = scmp.lt.s32.totalorder %s12518_s11, %s11022_s4 }
0x4111   : > { %v8003_v56 = vmul.f32 0.7978846, %v8001_v20  ;;  %p11025_p1 = scmp.lt.s32.totalorder %s11023_s15, %s11017_s1 }
0x4112   : > { %10645 = vtanh.f32 %v8002_v54 }
0x4113   : > { %10647 = vtanh.f32 %v8003_v56  ;;  %p11026_p2 = por %p11025_p1, %p11024_p12 }
0x4115   : > { %p11027_p3 = pnand %p11026_p2, %p11020_p10 }
0x411c   : > { %v10646_v62 = vpop.eup %10645 }
0x411d   : > { %v10648_v41 = vpop.eup %10647  ;;  %v8006_v2 = vadd.f32 1.0, %v10646_v62 }
0x411e   : > { %v8007_v57 = vadd.f32 1.0, %v10648_v41 }
0x411f   : > { %v8008_v58 = vmul.f32 0.5, %v8006_v2 }
0x4120   : > { %v8009_v53 = vmul.f32 0.5, %v8007_v57 }
0x4121   : > { %v8010_v3 = vmul.f32 %v8008_v58, %v7990_v40  ;;  %v10281_v40 = vpack.c.bf16 %v8247_v15, %v8246_v39 }
0x4122   : > { %v8011_v63 = vmul.f32 %v8009_v53, %v7992_v44  ;;  %v8249_v44 = vld [vmem:[#allocation5 + $0x38] sm:$0xff] }
0x4123   : > { %v10284_v46 = vpack.c.bf16 %v8249_v44, %v8248_v43 }
0x4124   : > { %8117 = vmatprep.mubr.f32.mxu0 %v8011_v63 }
0x4125   : > { %8118 = vmatmul.mubr.f32.vlgmr.msra.gmra.mrb[48].mxu0 %v8010_v3 }
0x41f8   : > { %v9338_v55 = vpop.f32.mrb[48].mxu0 }
0x41f9   : > { %v9339_v5 = vpop.f32.mrb[49].mxu0 }
0x41fa   : > { %v9340_v8 = vadd.f32 %v9339_v5, %v9338_v55 }
0x41fc   : > { %v8120_v36 = vadd.f32 %v9340_v8, %v8929_v4 }
0x41fe   : > { %v8123_v9 = vadd.f32 %v8120_v36, %v12426_v59  ;;  %v8157_v59 = vld [vmem:[#allocation2 + $0x20] sm:$0xff] }
0x41ff   : > { %v10269_v7 = vpack.c.bf16 %v8158_v60, %v8157_v59 }
0x4200   : > { %v8126_v6 = vsel %vm1592_vm1, %v8123_v9, 0.0 }
0x4201   : > { %8127 = vadd.xlane.f32.xlu0 %v8126_v6  ;;  %10270 = vmatpush3.bf16.msra.mxu1 %v10269_v7 }
0x4202   : > { %10271 = vmatprep.subr.bf16.mxu1 %v11172_v0 }
0x4205   : > { %10273 = vmatpush3.bf16.msra.mxu1 %v10272_v22 }
0x4206   : > { %10274 = vmatprep.subr.bf16.mxu1 %v11172_v0 }
0x428e   : > { %v8128_v10 = vpop.xlane.xlu0 %8127 }
0x428f   : > { %v8129_v12 = vmul.f32 0.015625, %v8128_v10 }
0x4291   : > { %v8130_v26 = vsub.f32 %v8123_v9, %v8129_v12 }
0x4293   : > { %v8131_v42 = vmul.f32 %v8130_v26, %v8130_v26 }
0x4295   : > { %v8132_v13 = vsel %vm1592_vm1, %v8131_v42, 0.0 }
0x4296   : > { %8133 = vadd.xlane.f32.xlu0 %v8132_v13 }
0x4323   : > { %v8134_v23 = vpop.xlane.xlu0 %8133 }
0x4324   : > { %v8135_v24 = vmul.f32 0.015625, %v8134_v23 }
0x4326   : > { %v8136_v11 = vadd.f32 1e-05, %v8135_v24 }
0x4328   : > { %10649 = vrsqrt.f32 %v8136_v11 }
0x4332   : > { %v10650_v25 = vpop.eup %10649 }
0x4333   : > { %v8138_v28 = vmul.f32 %v10650_v25, %v8130_v26 }
0x4335   : > { %v8145_v31 = vmul.f32 %v8930_v27, %v8138_v28 }
0x4337   : > { %v8152_v33 = vadd.f32 %v8931_v30, %v8145_v31 }
0x4339   : > { %9739 = vmatmul.mubr.msk.f32.vlgmr.msra.gmra.mrb[82].mxu1 %vm1592_vm1, %v8152_v33 }
0x433a   : > { %10276 = vmatpush3.bf16.msra.mxu1 %v10275_v32  ;;  %9757 = vmatprep.mubr.msk.f32.mxu1 %vm11173_vm0, %v11174_v1  ;;  %v8932_v1 = vld [vmem:[%s12744_s18] ss:$0 sm:$0xff]  ;;  %s8332_s18 = scalar_lea.sflag [#allocation4], %s1553_s22 }
0x433b   : > { %10277 = vmatprep.subr.bf16.mxu1 %v11172_v0 }
0x433e   : > { %10279 = vmatpush3.bf16.msra.mxu1 %v10278_v38 }
0x433f   : > { %10280 = vmatprep.subr.bf16.mxu1 %v11172_v0 }
0x4342   : > { %10282 = vmatpush3.bf16.msra.mxu1 %v10281_v40 }
0x4343   : > { %10283 = vmatprep.subr.bf16.mxu1 %v11172_v0 }
0x4346   : > { %10285 = vmatpush3.bf16.msra.mxu1 %v10284_v46 }
0x440c   : > { %v8237_v47 = vpop.f32.mrb[82].mxu1 }
0x440d   : > { %v8238_v48 = vadd.f32 %v8932_v1, %v8237_v47  ;;  %v9740_v50 = vpop.f32.mrb[83].mxu1 }
0x440f   : > { %10651 = vtanh.f32 %v8238_v48 }
0x4419   : > { %v10652_v51 = vpop.eup %10651 }
0x441a   : > { %9758 = vmatmul.mubr.msk.f32.vlgmr.msra.gmra.mrb[84].mxu1 %vm1592_vm1, %v10652_v51 }
0x44ed   : > { %v8326_v52 = vpop.f32.mrb[84].mxu1 }
0x44ee   : > { %v8327_v20 = vadd.f32 %v8934_v34, %v8326_v52  ;;  %v9759_v0 = vpop.f32.mrb[85].mxu1 }
0x44f0   : > { %8330 = vst.msk [vmem:[%s1555_s8] sm:$0xff] %vm1592_vm1, %v8327_v20 }
0x44f1   : > { %11030 = shalt.err (!%p11027_p3)
}
0x44f2   : > { %s11031_s22 = scalar_lea.hbm %s12516_s26, 128  ;;  %s11035_s2 = scalar_lea.hbm %s11412_s6, 256 }
0x44f3   : > { %p11032_p4 = scmp.ne.s32.totalorder %s12516_s26, %s11031_s22  ;;  %p11036_p11 = scmp.lt.u32.totalorder %s12516_s26, %s11412_s6 }
0x44f4   : > { %p11037_p13 = scmp.lt.u32.totalorder %s11035_s2, %s11031_s22  ;;  %p11039_p0 = scmp.lt.u32.totalorder %s11031_s22, %s12516_s26 }
0x44f5   : > { %p11033_p7 = pnand %p11032_p4, %p12746_p5 }
0x44f6   : > { %p11038_p6 = por %p11037_p13, %p11036_p11 }
0x44f7   : > { %p11034_p8 = pneg %p11033_p7 }
0x44f8   : > { %p11040_p9 = por %p11039_p0, %p11038_p6 }
0x44fa   : > { %p11041_p10 = pnand %p11040_p9, %p11034_p8 }
0x44fc   : > { %11044 = shalt.err (!%p11041_p10)
}
0x44fd   : > { %10342 = dma.vmem_to_hbm [thread:$0]  (%p12746_p5), %s12518_s11, 128, %s12516_s26, %s8332_s18  }
0x44fe PF: > { %s12747_s1 = sld [smem:[#allocation73_spill]]  ;;  %s12748_s8 = sld [smem:[#allocation71_spill]] }
0x44ff   : > { %s12749_s0 = sld [smem:[#allocation76_spill]] }
0x4504   : > { %p10414_p12 = scmp.ge.s32.totalorder %s12747_s1, 2  ;;  %s8369_s4 = sand.u32 1, %s12748_s8  }
0x4505   : > { %p12750_p1 = scmp.ne.s32.totalorder %s12749_s0, 0  ;;  %s8370_s15 = scalar_lea.sflag [#allocation4], %s8369_s4 }
0x4507   : > { %p10385_p2 = pnand %p10414_p12, %p12750_p1 }
0x4509   : > { %11090 = dma.done.wait (!%p10385_p2), %s8370_s15, 128  }
0x450a   : > { %11092 = vsyncadd (!%p10385_p2), %s8370_s15, 4294967168  ;;  %s12751_s22 = sld [smem:[#allocation74_spill]]  ;;  %s12752_s2 = sld [smem:[#allocation72_spill]] }
0x450b   : > { %s12753_s18 = sld [smem:[#allocation75_spill]]  ;;  %s12754_s15 = smov %s11099_s16 }
0x4510   : > { %p111_p3 = scmp.ge.s32.totalorder %s12751_s22, 4   ;;  %s12755_s16 = smov %s12752_s2 }
0x4512   :  { %113 = sbr.rel (!%p111_p3) target bundleno = 102 (0x66), region = 390 }
0x4519   :  { %8387 = vsyncpa [#allocation3], 1 }
0x451a   :  { %8389 = vsyncpa [#allocation3 + $0x1], 1 }
0x451b   :  { %8390 = vsyncpa [#allocation6], 1 }
0x451c   :  { %8391 = vsyncpa [#allocation9], 1 }
0x451d   :  { %8392 = vsyncpa [#allocation12], 1 }
0x451e   :  { %8393 = vsyncpa [#allocation15], 1 }
0x451f   :  { %8394 = vsyncpa [#allocation18], 1 }
0x4520   :  { %8395 = vsyncpa [#allocation21], 1 }
0x4521   :  { %8396 = vsyncpa [#allocation4], 1 }
0x4522   :  { %8398 = vsyncpa [#allocation4 + $0x1], 1 }

</bundles_post_ra>
